<compile_context>
chip_gen: v7x
topology: tpu7x:2x2x1
jax: 0.10.0
libtpu: 0.0.40
codegen_flags: <defaults>
</compile_context>

<pallas_src>
import functools
import math

import jax
import jax.numpy as jnp
from jax.experimental import pallas as pl
from jax.experimental.pallas import tpu as pltpu


# ----------------------------------------------------------------------------
# VMEM-aware tile sizing (v5e/v6e: 128 MiB physical VMEM, v7x: 64 MiB per core).
# ----------------------------------------------------------------------------
def _vmem_capacity_bytes():
    try:
        info = pltpu.get_tpu_info()
        cap = int(getattr(info, "vmem_capacity_bytes", 0))
        if cap > 0:
            return cap
    except Exception:
        pass
    return 64 * 1024 * 1024          # conservative default (v7x per-core VMEM)


_VMEM_CAP = _vmem_capacity_bytes()
_VMEM_LIMIT = int(min(0.7 * _VMEM_CAP, 100 * 1024 * 1024))   # scoped limit for Mosaic
_TILE_BUDGET = int(0.75 * _VMEM_LIMIT)                       # incl. double-buffering + temps


def _round_up(x, m):
    return ((x + m - 1) // m) * m


def _pick_tile(total, per_row_bytes, fixed_bytes, *, align=8, cap=2048):
    """Largest row tile (multiple of `align`, <= cap) fitting the VMEM tile budget.
    Prefers a tile that divides `total` exactly so no pad-then-slice copy is needed."""
    total = int(total)
    if total <= align:
        return total
    per_row_bytes = max(int(per_row_bytes), 1)
    avail = max(_TILE_BUDGET - int(fixed_bytes), align * per_row_bytes)
    t = int(avail // per_row_bytes)
    t = max(min(t, cap, total), align)
    t = (t // align) * align
    if total % align == 0:
        while t > align and total % t != 0:
            t -= align
    return int(t)


def _cparams(n_axes):
    return pltpu.CompilerParams(
        dimension_semantics=("parallel",) * n_axes,
        vmem_limit_bytes=_VMEM_LIMIT)


def _combine_compute_dtype():
    # bf16 VPU ops exist on v6e/v7x; older chips (v5e and earlier) lack them.
    try:
        kind = jax.devices()[0].device_kind.lower()
    except Exception:
        kind = ""
    return jnp.bfloat16 if ("v6" in kind or "v7" in kind) else jnp.float32


_COMBINE_DTYPE = _combine_compute_dtype()


# ----------------------------------------------------------------------------
# Kernel 1: fused kNN.  For each query-row tile, compute the full score row
#   score[i, j] = -||x_i||^2 + 2 x_i.x_j - ||x_j||^2     (f32)
# against the resident full point set (bf16 MXU matmul, f32 norms, hoisted
# column norms), then extract the top-k column indices in-kernel (k iterative
# argmax passes).  Only the (tn, k) int32 index block ever leaves VMEM.
# ----------------------------------------------------------------------------
def _knn_kernel(xr_ref, xf_ref, negsq_ref, idx_ref, *, k, n_cols):
    xr = xr_ref[0]                                            # (tn, Cp) bf16 query rows
    xf = xf_ref[0]                                            # (N,  Cp) bf16 all points
    rr = jnp.sum(jnp.square(xr.astype(jnp.float32)), axis=-1, keepdims=True)   # (tn, 1)
    inner = jax.lax.dot_general(xr, xf, (((1,), (1,)), ((), ())),
                                preferred_element_type=jnp.float32)            # (tn, N)
    scores = 2.0 * inner - rr + negsq_ref[0]                  # (tn, N) f32
    col = jax.lax.broadcasted_iota(jnp.int32, scores.shape, 1)
    neg_inf = jnp.float32(-jnp.inf)
    cols_out = []
    for _ in range(k):                                        # streaming top-k, unrolled
        m = jnp.max(scores, axis=-1, keepdims=True)           # (tn, 1)
        amax = jnp.min(jnp.where(scores == m, col, n_cols),
                       axis=-1, keepdims=True)                # (tn, 1) first argmax
        cols_out.append(amax)
        scores = jnp.where(col == amax, neg_inf, scores)      # knock out the winner
    idx_ref[0] = jnp.concatenate(cols_out, axis=-1)           # (tn, k) int32


def knn_indices(feat_bnc, k):
    """feat_bnc: [B, N, C] -> neighbor indices [B, N, k] (int32), self-loop included."""
    B, N, C = feat_bnc.shape
    xb = feat_bnc.astype(jnp.bfloat16)
    pad_c = (-C) % 16                                          # bf16 sublane packing
    if pad_c:
        xb = jnp.pad(xb, ((0, 0), (0, 0), (0, pad_c)))
    Cp = xb.shape[-1]
    # Hoisted column norms: -||x_j||^2, computed once per batch.
    negsq = (-jnp.sum(jnp.square(xb.astype(jnp.float32)), axis=-1)).reshape(B, 1, N)

    cap = 1024 if _VMEM_CAP > 96 * 1024 * 1024 else 512        # larger row tile on v5e/v6e
    fixed = 2 * (N * Cp * 2) + 2 * (N * 4)                     # resident xf + negsq (2 bufs)
    per_row = 2 * (Cp * 2) + 2 * (k * 4) + 6 * (N * 4)         # xr / idx blocks + f32/i32 temps
    tn = _pick_tile(N, per_row, fixed, align=8, cap=cap)
    Np = _round_up(N, tn)
    xr = xb if Np == N else jnp.pad(xb, ((0, 0), (0, Np - N), (0, 0)))

    idx = pl.pallas_call(
        functools.partial(_knn_kernel, k=k, n_cols=N),
        out_shape=jax.ShapeDtypeStruct((B, Np, k), jnp.int32),
        grid=(B, Np // tn),
        in_specs=[
            pl.BlockSpec((1, tn, Cp), lambda b, i: (b, i, 0)),
            pl.BlockSpec((1, N, Cp), lambda b, i: (b, 0, 0)),
            pl.BlockSpec((1, 1, N), lambda b, i: (b, 0, 0)),
        ],
        out_specs=pl.BlockSpec((1, tn, k), lambda b, i: (b, i, 0)),
        compiler_params=_cparams(2),
    )(xr, xb, negsq)
    return idx if Np == N else idx[:, :N]


# ----------------------------------------------------------------------------
# Kernel 2: fused pointwise 1x1 conv:  x @ W_folded + b  [-> LeakyReLU(0.2)]
# BN scale is folded into W at wrapper level; bf16 MXU inputs, f32 accumulation.
# ----------------------------------------------------------------------------
def _pointwise_kernel(x_ref, w_ref, b_ref, o_ref, *, apply_act):
    h = jnp.dot(x_ref[...], w_ref[...], preferred_element_type=jnp.float32)
    h = h + b_ref[...]
    if apply_act:
        h = jnp.where(h > 0, h, 0.2 * h)                      # LeakyReLU(0.2)
    o_ref[...] = h.astype(o_ref.dtype)


def pointwise_conv(x, w, b, apply_act=True, out_dtype=jnp.bfloat16):
    """x: [M, Cin] -> [M, Cout].  `w` must already have the BN scale folded in."""
    M, cin = x.shape
    cout = w.shape[1]
    pad_c = (-cin) % 16                                        # bf16 (16,128) weight tiles
    if pad_c:
        x = jnp.pad(x, ((0, 0), (0, pad_c)))
        w = jnp.pad(w, ((0, pad_c), (0, 0)))
        cin += pad_c
    x = x.astype(jnp.bfloat16)
    w = w.astype(jnp.bfloat16)
    b2 = b.reshape(1, cout).astype(jnp.float32)
    osz = jnp.dtype(out_dtype).itemsize
    fixed = 2 * cin * cout * 2 + 2 * cout * 4                  # weights + bias (2 bufs)
    per_row = 2 * cin * 2 + 2 * cout * osz + 2 * cout * 4      # x / out blocks + f32 temp
    tm = _pick_tile(M, per_row, fixed, align=8, cap=2048)
    Mp = _round_up(M, tm)
    if Mp != M:
        x = jnp.pad(x, ((0, Mp - M), (0, 0)))
    out = pl.pallas_call(
        functools.partial(_pointwise_kernel, apply_act=apply_act),
        out_shape=jax.ShapeDtypeStruct((Mp, cout), out_dtype),
        grid=(Mp // tm,),
        in_specs=[
            pl.BlockSpec((tm, cin), lambda i: (i, 0)),
            pl.BlockSpec((cin, cout), lambda i: (0, 0)),
            pl.BlockSpec((1, cout), lambda i: (0, 0)),
        ],
        out_specs=pl.BlockSpec((tm, cout), lambda i: (i, 0)),
        compiler_params=_cparams(1),
    )(x, w, b2)
    return out if Mp == M else out[:M]


# ----------------------------------------------------------------------------
# Kernel 3: fused EdgeConv combine with IN-KERNEL neighbor gather.
# Per batch element: y [N, Cout] stays resident in VMEM; for each of the k
# neighbor columns we gather the neighbor rows, add the center term, apply
# LeakyReLU and keep a running max -> no [P, k, Cout] tensor in HBM and no
# large f32 temporaries.
# ----------------------------------------------------------------------------
def _edge_combine_gather_kernel(y_ref, z_ref, idx_ref, o_ref, *, k, gather_form,
                                compute_dtype):
    y = y_ref[0]                                               # (N, Cout) resident
    z = z_ref[0].astype(compute_dtype)                         # (N, Cout) center term
    idx = idx_ref[0]                                           # (N, k) int32
    n, cout = y.shape
    acc = None
    for j in range(k):
        col = idx[:, j]                                        # (N,)
        if gather_form == "take":
            g = jnp.take(y, col, axis=0, mode="promise_in_bounds")
        else:
            g = jnp.take_along_axis(
                y, jnp.broadcast_to(col[:, None], (n, cout)), axis=0,
                mode="promise_in_bounds")
        h = g.astype(compute_dtype) + z
        h = jnp.where(h > 0, h, 0.2 * h)                       # LeakyReLU(0.2)
        acc = h if acc is None else jnp.maximum(acc, h)        # running max over k
    o_ref[0] = acc.astype(o_ref.dtype)


def _edge_combine_fused(y, z, idx, gather_form, out_dtype=jnp.bfloat16):
    B, N, cout = y.shape
    k = idx.shape[-1]
    return pl.pallas_call(
        functools.partial(_edge_combine_gather_kernel, k=k, gather_form=gather_form,
                          compute_dtype=_COMBINE_DTYPE),
        out_shape=jax.ShapeDtypeStruct((B, N, cout), out_dtype),
        grid=(B,),
        in_specs=[
            pl.BlockSpec((1, N, cout), lambda b: (b, 0, 0)),
            pl.BlockSpec((1, N, cout), lambda b: (b, 0, 0)),
            pl.BlockSpec((1, N, k), lambda b: (b, 0, 0)),
        ],
        out_specs=pl.BlockSpec((1, N, cout), lambda b: (b, 0, 0)),
        compiler_params=_cparams(1),
    )(y, z, idx)


# --- fallback path: XLA gather + tiled combine kernel (always lowers) --------
def _edge_combine_tiled_kernel(yg_ref, z_ref, o_ref, *, compute_dtype):
    yg = yg_ref[...].astype(compute_dtype)                     # (tp, k, Cout)
    z = z_ref[...].astype(compute_dtype)                       # (tp, Cout)
    h = yg + z[:, None, :]
    h = jnp.where(h > 0, h, 0.2 * h)
    o_ref[...] = jnp.max(h, axis=1).astype(o_ref.dtype)


def _edge_combine_tiled(yg, z, out_dtype=jnp.bfloat16):
    P, k, cout = yg.shape
    csz = jnp.dtype(_COMBINE_DTYPE).itemsize
    per_row = (2 * k * cout * yg.dtype.itemsize
               + 2 * cout * z.dtype.itemsize
               + 2 * cout * jnp.dtype(out_dtype).itemsize
               + 3 * k * cout * csz)                           # in-kernel temporaries
    tp = _pick_tile(P, per_row, 0, align=8, cap=2048)
    Pp = _round_up(P, tp)
    if Pp != P:
        yg = jnp.pad(yg, ((0, Pp - P), (0, 0), (0, 0)))
        z = jnp.pad(z, ((0, Pp - P), (0, 0)))
    out = pl.pallas_call(
        functools.partial(_edge_combine_tiled_kernel, compute_dtype=_COMBINE_DTYPE),
        out_shape=jax.ShapeDtypeStruct((Pp, cout), out_dtype),
        grid=(Pp // tp,),
        in_specs=[
            pl.BlockSpec((tp, k, cout), lambda i: (i, 0, 0)),
            pl.BlockSpec((tp, cout), lambda i: (i, 0)),
        ],
        out_specs=pl.BlockSpec((tp, cout), lambda i: (i, 0)),
        compiler_params=_cparams(1),
    )(yg, z)
    return out if Pp == P else out[:P]


# --- eager probe: pick a gather formulation + dtype the Mosaic lowering accepts
def _select_gather_mode():
    try:
        B, N, cout, k = 1, 32, 128, 8
        kk = jax.random.split(jax.random.PRNGKey(7), 3)
        y = jax.random.normal(kk[0], (B, N, cout), jnp.float32)
        z = jax.random.normal(kk[1], (B, N, cout), jnp.float32)
        idx = jax.random.randint(kk[2], (B, N, k), 0, N, dtype=jnp.int32)
        yg = jax.vmap(lambda a, i: a[i])(y, idx)
        h = yg + z[:, :, None, :]
        ref = jnp.max(jnp.where(h > 0, h, 0.2 * h), axis=2)
        for form in ("take", "take_along_axis"):
            for ydt in (jnp.bfloat16, jnp.float32):
                try:
                    out = _edge_combine_fused(y.astype(ydt), z.astype(jnp.bfloat16),
                                              idx, form, out_dtype=jnp.float32)
                    out = jax.block_until_ready(out)
                    if bool(jnp.allclose(out, ref, rtol=5e-2, atol=5e-2)):
                        return (form, ydt)
                except Exception:
                    continue
    except Exception:
        pass
    return None


_GATHER_MODE = _select_gather_mode()


def edge_combine(y, z, idx, out_dtype=jnp.bfloat16):
    """y, z: [B, N, Cout]; idx: [B, N, k] -> [B, N, Cout] = max_k LReLU(y[idx] + z)."""
    B, N, cout = y.shape
    k = idx.shape[-1]
    if _GATHER_MODE is not None:
        form, ydt = _GATHER_MODE
        ysz = jnp.dtype(ydt).itemsize
        est = (2 * N * cout * (ysz + 2 + jnp.dtype(out_dtype).itemsize)
               + 2 * N * k * 4
               + 6 * N * cout * jnp.dtype(_COMBINE_DTYPE).itemsize)
        if est <= _TILE_BUDGET:
            return _edge_combine_fused(y.astype(ydt), z, idx, form, out_dtype=out_dtype)
    # Fallback: XLA gather then tiled combine kernel.
    yg = jax.vmap(lambda yb, ib: yb[ib])(y, idx)               # [B, N, k, Cout]
    out = _edge_combine_tiled(yg.reshape(B * N, k, cout),
                              z.reshape(B * N, cout), out_dtype)
    return out.reshape(B, N, cout)


# ----------------------------------------------------------------------------
# Kernel 4: fused conv7 + conv8 head (x7 never hits HBM; logits lane-padded).
# ----------------------------------------------------------------------------
def _head_kernel(x_ref, w7_ref, b7_ref, w8_ref, b8_ref, o_ref):
    h = jnp.dot(x_ref[...], w7_ref[...], preferred_element_type=jnp.float32)
    h = h + b7_ref[...]
    h = jnp.where(h > 0, h, 0.2 * h)                           # LeakyReLU(0.2)
    o = jnp.dot(h.astype(jnp.bfloat16), w8_ref[...], preferred_element_type=jnp.float32)
    o_ref[...] = (o + b8_ref[...]).astype(o_ref.dtype)


def mlp_head(x6, p7, p8, num_classes):
    """x6: [M, 512] -> logits [M, num_classes] (f32)."""
    M, c6 = x6.shape
    w7 = (p7["w"] * p7["s"]).astype(jnp.bfloat16)              # (512, 256), BN folded
    b7 = p7["b"].reshape(1, -1).astype(jnp.float32)
    c7 = w7.shape[1]
    ncp = _round_up(max(num_classes, 1), 128)                  # lane-dense logits
    w8 = jnp.pad(p8["w"] * p8["s"], ((0, 0), (0, ncp - num_classes))).astype(jnp.bfloat16)
    b8 = jnp.pad(p8["b"], (0, ncp - num_classes)).reshape(1, ncp).astype(jnp.float32)
    x6 = x6.astype(jnp.bfloat16)
    fixed = 2 * (c6 * c7 * 2 + c7 * ncp * 2 + c7 * 4 + ncp * 4)
    per_row = 2 * c6 * 2 + 2 * ncp * 4 + (c7 * 4 + c7 * 2 + ncp * 4)
    tm = _pick_tile(M, per_row, fixed, align=8, cap=2048)
    Mp = _round_up(M, tm)
    if Mp != M:
        x6 = jnp.pad(x6, ((0, Mp - M), (0, 0)))
    out = pl.pallas_call(
        _head_kernel,
        out_shape=jax.ShapeDtypeStruct((Mp, ncp), jnp.float32),
        grid=(Mp // tm,),
        in_specs=[
            pl.BlockSpec((tm, c6), lambda i: (i, 0)),
            pl.BlockSpec((c6, c7), lambda i: (0, 0)),
            pl.BlockSpec((1, c7), lambda i: (0, 0)),
            pl.BlockSpec((c7, ncp), lambda i: (0, 0)),
            pl.BlockSpec((1, ncp), lambda i: (0, 0)),
        ],
        out_specs=pl.BlockSpec((tm, ncp), lambda i: (i, 0)),
        compiler_params=_cparams(1),
    )(x6, w7, b7, w8, b8)
    if Mp != M:
        out = out[:M]
    return out[:, :num_classes]


# ----------------------------------------------------------------------------
# Model glue.
# ----------------------------------------------------------------------------
def edge_conv_layer(feat_bnc, p, k):
    """One EdgeConv via the 1x1-conv linearity decomposition."""
    B, N, C = feat_bnc.shape
    cout = p["w"].shape[1]
    idx = knn_indices(feat_bnc, k)                             # [B, N, k]   (Pallas fused kNN)
    # y = x @ (W_top*s);  z = x @ ((W_bot - W_top)*s) + b  -- one per-point matmul.
    w_top, w_bot = p["w"][:C], p["w"][C:]
    w_eff = jnp.concatenate([w_top * p["s"], (w_bot - w_top) * p["s"]], axis=1)   # [C, 2*Cout]
    b_eff = jnp.concatenate([jnp.zeros_like(p["b"]), p["b"]])
    yz = pointwise_conv(feat_bnc.reshape(B * N, C), w_eff, b_eff,
                        apply_act=False, out_dtype=jnp.bfloat16)                  # (Pallas)
    y = yz[:, :cout].reshape(B, N, cout)
    z = yz[:, cout:].reshape(B, N, cout)
    return edge_combine(y, z, idx)                             # [B, N, Cout]  (Pallas)


def dgcnn_with_color_forward(x, params, k, num_classes):
    """x: [B, 6, N] (xyz + rgb, PyTorch layout).
    Returns (logits [B, N, num_classes], x5 [B, emb_dims, N], None)."""
    if x.shape[1] != 6:
        raise ValueError("DGCNNWithColor expects 6-channel input (xyz + rgb)")
    B, _, N = x.shape
    M = B * N
    xyz = jnp.transpose(x[:, :3, :], (0, 2, 1))                # [B, N, 3]
    rgb = jnp.transpose(x[:, 3:6, :], (0, 2, 1))               # [B, N, 3]

    x1 = edge_conv_layer(xyz, params["conv1"], k)              # [B, N, 64]   (bf16)
    x2 = edge_conv_layer(x1, params["conv2"], k)               # [B, N, 64]
    x3 = edge_conv_layer(x2, params["conv3"], k)               # [B, N, 64]
    x4 = edge_conv_layer(x3, params["conv4"], k)               # [B, N, 128]

    p = params["color"]
    color_feat = pointwise_conv(rgb.reshape(M, 3), p["w"] * p["s"], p["b"]
                                ).reshape(B, N, -1)            # [B, N, 64]

    x_cat = jnp.concatenate([x1, x2, x3, x4, color_feat], axis=-1)   # [B, N, 384]

    p = params["conv5"]
    x5 = pointwise_conv(x_cat.reshape(M, -1), p["w"] * p["s"], p["b"],
                        out_dtype=jnp.float32).reshape(B, N, -1)     # [B, N, emb_dims]

    x_comb = jnp.concatenate([x_cat, x5.astype(jnp.bfloat16)], axis=-1)

    p = params["conv6"]
    x6 = pointwise_conv(x_comb.reshape(M, -1), p["w"] * p["s"], p["b"])   # [M, 512]
    logits = mlp_head(x6, params["conv7"], params["conv8"], num_classes)  # [M, nc] (fused 7+8)

    logits = logits.reshape(B, N, num_classes)                 # == torch logits.transpose(2,1)
    x5_out = jnp.transpose(x5, (0, 2, 1))                      # [B, emb_dims, N]
    return logits, x5_out, None


# ----------------------------------------------------------------------------
# Deterministic parameter initialization (conv weights + folded BN scale/bias).
# ----------------------------------------------------------------------------
def init_params(key, emb_dims, num_classes):
    keys = iter(jax.random.split(key, 64))
    eps = 1e-5

    def conv_bn(cin, cout):
        w = jax.random.normal(next(keys), (cin, cout), jnp.float32) / math.sqrt(cin)
        gamma = 1.0 + 0.1 * jax.random.normal(next(keys), (cout,), jnp.float32)
        beta = 0.1 * jax.random.normal(next(keys), (cout,), jnp.float32)
        rmean = 0.1 * jax.random.normal(next(keys), (cout,), jnp.float32)
        rvar = 1.0 + 0.5 * jax.random.uniform(next(keys), (cout,), jnp.float32)
        s = gamma / jnp.sqrt(rvar + eps)
        b = beta - rmean * s
        return {"w": w, "s": s, "b": b}

    params = {
        "conv1": conv_bn(2 * 3, 64),
        "conv2": conv_bn(2 * 64, 64),
        "conv3": conv_bn(2 * 64, 64),
        "conv4": conv_bn(2 * 64, 128),
        "color": conv_bn(3, 64),
        "conv5": conv_bn(384, emb_dims),
        "conv6": conv_bn(emb_dims + 384, 512),
        "conv7": conv_bn(512, 256),
    }
    w8 = jax.random.normal(next(keys), (256, num_classes), jnp.float32) / math.sqrt(256)
    b8 = 0.1 * jax.random.normal(next(keys), (num_classes,), jnp.float32)
    params["conv8"] = {"w": w8, "s": jnp.ones((num_classes,), jnp.float32), "b": b8}
    return params


if __name__ == "__main__":
    # Small deterministic example: B=2 clouds, 6 channels (xyz+rgb), N=32 points.
    B, N = 2, 32
    K_NEIGHBORS = 8
    EMB_DIMS = 128
    NUM_CLASSES = 13

    key = jax.random.PRNGKey(0)
    k_x, k_p = jax.random.split(key)
    x = jax.random.normal(k_x, (B, 6, N), jnp.float32)
    params = init_params(k_p, EMB_DIMS, NUM_CLASSES)

    fwd = jax.jit(functools.partial(dgcnn_with_color_forward,
                                    k=K_NEIGHBORS, num_classes=NUM_CLASSES))
    logits, x5, trans_feat = fwd(x, params)
    jax.block_until_ready(logits)
    jax.block_until_ready(x5)

    assert logits.shape == (B, N, NUM_CLASSES), logits.shape
    assert x5.shape == (B, EMB_DIMS, N), x5.shape
    assert trans_feat is None
    assert bool(jnp.all(jnp.isfinite(logits)))
    print("KERNEL_OK")
</pallas_src>

<mosaic_0001>
module attributes {stable_mosaic.version = 11 : i64} {
  func.func @_edge_combine_gather_kernel(%arg0: i32, %arg1: memref<1x32x128xbf16, #tpu.memory_space<vmem>>, %arg2: memref<1x32x128xbf16, #tpu.memory_space<vmem>>, %arg3: memref<1x32x8xi32, #tpu.memory_space<vmem>>, %arg4: memref<1x32x128xf32, #tpu.memory_space<vmem>>) attributes {dimension_semantics = [#tpu.dimension_semantics<parallel>], iteration_bounds = array<i64: 1>, scalar_prefetch = 0 : i64, scratch_operands = 0 : i64, tpu.core_type = #tpu.core_type<tc>, window_params = [{transform_indices = @transform_0, window_bounds = array<i64: 1, 32, 128>}, {transform_indices = @transform_1, window_bounds = array<i64: 1, 32, 128>}, {transform_indices = @transform_2, window_bounds = array<i64: 1, 32, 8>}, {transform_indices = @transform_3, window_bounds = array<i64: 1, 32, 128>}]} {
    %c0 = arith.constant 0 : index
    %c0_0 = arith.constant 0 : index
    %c0_1 = arith.constant 0 : index
    %0 = vector.load %arg1[%c0, %c0_0, %c0_1] : memref<1x32x128xbf16, #tpu.memory_space<vmem>>, vector<1x32x128xbf16>
    %1 = vector.shape_cast %0 : vector<1x32x128xbf16> to vector<32x128xbf16>
    %c0_2 = arith.constant 0 : index
    %c0_3 = arith.constant 0 : index
    %c0_4 = arith.constant 0 : index
    %2 = vector.load %arg2[%c0_2, %c0_3, %c0_4] : memref<1x32x128xbf16, #tpu.memory_space<vmem>>, vector<1x32x128xbf16>
    %3 = vector.shape_cast %2 : vector<1x32x128xbf16> to vector<32x128xbf16>
    %4 = arith.extf %3 : vector<32x128xbf16> to vector<32x128xf32>
    %c0_5 = arith.constant 0 : index
    %c0_6 = arith.constant 0 : index
    %c0_7 = arith.constant 0 : index
    %5 = vector.load %arg3[%c0_5, %c0_6, %c0_7] : memref<1x32x8xi32, #tpu.memory_space<vmem>>, vector<1x32x8xi32>
    %6 = vector.shape_cast %5 : vector<1x32x8xi32> to vector<32x8xi32>
    %7 = vector.extract_strided_slice %6 {offsets = [0, 0], sizes = [32, 1], strides = [1, 1]} : vector<32x8xi32> to vector<32x1xi32>
    %8 = vector.shape_cast %7 : vector<32x1xi32> to vector<32xi32>
    %9 = vector.shape_cast %8 : vector<32xi32> to vector<32x1xi32>
    %10 = vector.shape_cast %9 : vector<32x1xi32> to vector<32x1xi32>
    %11 = vector.broadcast %10 : vector<32x1xi32> to vector<32x128xi32>
    %12 = vector.shape_cast %11 : vector<32x128xi32> to vector<32x128x1xi32>
    %13 = vector.shape_cast %12 : vector<32x128x1xi32> to vector<32x128xi32>
    %14 = tpu.dynamic_gather %1[%13] in [0] : vector<32x128xbf16>, vector<32x128xi32> -> vector<32x128xbf16>
    %15 = arith.extf %14 : vector<32x128xbf16> to vector<32x128xf32>
    %16 = arith.addf %15, %4 : vector<32x128xf32>
    %cst = arith.constant 0.000000e+00 : f32
    %17 = vector.broadcast %cst : f32 to vector<32x128xf32>
    %18 = arith.cmpf ogt, %16, %17 : vector<32x128xf32>
    %cst_8 = arith.constant 2.000000e-01 : f32
    %19 = vector.broadcast %cst_8 : f32 to vector<32x128xf32>
    %20 = arith.mulf %19, %16 : vector<32x128xf32>
    %21 = arith.select %18, %16, %20 : vector<32x128xi1>, vector<32x128xf32>
    %22 = vector.extract_strided_slice %6 {offsets = [0, 1], sizes = [32, 1], strides = [1, 1]} : vector<32x8xi32> to vector<32x1xi32>
    %23 = vector.shape_cast %22 : vector<32x1xi32> to vector<32xi32>
    %24 = vector.shape_cast %23 : vector<32xi32> to vector<32x1xi32>
    %25 = vector.shape_cast %24 : vector<32x1xi32> to vector<32x1xi32>
    %26 = vector.broadcast %25 : vector<32x1xi32> to vector<32x128xi32>
    %27 = vector.shape_cast %26 : vector<32x128xi32> to vector<32x128x1xi32>
    %28 = vector.shape_cast %27 : vector<32x128x1xi32> to vector<32x128xi32>
    %29 = tpu.dynamic_gather %1[%28] in [0] : vector<32x128xbf16>, vector<32x128xi32> -> vector<32x128xbf16>
    %30 = arith.extf %29 : vector<32x128xbf16> to vector<32x128xf32>
    %31 = arith.addf %30, %4 : vector<32x128xf32>
    %cst_9 = arith.constant 0.000000e+00 : f32
    %32 = vector.broadcast %cst_9 : f32 to vector<32x128xf32>
    %33 = arith.cmpf ogt, %31, %32 : vector<32x128xf32>
    %cst_10 = arith.constant 2.000000e-01 : f32
    %34 = vector.broadcast %cst_10 : f32 to vector<32x128xf32>
    %35 = arith.mulf %34, %31 : vector<32x128xf32>
    %36 = arith.select %33, %31, %35 : vector<32x128xi1>, vector<32x128xf32>
    %37 = arith.maximumf %21, %36 : vector<32x128xf32>
    %38 = vector.extract_strided_slice %6 {offsets = [0, 2], sizes = [32, 1], strides = [1, 1]} : vector<32x8xi32> to vector<32x1xi32>
    %39 = vector.shape_cast %38 : vector<32x1xi32> to vector<32xi32>
    %40 = vector.shape_cast %39 : vector<32xi32> to vector<32x1xi32>
    %41 = vector.shape_cast %40 : vector<32x1xi32> to vector<32x1xi32>
    %42 = vector.broadcast %41 : vector<32x1xi32> to vector<32x128xi32>
    %43 = vector.shape_cast %42 : vector<32x128xi32> to vector<32x128x1xi32>
    %44 = vector.shape_cast %43 : vector<32x128x1xi32> to vector<32x128xi32>
    %45 = tpu.dynamic_gather %1[%44] in [0] : vector<32x128xbf16>, vector<32x128xi32> -> vector<32x128xbf16>
    %46 = arith.extf %45 : vector<32x128xbf16> to vector<32x128xf32>
    %47 = arith.addf %46, %4 : vector<32x128xf32>
    %cst_11 = arith.constant 0.000000e+00 : f32
    %48 = vector.broadcast %cst_11 : f32 to vector<32x128xf32>
    %49 = arith.cmpf ogt, %47, %48 : vector<32x128xf32>
    %cst_12 = arith.constant 2.000000e-01 : f32
    %50 = vector.broadcast %cst_12 : f32 to vector<32x128xf32>
    %51 = arith.mulf %50, %47 : vector<32x128xf32>
    %52 = arith.select %49, %47, %51 : vector<32x128xi1>, vector<32x128xf32>
    %53 = arith.maximumf %37, %52 : vector<32x128xf32>
    %54 = vector.extract_strided_slice %6 {offsets = [0, 3], sizes = [32, 1], strides = [1, 1]} : vector<32x8xi32> to vector<32x1xi32>
    %55 = vector.shape_cast %54 : vector<32x1xi32> to vector<32xi32>
    %56 = vector.shape_cast %55 : vector<32xi32> to vector<32x1xi32>
    %57 = vector.shape_cast %56 : vector<32x1xi32> to vector<32x1xi32>
    %58 = vector.broadcast %57 : vector<32x1xi32> to vector<32x128xi32>
    %59 = vector.shape_cast %58 : vector<32x128xi32> to vector<32x128x1xi32>
    %60 = vector.shape_cast %59 : vector<32x128x1xi32> to vector<32x128xi32>
    %61 = tpu.dynamic_gather %1[%60] in [0] : vector<32x128xbf16>, vector<32x128xi32> -> vector<32x128xbf16>
    %62 = arith.extf %61 : vector<32x128xbf16> to vector<32x128xf32>
    %63 = arith.addf %62, %4 : vector<32x128xf32>
    %cst_13 = arith.constant 0.000000e+00 : f32
    %64 = vector.broadcast %cst_13 : f32 to vector<32x128xf32>
    %65 = arith.cmpf ogt, %63, %64 : vector<32x128xf32>
    %cst_14 = arith.constant 2.000000e-01 : f32
    %66 = vector.broadcast %cst_14 : f32 to vector<32x128xf32>
    %67 = arith.mulf %66, %63 : vector<32x128xf32>
    %68 = arith.select %65, %63, %67 : vector<32x128xi1>, vector<32x128xf32>
    %69 = arith.maximumf %53, %68 : vector<32x128xf32>
    %70 = vector.extract_strided_slice %6 {offsets = [0, 4], sizes = [32, 1], strides = [1, 1]} : vector<32x8xi32> to vector<32x1xi32>
    %71 = vector.shape_cast %70 : vector<32x1xi32> to vector<32xi32>
    %72 = vector.shape_cast %71 : vector<32xi32> to vector<32x1xi32>
    %73 = vector.shape_cast %72 : vector<32x1xi32> to vector<32x1xi32>
    %74 = vector.broadcast %73 : vector<32x1xi32> to vector<32x128xi32>
    %75 = vector.shape_cast %74 : vector<32x128xi32> to vector<32x128x1xi32>
    %76 = vector.shape_cast %75 : vector<32x128x1xi32> to vector<32x128xi32>
    %77 = tpu.dynamic_gather %1[%76] in [0] : vector<32x128xbf16>, vector<32x128xi32> -> vector<32x128xbf16>
    %78 = arith.extf %77 : vector<32x128xbf16> to vector<32x128xf32>
    %79 = arith.addf %78, %4 : vector<32x128xf32>
    %cst_15 = arith.constant 0.000000e+00 : f32
    %80 = vector.broadcast %cst_15 : f32 to vector<32x128xf32>
    %81 = arith.cmpf ogt, %79, %80 : vector<32x128xf32>
    %cst_16 = arith.constant 2.000000e-01 : f32
    %82 = vector.broadcast %cst_16 : f32 to vector<32x128xf32>
    %83 = arith.mulf %82, %79 : vector<32x128xf32>
    %84 = arith.select %81, %79, %83 : vector<32x128xi1>, vector<32x128xf32>
    %85 = arith.maximumf %69, %84 : vector<32x128xf32>
    %86 = vector.extract_strided_slice %6 {offsets = [0, 5], sizes = [32, 1], strides = [1, 1]} : vector<32x8xi32> to vector<32x1xi32>
    %87 = vector.shape_cast %86 : vector<32x1xi32> to vector<32xi32>
    %88 = vector.shape_cast %87 : vector<32xi32> to vector<32x1xi32>
    %89 = vector.shape_cast %88 : vector<32x1xi32> to vector<32x1xi32>
    %90 = vector.broadcast %89 : vector<32x1xi32> to vector<32x128xi32>
    %91 = vector.shape_cast %90 : vector<32x128xi32> to vector<32x128x1xi32>
    %92 = vector.shape_cast %91 : vector<32x128x1xi32> to vector<32x128xi32>
    %93 = tpu.dynamic_gather %1[%92] in [0] : vector<32x128xbf16>, vector<32x128xi32> -> vector<32x128xbf16>
    %94 = arith.extf %93 : vector<32x128xbf16> to vector<32x128xf32>
    %95 = arith.addf %94, %4 : vector<32x128xf32>
    %cst_17 = arith.constant 0.000000e+00 : f32
    %96 = vector.broadcast %cst_17 : f32 to vector<32x128xf32>
    %97 = arith.cmpf ogt, %95, %96 : vector<32x128xf32>
    %cst_18 = arith.constant 2.000000e-01 : f32
    %98 = vector.broadcast %cst_18 : f32 to vector<32x128xf32>
    %99 = arith.mulf %98, %95 : vector<32x128xf32>
    %100 = arith.select %97, %95, %99 : vector<32x128xi1>, vector<32x128xf32>
    %101 = arith.maximumf %85, %100 : vector<32x128xf32>
    %102 = vector.extract_strided_slice %6 {offsets = [0, 6], sizes = [32, 1], strides = [1, 1]} : vector<32x8xi32> to vector<32x1xi32>
    %103 = vector.shape_cast %102 : vector<32x1xi32> to vector<32xi32>
    %104 = vector.shape_cast %103 : vector<32xi32> to vector<32x1xi32>
    %105 = vector.shape_cast %104 : vector<32x1xi32> to vector<32x1xi32>
    %106 = vector.broadcast %105 : vector<32x1xi32> to vector<32x128xi32>
    %107 = vector.shape_cast %106 : vector<32x128xi32> to vector<32x128x1xi32>
    %108 = vector.shape_cast %107 : vector<32x128x1xi32> to vector<32x128xi32>
    %109 = tpu.dynamic_gather %1[%108] in [0] : vector<32x128xbf16>, vector<32x128xi32> -> vector<32x128xbf16>
    %110 = arith.extf %109 : vector<32x128xbf16> to vector<32x128xf32>
    %111 = arith.addf %110, %4 : vector<32x128xf32>
    %cst_19 = arith.constant 0.000000e+00 : f32
    %112 = vector.broadcast %cst_19 : f32 to vector<32x128xf32>
    %113 = arith.cmpf ogt, %111, %112 : vector<32x128xf32>
    %cst_20 = arith.constant 2.000000e-01 : f32
    %114 = vector.broadcast %cst_20 : f32 to vector<32x128xf32>
    %115 = arith.mulf %114, %111 : vector<32x128xf32>
    %116 = arith.select %113, %111, %115 : vector<32x128xi1>, vector<32x128xf32>
    %117 = arith.maximumf %101, %116 : vector<32x128xf32>
    %118 = vector.extract_strided_slice %6 {offsets = [0, 7], sizes = [32, 1], strides = [1, 1]} : vector<32x8xi32> to vector<32x1xi32>
    %119 = vector.shape_cast %118 : vector<32x1xi32> to vector<32xi32>
    %120 = vector.shape_cast %119 : vector<32xi32> to vector<32x1xi32>
    %121 = vector.shape_cast %120 : vector<32x1xi32> to vector<32x1xi32>
    %122 = vector.broadcast %121 : vector<32x1xi32> to vector<32x128xi32>
    %123 = vector.shape_cast %122 : vector<32x128xi32> to vector<32x128x1xi32>
    %124 = vector.shape_cast %123 : vector<32x128x1xi32> to vector<32x128xi32>
    %125 = tpu.dynamic_gather %1[%124] in [0] : vector<32x128xbf16>, vector<32x128xi32> -> vector<32x128xbf16>
    %126 = arith.extf %125 : vector<32x128xbf16> to vector<32x128xf32>
    %127 = arith.addf %126, %4 : vector<32x128xf32>
    %cst_21 = arith.constant 0.000000e+00 : f32
    %128 = vector.broadcast %cst_21 : f32 to vector<32x128xf32>
    %129 = arith.cmpf ogt, %127, %128 : vector<32x128xf32>
    %cst_22 = arith.constant 2.000000e-01 : f32
    %130 = vector.broadcast %cst_22 : f32 to vector<32x128xf32>
    %131 = arith.mulf %130, %127 : vector<32x128xf32>
    %132 = arith.select %129, %127, %131 : vector<32x128xi1>, vector<32x128xf32>
    %133 = arith.maximumf %117, %132 : vector<32x128xf32>
    %c0_23 = arith.constant 0 : index
    %c0_24 = arith.constant 0 : index
    %c0_25 = arith.constant 0 : index
    %134 = vector.load %arg4[%c0_23, %c0_24, %c0_25] : memref<1x32x128xf32, #tpu.memory_space<vmem>>, vector<1x32x128xf32>
    %135 = vector.shape_cast %134 : vector<1x32x128xf32> to vector<32x128xf32>
    %136 = vector.shape_cast %133 : vector<32x128xf32> to vector<1x32x128xf32>
    tpu.vector_store %arg4[%c0_23, %c0_24, %c0_25], %136 {strides = array<i32>} : memref<1x32x128xf32, #tpu.memory_space<vmem>>, vector<1x32x128xf32>,
    return
  }
  func.func @transform_0(%arg0: i32) -> (i32, i32, i32) {
    %c0_i32 = arith.constant 0 : i32
    %c0_i32_0 = arith.constant 0 : i32
    %c0_i32_1 = arith.constant 0 : i32
    return %arg0, %c0_i32, %c0_i32_0 : i32, i32, i32
  }
  func.func @transform_1(%arg0: i32) -> (i32, i32, i32) {
    %c0_i32 = arith.constant 0 : i32
    %c0_i32_0 = arith.constant 0 : i32
    %c0_i32_1 = arith.constant 0 : i32
    return %arg0, %c0_i32, %c0_i32_0 : i32, i32, i32
  }
  func.func @transform_2(%arg0: i32) -> (i32, i32, i32) {
    %c0_i32 = arith.constant 0 : i32
    %c0_i32_0 = arith.constant 0 : i32
    %c0_i32_1 = arith.constant 0 : i32
    return %arg0, %c0_i32, %c0_i32_0 : i32, i32, i32
  }
  func.func @transform_3(%arg0: i32) -> (i32, i32, i32) {
    %c0_i32 = arith.constant 0 : i32
    %c0_i32_0 = arith.constant 0 : i32
    %c0_i32_1 = arith.constant 0 : i32
    return %arg0, %c0_i32, %c0_i32_0 : i32, i32, i32
  }
}

module attributes {stable_mosaic.version = 11 : i64} {
  func.func @_edge_combine_gather_kernel(%arg0: i32, %arg1: memref<1x32x128xf32, #tpu.memory_space<vmem>>, %arg2: memref<1x32x128xbf16, #tpu.memory_space<vmem>>, %arg3: memref<1x32x8xi32, #tpu.memory_space<vmem>>, %arg4: memref<1x32x128xf32, #tpu.memory_space<vmem>>) attributes {dimension_semantics = [#tpu.dimension_semantics<parallel>], iteration_bounds = array<i64: 1>, scalar_prefetch = 0 : i64, scratch_operands = 0 : i64, tpu.core_type = #tpu.core_type<tc>, window_params = [{transform_indices = @transform_0, window_bounds = array<i64: 1, 32, 128>}, {transform_indices = @transform_1, window_bounds = array<i64: 1, 32, 128>}, {transform_indices = @transform_2, window_bounds = array<i64: 1, 32, 8>}, {transform_indices = @transform_3, window_bounds = array<i64: 1, 32, 128>}]} {
    %c0 = arith.constant 0 : index
    %c0_0 = arith.constant 0 : index
    %c0_1 = arith.constant 0 : index
    %0 = vector.load %arg1[%c0, %c0_0, %c0_1] : memref<1x32x128xf32, #tpu.memory_space<vmem>>, vector<1x32x128xf32>
    %1 = vector.shape_cast %0 : vector<1x32x128xf32> to vector<32x128xf32>
    %c0_2 = arith.constant 0 : index
    %c0_3 = arith.constant 0 : index
    %c0_4 = arith.constant 0 : index
    %2 = vector.load %arg2[%c0_2, %c0_3, %c0_4] : memref<1x32x128xbf16, #tpu.memory_space<vmem>>, vector<1x32x128xbf16>
    %3 = vector.shape_cast %2 : vector<1x32x128xbf16> to vector<32x128xbf16>
    %4 = arith.extf %3 : vector<32x128xbf16> to vector<32x128xf32>
    %c0_5 = arith.constant 0 : index
    %c0_6 = arith.constant 0 : index
    %c0_7 = arith.constant 0 : index
    %5 = vector.load %arg3[%c0_5, %c0_6, %c0_7] : memref<1x32x8xi32, #tpu.memory_space<vmem>>, vector<1x32x8xi32>
    %6 = vector.shape_cast %5 : vector<1x32x8xi32> to vector<32x8xi32>
    %7 = vector.extract_strided_slice %6 {offsets = [0, 0], sizes = [32, 1], strides = [1, 1]} : vector<32x8xi32> to vector<32x1xi32>
    %8 = vector.shape_cast %7 : vector<32x1xi32> to vector<32xi32>
    %9 = vector.shape_cast %8 : vector<32xi32> to vector<32x1xi32>
    %10 = vector.shape_cast %9 : vector<32x1xi32> to vector<32x1xi32>
    %11 = vector.broadcast %10 : vector<32x1xi32> to vector<32x128xi32>
    %12 = vector.shape_cast %11 : vector<32x128xi32> to vector<32x128x1xi32>
    %13 = vector.shape_cast %12 : vector<32x128x1xi32> to vector<32x128xi32>
    %14 = tpu.dynamic_gather %1[%13] in [0] : vector<32x128xf32>, vector<32x128xi32> -> vector<32x128xf32>
    %15 = arith.addf %14, %4 : vector<32x128xf32>
    %cst = arith.constant 0.000000e+00 : f32
    %16 = vector.broadcast %cst : f32 to vector<32x128xf32>
    %17 = arith.cmpf ogt, %15, %16 : vector<32x128xf32>
    %cst_8 = arith.constant 2.000000e-01 : f32
    %18 = vector.broadcast %cst_8 : f32 to vector<32x128xf32>
    %19 = arith.mulf %18, %15 : vector<32x128xf32>
    %20 = arith.select %17, %15, %19 : vector<32x128xi1>, vector<32x128xf32>
    %21 = vector.extract_strided_slice %6 {offsets = [0, 1], sizes = [32, 1], strides = [1, 1]} : vector<32x8xi32> to vector<32x1xi32>
    %22 = vector.shape_cast %21 : vector<32x1xi32> to vector<32xi32>
    %23 = vector.shape_cast %22 : vector<32xi32> to vector<32x1xi32>
    %24 = vector.shape_cast %23 : vector<32x1xi32> to vector<32x1xi32>
    %25 = vector.broadcast %24 : vector<32x1xi32> to vector<32x128xi32>
    %26 = vector.shape_cast %25 : vector<32x128xi32> to vector<32x128x1xi32>
    %27 = vector.shape_cast %26 : vector<32x128x1xi32> to vector<32x128xi32>
    %28 = tpu.dynamic_gather %1[%27] in [0] : vector<32x128xf32>, vector<32x128xi32> -> vector<32x128xf32>
    %29 = arith.addf %28, %4 : vector<32x128xf32>
    %cst_9 = arith.constant 0.000000e+00 : f32
    %30 = vector.broadcast %cst_9 : f32 to vector<32x128xf32>
    %31 = arith.cmpf ogt, %29, %30 : vector<32x128xf32>
    %cst_10 = arith.constant 2.000000e-01 : f32
    %32 = vector.broadcast %cst_10 : f32 to vector<32x128xf32>
    %33 = arith.mulf %32, %29 : vector<32x128xf32>
    %34 = arith.select %31, %29, %33 : vector<32x128xi1>, vector<32x128xf32>
    %35 = arith.maximumf %20, %34 : vector<32x128xf32>
    %36 = vector.extract_strided_slice %6 {offsets = [0, 2], sizes = [32, 1], strides = [1, 1]} : vector<32x8xi32> to vector<32x1xi32>
    %37 = vector.shape_cast %36 : vector<32x1xi32> to vector<32xi32>
    %38 = vector.shape_cast %37 : vector<32xi32> to vector<32x1xi32>
    %39 = vector.shape_cast %38 : vector<32x1xi32> to vector<32x1xi32>
    %40 = vector.broadcast %39 : vector<32x1xi32> to vector<32x128xi32>
    %41 = vector.shape_cast %40 : vector<32x128xi32> to vector<32x128x1xi32>
    %42 = vector.shape_cast %41 : vector<32x128x1xi32> to vector<32x128xi32>
    %43 = tpu.dynamic_gather %1[%42] in [0] : vector<32x128xf32>, vector<32x128xi32> -> vector<32x128xf32>
    %44 = arith.addf %43, %4 : vector<32x128xf32>
    %cst_11 = arith.constant 0.000000e+00 : f32
    %45 = vector.broadcast %cst_11 : f32 to vector<32x128xf32>
    %46 = arith.cmpf ogt, %44, %45 : vector<32x128xf32>
    %cst_12 = arith.constant 2.000000e-01 : f32
    %47 = vector.broadcast %cst_12 : f32 to vector<32x128xf32>
    %48 = arith.mulf %47, %44 : vector<32x128xf32>
    %49 = arith.select %46, %44, %48 : vector<32x128xi1>, vector<32x128xf32>
    %50 = arith.maximumf %35, %49 : vector<32x128xf32>
    %51 = vector.extract_strided_slice %6 {offsets = [0, 3], sizes = [32, 1], strides = [1, 1]} : vector<32x8xi32> to vector<32x1xi32>
    %52 = vector.shape_cast %51 : vector<32x1xi32> to vector<32xi32>
    %53 = vector.shape_cast %52 : vector<32xi32> to vector<32x1xi32>
    %54 = vector.shape_cast %53 : vector<32x1xi32> to vector<32x1xi32>
    %55 = vector.broadcast %54 : vector<32x1xi32> to vector<32x128xi32>
    %56 = vector.shape_cast %55 : vector<32x128xi32> to vector<32x128x1xi32>
    %57 = vector.shape_cast %56 : vector<32x128x1xi32> to vector<32x128xi32>
    %58 = tpu.dynamic_gather %1[%57] in [0] : vector<32x128xf32>, vector<32x128xi32> -> vector<32x128xf32>
    %59 = arith.addf %58, %4 : vector<32x128xf32>
    %cst_13 = arith.constant 0.000000e+00 : f32
    %60 = vector.broadcast %cst_13 : f32 to vector<32x128xf32>
    %61 = arith.cmpf ogt, %59, %60 : vector<32x128xf32>
    %cst_14 = arith.constant 2.000000e-01 : f32
    %62 = vector.broadcast %cst_14 : f32 to vector<32x128xf32>
    %63 = arith.mulf %62, %59 : vector<32x128xf32>
    %64 = arith.select %61, %59, %63 : vector<32x128xi1>, vector<32x128xf32>
    %65 = arith.maximumf %50, %64 : vector<32x128xf32>
    %66 = vector.extract_strided_slice %6 {offsets = [0, 4], sizes = [32, 1], strides = [1, 1]} : vector<32x8xi32> to vector<32x1xi32>
    %67 = vector.shape_cast %66 : vector<32x1xi32> to vector<32xi32>
    %68 = vector.shape_cast %67 : vector<32xi32> to vector<32x1xi32>
    %69 = vector.shape_cast %68 : vector<32x1xi32> to vector<32x1xi32>
    %70 = vector.broadcast %69 : vector<32x1xi32> to vector<32x128xi32>
    %71 = vector.shape_cast %70 : vector<32x128xi32> to vector<32x128x1xi32>
    %72 = vector.shape_cast %71 : vector<32x128x1xi32> to vector<32x128xi32>
    %73 = tpu.dynamic_gather %1[%72] in [0] : vector<32x128xf32>, vector<32x128xi32> -> vector<32x128xf32>
    %74 = arith.addf %73, %4 : vector<32x128xf32>
    %cst_15 = arith.constant 0.000000e+00 : f32
    %75 = vector.broadcast %cst_15 : f32 to vector<32x128xf32>
    %76 = arith.cmpf ogt, %74, %75 : vector<32x128xf32>
    %cst_16 = arith.constant 2.000000e-01 : f32
    %77 = vector.broadcast %cst_16 : f32 to vector<32x128xf32>
    %78 = arith.mulf %77, %74 : vector<32x128xf32>
    %79 = arith.select %76, %74, %78 : vector<32x128xi1>, vector<32x128xf32>
    %80 = arith.maximumf %65, %79 : vector<32x128xf32>
    %81 = vector.extract_strided_slice %6 {offsets = [0, 5], sizes = [32, 1], strides = [1, 1]} : vector<32x8xi32> to vector<32x1xi32>
    %82 = vector.shape_cast %81 : vector<32x1xi32> to vector<32xi32>
    %83 = vector.shape_cast %82 : vector<32xi32> to vector<32x1xi32>
    %84 = vector.shape_cast %83 : vector<32x1xi32> to vector<32x1xi32>
    %85 = vector.broadcast %84 : vector<32x1xi32> to vector<32x128xi32>
    %86 = vector.shape_cast %85 : vector<32x128xi32> to vector<32x128x1xi32>
    %87 = vector.shape_cast %86 : vector<32x128x1xi32> to vector<32x128xi32>
    %88 = tpu.dynamic_gather %1[%87] in [0] : vector<32x128xf32>, vector<32x128xi32> -> vector<32x128xf32>
    %89 = arith.addf %88, %4 : vector<32x128xf32>
    %cst_17 = arith.constant 0.000000e+00 : f32
    %90 = vector.broadcast %cst_17 : f32 to vector<32x128xf32>
    %91 = arith.cmpf ogt, %89, %90 : vector<32x128xf32>
    %cst_18 = arith.constant 2.000000e-01 : f32
    %92 = vector.broadcast %cst_18 : f32 to vector<32x128xf32>
    %93 = arith.mulf %92, %89 : vector<32x128xf32>
    %94 = arith.select %91, %89, %93 : vector<32x128xi1>, vector<32x128xf32>
    %95 = arith.maximumf %80, %94 : vector<32x128xf32>
    %96 = vector.extract_strided_slice %6 {offsets = [0, 6], sizes = [32, 1], strides = [1, 1]} : vector<32x8xi32> to vector<32x1xi32>
    %97 = vector.shape_cast %96 : vector<32x1xi32> to vector<32xi32>
    %98 = vector.shape_cast %97 : vector<32xi32> to vector<32x1xi32>
    %99 = vector.shape_cast %98 : vector<32x1xi32> to vector<32x1xi32>
    %100 = vector.broadcast %99 : vector<32x1xi32> to vector<32x128xi32>
    %101 = vector.shape_cast %100 : vector<32x128xi32> to vector<32x128x1xi32>
    %102 = vector.shape_cast %101 : vector<32x128x1xi32> to vector<32x128xi32>
    %103 = tpu.dynamic_gather %1[%102] in [0] : vector<32x128xf32>, vector<32x128xi32> -> vector<32x128xf32>
    %104 = arith.addf %103, %4 : vector<32x128xf32>
    %cst_19 = arith.constant 0.000000e+00 : f32
    %105 = vector.broadcast %cst_19 : f32 to vector<32x128xf32>
    %106 = arith.cmpf ogt, %104, %105 : vector<32x128xf32>
    %cst_20 = arith.constant 2.000000e-01 : f32
    %107 = vector.broadcast %cst_20 : f32 to vector<32x128xf32>
    %108 = arith.mulf %107, %104 : vector<32x128xf32>
    %109 = arith.select %106, %104, %108 : vector<32x128xi1>, vector<32x128xf32>
    %110 = arith.maximumf %95, %109 : vector<32x128xf32>
    %111 = vector.extract_strided_slice %6 {offsets = [0, 7], sizes = [32, 1], strides = [1, 1]} : vector<32x8xi32> to vector<32x1xi32>
    %112 = vector.shape_cast %111 : vector<32x1xi32> to vector<32xi32>
    %113 = vector.shape_cast %112 : vector<32xi32> to vector<32x1xi32>
    %114 = vector.shape_cast %113 : vector<32x1xi32> to vector<32x1xi32>
    %115 = vector.broadcast %114 : vector<32x1xi32> to vector<32x128xi32>
    %116 = vector.shape_cast %115 : vector<32x128xi32> to vector<32x128x1xi32>
    %117 = vector.shape_cast %116 : vector<32x128x1xi32> to vector<32x128xi32>
    %118 = tpu.dynamic_gather %1[%117] in [0] : vector<32x128xf32>, vector<32x128xi32> -> vector<32x128xf32>
    %119 = arith.addf %118, %4 : vector<32x128xf32>
    %cst_21 = arith.constant 0.000000e+00 : f32
    %120 = vector.broadcast %cst_21 : f32 to vector<32x128xf32>
    %121 = arith.cmpf ogt, %119, %120 : vector<32x128xf32>
    %cst_22 = arith.constant 2.000000e-01 : f32
    %122 = vector.broadcast %cst_22 : f32 to vector<32x128xf32>
    %123 = arith.mulf %122, %119 : vector<32x128xf32>
    %124 = arith.select %121, %119, %123 : vector<32x128xi1>, vector<32x128xf32>
    %125 = arith.maximumf %110, %124 : vector<32x128xf32>
    %c0_23 = arith.constant 0 : index
    %c0_24 = arith.constant 0 : index
    %c0_25 = arith.constant 0 : index
    %126 = vector.load %arg4[%c0_23, %c0_24, %c0_25] : memref<1x32x128xf32, #tpu.memory_space<vmem>>, vector<1x32x128xf32>
    %127 = vector.shape_cast %126 : vector<1x32x128xf32> to vector<32x128xf32>
    %128 = vector.shape_cast %125 : vector<32x128xf32> to vector<1x32x128xf32>
    tpu.vector_store %arg4[%c0_23, %c0_24, %c0_25], %128 {strides = array<i32>} : memref<1x32x128xf32, #tpu.memory_space<vmem>>, vector<1x32x128xf32>,
    return
  }
  func.func @transform_0(%arg0: i32) -> (i32, i32, i32) {
    %c0_i32 = arith.constant 0 : i32
    %c0_i32_0 = arith.constant 0 : i32
    %c0_i32_1 = arith.constant 0 : i32
    return %arg0, %c0_i32, %c0_i32_0 : i32, i32, i32
  }
  func.func @transform_1(%arg0: i32) -> (i32, i32, i32) {
    %c0_i32 = arith.constant 0 : i32
    %c0_i32_0 = arith.constant 0 : i32
    %c0_i32_1 = arith.constant 0 : i32
    return %arg0, %c0_i32, %c0_i32_0 : i32, i32, i32
  }
  func.func @transform_2(%arg0: i32) -> (i32, i32, i32) {
    %c0_i32 = arith.constant 0 : i32
    %c0_i32_0 = arith.constant 0 : i32
    %c0_i32_1 = arith.constant 0 : i32
    return %arg0, %c0_i32, %c0_i32_0 : i32, i32, i32
  }
  func.func @transform_3(%arg0: i32) -> (i32, i32, i32) {
    %c0_i32 = arith.constant 0 : i32
    %c0_i32_0 = arith.constant 0 : i32
    %c0_i32_1 = arith.constant 0 : i32
    return %arg0, %c0_i32, %c0_i32_0 : i32, i32, i32
  }
}

module attributes {stable_mosaic.version = 11 : i64} {
  func.func @_knn_kernel(%arg0: i32, %arg1: i32, %arg2: memref<1x32x16xbf16, #tpu.memory_space<vmem>>, %arg3: memref<1x32x16xbf16, #tpu.memory_space<vmem>>, %arg4: memref<1x1x32xf32, #tpu.memory_space<vmem>>, %arg5: memref<1x32x8xi32, #tpu.memory_space<vmem>>) attributes {dimension_semantics = [#tpu.dimension_semantics<parallel>, #tpu.dimension_semantics<parallel>], iteration_bounds = array<i64: 2, 1>, scalar_prefetch = 0 : i64, scratch_operands = 0 : i64, tpu.core_type = #tpu.core_type<tc>, window_params = [{transform_indices = @transform_0, window_bounds = array<i64: 1, 32, 16>}, {transform_indices = @transform_1, window_bounds = array<i64: 1, 32, 16>}, {transform_indices = @transform_2, window_bounds = array<i64: 1, 1, 32>}, {transform_indices = @transform_3, window_bounds = array<i64: 1, 32, 8>}]} {
    %c0 = arith.constant 0 : index
    %c0_0 = arith.constant 0 : index
    %c0_1 = arith.constant 0 : index
    %0 = vector.load %arg2[%c0, %c0_0, %c0_1] : memref<1x32x16xbf16, #tpu.memory_space<vmem>>, vector<1x32x16xbf16>
    %1 = vector.shape_cast %0 : vector<1x32x16xbf16> to vector<32x16xbf16>
    %c0_2 = arith.constant 0 : index
    %c0_3 = arith.constant 0 : index
    %c0_4 = arith.constant 0 : index
    %2 = vector.load %arg3[%c0_2, %c0_3, %c0_4] : memref<1x32x16xbf16, #tpu.memory_space<vmem>>, vector<1x32x16xbf16>
    %3 = vector.shape_cast %2 : vector<1x32x16xbf16> to vector<32x16xbf16>
    %4 = arith.extf %1 : vector<32x16xbf16> to vector<32x16xf32>
    %5 = arith.mulf %4, %4 : vector<32x16xf32>
    %cst = arith.constant dense<0.000000e+00> : vector<32xf32>
    %6 = vector.multi_reduction <add>, %5, %cst [1] : vector<32x16xf32> to vector<32xf32>
    %7 = vector.shape_cast %6 : vector<32xf32> to vector<32x1xf32>
    %cst_5 = arith.constant dense<0.000000e+00> : vector<32x32xf32>
    %8 = tpu.matmul %1, %3, %cst_5 {dimension_numbers = #tpu.dot_dimension_numbers<[1], [1], [0], [0], [0, 0, 1, 0], [], []>} : vector<32x16xbf16>, vector<32x16xbf16>, vector<32x32xf32> -> vector<32x32xf32>
    %cst_6 = arith.constant 2.000000e+00 : f32
    %9 = vector.broadcast %cst_6 : f32 to vector<32x32xf32>
    %10 = arith.mulf %9, %8 : vector<32x32xf32>
    %11 = vector.broadcast %7 : vector<32x1xf32> to vector<32x32xf32>
    %12 = arith.subf %10, %11 : vector<32x32xf32>
    %c0_7 = arith.constant 0 : index
    %c0_8 = arith.constant 0 : index
    %c0_9 = arith.constant 0 : index
    %13 = vector.load %arg4[%c0_7, %c0_8, %c0_9] : memref<1x1x32xf32, #tpu.memory_space<vmem>>, vector<1x1x32xf32>
    %14 = vector.shape_cast %13 : vector<1x1x32xf32> to vector<1x32xf32>
    %15 = vector.broadcast %14 : vector<1x32xf32> to vector<32x32xf32>
    %16 = arith.addf %12, %15 : vector<32x32xf32>
    %17 = tpu.iota {dimensions = array<i32: 1>} : vector<32x32xi32>
    %cst_10 = arith.constant dense<0xFF800000> : vector<32xf32>
    %18 = vector.multi_reduction <maximumf>, %16, %cst_10 [1] : vector<32x32xf32> to vector<32xf32>
    %19 = vector.shape_cast %18 : vector<32xf32> to vector<32x1xf32>
    %20 = vector.broadcast %19 : vector<32x1xf32> to vector<32x32xf32>
    %21 = arith.cmpf oeq, %16, %20 : vector<32x32xf32>
    %c32_i32 = arith.constant 32 : i32
    %22 = vector.broadcast %c32_i32 : i32 to vector<32x32xi32>
    %23 = arith.select %21, %17, %22 : vector<32x32xi1>, vector<32x32xi32>
    %cst_11 = arith.constant dense<2147483647> : vector<32xi32>
    %24 = vector.multi_reduction <minsi>, %23, %cst_11 [1] : vector<32x32xi32> to vector<32xi32>
    %25 = vector.shape_cast %24 : vector<32xi32> to vector<32x1xi32>
    %26 = vector.broadcast %25 : vector<32x1xi32> to vector<32x32xi32>
    %27 = arith.cmpi eq, %17, %26 : vector<32x32xi32>
    %cst_12 = arith.constant 0xFF800000 : f32
    %28 = vector.broadcast %cst_12 : f32 to vector<32x32xf32>
    %29 = arith.select %27, %28, %16 : vector<32x32xi1>, vector<32x32xf32>
    %cst_13 = arith.constant dense<0xFF800000> : vector<32xf32>
    %30 = vector.multi_reduction <maximumf>, %29, %cst_13 [1] : vector<32x32xf32> to vector<32xf32>
    %31 = vector.shape_cast %30 : vector<32xf32> to vector<32x1xf32>
    %32 = vector.broadcast %31 : vector<32x1xf32> to vector<32x32xf32>
    %33 = arith.cmpf oeq, %29, %32 : vector<32x32xf32>
    %c32_i32_14 = arith.constant 32 : i32
    %34 = vector.broadcast %c32_i32_14 : i32 to vector<32x32xi32>
    %35 = arith.select %33, %17, %34 : vector<32x32xi1>, vector<32x32xi32>
    %cst_15 = arith.constant dense<2147483647> : vector<32xi32>
    %36 = vector.multi_reduction <minsi>, %35, %cst_15 [1] : vector<32x32xi32> to vector<32xi32>
    %37 = vector.shape_cast %36 : vector<32xi32> to vector<32x1xi32>
    %38 = vector.broadcast %37 : vector<32x1xi32> to vector<32x32xi32>
    %39 = arith.cmpi eq, %17, %38 : vector<32x32xi32>
    %cst_16 = arith.constant 0xFF800000 : f32
    %40 = vector.broadcast %cst_16 : f32 to vector<32x32xf32>
    %41 = arith.select %39, %40, %29 : vector<32x32xi1>, vector<32x32xf32>
    %cst_17 = arith.constant dense<0xFF800000> : vector<32xf32>
    %42 = vector.multi_reduction <maximumf>, %41, %cst_17 [1] : vector<32x32xf32> to vector<32xf32>
    %43 = vector.shape_cast %42 : vector<32xf32> to vector<32x1xf32>
    %44 = vector.broadcast %43 : vector<32x1xf32> to vector<32x32xf32>
    %45 = arith.cmpf oeq, %41, %44 : vector<32x32xf32>
    %c32_i32_18 = arith.constant 32 : i32
    %46 = vector.broadcast %c32_i32_18 : i32 to vector<32x32xi32>
    %47 = arith.select %45, %17, %46 : vector<32x32xi1>, vector<32x32xi32>
    %cst_19 = arith.constant dense<2147483647> : vector<32xi32>
    %48 = vector.multi_reduction <minsi>, %47, %cst_19 [1] : vector<32x32xi32> to vector<32xi32>
    %49 = vector.shape_cast %48 : vector<32xi32> to vector<32x1xi32>
    %50 = vector.broadcast %49 : vector<32x1xi32> to vector<32x32xi32>
    %51 = arith.cmpi eq, %17, %50 : vector<32x32xi32>
    %cst_20 = arith.constant 0xFF800000 : f32
    %52 = vector.broadcast %cst_20 : f32 to vector<32x32xf32>
    %53 = arith.select %51, %52, %41 : vector<32x32xi1>, vector<32x32xf32>
    %cst_21 = arith.constant dense<0xFF800000> : vector<32xf32>
    %54 = vector.multi_reduction <maximumf>, %53, %cst_21 [1] : vector<32x32xf32> to vector<32xf32>
    %55 = vector.shape_cast %54 : vector<32xf32> to vector<32x1xf32>
    %56 = vector.broadcast %55 : vector<32x1xf32> to vector<32x32xf32>
    %57 = arith.cmpf oeq, %53, %56 : vector<32x32xf32>
    %c32_i32_22 = arith.constant 32 : i32
    %58 = vector.broadcast %c32_i32_22 : i32 to vector<32x32xi32>
    %59 = arith.select %57, %17, %58 : vector<32x32xi1>, vector<32x32xi32>
    %cst_23 = arith.constant dense<2147483647> : vector<32xi32>
    %60 = vector.multi_reduction <minsi>, %59, %cst_23 [1] : vector<32x32xi32> to vector<32xi32>
    %61 = vector.shape_cast %60 : vector<32xi32> to vector<32x1xi32>
    %62 = vector.broadcast %61 : vector<32x1xi32> to vector<32x32xi32>
    %63 = arith.cmpi eq, %17, %62 : vector<32x32xi32>
    %cst_24 = arith.constant 0xFF800000 : f32
    %64 = vector.broadcast %cst_24 : f32 to vector<32x32xf32>
    %65 = arith.select %63, %64, %53 : vector<32x32xi1>, vector<32x32xf32>
    %cst_25 = arith.constant dense<0xFF800000> : vector<32xf32>
    %66 = vector.multi_reduction <maximumf>, %65, %cst_25 [1] : vector<32x32xf32> to vector<32xf32>
    %67 = vector.shape_cast %66 : vector<32xf32> to vector<32x1xf32>
    %68 = vector.broadcast %67 : vector<32x1xf32> to vector<32x32xf32>
    %69 = arith.cmpf oeq, %65, %68 : vector<32x32xf32>
    %c32_i32_26 = arith.constant 32 : i32
    %70 = vector.broadcast %c32_i32_26 : i32 to vector<32x32xi32>
    %71 = arith.select %69, %17, %70 : vector<32x32xi1>, vector<32x32xi32>
    %cst_27 = arith.constant dense<2147483647> : vector<32xi32>
    %72 = vector.multi_reduction <minsi>, %71, %cst_27 [1] : vector<32x32xi32> to vector<32xi32>
    %73 = vector.shape_cast %72 : vector<32xi32> to vector<32x1xi32>
    %74 = vector.broadcast %73 : vector<32x1xi32> to vector<32x32xi32>
    %75 = arith.cmpi eq, %17, %74 : vector<32x32xi32>
    %cst_28 = arith.constant 0xFF800000 : f32
    %76 = vector.broadcast %cst_28 : f32 to vector<32x32xf32>
    %77 = arith.select %75, %76, %65 : vector<32x32xi1>, vector<32x32xf32>
    %cst_29 = arith.constant dense<0xFF800000> : vector<32xf32>
    %78 = vector.multi_reduction <maximumf>, %77, %cst_29 [1] : vector<32x32xf32> to vector<32xf32>
    %79 = vector.shape_cast %78 : vector<32xf32> to vector<32x1xf32>
    %80 = vector.broadcast %79 : vector<32x1xf32> to vector<32x32xf32>
    %81 = arith.cmpf oeq, %77, %80 : vector<32x32xf32>
    %c32_i32_30 = arith.constant 32 : i32
    %82 = vector.broadcast %c32_i32_30 : i32 to vector<32x32xi32>
    %83 = arith.select %81, %17, %82 : vector<32x32xi1>, vector<32x32xi32>
    %cst_31 = arith.constant dense<2147483647> : vector<32xi32>
    %84 = vector.multi_reduction <minsi>, %83, %cst_31 [1] : vector<32x32xi32> to vector<32xi32>
    %85 = vector.shape_cast %84 : vector<32xi32> to vector<32x1xi32>
    %86 = vector.broadcast %85 : vector<32x1xi32> to vector<32x32xi32>
    %87 = arith.cmpi eq, %17, %86 : vector<32x32xi32>
    %cst_32 = arith.constant 0xFF800000 : f32
    %88 = vector.broadcast %cst_32 : f32 to vector<32x32xf32>
    %89 = arith.select %87, %88, %77 : vector<32x32xi1>, vector<32x32xf32>
    %cst_33 = arith.constant dense<0xFF800000> : vector<32xf32>
    %90 = vector.multi_reduction <maximumf>, %89, %cst_33 [1] : vector<32x32xf32> to vector<32xf32>
    %91 = vector.shape_cast %90 : vector<32xf32> to vector<32x1xf32>
    %92 = vector.broadcast %91 : vector<32x1xf32> to vector<32x32xf32>
    %93 = arith.cmpf oeq, %89, %92 : vector<32x32xf32>
    %c32_i32_34 = arith.constant 32 : i32
    %94 = vector.broadcast %c32_i32_34 : i32 to vector<32x32xi32>
    %95 = arith.select %93, %17, %94 : vector<32x32xi1>, vector<32x32xi32>
    %cst_35 = arith.constant dense<2147483647> : vector<32xi32>
    %96 = vector.multi_reduction <minsi>, %95, %cst_35 [1] : vector<32x32xi32> to vector<32xi32>
    %97 = vector.shape_cast %96 : vector<32xi32> to vector<32x1xi32>
    %98 = vector.broadcast %97 : vector<32x1xi32> to vector<32x32xi32>
    %99 = arith.cmpi eq, %17, %98 : vector<32x32xi32>
    %cst_36 = arith.constant 0xFF800000 : f32
    %100 = vector.broadcast %cst_36 : f32 to vector<32x32xf32>
    %101 = arith.select %99, %100, %89 : vector<32x32xi1>, vector<32x32xf32>
    %cst_37 = arith.constant dense<0xFF800000> : vector<32xf32>
    %102 = vector.multi_reduction <maximumf>, %101, %cst_37 [1] : vector<32x32xf32> to vector<32xf32>
    %103 = vector.shape_cast %102 : vector<32xf32> to vector<32x1xf32>
    %104 = vector.broadcast %103 : vector<32x1xf32> to vector<32x32xf32>
    %105 = arith.cmpf oeq, %101, %104 : vector<32x32xf32>
    %c32_i32_38 = arith.constant 32 : i32
    %106 = vector.broadcast %c32_i32_38 : i32 to vector<32x32xi32>
    %107 = arith.select %105, %17, %106 : vector<32x32xi1>, vector<32x32xi32>
    %cst_39 = arith.constant dense<2147483647> : vector<32xi32>
    %108 = vector.multi_reduction <minsi>, %107, %cst_39 [1] : vector<32x32xi32> to vector<32xi32>
    %109 = vector.shape_cast %108 : vector<32xi32> to vector<32x1xi32>
    %110 = tpu.concatenate %25, %37, %49, %61, %73, %85, %97, %109 in 1 : vector<32x1xi32>, vector<32x1xi32>, vector<32x1xi32>, vector<32x1xi32>, vector<32x1xi32>, vector<32x1xi32>, vector<32x1xi32>, vector<32x1xi32> -> vector<32x8xi32>
    %c0_40 = arith.constant 0 : index
    %c0_41 = arith.constant 0 : index
    %c0_42 = arith.constant 0 : index
    %111 = vector.load %arg5[%c0_40, %c0_41, %c0_42] : memref<1x32x8xi32, #tpu.memory_space<vmem>>, vector<1x32x8xi32>
    %112 = vector.shape_cast %111 : vector<1x32x8xi32> to vector<32x8xi32>
    %113 = vector.shape_cast %110 : vector<32x8xi32> to vector<1x32x8xi32>
    tpu.vector_store %arg5[%c0_40, %c0_41, %c0_42], %113 {strides = array<i32>} : memref<1x32x8xi32, #tpu.memory_space<vmem>>, vector<1x32x8xi32>,
    return
  }
  func.func @transform_0(%arg0: i32, %arg1: i32) -> (i32, i32, i32) {
    %c0_i32 = arith.constant 0 : i32
    %c0_i32_0 = arith.constant 0 : i32
    return %arg0, %arg1, %c0_i32 : i32, i32, i32
  }
  func.func @transform_1(%arg0: i32, %arg1: i32) -> (i32, i32, i32) {
    %c0_i32 = arith.constant 0 : i32
    %c0_i32_0 = arith.constant 0 : i32
    %c0_i32_1 = arith.constant 0 : i32
    return %arg0, %c0_i32, %c0_i32_0 : i32, i32, i32
  }
  func.func @transform_2(%arg0: i32, %arg1: i32) -> (i32, i32, i32) {
    %c0_i32 = arith.constant 0 : i32
    %c0_i32_0 = arith.constant 0 : i32
    %c0_i32_1 = arith.constant 0 : i32
    return %arg0, %c0_i32, %c0_i32_0 : i32, i32, i32
  }
  func.func @transform_3(%arg0: i32, %arg1: i32) -> (i32, i32, i32) {
    %c0_i32 = arith.constant 0 : i32
    %c0_i32_0 = arith.constant 0 : i32
    return %arg0, %arg1, %c0_i32 : i32, i32, i32
  }
}

module attributes {stable_mosaic.version = 11 : i64} {
  func.func @_edge_combine_tiled_kernel(%arg0: i32, %arg1: memref<64x8x64xbf16, #tpu.memory_space<vmem>>, %arg2: memref<64x64xbf16, #tpu.memory_space<vmem>>, %arg3: memref<64x64xbf16, #tpu.memory_space<vmem>>) attributes {dimension_semantics = [#tpu.dimension_semantics<parallel>], iteration_bounds = array<i64: 1>, scalar_prefetch = 0 : i64, scratch_operands = 0 : i64, tpu.core_type = #tpu.core_type<tc>, window_params = [{transform_indices = @transform_0, window_bounds = array<i64: 64, 8, 64>}, {transform_indices = @transform_1, window_bounds = array<i64: 64, 64>}, {transform_indices = @transform_2, window_bounds = array<i64: 64, 64>}]} {
    %c0 = arith.constant 0 : index
    %c0_0 = arith.constant 0 : index
    %c0_1 = arith.constant 0 : index
    %0 = vector.load %arg1[%c0, %c0_0, %c0_1] : memref<64x8x64xbf16, #tpu.memory_space<vmem>>, vector<64x8x64xbf16>
    %1 = arith.extf %0 : vector<64x8x64xbf16> to vector<64x8x64xf32>
    %c0_2 = arith.constant 0 : index
    %c0_3 = arith.constant 0 : index
    %2 = vector.load %arg2[%c0_2, %c0_3] : memref<64x64xbf16, #tpu.memory_space<vmem>>, vector<64x64xbf16>
    %3 = arith.extf %2 : vector<64x64xbf16> to vector<64x64xf32>
    %4 = vector.shape_cast %3 : vector<64x64xf32> to vector<64x1x64xf32>
    %5 = vector.broadcast %4 : vector<64x1x64xf32> to vector<64x8x64xf32>
    %6 = arith.addf %1, %5 : vector<64x8x64xf32>
    %cst = arith.constant 0.000000e+00 : f32
    %7 = vector.broadcast %cst : f32 to vector<64x8x64xf32>
    %8 = arith.cmpf ogt, %6, %7 : vector<64x8x64xf32>
    %cst_4 = arith.constant 2.000000e-01 : f32
    %9 = vector.broadcast %cst_4 : f32 to vector<64x8x64xf32>
    %10 = arith.mulf %9, %6 : vector<64x8x64xf32>
    %11 = arith.select %8, %6, %10 : vector<64x8x64xi1>, vector<64x8x64xf32>
    %cst_5 = arith.constant dense<0xFF800000> : vector<64x64xf32>
    %12 = vector.multi_reduction <maximumf>, %11, %cst_5 [1] : vector<64x8x64xf32> to vector<64x64xf32>
    %13 = arith.truncf %12 : vector<64x64xf32> to vector<64x64xbf16>
    %c0_6 = arith.constant 0 : index
    %c0_7 = arith.constant 0 : index
    %14 = vector.load %arg3[%c0_6, %c0_7] : memref<64x64xbf16, #tpu.memory_space<vmem>>, vector<64x64xbf16>
    tpu.vector_store %arg3[%c0_6, %c0_7], %13 {strides = array<i32>} : memref<64x64xbf16, #tpu.memory_space<vmem>>, vector<64x64xbf16>,
    return
  }
  func.func @transform_0(%arg0: i32) -> (i32, i32, i32) {
    %c0_i32 = arith.constant 0 : i32
    %c0_i32_0 = arith.constant 0 : i32
    %c0_i32_1 = arith.constant 0 : i32
    return %arg0, %c0_i32, %c0_i32_0 : i32, i32, i32
  }
  func.func @transform_1(%arg0: i32) -> (i32, i32) {
    %c0_i32 = arith.constant 0 : i32
    %c0_i32_0 = arith.constant 0 : i32
    return %arg0, %c0_i32 : i32, i32
  }
  func.func @transform_2(%arg0: i32) -> (i32, i32) {
    %c0_i32 = arith.constant 0 : i32
    %c0_i32_0 = arith.constant 0 : i32
    return %arg0, %c0_i32 : i32, i32
  }
}

module attributes {stable_mosaic.version = 11 : i64} {
  func.func @_pointwise_kernel(%arg0: i32, %arg1: memref<64x16xbf16, #tpu.memory_space<vmem>>, %arg2: memref<16x128xbf16, #tpu.memory_space<vmem>>, %arg3: memref<1x128xf32, #tpu.memory_space<vmem>>, %arg4: memref<64x128xbf16, #tpu.memory_space<vmem>>) attributes {dimension_semantics = [#tpu.dimension_semantics<parallel>], iteration_bounds = array<i64: 1>, scalar_prefetch = 0 : i64, scratch_operands = 0 : i64, tpu.core_type = #tpu.core_type<tc>, window_params = [{transform_indices = @transform_0, window_bounds = array<i64: 64, 16>}, {pipeline_mode = #tpu.pipeline_mode<synchronous>, transform_indices = @transform_1, window_bounds = array<i64: 16, 128>}, {pipeline_mode = #tpu.pipeline_mode<synchronous>, transform_indices = @transform_2, window_bounds = array<i64: 1, 128>}, {transform_indices = @transform_3, window_bounds = array<i64: 64, 128>}]} {
    %c0 = arith.constant 0 : index
    %c0_0 = arith.constant 0 : index
    %0 = vector.load %arg1[%c0, %c0_0] : memref<64x16xbf16, #tpu.memory_space<vmem>>, vector<64x16xbf16>
    %c0_1 = arith.constant 0 : index
    %c0_2 = arith.constant 0 : index
    %1 = vector.load %arg2[%c0_1, %c0_2] : memref<16x128xbf16, #tpu.memory_space<vmem>>, vector<16x128xbf16>
    %cst = arith.constant dense<0.000000e+00> : vector<64x128xf32>
    %2 = tpu.matmul %0, %1, %cst {dimension_numbers = #tpu.dot_dimension_numbers<[1], [0], [0], [1], [0, 0, 1, 1], [], []>} : vector<64x16xbf16>, vector<16x128xbf16>, vector<64x128xf32> -> vector<64x128xf32>
    %c0_3 = arith.constant 0 : index
    %c0_4 = arith.constant 0 : index
    %3 = vector.load %arg3[%c0_3, %c0_4] : memref<1x128xf32, #tpu.memory_space<vmem>>, vector<1x128xf32>
    %4 = vector.broadcast %3 : vector<1x128xf32> to vector<64x128xf32>
    %5 = arith.addf %2, %4 : vector<64x128xf32>
    %6 = arith.truncf %5 : vector<64x128xf32> to vector<64x128xbf16>
    %c0_5 = arith.constant 0 : index
    %c0_6 = arith.constant 0 : index
    %7 = vector.load %arg4[%c0_5, %c0_6] : memref<64x128xbf16, #tpu.memory_space<vmem>>, vector<64x128xbf16>
    tpu.vector_store %arg4[%c0_5, %c0_6], %6 {strides = array<i32>} : memref<64x128xbf16, #tpu.memory_space<vmem>>, vector<64x128xbf16>,
    return
  }
  func.func @transform_0(%arg0: i32) -> (i32, i32) {
    %c0_i32 = arith.constant 0 : i32
    %c0_i32_0 = arith.constant 0 : i32
    return %arg0, %c0_i32 : i32, i32
  }
  func.func @transform_1(%arg0: i32) -> (i32, i32) {
    %c0_i32 = arith.constant 0 : i32
    %c0_i32_0 = arith.constant 0 : i32
    %c0_i32_1 = arith.constant 0 : i32
    return %c0_i32, %c0_i32_0 : i32, i32
  }
  func.func @transform_2(%arg0: i32) -> (i32, i32) {
    %c0_i32 = arith.constant 0 : i32
    %c0_i32_0 = arith.constant 0 : i32
    %c0_i32_1 = arith.constant 0 : i32
    return %c0_i32, %c0_i32_0 : i32, i32
  }
  func.func @transform_3(%arg0: i32) -> (i32, i32) {
    %c0_i32 = arith.constant 0 : i32
    %c0_i32_0 = arith.constant 0 : i32
    return %arg0, %c0_i32 : i32, i32
  }
}

module attributes {stable_mosaic.version = 11 : i64} {
  func.func @_knn_kernel(%arg0: i32, %arg1: i32, %arg2: memref<1x32x64xbf16, #tpu.memory_space<vmem>>, %arg3: memref<1x32x64xbf16, #tpu.memory_space<vmem>>, %arg4: memref<1x1x32xf32, #tpu.memory_space<vmem>>, %arg5: memref<1x32x8xi32, #tpu.memory_space<vmem>>) attributes {dimension_semantics = [#tpu.dimension_semantics<parallel>, #tpu.dimension_semantics<parallel>], iteration_bounds = array<i64: 2, 1>, scalar_prefetch = 0 : i64, scratch_operands = 0 : i64, tpu.core_type = #tpu.core_type<tc>, window_params = [{transform_indices = @transform_0, window_bounds = array<i64: 1, 32, 64>}, {transform_indices = @transform_1, window_bounds = array<i64: 1, 32, 64>}, {transform_indices = @transform_2, window_bounds = array<i64: 1, 1, 32>}, {transform_indices = @transform_3, window_bounds = array<i64: 1, 32, 8>}]} {
    %c0 = arith.constant 0 : index
    %c0_0 = arith.constant 0 : index
    %c0_1 = arith.constant 0 : index
    %0 = vector.load %arg2[%c0, %c0_0, %c0_1] : memref<1x32x64xbf16, #tpu.memory_space<vmem>>, vector<1x32x64xbf16>
    %1 = vector.shape_cast %0 : vector<1x32x64xbf16> to vector<32x64xbf16>
    %c0_2 = arith.constant 0 : index
    %c0_3 = arith.constant 0 : index
    %c0_4 = arith.constant 0 : index
    %2 = vector.load %arg3[%c0_2, %c0_3, %c0_4] : memref<1x32x64xbf16, #tpu.memory_space<vmem>>, vector<1x32x64xbf16>
    %3 = vector.shape_cast %2 : vector<1x32x64xbf16> to vector<32x64xbf16>
    %4 = arith.extf %1 : vector<32x64xbf16> to vector<32x64xf32>
    %5 = arith.mulf %4, %4 : vector<32x64xf32>
    %cst = arith.constant dense<0.000000e+00> : vector<32xf32>
    %6 = vector.multi_reduction <add>, %5, %cst [1] : vector<32x64xf32> to vector<32xf32>
    %7 = vector.shape_cast %6 : vector<32xf32> to vector<32x1xf32>
    %cst_5 = arith.constant dense<0.000000e+00> : vector<32x32xf32>
    %8 = tpu.matmul %1, %3, %cst_5 {dimension_numbers = #tpu.dot_dimension_numbers<[1], [1], [0], [0], [0, 0, 1, 0], [], []>} : vector<32x64xbf16>, vector<32x64xbf16>, vector<32x32xf32> -> vector<32x32xf32>
    %cst_6 = arith.constant 2.000000e+00 : f32
    %9 = vector.broadcast %cst_6 : f32 to vector<32x32xf32>
    %10 = arith.mulf %9, %8 : vector<32x32xf32>
    %11 = vector.broadcast %7 : vector<32x1xf32> to vector<32x32xf32>
    %12 = arith.subf %10, %11 : vector<32x32xf32>
    %c0_7 = arith.constant 0 : index
    %c0_8 = arith.constant 0 : index
    %c0_9 = arith.constant 0 : index
    %13 = vector.load %arg4[%c0_7, %c0_8, %c0_9] : memref<1x1x32xf32, #tpu.memory_space<vmem>>, vector<1x1x32xf32>
    %14 = vector.shape_cast %13 : vector<1x1x32xf32> to vector<1x32xf32>
    %15 = vector.broadcast %14 : vector<1x32xf32> to vector<32x32xf32>
    %16 = arith.addf %12, %15 : vector<32x32xf32>
    %17 = tpu.iota {dimensions = array<i32: 1>} : vector<32x32xi32>
    %cst_10 = arith.constant dense<0xFF800000> : vector<32xf32>
    %18 = vector.multi_reduction <maximumf>, %16, %cst_10 [1] : vector<32x32xf32> to vector<32xf32>
    %19 = vector.shape_cast %18 : vector<32xf32> to vector<32x1xf32>
    %20 = vector.broadcast %19 : vector<32x1xf32> to vector<32x32xf32>
    %21 = arith.cmpf oeq, %16, %20 : vector<32x32xf32>
    %c32_i32 = arith.constant 32 : i32
    %22 = vector.broadcast %c32_i32 : i32 to vector<32x32xi32>
    %23 = arith.select %21, %17, %22 : vector<32x32xi1>, vector<32x32xi32>
    %cst_11 = arith.constant dense<2147483647> : vector<32xi32>
    %24 = vector.multi_reduction <minsi>, %23, %cst_11 [1] : vector<32x32xi32> to vector<32xi32>
    %25 = vector.shape_cast %24 : vector<32xi32> to vector<32x1xi32>
    %26 = vector.broadcast %25 : vector<32x1xi32> to vector<32x32xi32>
    %27 = arith.cmpi eq, %17, %26 : vector<32x32xi32>
    %cst_12 = arith.constant 0xFF800000 : f32
    %28 = vector.broadcast %cst_12 : f32 to vector<32x32xf32>
    %29 = arith.select %27, %28, %16 : vector<32x32xi1>, vector<32x32xf32>
    %cst_13 = arith.constant dense<0xFF800000> : vector<32xf32>
    %30 = vector.multi_reduction <maximumf>, %29, %cst_13 [1] : vector<32x32xf32> to vector<32xf32>
    %31 = vector.shape_cast %30 : vector<32xf32> to vector<32x1xf32>
    %32 = vector.broadcast %31 : vector<32x1xf32> to vector<32x32xf32>
    %33 = arith.cmpf oeq, %29, %32 : vector<32x32xf32>
    %c32_i32_14 = arith.constant 32 : i32
    %34 = vector.broadcast %c32_i32_14 : i32 to vector<32x32xi32>
    %35 = arith.select %33, %17, %34 : vector<32x32xi1>, vector<32x32xi32>
    %cst_15 = arith.constant dense<2147483647> : vector<32xi32>
    %36 = vector.multi_reduction <minsi>, %35, %cst_15 [1] : vector<32x32xi32> to vector<32xi32>
    %37 = vector.shape_cast %36 : vector<32xi32> to vector<32x1xi32>
    %38 = vector.broadcast %37 : vector<32x1xi32> to vector<32x32xi32>
    %39 = arith.cmpi eq, %17, %38 : vector<32x32xi32>
    %cst_16 = arith.constant 0xFF800000 : f32
    %40 = vector.broadcast %cst_16 : f32 to vector<32x32xf32>
    %41 = arith.select %39, %40, %29 : vector<32x32xi1>, vector<32x32xf32>
    %cst_17 = arith.constant dense<0xFF800000> : vector<32xf32>
    %42 = vector.multi_reduction <maximumf>, %41, %cst_17 [1] : vector<32x32xf32> to vector<32xf32>
    %43 = vector.shape_cast %42 : vector<32xf32> to vector<32x1xf32>
    %44 = vector.broadcast %43 : vector<32x1xf32> to vector<32x32xf32>
    %45 = arith.cmpf oeq, %41, %44 : vector<32x32xf32>
    %c32_i32_18 = arith.constant 32 : i32
    %46 = vector.broadcast %c32_i32_18 : i32 to vector<32x32xi32>
    %47 = arith.select %45, %17, %46 : vector<32x32xi1>, vector<32x32xi32>
    %cst_19 = arith.constant dense<2147483647> : vector<32xi32>
    %48 = vector.multi_reduction <minsi>, %47, %cst_19 [1] : vector<32x32xi32> to vector<32xi32>
    %49 = vector.shape_cast %48 : vector<32xi32> to vector<32x1xi32>
    %50 = vector.broadcast %49 : vector<32x1xi32> to vector<32x32xi32>
    %51 = arith.cmpi eq, %17, %50 : vector<32x32xi32>
    %cst_20 = arith.constant 0xFF800000 : f32
    %52 = vector.broadcast %cst_20 : f32 to vector<32x32xf32>
    %53 = arith.select %51, %52, %41 : vector<32x32xi1>, vector<32x32xf32>
    %cst_21 = arith.constant dense<0xFF800000> : vector<32xf32>
    %54 = vector.multi_reduction <maximumf>, %53, %cst_21 [1] : vector<32x32xf32> to vector<32xf32>
    %55 = vector.shape_cast %54 : vector<32xf32> to vector<32x1xf32>
    %56 = vector.broadcast %55 : vector<32x1xf32> to vector<32x32xf32>
    %57 = arith.cmpf oeq, %53, %56 : vector<32x32xf32>
    %c32_i32_22 = arith.constant 32 : i32
    %58 = vector.broadcast %c32_i32_22 : i32 to vector<32x32xi32>
    %59 = arith.select %57, %17, %58 : vector<32x32xi1>, vector<32x32xi32>
    %cst_23 = arith.constant dense<2147483647> : vector<32xi32>
    %60 = vector.multi_reduction <minsi>, %59, %cst_23 [1] : vector<32x32xi32> to vector<32xi32>
    %61 = vector.shape_cast %60 : vector<32xi32> to vector<32x1xi32>
    %62 = vector.broadcast %61 : vector<32x1xi32> to vector<32x32xi32>
    %63 = arith.cmpi eq, %17, %62 : vector<32x32xi32>
    %cst_24 = arith.constant 0xFF800000 : f32
    %64 = vector.broadcast %cst_24 : f32 to vector<32x32xf32>
    %65 = arith.select %63, %64, %53 : vector<32x32xi1>, vector<32x32xf32>
    %cst_25 = arith.constant dense<0xFF800000> : vector<32xf32>
    %66 = vector.multi_reduction <maximumf>, %65, %cst_25 [1] : vector<32x32xf32> to vector<32xf32>
    %67 = vector.shape_cast %66 : vector<32xf32> to vector<32x1xf32>
    %68 = vector.broadcast %67 : vector<32x1xf32> to vector<32x32xf32>
    %69 = arith.cmpf oeq, %65, %68 : vector<32x32xf32>
    %c32_i32_26 = arith.constant 32 : i32
    %70 = vector.broadcast %c32_i32_26 : i32 to vector<32x32xi32>
    %71 = arith.select %69, %17, %70 : vector<32x32xi1>, vector<32x32xi32>
    %cst_27 = arith.constant dense<2147483647> : vector<32xi32>
    %72 = vector.multi_reduction <minsi>, %71, %cst_27 [1] : vector<32x32xi32> to vector<32xi32>
    %73 = vector.shape_cast %72 : vector<32xi32> to vector<32x1xi32>
    %74 = vector.broadcast %73 : vector<32x1xi32> to vector<32x32xi32>
    %75 = arith.cmpi eq, %17, %74 : vector<32x32xi32>
    %cst_28 = arith.constant 0xFF800000 : f32
    %76 = vector.broadcast %cst_28 : f32 to vector<32x32xf32>
    %77 = arith.select %75, %76, %65 : vector<32x32xi1>, vector<32x32xf32>
    %cst_29 = arith.constant dense<0xFF800000> : vector<32xf32>
    %78 = vector.multi_reduction <maximumf>, %77, %cst_29 [1] : vector<32x32xf32> to vector<32xf32>
    %79 = vector.shape_cast %78 : vector<32xf32> to vector<32x1xf32>
    %80 = vector.broadcast %79 : vector<32x1xf32> to vector<32x32xf32>
    %81 = arith.cmpf oeq, %77, %80 : vector<32x32xf32>
    %c32_i32_30 = arith.constant 32 : i32
    %82 = vector.broadcast %c32_i32_30 : i32 to vector<32x32xi32>
    %83 = arith.select %81, %17, %82 : vector<32x32xi1>, vector<32x32xi32>
    %cst_31 = arith.constant dense<2147483647> : vector<32xi32>
    %84 = vector.multi_reduction <minsi>, %83, %cst_31 [1] : vector<32x32xi32> to vector<32xi32>
    %85 = vector.shape_cast %84 : vector<32xi32> to vector<32x1xi32>
    %86 = vector.broadcast %85 : vector<32x1xi32> to vector<32x32xi32>
    %87 = arith.cmpi eq, %17, %86 : vector<32x32xi32>
    %cst_32 = arith.constant 0xFF800000 : f32
    %88 = vector.broadcast %cst_32 : f32 to vector<32x32xf32>
    %89 = arith.select %87, %88, %77 : vector<32x32xi1>, vector<32x32xf32>
    %cst_33 = arith.constant dense<0xFF800000> : vector<32xf32>
    %90 = vector.multi_reduction <maximumf>, %89, %cst_33 [1] : vector<32x32xf32> to vector<32xf32>
    %91 = vector.shape_cast %90 : vector<32xf32> to vector<32x1xf32>
    %92 = vector.broadcast %91 : vector<32x1xf32> to vector<32x32xf32>
    %93 = arith.cmpf oeq, %89, %92 : vector<32x32xf32>
    %c32_i32_34 = arith.constant 32 : i32
    %94 = vector.broadcast %c32_i32_34 : i32 to vector<32x32xi32>
    %95 = arith.select %93, %17, %94 : vector<32x32xi1>, vector<32x32xi32>
    %cst_35 = arith.constant dense<2147483647> : vector<32xi32>
    %96 = vector.multi_reduction <minsi>, %95, %cst_35 [1] : vector<32x32xi32> to vector<32xi32>
    %97 = vector.shape_cast %96 : vector<32xi32> to vector<32x1xi32>
    %98 = vector.broadcast %97 : vector<32x1xi32> to vector<32x32xi32>
    %99 = arith.cmpi eq, %17, %98 : vector<32x32xi32>
    %cst_36 = arith.constant 0xFF800000 : f32
    %100 = vector.broadcast %cst_36 : f32 to vector<32x32xf32>
    %101 = arith.select %99, %100, %89 : vector<32x32xi1>, vector<32x32xf32>
    %cst_37 = arith.constant dense<0xFF800000> : vector<32xf32>
    %102 = vector.multi_reduction <maximumf>, %101, %cst_37 [1] : vector<32x32xf32> to vector<32xf32>
    %103 = vector.shape_cast %102 : vector<32xf32> to vector<32x1xf32>
    %104 = vector.broadcast %103 : vector<32x1xf32> to vector<32x32xf32>
    %105 = arith.cmpf oeq, %101, %104 : vector<32x32xf32>
    %c32_i32_38 = arith.constant 32 : i32
    %106 = vector.broadcast %c32_i32_38 : i32 to vector<32x32xi32>
    %107 = arith.select %105, %17, %106 : vector<32x32xi1>, vector<32x32xi32>
    %cst_39 = arith.constant dense<2147483647> : vector<32xi32>
    %108 = vector.multi_reduction <minsi>, %107, %cst_39 [1] : vector<32x32xi32> to vector<32xi32>
    %109 = vector.shape_cast %108 : vector<32xi32> to vector<32x1xi32>
    %110 = tpu.concatenate %25, %37, %49, %61, %73, %85, %97, %109 in 1 : vector<32x1xi32>, vector<32x1xi32>, vector<32x1xi32>, vector<32x1xi32>, vector<32x1xi32>, vector<32x1xi32>, vector<32x1xi32>, vector<32x1xi32> -> vector<32x8xi32>
    %c0_40 = arith.constant 0 : index
    %c0_41 = arith.constant 0 : index
    %c0_42 = arith.constant 0 : index
    %111 = vector.load %arg5[%c0_40, %c0_41, %c0_42] : memref<1x32x8xi32, #tpu.memory_space<vmem>>, vector<1x32x8xi32>
    %112 = vector.shape_cast %111 : vector<1x32x8xi32> to vector<32x8xi32>
    %113 = vector.shape_cast %110 : vector<32x8xi32> to vector<1x32x8xi32>
    tpu.vector_store %arg5[%c0_40, %c0_41, %c0_42], %113 {strides = array<i32>} : memref<1x32x8xi32, #tpu.memory_space<vmem>>, vector<1x32x8xi32>,
    return
  }
  func.func @transform_0(%arg0: i32, %arg1: i32) -> (i32, i32, i32) {
    %c0_i32 = arith.constant 0 : i32
    %c0_i32_0 = arith.constant 0 : i32
    return %arg0, %arg1, %c0_i32 : i32, i32, i32
  }
  func.func @transform_1(%arg0: i32, %arg1: i32) -> (i32, i32, i32) {
    %c0_i32 = arith.constant 0 : i32
    %c0_i32_0 = arith.constant 0 : i32
    %c0_i32_1 = arith.constant 0 : i32
    return %arg0, %c0_i32, %c0_i32_0 : i32, i32, i32
  }
  func.func @transform_2(%arg0: i32, %arg1: i32) -> (i32, i32, i32) {
    %c0_i32 = arith.constant 0 : i32
    %c0_i32_0 = arith.constant 0 : i32
    %c0_i32_1 = arith.constant 0 : i32
    return %arg0, %c0_i32, %c0_i32_0 : i32, i32, i32
  }
  func.func @transform_3(%arg0: i32, %arg1: i32) -> (i32, i32, i32) {
    %c0_i32 = arith.constant 0 : i32
    %c0_i32_0 = arith.constant 0 : i32
    return %arg0, %arg1, %c0_i32 : i32, i32, i32
  }
}

module attributes {stable_mosaic.version = 11 : i64} {
  func.func @_pointwise_kernel(%arg0: i32, %arg1: memref<64x64xbf16, #tpu.memory_space<vmem>>, %arg2: memref<64x128xbf16, #tpu.memory_space<vmem>>, %arg3: memref<1x128xf32, #tpu.memory_space<vmem>>, %arg4: memref<64x128xbf16, #tpu.memory_space<vmem>>) attributes {dimension_semantics = [#tpu.dimension_semantics<parallel>], iteration_bounds = array<i64: 1>, scalar_prefetch = 0 : i64, scratch_operands = 0 : i64, tpu.core_type = #tpu.core_type<tc>, window_params = [{transform_indices = @transform_0, window_bounds = array<i64: 64, 64>}, {pipeline_mode = #tpu.pipeline_mode<synchronous>, transform_indices = @transform_1, window_bounds = array<i64: 64, 128>}, {pipeline_mode = #tpu.pipeline_mode<synchronous>, transform_indices = @transform_2, window_bounds = array<i64: 1, 128>}, {transform_indices = @transform_3, window_bounds = array<i64: 64, 128>}]} {
    %c0 = arith.constant 0 : index
    %c0_0 = arith.constant 0 : index
    %0 = vector.load %arg1[%c0, %c0_0] : memref<64x64xbf16, #tpu.memory_space<vmem>>, vector<64x64xbf16>
    %c0_1 = arith.constant 0 : index
    %c0_2 = arith.constant 0 : index
    %1 = vector.load %arg2[%c0_1, %c0_2] : memref<64x128xbf16, #tpu.memory_space<vmem>>, vector<64x128xbf16>
    %cst = arith.constant dense<0.000000e+00> : vector<64x128xf32>
    %2 = tpu.matmul %0, %1, %cst {dimension_numbers = #tpu.dot_dimension_numbers<[1], [0], [0], [1], [0, 0, 1, 1], [], []>} : vector<64x64xbf16>, vector<64x128xbf16>, vector<64x128xf32> -> vector<64x128xf32>
    %c0_3 = arith.constant 0 : index
    %c0_4 = arith.constant 0 : index
    %3 = vector.load %arg3[%c0_3, %c0_4] : memref<1x128xf32, #tpu.memory_space<vmem>>, vector<1x128xf32>
    %4 = vector.broadcast %3 : vector<1x128xf32> to vector<64x128xf32>
    %5 = arith.addf %2, %4 : vector<64x128xf32>
    %6 = arith.truncf %5 : vector<64x128xf32> to vector<64x128xbf16>
    %c0_5 = arith.constant 0 : index
    %c0_6 = arith.constant 0 : index
    %7 = vector.load %arg4[%c0_5, %c0_6] : memref<64x128xbf16, #tpu.memory_space<vmem>>, vector<64x128xbf16>
    tpu.vector_store %arg4[%c0_5, %c0_6], %6 {strides = array<i32>} : memref<64x128xbf16, #tpu.memory_space<vmem>>, vector<64x128xbf16>,
    return
  }
  func.func @transform_0(%arg0: i32) -> (i32, i32) {
    %c0_i32 = arith.constant 0 : i32
    %c0_i32_0 = arith.constant 0 : i32
    return %arg0, %c0_i32 : i32, i32
  }
  func.func @transform_1(%arg0: i32) -> (i32, i32) {
    %c0_i32 = arith.constant 0 : i32
    %c0_i32_0 = arith.constant 0 : i32
    %c0_i32_1 = arith.constant 0 : i32
    return %c0_i32, %c0_i32_0 : i32, i32
  }
  func.func @transform_2(%arg0: i32) -> (i32, i32) {
    %c0_i32 = arith.constant 0 : i32
    %c0_i32_0 = arith.constant 0 : i32
    %c0_i32_1 = arith.constant 0 : i32
    return %c0_i32, %c0_i32_0 : i32, i32
  }
  func.func @transform_3(%arg0: i32) -> (i32, i32) {
    %c0_i32 = arith.constant 0 : i32
    %c0_i32_0 = arith.constant 0 : i32
    return %arg0, %c0_i32 : i32, i32
  }
}

module attributes {stable_mosaic.version = 11 : i64} {
  func.func @_pointwise_kernel(%arg0: i32, %arg1: memref<64x64xbf16, #tpu.memory_space<vmem>>, %arg2: memref<64x256xbf16, #tpu.memory_space<vmem>>, %arg3: memref<1x256xf32, #tpu.memory_space<vmem>>, %arg4: memref<64x256xbf16, #tpu.memory_space<vmem>>) attributes {dimension_semantics = [#tpu.dimension_semantics<parallel>], iteration_bounds = array<i64: 1>, scalar_prefetch = 0 : i64, scratch_operands = 0 : i64, tpu.core_type = #tpu.core_type<tc>, window_params = [{transform_indices = @transform_0, window_bounds = array<i64: 64, 64>}, {pipeline_mode = #tpu.pipeline_mode<synchronous>, transform_indices = @transform_1, window_bounds = array<i64: 64, 256>}, {pipeline_mode = #tpu.pipeline_mode<synchronous>, transform_indices = @transform_2, window_bounds = array<i64: 1, 256>}, {transform_indices = @transform_3, window_bounds = array<i64: 64, 256>}]} {
    %c0 = arith.constant 0 : index
    %c0_0 = arith.constant 0 : index
    %0 = vector.load %arg1[%c0, %c0_0] : memref<64x64xbf16, #tpu.memory_space<vmem>>, vector<64x64xbf16>
    %c0_1 = arith.constant 0 : index
    %c0_2 = arith.constant 0 : index
    %1 = vector.load %arg2[%c0_1, %c0_2] : memref<64x256xbf16, #tpu.memory_space<vmem>>, vector<64x256xbf16>
    %cst = arith.constant dense<0.000000e+00> : vector<64x256xf32>
    %2 = tpu.matmul %0, %1, %cst {dimension_numbers = #tpu.dot_dimension_numbers<[1], [0], [0], [1], [0, 0, 1, 1], [], []>} : vector<64x64xbf16>, vector<64x256xbf16>, vector<64x256xf32> -> vector<64x256xf32>
    %c0_3 = arith.constant 0 : index
    %c0_4 = arith.constant 0 : index
    %3 = vector.load %arg3[%c0_3, %c0_4] : memref<1x256xf32, #tpu.memory_space<vmem>>, vector<1x256xf32>
    %4 = vector.broadcast %3 : vector<1x256xf32> to vector<64x256xf32>
    %5 = arith.addf %2, %4 : vector<64x256xf32>
    %6 = arith.truncf %5 : vector<64x256xf32> to vector<64x256xbf16>
    %c0_5 = arith.constant 0 : index
    %c0_6 = arith.constant 0 : index
    %7 = vector.load %arg4[%c0_5, %c0_6] : memref<64x256xbf16, #tpu.memory_space<vmem>>, vector<64x256xbf16>
    tpu.vector_store %arg4[%c0_5, %c0_6], %6 {strides = array<i32>} : memref<64x256xbf16, #tpu.memory_space<vmem>>, vector<64x256xbf16>,
    return
  }
  func.func @transform_0(%arg0: i32) -> (i32, i32) {
    %c0_i32 = arith.constant 0 : i32
    %c0_i32_0 = arith.constant 0 : i32
    return %arg0, %c0_i32 : i32, i32
  }
  func.func @transform_1(%arg0: i32) -> (i32, i32) {
    %c0_i32 = arith.constant 0 : i32
    %c0_i32_0 = arith.constant 0 : i32
    %c0_i32_1 = arith.constant 0 : i32
    return %c0_i32, %c0_i32_0 : i32, i32
  }
  func.func @transform_2(%arg0: i32) -> (i32, i32) {
    %c0_i32 = arith.constant 0 : i32
    %c0_i32_0 = arith.constant 0 : i32
    %c0_i32_1 = arith.constant 0 : i32
    return %c0_i32, %c0_i32_0 : i32, i32
  }
  func.func @transform_3(%arg0: i32) -> (i32, i32) {
    %c0_i32 = arith.constant 0 : i32
    %c0_i32_0 = arith.constant 0 : i32
    return %arg0, %c0_i32 : i32, i32
  }
}

module attributes {stable_mosaic.version = 11 : i64} {
  func.func @_edge_combine_tiled_kernel(%arg0: i32, %arg1: memref<64x8x128xbf16, #tpu.memory_space<vmem>>, %arg2: memref<64x128xbf16, #tpu.memory_space<vmem>>, %arg3: memref<64x128xbf16, #tpu.memory_space<vmem>>) attributes {dimension_semantics = [#tpu.dimension_semantics<parallel>], iteration_bounds = array<i64: 1>, scalar_prefetch = 0 : i64, scratch_operands = 0 : i64, tpu.core_type = #tpu.core_type<tc>, window_params = [{transform_indices = @transform_0, window_bounds = array<i64: 64, 8, 128>}, {transform_indices = @transform_1, window_bounds = array<i64: 64, 128>}, {transform_indices = @transform_2, window_bounds = array<i64: 64, 128>}]} {
    %c0 = arith.constant 0 : index
    %c0_0 = arith.constant 0 : index
    %c0_1 = arith.constant 0 : index
    %0 = vector.load %arg1[%c0, %c0_0, %c0_1] : memref<64x8x128xbf16, #tpu.memory_space<vmem>>, vector<64x8x128xbf16>
    %1 = arith.extf %0 : vector<64x8x128xbf16> to vector<64x8x128xf32>
    %c0_2 = arith.constant 0 : index
    %c0_3 = arith.constant 0 : index
    %2 = vector.load %arg2[%c0_2, %c0_3] : memref<64x128xbf16, #tpu.memory_space<vmem>>, vector<64x128xbf16>
    %3 = arith.extf %2 : vector<64x128xbf16> to vector<64x128xf32>
    %4 = vector.shape_cast %3 : vector<64x128xf32> to vector<64x1x128xf32>
    %5 = vector.broadcast %4 : vector<64x1x128xf32> to vector<64x8x128xf32>
    %6 = arith.addf %1, %5 : vector<64x8x128xf32>
    %cst = arith.constant 0.000000e+00 : f32
    %7 = vector.broadcast %cst : f32 to vector<64x8x128xf32>
    %8 = arith.cmpf ogt, %6, %7 : vector<64x8x128xf32>
    %cst_4 = arith.constant 2.000000e-01 : f32
    %9 = vector.broadcast %cst_4 : f32 to vector<64x8x128xf32>
    %10 = arith.mulf %9, %6 : vector<64x8x128xf32>
    %11 = arith.select %8, %6, %10 : vector<64x8x128xi1>, vector<64x8x128xf32>
    %cst_5 = arith.constant dense<0xFF800000> : vector<64x128xf32>
    %12 = vector.multi_reduction <maximumf>, %11, %cst_5 [1] : vector<64x8x128xf32> to vector<64x128xf32>
    %13 = arith.truncf %12 : vector<64x128xf32> to vector<64x128xbf16>
    %c0_6 = arith.constant 0 : index
    %c0_7 = arith.constant 0 : index
    %14 = vector.load %arg3[%c0_6, %c0_7] : memref<64x128xbf16, #tpu.memory_space<vmem>>, vector<64x128xbf16>
    tpu.vector_store %arg3[%c0_6, %c0_7], %13 {strides = array<i32>} : memref<64x128xbf16, #tpu.memory_space<vmem>>, vector<64x128xbf16>,
    return
  }
  func.func @transform_0(%arg0: i32) -> (i32, i32, i32) {
    %c0_i32 = arith.constant 0 : i32
    %c0_i32_0 = arith.constant 0 : i32
    %c0_i32_1 = arith.constant 0 : i32
    return %arg0, %c0_i32, %c0_i32_0 : i32, i32, i32
  }
  func.func @transform_1(%arg0: i32) -> (i32, i32) {
    %c0_i32 = arith.constant 0 : i32
    %c0_i32_0 = arith.constant 0 : i32
    return %arg0, %c0_i32 : i32, i32
  }
  func.func @transform_2(%arg0: i32) -> (i32, i32) {
    %c0_i32 = arith.constant 0 : i32
    %c0_i32_0 = arith.constant 0 : i32
    return %arg0, %c0_i32 : i32, i32
  }
}

module attributes {stable_mosaic.version = 11 : i64} {
  func.func @_pointwise_kernel(%arg0: i32, %arg1: memref<64x16xbf16, #tpu.memory_space<vmem>>, %arg2: memref<16x64xbf16, #tpu.memory_space<vmem>>, %arg3: memref<1x64xf32, #tpu.memory_space<vmem>>, %arg4: memref<64x64xbf16, #tpu.memory_space<vmem>>) attributes {dimension_semantics = [#tpu.dimension_semantics<parallel>], iteration_bounds = array<i64: 1>, scalar_prefetch = 0 : i64, scratch_operands = 0 : i64, tpu.core_type = #tpu.core_type<tc>, window_params = [{transform_indices = @transform_0, window_bounds = array<i64: 64, 16>}, {pipeline_mode = #tpu.pipeline_mode<synchronous>, transform_indices = @transform_1, window_bounds = array<i64: 16, 64>}, {pipeline_mode = #tpu.pipeline_mode<synchronous>, transform_indices = @transform_2, window_bounds = array<i64: 1, 64>}, {transform_indices = @transform_3, window_bounds = array<i64: 64, 64>}]} {
    %c0 = arith.constant 0 : index
    %c0_0 = arith.constant 0 : index
    %0 = vector.load %arg1[%c0, %c0_0] : memref<64x16xbf16, #tpu.memory_space<vmem>>, vector<64x16xbf16>
    %c0_1 = arith.constant 0 : index
    %c0_2 = arith.constant 0 : index
    %1 = vector.load %arg2[%c0_1, %c0_2] : memref<16x64xbf16, #tpu.memory_space<vmem>>, vector<16x64xbf16>
    %cst = arith.constant dense<0.000000e+00> : vector<64x64xf32>
    %2 = tpu.matmul %0, %1, %cst {dimension_numbers = #tpu.dot_dimension_numbers<[1], [0], [0], [1], [0, 0, 1, 1], [], []>} : vector<64x16xbf16>, vector<16x64xbf16>, vector<64x64xf32> -> vector<64x64xf32>
    %c0_3 = arith.constant 0 : index
    %c0_4 = arith.constant 0 : index
    %3 = vector.load %arg3[%c0_3, %c0_4] : memref<1x64xf32, #tpu.memory_space<vmem>>, vector<1x64xf32>
    %4 = vector.broadcast %3 : vector<1x64xf32> to vector<64x64xf32>
    %5 = arith.addf %2, %4 : vector<64x64xf32>
    %cst_5 = arith.constant 0.000000e+00 : f32
    %6 = vector.broadcast %cst_5 : f32 to vector<64x64xf32>
    %7 = arith.cmpf ogt, %5, %6 : vector<64x64xf32>
    %cst_6 = arith.constant 2.000000e-01 : f32
    %8 = vector.broadcast %cst_6 : f32 to vector<64x64xf32>
    %9 = arith.mulf %8, %5 : vector<64x64xf32>
    %10 = arith.select %7, %5, %9 : vector<64x64xi1>, vector<64x64xf32>
    %11 = arith.truncf %10 : vector<64x64xf32> to vector<64x64xbf16>
    %c0_7 = arith.constant 0 : index
    %c0_8 = arith.constant 0 : index
    %12 = vector.load %arg4[%c0_7, %c0_8] : memref<64x64xbf16, #tpu.memory_space<vmem>>, vector<64x64xbf16>
    tpu.vector_store %arg4[%c0_7, %c0_8], %11 {strides = array<i32>} : memref<64x64xbf16, #tpu.memory_space<vmem>>, vector<64x64xbf16>,
    return
  }
  func.func @transform_0(%arg0: i32) -> (i32, i32) {
    %c0_i32 = arith.constant 0 : i32
    %c0_i32_0 = arith.constant 0 : i32
    return %arg0, %c0_i32 : i32, i32
  }
  func.func @transform_1(%arg0: i32) -> (i32, i32) {
    %c0_i32 = arith.constant 0 : i32
    %c0_i32_0 = arith.constant 0 : i32
    %c0_i32_1 = arith.constant 0 : i32
    return %c0_i32, %c0_i32_0 : i32, i32
  }
  func.func @transform_2(%arg0: i32) -> (i32, i32) {
    %c0_i32 = arith.constant 0 : i32
    %c0_i32_0 = arith.constant 0 : i32
    %c0_i32_1 = arith.constant 0 : i32
    return %c0_i32, %c0_i32_0 : i32, i32
  }
  func.func @transform_3(%arg0: i32) -> (i32, i32) {
    %c0_i32 = arith.constant 0 : i32
    %c0_i32_0 = arith.constant 0 : i32
    return %arg0, %c0_i32 : i32, i32
  }
}

module attributes {stable_mosaic.version = 11 : i64} {
  func.func @_pointwise_kernel(%arg0: i32, %arg1: memref<64x384xbf16, #tpu.memory_space<vmem>>, %arg2: memref<384x128xbf16, #tpu.memory_space<vmem>>, %arg3: memref<1x128xf32, #tpu.memory_space<vmem>>, %arg4: memref<64x128xf32, #tpu.memory_space<vmem>>) attributes {dimension_semantics = [#tpu.dimension_semantics<parallel>], iteration_bounds = array<i64: 1>, scalar_prefetch = 0 : i64, scratch_operands = 0 : i64, tpu.core_type = #tpu.core_type<tc>, window_params = [{transform_indices = @transform_0, window_bounds = array<i64: 64, 384>}, {pipeline_mode = #tpu.pipeline_mode<synchronous>, transform_indices = @transform_1, window_bounds = array<i64: 384, 128>}, {pipeline_mode = #tpu.pipeline_mode<synchronous>, transform_indices = @transform_2, window_bounds = array<i64: 1, 128>}, {transform_indices = @transform_3, window_bounds = array<i64: 64, 128>}]} {
    %c0 = arith.constant 0 : index
    %c0_0 = arith.constant 0 : index
    %0 = vector.load %arg1[%c0, %c0_0] : memref<64x384xbf16, #tpu.memory_space<vmem>>, vector<64x384xbf16>
    %c0_1 = arith.constant 0 : index
    %c0_2 = arith.constant 0 : index
    %1 = vector.load %arg2[%c0_1, %c0_2] : memref<384x128xbf16, #tpu.memory_space<vmem>>, vector<384x128xbf16>
    %cst = arith.constant dense<0.000000e+00> : vector<64x128xf32>
    %2 = tpu.matmul %0, %1, %cst {dimension_numbers = #tpu.dot_dimension_numbers<[1], [0], [0], [1], [0, 0, 1, 1], [], []>} : vector<64x384xbf16>, vector<384x128xbf16>, vector<64x128xf32> -> vector<64x128xf32>
    %c0_3 = arith.constant 0 : index
    %c0_4 = arith.constant 0 : index
    %3 = vector.load %arg3[%c0_3, %c0_4] : memref<1x128xf32, #tpu.memory_space<vmem>>, vector<1x128xf32>
    %4 = vector.broadcast %3 : vector<1x128xf32> to vector<64x128xf32>
    %5 = arith.addf %2, %4 : vector<64x128xf32>
    %cst_5 = arith.constant 0.000000e+00 : f32
    %6 = vector.broadcast %cst_5 : f32 to vector<64x128xf32>
    %7 = arith.cmpf ogt, %5, %6 : vector<64x128xf32>
    %cst_6 = arith.constant 2.000000e-01 : f32
    %8 = vector.broadcast %cst_6 : f32 to vector<64x128xf32>
    %9 = arith.mulf %8, %5 : vector<64x128xf32>
    %10 = arith.select %7, %5, %9 : vector<64x128xi1>, vector<64x128xf32>
    %c0_7 = arith.constant 0 : index
    %c0_8 = arith.constant 0 : index
    %11 = vector.load %arg4[%c0_7, %c0_8] : memref<64x128xf32, #tpu.memory_space<vmem>>, vector<64x128xf32>
    tpu.vector_store %arg4[%c0_7, %c0_8], %10 {strides = array<i32>} : memref<64x128xf32, #tpu.memory_space<vmem>>, vector<64x128xf32>,
    return
  }
  func.func @transform_0(%arg0: i32) -> (i32, i32) {
    %c0_i32 = arith.constant 0 : i32
    %c0_i32_0 = arith.constant 0 : i32
    return %arg0, %c0_i32 : i32, i32
  }
  func.func @transform_1(%arg0: i32) -> (i32, i32) {
    %c0_i32 = arith.constant 0 : i32
    %c0_i32_0 = arith.constant 0 : i32
    %c0_i32_1 = arith.constant 0 : i32
    return %c0_i32, %c0_i32_0 : i32, i32
  }
  func.func @transform_2(%arg0: i32) -> (i32, i32) {
    %c0_i32 = arith.constant 0 : i32
    %c0_i32_0 = arith.constant 0 : i32
    %c0_i32_1 = arith.constant 0 : i32
    return %c0_i32, %c0_i32_0 : i32, i32
  }
  func.func @transform_3(%arg0: i32) -> (i32, i32) {
    %c0_i32 = arith.constant 0 : i32
    %c0_i32_0 = arith.constant 0 : i32
    return %arg0, %c0_i32 : i32, i32
  }
}

module attributes {stable_mosaic.version = 11 : i64} {
  func.func @_pointwise_kernel(%arg0: i32, %arg1: memref<64x512xbf16, #tpu.memory_space<vmem>>, %arg2: memref<512x512xbf16, #tpu.memory_space<vmem>>, %arg3: memref<1x512xf32, #tpu.memory_space<vmem>>, %arg4: memref<64x512xbf16, #tpu.memory_space<vmem>>) attributes {dimension_semantics = [#tpu.dimension_semantics<parallel>], iteration_bounds = array<i64: 1>, scalar_prefetch = 0 : i64, scratch_operands = 0 : i64, tpu.core_type = #tpu.core_type<tc>, window_params = [{transform_indices = @transform_0, window_bounds = array<i64: 64, 512>}, {pipeline_mode = #tpu.pipeline_mode<synchronous>, transform_indices = @transform_1, window_bounds = array<i64: 512, 512>}, {pipeline_mode = #tpu.pipeline_mode<synchronous>, transform_indices = @transform_2, window_bounds = array<i64: 1, 512>}, {transform_indices = @transform_3, window_bounds = array<i64: 64, 512>}]} {
    %c0 = arith.constant 0 : index
    %c0_0 = arith.constant 0 : index
    %0 = vector.load %arg1[%c0, %c0_0] : memref<64x512xbf16, #tpu.memory_space<vmem>>, vector<64x512xbf16>
    %c0_1 = arith.constant 0 : index
    %c0_2 = arith.constant 0 : index
    %1 = vector.load %arg2[%c0_1, %c0_2] : memref<512x512xbf16, #tpu.memory_space<vmem>>, vector<512x512xbf16>
    %cst = arith.constant dense<0.000000e+00> : vector<64x512xf32>
    %2 = tpu.matmul %0, %1, %cst {dimension_numbers = #tpu.dot_dimension_numbers<[1], [0], [0], [1], [0, 0, 1, 1], [], []>} : vector<64x512xbf16>, vector<512x512xbf16>, vector<64x512xf32> -> vector<64x512xf32>
    %c0_3 = arith.constant 0 : index
    %c0_4 = arith.constant 0 : index
    %3 = vector.load %arg3[%c0_3, %c0_4] : memref<1x512xf32, #tpu.memory_space<vmem>>, vector<1x512xf32>
    %4 = vector.broadcast %3 : vector<1x512xf32> to vector<64x512xf32>
    %5 = arith.addf %2, %4 : vector<64x512xf32>
    %cst_5 = arith.constant 0.000000e+00 : f32
    %6 = vector.broadcast %cst_5 : f32 to vector<64x512xf32>
    %7 = arith.cmpf ogt, %5, %6 : vector<64x512xf32>
    %cst_6 = arith.constant 2.000000e-01 : f32
    %8 = vector.broadcast %cst_6 : f32 to vector<64x512xf32>
    %9 = arith.mulf %8, %5 : vector<64x512xf32>
    %10 = arith.select %7, %5, %9 : vector<64x512xi1>, vector<64x512xf32>
    %11 = arith.truncf %10 : vector<64x512xf32> to vector<64x512xbf16>
    %c0_7 = arith.constant 0 : index
    %c0_8 = arith.constant 0 : index
    %12 = vector.load %arg4[%c0_7, %c0_8] : memref<64x512xbf16, #tpu.memory_space<vmem>>, vector<64x512xbf16>
    tpu.vector_store %arg4[%c0_7, %c0_8], %11 {strides = array<i32>} : memref<64x512xbf16, #tpu.memory_space<vmem>>, vector<64x512xbf16>,
    return
  }
  func.func @transform_0(%arg0: i32) -> (i32, i32) {
    %c0_i32 = arith.constant 0 : i32
    %c0_i32_0 = arith.constant 0 : i32
    return %arg0, %c0_i32 : i32, i32
  }
  func.func @transform_1(%arg0: i32) -> (i32, i32) {
    %c0_i32 = arith.constant 0 : i32
    %c0_i32_0 = arith.constant 0 : i32
    %c0_i32_1 = arith.constant 0 : i32
    return %c0_i32, %c0_i32_0 : i32, i32
  }
  func.func @transform_2(%arg0: i32) -> (i32, i32) {
    %c0_i32 = arith.constant 0 : i32
    %c0_i32_0 = arith.constant 0 : i32
    %c0_i32_1 = arith.constant 0 : i32
    return %c0_i32, %c0_i32_0 : i32, i32
  }
  func.func @transform_3(%arg0: i32) -> (i32, i32) {
    %c0_i32 = arith.constant 0 : i32
    %c0_i32_0 = arith.constant 0 : i32
    return %arg0, %c0_i32 : i32, i32
  }
}

module attributes {stable_mosaic.version = 11 : i64} {
  func.func @_head_kernel(%arg0: i32, %arg1: memref<64x512xbf16, #tpu.memory_space<vmem>>, %arg2: memref<512x256xbf16, #tpu.memory_space<vmem>>, %arg3: memref<1x256xf32, #tpu.memory_space<vmem>>, %arg4: memref<256x128xbf16, #tpu.memory_space<vmem>>, %arg5: memref<1x128xf32, #tpu.memory_space<vmem>>, %arg6: memref<64x128xf32, #tpu.memory_space<vmem>>) attributes {dimension_semantics = [#tpu.dimension_semantics<parallel>], iteration_bounds = array<i64: 1>, scalar_prefetch = 0 : i64, scratch_operands = 0 : i64, tpu.core_type = #tpu.core_type<tc>, window_params = [{transform_indices = @transform_0, window_bounds = array<i64: 64, 512>}, {pipeline_mode = #tpu.pipeline_mode<synchronous>, transform_indices = @transform_1, window_bounds = array<i64: 512, 256>}, {pipeline_mode = #tpu.pipeline_mode<synchronous>, transform_indices = @transform_2, window_bounds = array<i64: 1, 256>}, {pipeline_mode = #tpu.pipeline_mode<synchronous>, transform_indices = @transform_3, window_bounds = array<i64: 256, 128>}, {pipeline_mode = #tpu.pipeline_mode<synchronous>, transform_indices = @transform_4, window_bounds = array<i64: 1, 128>}, {transform_indices = @transform_5, window_bounds = array<i64: 64, 128>}]} {
    %c0 = arith.constant 0 : index
    %c0_0 = arith.constant 0 : index
    %0 = vector.load %arg1[%c0, %c0_0] : memref<64x512xbf16, #tpu.memory_space<vmem>>, vector<64x512xbf16>
    %c0_1 = arith.constant 0 : index
    %c0_2 = arith.constant 0 : index
    %1 = vector.load %arg2[%c0_1, %c0_2] : memref<512x256xbf16, #tpu.memory_space<vmem>>, vector<512x256xbf16>
    %cst = arith.constant dense<0.000000e+00> : vector<64x256xf32>
    %2 = tpu.matmul %0, %1, %cst {dimension_numbers = #tpu.dot_dimension_numbers<[1], [0], [0], [1], [0, 0, 1, 1], [], []>} : vector<64x512xbf16>, vector<512x256xbf16>, vector<64x256xf32> -> vector<64x256xf32>
    %c0_3 = arith.constant 0 : index
    %c0_4 = arith.constant 0 : index
    %3 = vector.load %arg3[%c0_3, %c0_4] : memref<1x256xf32, #tpu.memory_space<vmem>>, vector<1x256xf32>
    %4 = vector.broadcast %3 : vector<1x256xf32> to vector<64x256xf32>
    %5 = arith.addf %2, %4 : vector<64x256xf32>
    %cst_5 = arith.constant 0.000000e+00 : f32
    %6 = vector.broadcast %cst_5 : f32 to vector<64x256xf32>
    %7 = arith.cmpf ogt, %5, %6 : vector<64x256xf32>
    %cst_6 = arith.constant 2.000000e-01 : f32
    %8 = vector.broadcast %cst_6 : f32 to vector<64x256xf32>
    %9 = arith.mulf %8, %5 : vector<64x256xf32>
    %10 = arith.select %7, %5, %9 : vector<64x256xi1>, vector<64x256xf32>
    %11 = arith.truncf %10 : vector<64x256xf32> to vector<64x256xbf16>
    %c0_7 = arith.constant 0 : index
    %c0_8 = arith.constant 0 : index
    %12 = vector.load %arg4[%c0_7, %c0_8] : memref<256x128xbf16, #tpu.memory_space<vmem>>, vector<256x128xbf16>
    %cst_9 = arith.constant dense<0.000000e+00> : vector<64x128xf32>
    %13 = tpu.matmul %11, %12, %cst_9 {dimension_numbers = #tpu.dot_dimension_numbers<[1], [0], [0], [1], [0, 0, 1, 1], [], []>} : vector<64x256xbf16>, vector<256x128xbf16>, vector<64x128xf32> -> vector<64x128xf32>
    %c0_10 = arith.constant 0 : index
    %c0_11 = arith.constant 0 : index
    %14 = vector.load %arg5[%c0_10, %c0_11] : memref<1x128xf32, #tpu.memory_space<vmem>>, vector<1x128xf32>
    %15 = vector.broadcast %14 : vector<1x128xf32> to vector<64x128xf32>
    %16 = arith.addf %13, %15 : vector<64x128xf32>
    %c0_12 = arith.constant 0 : index
    %c0_13 = arith.constant 0 : index
    %17 = vector.load %arg6[%c0_12, %c0_13] : memref<64x128xf32, #tpu.memory_space<vmem>>, vector<64x128xf32>
    tpu.vector_store %arg6[%c0_12, %c0_13], %16 {strides = array<i32>} : memref<64x128xf32, #tpu.memory_space<vmem>>, vector<64x128xf32>,
    return
  }
  func.func @transform_0(%arg0: i32) -> (i32, i32) {
    %c0_i32 = arith.constant 0 : i32
    %c0_i32_0 = arith.constant 0 : i32
    return %arg0, %c0_i32 : i32, i32
  }
  func.func @transform_1(%arg0: i32) -> (i32, i32) {
    %c0_i32 = arith.constant 0 : i32
    %c0_i32_0 = arith.constant 0 : i32
    %c0_i32_1 = arith.constant 0 : i32
    return %c0_i32, %c0_i32_0 : i32, i32
  }
  func.func @transform_2(%arg0: i32) -> (i32, i32) {
    %c0_i32 = arith.constant 0 : i32
    %c0_i32_0 = arith.constant 0 : i32
    %c0_i32_1 = arith.constant 0 : i32
    return %c0_i32, %c0_i32_0 : i32, i32
  }
  func.func @transform_3(%arg0: i32) -> (i32, i32) {
    %c0_i32 = arith.constant 0 : i32
    %c0_i32_0 = arith.constant 0 : i32
    %c0_i32_1 = arith.constant 0 : i32
    return %c0_i32, %c0_i32_0 : i32, i32
  }
  func.func @transform_4(%arg0: i32) -> (i32, i32) {
    %c0_i32 = arith.constant 0 : i32
    %c0_i32_0 = arith.constant 0 : i32
    %c0_i32_1 = arith.constant 0 : i32
    return %c0_i32, %c0_i32_0 : i32, i32
  }
  func.func @transform_5(%arg0: i32) -> (i32, i32) {
    %c0_i32 = arith.constant 0 : i32
    %c0_i32_0 = arith.constant 0 : i32
    return %arg0, %c0_i32 : i32, i32
  }
}

</mosaic_0001>

<bundles_post_ra>
// kernel: neg.32
= control target key start
LH: loop header
LB: loop body
LE: loop exit
PB: predicated region body
PF: predicated region fallthrough
CT: control target
= control target key end

     0   :  { %s24_s0 = inlined_call_operand.vmem [shape: f32[2,32], index: 0, kind: input, shape index: {}]   ;;  %s25_s1 = inlined_call_operand.vmem [shape: f32[2,32], index: 1, kind: output, shape index: {}]  }
   0x1   :  { %v2_v0 = vld [vmem:[%s24_s0] sm:$0x3] }
   0x2   :  { %v5_v1 = vxor.u32 2147483648, %v2_v0 }
   0x4   :  { %7 = vst [vmem:[%s25_s1] sm:$0x3] %v5_v1 }

// kernel: dgcnn_with_color_forward.17
= control target key start
LH: loop header
LB: loop body
LE: loop exit
PB: predicated region body
PF: predicated region fallthrough
CT: control target
= control target key end

     0   :  { %vm58_vm0 = vcmask 130048   ;;  %s301_s1 = inlined_call_operand.vmem [shape: bf16[16,128], index: 1, kind: input, shape index: {}]   ;;  %s302_s0 = inlined_call_operand.vmem [shape: bf16[64,16], index: 0, kind: input, shape index: {}]   ;;  %s303_s2 = inlined_call_operand.vmem [shape: f32[1,128], index: 2, kind: input, shape index: {}]   ;;  %s304_s3 = inlined_call_operand.vmem [shape: bf16[64,128], index: 3, kind: output, shape index: {}]  }
   0x1   :  { %v246_v0 = vld [vmem:[%s301_s1] sm:$0xff]   ;;  %v248_v2 = vld [vmem:[%s302_s0 + $0x10] sm:$0xff]   ;;  %v249_v3 = vld [vmem:[%s302_s0 + $0x8] sm:$0xff]  }
   0x2   :  { %v247_v1 = vld [vmem:[%s302_s0] sm:$0xff]   ;;  %234 = vmatprep.subr.bf16.mxu0 %v246_v0  ;;  %244 = vmatprep.subr.bf16.mxu1 %v246_v0  ;;  %v250_v4 = vld [vmem:[%s302_s0 + $0x18] sm:$0xff]  }
   0x3   :  { %235 = vmatpush3.bf16.msra.mxu0 %v246_v0  ;;  %245 = vmatpush3.bf16.msra.mxu1 %v246_v0  ;;  %v180_v6 = vld [vmem:[%s303_s2] ss:$0 sm:$0xff] }
   0x4   :  { %236 = vmatprep.mubr.msk.bf16.mxu0 %vm58_vm0, %v247_v1  ;;  %240 = vmatprep.mubr.msk.bf16.mxu1 %vm58_vm0, %v248_v2 }
   0x6   :  { %237 = vmatmul.mubr.msk.bf16.vlgmr.msra.gmra.mrb[0].mxu0 %vm58_vm0, %v249_v3  ;;  %241 = vmatmul.mubr.msk.bf16.vlgmr.msra.gmra.mrb[0].mxu1 %vm58_vm0, %v250_v4 }
  0xd9   :  { %v238_v5 = vpop.f32.mrb[0].mxu0  ;;  %v242_v7 = vpop.f32.mrb[0].mxu1 }
  0xda   :  { %v105_v8 = vpop.f32.mrb[1].mxu0  ;;  %v121_v9 = vpop.f32.mrb[1].mxu1  ;;  %v114_v12 = vadd.f32 %v238_v5, %v180_v6  ;;  %v130_v13 = vadd.f32 %v242_v7, %v180_v6 }
  0xdb   :  { %v239_v10 = vpop.f32.mrb[2].mxu0  ;;  %v243_v11 = vpop.f32.mrb[2].mxu1  ;;  %v106_v18 = vadd.f32 %v180_v6, %v105_v8  ;;  %v122_v19 = vadd.f32 %v180_v6, %v121_v9 }
  0xdc   :  { %v117_v14 = vadd.f32 %v239_v10, %v180_v6  ;;  %v133_v15 = vadd.f32 %v243_v11, %v180_v6  ;;  %v108_v16 = vpop.f32.mrb[3].mxu0  ;;  %v124_v17 = vpop.f32.mrb[3].mxu1 }
  0xdd   :  { %v109_v20 = vadd.f32 %v180_v6, %v108_v16  ;;  %v125_v21 = vadd.f32 %v180_v6, %v124_v17 }
  0xde   :  { %v214_v22 = vpack.c.bf16 %v117_v14, %v114_v12  ;;  %v224_v23 = vpack.c.bf16 %v133_v15, %v130_v13 }
  0xdf   :  { %v209_v24 = vpack.c.bf16 %v109_v20, %v106_v18  ;;  %v219_v25 = vpack.c.bf16 %v125_v21, %v122_v19 }
  0xe0   :  { %226 = vst [vmem:[%s304_s3 + $0x8] sm:$0xff] %v214_v22   ;;  %228 = vst [vmem:[%s304_s3 + $0x18] sm:$0xff] %v224_v23  }
  0xe1   :  { %210 = vst [vmem:[%s304_s3] sm:$0xff] %v209_v24   ;;  %227 = vst [vmem:[%s304_s3 + $0x10] sm:$0xff] %v219_v25  }

// kernel: dgcnn_with_color_forward.16
= control target key start
LH: loop header
LB: loop body
LE: loop exit
PB: predicated region body
PF: predicated region fallthrough
CT: control target
= control target key end

     0   :  { %s1332_s12 = smov 0   ;;  %s1334_s13 = smov 0   ;;  %s1776_s0 = inlined_call_operand.vmem [shape: bf16[2,32,16], index: 0, kind: input, shape index: {}, may-alias: {0,1}]   ;;  %s1777_s1 = inlined_call_operand.vmem [shape: bf16[2,32,16], index: 1, kind: input, shape index: {}, may-alias: {0,1}]   ;;  %s1778_s2 = inlined_call_operand.vmem [shape: f32[2,1,32], index: 2, kind: input, shape index: {}]   ;;  %s1779_s3 = inlined_call_operand.vmem [shape: s32[2,32,8], index: 3, kind: output, shape index: {}]  }
   0x1   :  { %s1336_s14 = smov 0  }
   0x2 LB: > { %s25_s15 = sadd.s32 1, %s1306_s13  ;;  %p1225_p0 = scmp.ge.s32.totalorder %s1310_s14, 1  ;;  %s1310_s14 = sphi %s1336_s14, %s13_s14   ;;  %s1306_s13 = sphi %s1334_s13, %s1781_s13   ;;  %s1302_s12 = sphi %s1332_s12, %s1780_s12  }
   0x3   : > { %p27_p1 = scmp.ge.s32.totalorder %s25_s15, 2  ;;  %p176_p2 = scmp.lt.s32.totalorder %s1310_s14, 3 }
   0x5   : > { %s1783_s15 = smov (%p27_p1, %s25_s15), 0  ;;  %p177_p3 = pnand %p1225_p0, %p176_p2 }
   0x6   : > { %p217_p4 = scmp.lt.s32.totalorder (!%p177_p3), %s1302_s12, 1  ;;  %vm261_vm0 = vcmask (!%p177_p3), 130048   ;;  %vm376_vm1 = vcmask (!%p177_p3), 261120   ;;  %v374_v43 = vlaneseq (!%p177_p3) }
   0x7   : > { %180 = sbr.rel (%p177_p3) target bundleno = 3796 (0xed4), region = 32 }
   0x8   : > { %v1389_v44 = vand.u32 (!%p177_p3), 127, %v374_v43 }
   0xe   : > { %s1785_s12 = smov (!%p217_p4, %s1302_s12), 1 }
   0xf   : > { %s1241_s16 = sshll.u32 %s1785_s12, 4  ;;  %s233_s25 = scalar_lea.vmem %s1778_s2, %s1785_s12 }
  0x10   : > { %s230_s19 = scalar_lea.vmem %s1777_s1, %s1241_s16  ;;  %s224_s22 = scalar_lea.vmem %s1776_s0, %s1241_s16  ;;  %v1238_v26 = vld [vmem:[%s233_s25] ss:$0 sm:$0xff] }
  0x11   : > { %v1282_v0 = vld [vmem:[%s230_s19] sm:$0xff]   ;;  %v1283_v1 = vld [vmem:[%s230_s19 + $0x8] sm:$0xff]   ;;  %s1243_s26 = sshll.u32 %s1785_s12, 5 }
  0x12   : > { %1256 = vmatprep.subr.msk.bf16.mxu0 %vm261_vm0, %v1282_v0  ;;  %v301_v2 = vsel %vm261_vm0, %v1282_v0, 0  ;;  %v245_v3 = vld [vmem:[%s224_s22] sm:$0xff]   ;;  %v247_v4 = vld [vmem:[%s224_s22 + $0x8] sm:$0xff]   ;;  %v304_v14 = vsel %vm261_vm0, %v1283_v1, 0  ;;  %s242_s29 = scalar_lea.vmem %s1779_s3, %s1243_s26 }
  0x13   : > { %1249 = vmatpush3.bf16.xpose.msra.mxu0 %v301_v2  ;;  %v255_v5 = vunpack.c.l.bf16 %v247_v4  ;;  %v253_v6 = vunpack.c.l.bf16 %v245_v3  ;;  %v256_v7 = vunpack.c.h.bf16 %v247_v4  ;;  %v254_v8 = vunpack.c.h.bf16 %v245_v3  ;;  %1252 = vmatprep.mubr.msk.bf16.mxu0 %vm261_vm0, %v245_v3 }
  0x14   : > { %1257 = vmatprep.subr.msk.bf16.mxu0 %vm261_vm0, %v1283_v1 }
  0x15   : > { %v259_v9 = vmul.f32 %v255_v5, %v255_v5  ;;  %v257_v10 = vmul.f32 %v253_v6, %v253_v6  ;;  %v260_v11 = vmul.f32 %v256_v7, %v256_v7  ;;  %v258_v12 = vmul.f32 %v254_v8, %v254_v8 }
  0x17   : > { %v268_v13 = vsel %vm261_vm0, %v259_v9, 0.0  ;;  %v262_v15 = vsel %vm261_vm0, %v257_v10, 0.0  ;;  %v271_v16 = vsel %vm261_vm0, %v260_v11, 0.0  ;;  %v265_v17 = vsel %vm261_vm0, %v258_v12, 0.0 }
  0x18   : > { %269 = vadd.xlane.f32.xlu1 %v268_v13  ;;  %263 = vadd.xlane.f32.xlu0 %v262_v15 }
  0x1b   : > { %1251 = vmatpush3.bf16.xpose.msra.mxu0 %v304_v14 }
  0x1c   : > { %272 = vadd.xlane.f32.xlu1 %v271_v16  ;;  %266 = vadd.xlane.f32.xlu0 %v265_v17 }
  0x22   : > { %1253 = vmatmul.mubr.msk.bf16.vlgmr.msra.gmra.mrb[0].mxu0 %vm261_vm0, %v247_v4 }
  0xa5   : > { %v270_v18 = vpop.xlane.xlu1 %269  ;;  %v264_v19 = vpop.xlane.xlu0 %263 }
  0xa9   : > { %v273_v25 = vpop.xlane.xlu1 %272  ;;  %v267_v29 = vpop.xlane.xlu0 %266 }
  0xf5   : > { %v1254_v20 = vpop.f32.mrb[0].mxu0 }
  0xf6   : > { %v357_v21 = vmul.f32 2.0, %v1254_v20  ;;  %v340_v22 = vpop.f32.mrb[1].mxu0 }
  0xf7   : > { %v355_v23 = vmul.f32 2.0, %v340_v22  ;;  %v1255_v24 = vpop.f32.mrb[2].mxu0 }
  0xf8   : > { %v358_v27 = vmul.f32 2.0, %v1255_v24  ;;  %v343_v28 = vpop.f32.mrb[3].mxu0  ;;  %v361_v30 = vsub.f32 %v357_v21, %v270_v18 }
  0xf9   : > { %v359_v31 = vsub.f32 %v355_v23, %v264_v19  ;;  %v356_v32 = vmul.f32 2.0, %v343_v28 }
  0xfa   : > { %v362_v34 = vsub.f32 %v358_v27, %v273_v25  ;;  %v1375_v36 = vadd.f32 %v1238_v26, %v361_v30 }
  0xfb   : > { %v1373_v33 = vadd.f32 %v1238_v26, %v359_v31  ;;  %v360_v35 = vsub.f32 %v356_v32, %v267_v29 }
  0xfc   : > { %v1381_v39 = vadd.f32 %v1238_v26, %v362_v34  ;;  %v383_v41 = vsel %vm376_vm1, %v1375_v36, -inf }
  0xfd   : > { %v1377_v37 = vadd.f32 %v1238_v26, %v360_v35  ;;  %v377_v38 = vsel %vm376_vm1, %v1373_v33, -inf }
  0xfe   : > { %378 = vmax.xlane.f32.xlu0 %v377_v38  ;;  %v386_v42 = vsel %vm376_vm1, %v1381_v39, -inf }
  0xff   : > { %v380_v40 = vsel %vm376_vm1, %v1377_v37, -inf }
 0x100   : > { %381 = vmax.xlane.f32.xlu1 %v380_v40 }
 0x102   : > { %384 = vmax.xlane.f32.xlu0 %v383_v41 }
 0x104   : > { %387 = vmax.xlane.f32.xlu1 %v386_v42 }
 0x18b   : > { %v379_v45 = vpop.xlane.xlu0 %378 }
 0x18c   : > { %vm389_vm2 = vcmp.eq.f32.partialorder %v1373_v33, %v379_v45 }
 0x18d   : > { %v393_v46 = vsel %vm389_vm2, %v1389_v44, 32  ;;  %v382_v47 = vpop.xlane.xlu1 %381 }
 0x18e   : > { %v397_v48 = vsel %vm376_vm1, %v393_v46, 2147483647  ;;  %vm390_vm3 = vcmp.eq.f32.partialorder %v1377_v37, %v382_v47 }
 0x18f   : > { %v394_v49 = vsel %vm390_vm3, %v1389_v44, 32  ;;  %v385_v50 = vpop.xlane.xlu0 %384  ;;  %v399_v51 = vshra.s32 %v397_v48, 16  ;;  %v398_v1 = vand.u32 65535, %v397_v48 }
 0x190   : > { %v412_v52 = vsel %vm376_vm1, %v394_v49, 2147483647  ;;  %vm391_vm4 = vcmp.eq.f32.partialorder %v1375_v36, %v385_v50 }
 0x191   : > { %v395_v53 = vsel %vm391_vm4, %v1389_v44, 32  ;;  %v388_v54 = vpop.xlane.xlu1 %387  ;;  %v401_v55 = vcvt.s32.f32 %v399_v51  ;;  %v414_v56 = vshra.s32 %v412_v52, 16  ;;  %v413_v2 = vand.u32 65535, %v412_v52 }
 0x192   : > { %v427_v57 = vsel %vm376_vm1, %v395_v53, 2147483647  ;;  %vm392_vm5 = vcmp.eq.f32.partialorder %v1381_v39, %v388_v54  ;;  %v400_v4 = vcvt.s32.f32 %v398_v1 }
 0x193   : > { %v396_v58 = vsel %vm392_vm5, %v1389_v44, 32  ;;  %402 = vmin.xlane.f32.xlu0 %v401_v55  ;;  %v416_v59 = vcvt.s32.f32 %v414_v56  ;;  %v429_v60 = vshra.s32 %v427_v57, 16  ;;  %v428_v5 = vand.u32 65535, %v427_v57 }
 0x194   : > { %v442_v61 = vsel %vm376_vm1, %v396_v58, 2147483647  ;;  %v415_v8 = vcvt.s32.f32 %v413_v2 }
 0x195   : > { %417 = vmin.xlane.f32.xlu1 %v416_v59  ;;  %v431_v62 = vcvt.s32.f32 %v429_v60  ;;  %v444_v63 = vshra.s32 %v442_v61, 16  ;;  %v443_v9 = vand.u32 65535, %v442_v61  ;;  %v430_v12 = vcvt.s32.f32 %v428_v5 }
 0x197   : > { %432 = vmin.xlane.f32.xlu0 %v431_v62  ;;  %v446_v0 = vcvt.s32.f32 %v444_v63  ;;  %v445_v15 = vcvt.s32.f32 %v443_v9 }
 0x199   : > { %447 = vmin.xlane.f32.xlu1 %v446_v0 }
 0x220   : > { %v403_v3 = vpop.xlane.xlu0 %402 }
 0x221   : > { %vm404_vm6 = vcmp.eq.f32.partialorder %v401_v55, %v403_v3  ;;  %v409_v17 = vcvt.f32.s32 %v403_v3 }
 0x222   : > { %v418_v6 = vpop.xlane.xlu1 %417  ;;  %v405_v7 = vsel %vm404_vm6, %v400_v4, inf }
 0x223   : > { %406 = vmin.xlane.f32.xlu0 %v405_v7  ;;  %vm419_vm7 = vcmp.eq.f32.partialorder %v416_v59, %v418_v6  ;;  %v424_v18 = vcvt.f32.s32 %v418_v6  ;;  %v410_v20 = vshll.u32 %v409_v17, 16 }
 0x224   : > { %v433_v10 = vpop.xlane.xlu0 %432  ;;  %v420_v11 = vsel %vm419_vm7, %v415_v8, inf }
 0x225   : > { %421 = vmin.xlane.f32.xlu1 %v420_v11  ;;  %vm434_vm8 = vcmp.eq.f32.partialorder %v431_v62, %v433_v10  ;;  %v439_v21 = vcvt.f32.s32 %v433_v10  ;;  %v425_v25 = vshll.u32 %v424_v18, 16 }
 0x226   : > { %v448_v13 = vpop.xlane.xlu1 %447  ;;  %v435_v14 = vsel %vm434_vm8, %v430_v12, inf }
 0x227   : > { %436 = vmin.xlane.f32.xlu0 %v435_v14  ;;  %vm449_vm9 = vcmp.eq.f32.partialorder %v446_v0, %v448_v13  ;;  %v454_v23 = vcvt.f32.s32 %v448_v13  ;;  %v440_v29 = vshll.u32 %v439_v21, 16 }
 0x228   : > { %v450_v16 = vsel %vm449_vm9, %v445_v15, inf }
 0x229   : > { %451 = vmin.xlane.f32.xlu1 %v450_v16  ;;  %v455_v32 = vshll.u32 %v454_v23, 16 }
 0x2b0   : > { %v407_v19 = vpop.xlane.xlu0 %406 }
 0x2b1   : > { %v408_v22 = vcvt.f32.s32 %v407_v19 }
 0x2b2   : > { %v422_v24 = vpop.xlane.xlu1 %421 }
 0x2b3   : > { %v1403_v26 = vadd.s32 %v410_v20, %v408_v22  ;;  %v423_v27 = vcvt.f32.s32 %v422_v24 }
 0x2b4   : > { %v437_v28 = vpop.xlane.xlu0 %436 }
 0x2b5   : > { %v1405_v30 = vadd.s32 %v425_v25, %v423_v27  ;;  %v438_v31 = vcvt.f32.s32 %v437_v28  ;;  %vm457_vm10 = vcmp.eq.s32.totalorder %v1389_v44, %v1403_v26 }
 0x2b6   : > { %v452_v34 = vpop.xlane.xlu1 %451  ;;  %v1410_v35 = vsel %vm457_vm10, -inf, %v1373_v33 }
 0x2b7   : > { %v1412_v38 = vadd.s32 %v440_v29, %v438_v31  ;;  %v453_v40 = vcvt.f32.s32 %v452_v34  ;;  %v465_v41 = vsel %vm376_vm1, %v1410_v35, -inf  ;;  %vm458_vm11 = vcmp.eq.s32.totalorder %v1389_v44, %v1405_v30 }
 0x2b8   : > { %466 = vmax.xlane.f32.xlu0 %v465_v41  ;;  %v1419_v42 = vsel %vm458_vm11, -inf, %v1377_v37 }
 0x2b9   : > { %v1421_v43 = vadd.s32 %v455_v32, %v453_v40  ;;  %v468_v45 = vsel %vm376_vm1, %v1419_v42, -inf  ;;  %vm459_vm12 = vcmp.eq.s32.totalorder %v1389_v44, %v1412_v38 }
 0x2ba   : > { %469 = vmax.xlane.f32.xlu1 %v468_v45  ;;  %v1428_v33 = vsel %vm459_vm12, -inf, %v1375_v36 }
 0x2bb   : > { %v471_v46 = vsel %vm376_vm1, %v1428_v33, -inf  ;;  %vm460_vm13 = vcmp.eq.s32.totalorder %v1389_v44, %v1421_v43 }
 0x2bc   : > { %472 = vmax.xlane.f32.xlu0 %v471_v46  ;;  %v1435_v37 = vsel %vm460_vm13, -inf, %v1381_v39 }
 0x2bd   : > { %v474_v47 = vsel %vm376_vm1, %v1435_v37, -inf }
 0x2be   : > { %475 = vmax.xlane.f32.xlu1 %v474_v47 }
 0x345   : > { %v467_v48 = vpop.xlane.xlu0 %466 }
 0x346   : > { %vm477_vm14 = vcmp.eq.f32.partialorder %v1410_v35, %v467_v48 }
 0x347   : > { %v481_v36 = vsel %vm477_vm14, %v1389_v44, 32  ;;  %v470_v49 = vpop.xlane.xlu1 %469 }
 0x348   : > { %v485_v50 = vsel %vm376_vm1, %v481_v36, 2147483647  ;;  %vm478_vm15 = vcmp.eq.f32.partialorder %v1419_v42, %v470_v49 }
 0x349   : > { %v482_v51 = vsel %vm478_vm15, %v1389_v44, 32  ;;  %v473_v52 = vpop.xlane.xlu0 %472  ;;  %v487_v53 = vshra.s32 %v485_v50, 16  ;;  %v486_v2 = vand.u32 65535, %v485_v50 }
 0x34a   : > { %v500_v39 = vsel %vm376_vm1, %v482_v51, 2147483647  ;;  %vm479_vm0 = vcmp.eq.f32.partialorder %v1428_v33, %v473_v52 }
 0x34b   : > { %v483_v54 = vsel %vm479_vm0, %v1389_v44, 32  ;;  %v476_v55 = vpop.xlane.xlu1 %475  ;;  %v489_v56 = vcvt.s32.f32 %v487_v53  ;;  %v502_v57 = vshra.s32 %v500_v39, 16  ;;  %v501_v3 = vand.u32 65535, %v500_v39 }
 0x34c   : > { %v515_v58 = vsel %vm376_vm1, %v483_v54, 2147483647  ;;  %vm480_vm2 = vcmp.eq.f32.partialorder %v1435_v37, %v476_v55  ;;  %v488_v5 = vcvt.s32.f32 %v486_v2 }
 0x34d   : > { %v484_v59 = vsel %vm480_vm2, %v1389_v44, 32  ;;  %490 = vmin.xlane.f32.xlu0 %v489_v56  ;;  %v504_v60 = vcvt.s32.f32 %v502_v57  ;;  %v517_v61 = vshra.s32 %v515_v58, 16  ;;  %v516_v6 = vand.u32 65535, %v515_v58 }
 0x34e   : > { %v530_v62 = vsel %vm376_vm1, %v484_v59, 2147483647  ;;  %v503_v9 = vcvt.s32.f32 %v501_v3 }
 0x34f   : > { %505 = vmin.xlane.f32.xlu1 %v504_v60  ;;  %v519_v63 = vcvt.s32.f32 %v517_v61  ;;  %v532_v0 = vshra.s32 %v530_v62, 16  ;;  %v531_v10 = vand.u32 65535, %v530_v62  ;;  %v518_v13 = vcvt.s32.f32 %v516_v6 }
 0x351   : > { %520 = vmin.xlane.f32.xlu0 %v519_v63  ;;  %v534_v1 = vcvt.s32.f32 %v532_v0  ;;  %v533_v16 = vcvt.s32.f32 %v531_v10 }
 0x353   : > { %535 = vmin.xlane.f32.xlu1 %v534_v1 }
 0x3da   : > { %v491_v4 = vpop.xlane.xlu0 %490 }
 0x3db   : > { %vm492_vm3 = vcmp.eq.f32.partialorder %v489_v56, %v491_v4  ;;  %v497_v18 = vcvt.f32.s32 %v491_v4 }
 0x3dc   : > { %v506_v7 = vpop.xlane.xlu1 %505  ;;  %v493_v8 = vsel %vm492_vm3, %v488_v5, inf }
 0x3dd   : > { %494 = vmin.xlane.f32.xlu0 %v493_v8  ;;  %vm507_vm4 = vcmp.eq.f32.partialorder %v504_v60, %v506_v7  ;;  %v512_v19 = vcvt.f32.s32 %v506_v7  ;;  %v498_v21 = vshll.u32 %v497_v18, 16 }
 0x3de   : > { %v521_v11 = vpop.xlane.xlu0 %520  ;;  %v508_v12 = vsel %vm507_vm4, %v503_v9, inf  ;;  %vm1073_vm4 = vcmask 7168  }
 0x3df   : > { %509 = vmin.xlane.f32.xlu1 %v508_v12  ;;  %vm522_vm5 = vcmp.eq.f32.partialorder %v519_v63, %v521_v11  ;;  %v527_v22 = vcvt.f32.s32 %v521_v11  ;;  %v513_v25 = vshll.u32 %v512_v19, 16 }
 0x3e0   : > { %v536_v14 = vpop.xlane.xlu1 %535  ;;  %v523_v15 = vsel %vm522_vm5, %v518_v13, inf  ;;  %vm1078_vm5 = vcmask 15360  }
 0x3e1   : > { %524 = vmin.xlane.f32.xlu0 %v523_v15  ;;  %vm537_vm6 = vcmp.eq.f32.partialorder %v534_v1, %v536_v14  ;;  %v542_v27 = vcvt.f32.s32 %v536_v14  ;;  %v528_v32 = vshll.u32 %v527_v22, 16 }
 0x3e2   : > { %v538_v17 = vsel %vm537_vm6, %v533_v16, inf }
 0x3e3   : > { %539 = vmin.xlane.f32.xlu1 %v538_v17  ;;  %v543_v46 = vshll.u32 %v542_v27, 16 }
 0x46a   : > { %v495_v20 = vpop.xlane.xlu0 %494 }
 0x46b   : > { %v496_v23 = vcvt.f32.s32 %v495_v20 }
 0x46c   : > { %v510_v24 = vpop.xlane.xlu1 %509 }
 0x46d   : > { %v1451_v28 = vadd.s32 %v498_v21, %v496_v23  ;;  %v511_v29 = vcvt.f32.s32 %v510_v24 }
 0x46e   : > { %v525_v31 = vpop.xlane.xlu0 %524 }
 0x46f   : > { %v1453_v34 = vadd.s32 %v513_v25, %v511_v29  ;;  %v526_v40 = vcvt.f32.s32 %v525_v31  ;;  %vm545_vm7 = vcmp.eq.s32.totalorder %v1389_v44, %v1451_v28 }
 0x470   : > { %v540_v41 = vpop.xlane.xlu1 %539  ;;  %v1458_v45 = vsel %vm545_vm7, -inf, %v1410_v35 }
 0x471   : > { %v1460_v47 = vadd.s32 %v528_v32, %v526_v40  ;;  %v541_v48 = vcvt.f32.s32 %v540_v41  ;;  %v553_v36 = vsel %vm376_vm1, %v1458_v45, -inf  ;;  %vm546_vm8 = vcmp.eq.s32.totalorder %v1389_v44, %v1453_v34 }
 0x472   : > { %554 = vmax.xlane.f32.xlu0 %v553_v36  ;;  %v1469_v50 = vsel %vm546_vm8, -inf, %v1419_v42  ;;  %v1074_v41 = vsel %vm1073_vm4, %v1403_v26, %v1451_v28 }
 0x473   : > { %v1466_v49 = vadd.s32 %v543_v46, %v541_v48  ;;  %vm547_vm9 = vcmp.eq.s32.totalorder %v1389_v44, %v1460_v47  ;;  %v556_v35 = vsel %vm376_vm1, %v1469_v50, -inf  ;;  %v1076_v26 = vsel %vm1073_vm4, %v1412_v38, %v1460_v47 }
 0x474   : > { %v1476_v51 = vsel %vm547_vm9, -inf, %v1428_v33  ;;  %557 = vmax.xlane.f32.xlu1 %v556_v35 }
 0x475   : > { %v559_v52 = vsel %vm376_vm1, %v1476_v51, -inf  ;;  %vm548_vm10 = vcmp.eq.s32.totalorder %v1389_v44, %v1466_v49 }
 0x476   : > { %560 = vmax.xlane.f32.xlu0 %v559_v52  ;;  %v1483_v42 = vsel %vm548_vm10, -inf, %v1435_v37 }
 0x477   : > { %v562_v53 = vsel %vm376_vm1, %v1483_v42, -inf }
 0x478   : > { %563 = vmax.xlane.f32.xlu1 %v562_v53 }
 0x4ff   : > { %v555_v39 = vpop.xlane.xlu0 %554 }
 0x500   : > { %vm565_vm11 = vcmp.eq.f32.partialorder %v1458_v45, %v555_v39 }
 0x501   : > { %v569_v33 = vsel %vm565_vm11, %v1389_v44, 32  ;;  %v558_v55 = vpop.xlane.xlu1 %557 }
 0x502   : > { %v573_v54 = vsel %vm376_vm1, %v569_v33, 2147483647  ;;  %vm566_vm12 = vcmp.eq.f32.partialorder %v1469_v50, %v558_v55  ;;  %v1075_v55 = vsel %vm1073_vm4, %v1405_v30, %v1453_v34 }
 0x503   : > { %v561_v56 = vpop.xlane.xlu0 %560  ;;  %v575_v57 = vshra.s32 %v573_v54, 16  ;;  %v570_v58 = vsel %vm566_vm12, %v1389_v44, 32  ;;  %v574_v7 = vand.u32 65535, %v573_v54 }
 0x504   : > { %vm567_vm13 = vcmp.eq.f32.partialorder %v1476_v51, %v561_v56  ;;  %v588_v37 = vsel %vm376_vm1, %v570_v58, 2147483647 }
 0x505   : > { %v571_v59 = vsel %vm567_vm13, %v1389_v44, 32  ;;  %v577_v60 = vcvt.s32.f32 %v575_v57  ;;  %v564_v62 = vpop.xlane.xlu1 %563  ;;  %v590_v63 = vshra.s32 %v588_v37, 16  ;;  %v589_v8 = vand.u32 65535, %v588_v37 }
 0x506   : > { %v603_v61 = vsel %vm376_vm1, %v571_v59, 2147483647  ;;  %vm568_vm14 = vcmp.eq.f32.partialorder %v1483_v42, %v564_v62  ;;  %v576_v10 = vcvt.s32.f32 %v574_v7 }
 0x507   : > { %578 = vmin.xlane.f32.xlu0 %v577_v60  ;;  %v605_v0 = vshra.s32 %v603_v61, 16  ;;  %v572_v1 = vsel %vm568_vm14, %v1389_v44, 32  ;;  %v592_v2 = vcvt.s32.f32 %v590_v63  ;;  %v604_v11 = vand.u32 65535, %v603_v61 }
 0x508   : > { %v618_v3 = vsel %vm376_vm1, %v572_v1, 2147483647  ;;  %v591_v14 = vcvt.s32.f32 %v589_v8 }
 0x509   : > { %v607_v4 = vcvt.s32.f32 %v605_v0  ;;  %593 = vmin.xlane.f32.xlu1 %v592_v2  ;;  %v620_v5 = vshra.s32 %v618_v3, 16  ;;  %v619_v15 = vand.u32 65535, %v618_v3  ;;  %v606_v17 = vcvt.s32.f32 %v604_v11 }
 0x50b   : > { %608 = vmin.xlane.f32.xlu0 %v607_v4  ;;  %v622_v6 = vcvt.s32.f32 %v620_v5  ;;  %v621_v21 = vcvt.s32.f32 %v619_v15 }
 0x50d   : > { %623 = vmin.xlane.f32.xlu1 %v622_v6 }
 0x594   : > { %v579_v9 = vpop.xlane.xlu0 %578 }
 0x595   : > { %vm580_vm15 = vcmp.eq.f32.partialorder %v577_v60, %v579_v9  ;;  %v585_v23 = vcvt.f32.s32 %v579_v9  ;;  %v1077_v60 = vsel %vm1073_vm4, %v1421_v43, %v1466_v49 }
 0x596   : > { %v581_v12 = vsel %vm580_vm15, %v576_v10, inf  ;;  %v594_v13 = vpop.xlane.xlu1 %593 }
 0x597   : > { %582 = vmin.xlane.f32.xlu0 %v581_v12  ;;  %vm595_vm0 = vcmp.eq.f32.partialorder %v592_v2, %v594_v13  ;;  %v600_v24 = vcvt.f32.s32 %v594_v13  ;;  %v586_v27 = vshll.u32 %v585_v23, 16 }
 0x598   : > { %v609_v16 = vpop.xlane.xlu0 %608  ;;  %v596_v18 = vsel %vm595_vm0, %v591_v14, inf }
 0x599   : > { %vm610_vm2 = vcmp.eq.f32.partialorder %v607_v4, %v609_v16  ;;  %597 = vmin.xlane.f32.xlu1 %v596_v18  ;;  %v615_v29 = vcvt.f32.s32 %v609_v16  ;;  %v601_v46 = vshll.u32 %v600_v24, 16 }
 0x59a   : > { %v611_v19 = vsel %vm610_vm2, %v606_v17, inf  ;;  %v624_v20 = vpop.xlane.xlu1 %623 }
 0x59b   : > { %612 = vmin.xlane.f32.xlu0 %v611_v19  ;;  %vm625_vm3 = vcmp.eq.f32.partialorder %v622_v6, %v624_v20  ;;  %v630_v48 = vcvt.f32.s32 %v624_v20  ;;  %v616_v52 = vshll.u32 %v615_v29, 16 }
 0x59c   : > { %v626_v22 = vsel %vm625_vm3, %v621_v21, inf  ;;  %vm1083_vm3 = vcmask 23552  }
 0x59d   : > { %627 = vmin.xlane.f32.xlu1 %v626_v22  ;;  %v631_v58 = vshll.u32 %v630_v48, 16 }
 0x624   : > { %v583_v25 = vpop.xlane.xlu0 %582 }
 0x625   : > { %v584_v31 = vcvt.f32.s32 %v583_v25 }
 0x626   : > { %v598_v40 = vpop.xlane.xlu1 %597 }
 0x627   : > { %v587_v32 = vadd.s32 %v586_v27, %v584_v31  ;;  %v599_v36 = vcvt.f32.s32 %v598_v40 }
 0x628   : > { %v613_v35 = vpop.xlane.xlu0 %612 }
 0x629   : > { %v1503_v53 = vsel %vm1078_vm5, %v1074_v41, %v587_v32  ;;  %v614_v39 = vcvt.f32.s32 %v613_v35  ;;  %vm633_vm6 = vcmp.eq.s32.totalorder %v1389_v44, %v587_v32  ;;  %v602_v33 = vadd.s32 %v601_v46, %v599_v36 }
 0x62a   : > { %v1507_v54 = vsel %vm633_vm6, -inf, %v1458_v45  ;;  %v628_v56 = vpop.xlane.xlu1 %627 }
 0x62b   : > { %v617_v28 = vadd.s32 %v616_v52, %v614_v39  ;;  %v641_v57 = vsel %vm376_vm1, %v1507_v54, -inf  ;;  %v1518_v37 = vsel %vm1078_vm5, %v1075_v55, %v602_v33  ;;  %v629_v59 = vcvt.f32.s32 %v628_v56 }
 0x62c   : > { %642 = vmax.xlane.f32.xlu0 %v641_v57  ;;  %vm634_vm7 = vcmp.eq.s32.totalorder %v1389_v44, %v602_v33 }
 0x62d   : > { %v1522_v45 = vsel %vm1078_vm5, %v1076_v26, %v617_v28  ;;  %v1525_v30 = vsel %vm634_vm7, -inf, %v1469_v50  ;;  %vm635_vm8 = vcmp.eq.s32.totalorder %v1389_v44, %v617_v28  ;;  %v632_v38 = vadd.s32 %v631_v58, %v629_v59 }
 0x62e   : > { %v644_v34 = vsel %vm376_vm1, %v1525_v30, -inf  ;;  %v1531_v47 = vsel %vm635_vm8, -inf, %v1476_v51 }
 0x62f   : > { %645 = vmax.xlane.f32.xlu1 %v644_v34  ;;  %v647_v61 = vsel %vm376_vm1, %v1531_v47, -inf  ;;  %v1539_v50 = vsel %vm1078_vm5, %v1077_v60, %v632_v38  ;;  %vm636_vm9 = vcmp.eq.s32.totalorder %v1389_v44, %v632_v38 }
 0x630   : > { %648 = vmax.xlane.f32.xlu0 %v647_v61  ;;  %v1543_v62 = vsel %vm636_vm9, -inf, %v1483_v42 }
 0x631   : > { %v650_v51 = vsel %vm376_vm1, %v1543_v62, -inf }
 0x633   : > { %651 = vmax.xlane.f32.xlu1 %v650_v51 }
 0x6b9   : > { %v643_v63 = vpop.xlane.xlu0 %642 }
 0x6ba   : > { %vm653_vm10 = vcmp.eq.f32.partialorder %v1507_v54, %v643_v63 }
 0x6bb   : > { %v657_v43 = vsel %vm653_vm10, %v1389_v44, 32 }
 0x6bc   : > { %v661_v49 = vsel %vm376_vm1, %v657_v43, 2147483647  ;;  %v646_v0 = vpop.xlane.xlu1 %645 }
 0x6bd   : > { %vm654_vm11 = vcmp.eq.f32.partialorder %v1525_v30, %v646_v0  ;;  %v649_v1 = vpop.xlane.xlu0 %648  ;;  %v663_v2 = vshra.s32 %v661_v49, 16  ;;  %v662_v16 = vand.u32 65535, %v661_v49 }
 0x6be   : > { %v658_v3 = vsel %vm654_vm11, %v1389_v44, 32  ;;  %vm655_vm12 = vcmp.eq.f32.partialorder %v1531_v47, %v649_v1 }
 0x6bf   : > { %v676_v42 = vsel %vm376_vm1, %v658_v3, 2147483647  ;;  %v659_v4 = vsel %vm655_vm12, %v1389_v44, 32  ;;  %v665_v5 = vcvt.s32.f32 %v663_v2  ;;  %v664_v19 = vcvt.s32.f32 %v662_v16 }
 0x6c0   : > { %v691_v6 = vsel %vm376_vm1, %v659_v4, 2147483647  ;;  %v652_v7 = vpop.xlane.xlu1 %651  ;;  %v678_v8 = vshra.s32 %v676_v42, 16  ;;  %v677_v17 = vand.u32 65535, %v676_v42 }
 0x6c1   : > { %vm656_vm13 = vcmp.eq.f32.partialorder %v1543_v62, %v652_v7  ;;  %666 = vmin.xlane.f32.xlu0 %v665_v5  ;;  %v693_v9 = vshra.s32 %v691_v6, 16  ;;  %v692_v20 = vand.u32 65535, %v691_v6 }
 0x6c2   : > { %v660_v10 = vsel %vm656_vm13, %v1389_v44, 32  ;;  %v680_v11 = vcvt.s32.f32 %v678_v8  ;;  %v679_v23 = vcvt.s32.f32 %v677_v17 }
 0x6c3   : > { %v706_v12 = vsel %vm376_vm1, %v660_v10, 2147483647  ;;  %v695_v13 = vcvt.s32.f32 %v693_v9  ;;  %v694_v27 = vcvt.s32.f32 %v692_v20 }
 0x6c4   : > { %681 = vmin.xlane.f32.xlu1 %v680_v11  ;;  %v708_v14 = vshra.s32 %v706_v12, 16  ;;  %v707_v24 = vand.u32 65535, %v706_v12 }
 0x6c5   : > { %696 = vmin.xlane.f32.xlu0 %v695_v13 }
 0x6c6   : > { %v710_v15 = vcvt.s32.f32 %v708_v14  ;;  %v709_v40 = vcvt.s32.f32 %v707_v24 }
 0x6c8   : > { %711 = vmin.xlane.f32.xlu1 %v710_v15 }
 0x74e   : > { %v667_v18 = vpop.xlane.xlu0 %666 }
 0x74f   : > { %vm668_vm14 = vcmp.eq.f32.partialorder %v665_v5, %v667_v18  ;;  %v673_v46 = vcvt.f32.s32 %v667_v18 }
 0x750   : > { %v669_v21 = vsel %vm668_vm14, %v664_v19, inf }
 0x751   : > { %v682_v22 = vpop.xlane.xlu1 %681  ;;  %670 = vmin.xlane.f32.xlu0 %v669_v21  ;;  %v674_v35 = vshll.u32 %v673_v46, 16 }
 0x752   : > { %v697_v25 = vpop.xlane.xlu0 %696  ;;  %vm683_vm15 = vcmp.eq.f32.partialorder %v680_v11, %v682_v22  ;;  %v688_v48 = vcvt.f32.s32 %v682_v22 }
 0x753   : > { %v684_v29 = vsel %vm683_vm15, %v679_v23, inf  ;;  %vm698_vm0 = vcmp.eq.f32.partialorder %v695_v13, %v697_v25  ;;  %v703_v52 = vcvt.f32.s32 %v697_v25 }
 0x754   : > { %685 = vmin.xlane.f32.xlu1 %v684_v29  ;;  %v699_v31 = vsel %vm698_vm0, %v694_v27, inf  ;;  %v689_v26 = vshll.u32 %v688_v48, 16  ;;  %vm1088_vm0 = vcmask 31744  }
 0x755   : > { %v712_v32 = vpop.xlane.xlu1 %711  ;;  %700 = vmin.xlane.f32.xlu0 %v699_v31  ;;  %v704_v58 = vshll.u32 %v703_v52, 16 }
 0x756   : > { %vm713_vm2 = vcmp.eq.f32.partialorder %v710_v15, %v712_v32  ;;  %v718_v28 = vcvt.f32.s32 %v712_v32 }
 0x757   : > { %v714_v41 = vsel %vm713_vm2, %v709_v40, inf }
 0x758   : > { %715 = vmin.xlane.f32.xlu1 %v714_v41  ;;  %v719_v43 = vshll.u32 %v718_v28, 16 }
 0x7de   : > { %v671_v36 = vpop.xlane.xlu0 %670 }
 0x7df   : > { %v672_v39 = vcvt.f32.s32 %v671_v36 }
 0x7e1   : > { %v675_v33 = vadd.s32 %v674_v35, %v672_v39  ;;  %v686_v55 = vpop.xlane.xlu1 %685 }
 0x7e2   : > { %v687_v56 = vcvt.f32.s32 %v686_v55  ;;  %v701_v57 = vpop.xlane.xlu0 %700 }
 0x7e3   : > { %v1561_v59 = vsel %vm1083_vm3, %v1503_v53, %v675_v33  ;;  %v702_v38 = vcvt.f32.s32 %v701_v57  ;;  %vm721_vm4 = vcmp.eq.s32.totalorder %v1389_v44, %v675_v33 }
 0x7e4   : > { %v690_v34 = vadd.s32 %v689_v26, %v687_v56  ;;  %v1565_v60 = vsel %vm721_vm4, -inf, %v1507_v54 }
 0x7e5   : > { %v705_v61 = vadd.s32 %v704_v58, %v702_v38  ;;  %v716_v51 = vpop.xlane.xlu1 %715  ;;  %v729_v63 = vsel %vm376_vm1, %v1565_v60, -inf }
 0x7e6   : > { %v1571_v49 = vsel %vm1083_vm3, %v1518_v37, %v690_v34  ;;  %v717_v0 = vcvt.f32.s32 %v716_v51  ;;  %730 = vmax.xlane.f32.xlu0 %v729_v63  ;;  %vm722_vm5 = vcmp.eq.s32.totalorder %v1389_v44, %v690_v34 }
 0x7e7   : > { %v1576_v53 = vsel %vm1083_vm3, %v1522_v45, %v705_v61  ;;  %v1579_v54 = vsel %vm722_vm5, -inf, %v1525_v30  ;;  %vm723_vm6 = vcmp.eq.s32.totalorder %v1389_v44, %v705_v61 }
 0x7e8   : > { %v720_v1 = vadd.s32 %v719_v43, %v717_v0  ;;  %v732_v2 = vsel %vm376_vm1, %v1579_v54, -inf  ;;  %v1585_v37 = vsel %vm723_vm6, -inf, %v1531_v47 }
 0x7e9   : > { %733 = vmax.xlane.f32.xlu1 %v732_v2  ;;  %v735_v3 = vsel %vm376_vm1, %v1585_v37, -inf }
 0x7ea   : > { %v1591_v45 = vsel %vm1083_vm3, %v1539_v50, %v720_v1  ;;  %736 = vmax.xlane.f32.xlu0 %v735_v3  ;;  %vm724_vm7 = vcmp.eq.s32.totalorder %v1389_v44, %v720_v1 }
 0x7eb   : > { %v1595_v30 = vsel %vm724_vm7, -inf, %v1543_v62 }
 0x7ec   : > { %v738_v42 = vsel %vm376_vm1, %v1595_v30, -inf }
 0x7ed   : > { %739 = vmax.xlane.f32.xlu1 %v738_v42 }
 0x873   : > { %v731_v47 = vpop.xlane.xlu0 %730 }
 0x874   : > { %vm741_vm8 = vcmp.eq.f32.partialorder %v1565_v60, %v731_v47 }
 0x875   : > { %v745_v4 = vsel %vm741_vm8, %v1389_v44, 32 }
 0x876   : > { %v749_v5 = vsel %vm376_vm1, %v745_v4, 2147483647  ;;  %v734_v6 = vpop.xlane.xlu1 %733 }
 0x877   : > { %vm742_vm9 = vcmp.eq.f32.partialorder %v1579_v54, %v734_v6  ;;  %v737_v50 = vpop.xlane.xlu0 %736  ;;  %v751_v7 = vshra.s32 %v749_v5, 16  ;;  %v750_v21 = vand.u32 65535, %v749_v5 }
 0x878   : > { %v746_v8 = vsel %vm742_vm9, %v1389_v44, 32  ;;  %vm743_vm10 = vcmp.eq.f32.partialorder %v1585_v37, %v737_v50 }
 0x879   : > { %v764_v62 = vsel %vm376_vm1, %v746_v8, 2147483647  ;;  %v747_v9 = vsel %vm743_vm10, %v1389_v44, 32  ;;  %v753_v10 = vcvt.s32.f32 %v751_v7  ;;  %v752_v24 = vcvt.s32.f32 %v750_v21 }
 0x87a   : > { %v779_v11 = vsel %vm376_vm1, %v747_v9, 2147483647  ;;  %v740_v12 = vpop.xlane.xlu1 %739  ;;  %v766_v13 = vshra.s32 %v764_v62, 16  ;;  %v765_v22 = vand.u32 65535, %v764_v62 }
 0x87b   : > { %vm744_vm11 = vcmp.eq.f32.partialorder %v1595_v30, %v740_v12  ;;  %754 = vmin.xlane.f32.xlu0 %v753_v10  ;;  %v781_v14 = vshra.s32 %v779_v11, 16  ;;  %v780_v25 = vand.u32 65535, %v779_v11 }
 0x87c   : > { %v748_v15 = vsel %vm744_vm11, %v1389_v44, 32  ;;  %v768_v16 = vcvt.s32.f32 %v766_v13  ;;  %v767_v31 = vcvt.s32.f32 %v765_v22 }
 0x87d   : > { %v794_v17 = vsel %vm376_vm1, %v748_v15, 2147483647  ;;  %v783_v18 = vcvt.s32.f32 %v781_v14  ;;  %v782_v41 = vcvt.s32.f32 %v780_v25 }
 0x87e   : > { %769 = vmin.xlane.f32.xlu1 %v768_v16  ;;  %v796_v19 = vshra.s32 %v794_v17, 16  ;;  %v795_v32 = vand.u32 65535, %v794_v17 }
 0x87f   : > { %784 = vmin.xlane.f32.xlu0 %v783_v18 }
 0x880   : > { %v798_v20 = vcvt.s32.f32 %v796_v19  ;;  %v797_v35 = vcvt.s32.f32 %v795_v32 }
 0x882   : > { %799 = vmin.xlane.f32.xlu1 %v798_v20 }
 0x908   : > { %v755_v23 = vpop.xlane.xlu0 %754 }
 0x909   : > { %vm756_vm12 = vcmp.eq.f32.partialorder %v753_v10, %v755_v23  ;;  %v761_v39 = vcvt.f32.s32 %v755_v23 }
 0x90a   : > { %v757_v27 = vsel %vm756_vm12, %v752_v24, inf }
 0x90b   : > { %v770_v29 = vpop.xlane.xlu1 %769  ;;  %758 = vmin.xlane.f32.xlu0 %v757_v27  ;;  %v762_v26 = vshll.u32 %v761_v39, 16 }
 0x90c   : > { %v785_v40 = vpop.xlane.xlu0 %784  ;;  %vm771_vm13 = vcmp.eq.f32.partialorder %v768_v16, %v770_v29  ;;  %v776_v33 = vcvt.f32.s32 %v770_v29 }
 0x90d   : > { %v772_v46 = vsel %vm771_vm13, %v767_v31, inf  ;;  %vm786_vm14 = vcmp.eq.f32.partialorder %v783_v18, %v785_v40  ;;  %v791_v28 = vcvt.f32.s32 %v785_v40 }
 0x90e   : > { %773 = vmin.xlane.f32.xlu1 %v772_v46  ;;  %v787_v48 = vsel %vm786_vm14, %v782_v41, inf  ;;  %v777_v38 = vshll.u32 %v776_v33, 16  ;;  %vm1093_vm14 = vcmask 39936  }
 0x90f   : > { %v800_v36 = vpop.xlane.xlu1 %799  ;;  %788 = vmin.xlane.f32.xlu0 %v787_v48  ;;  %v792_v63 = vshll.u32 %v791_v28, 16 }
 0x910   : > { %vm801_vm15 = vcmp.eq.f32.partialorder %v798_v20, %v800_v36  ;;  %v806_v34 = vcvt.f32.s32 %v800_v36 }
 0x911   : > { %v802_v52 = vsel %vm801_vm15, %v797_v35, inf }
 0x912   : > { %803 = vmin.xlane.f32.xlu1 %v802_v52  ;;  %v807_v4 = vshll.u32 %v806_v34, 16 }
 0x998   : > { %v759_v55 = vpop.xlane.xlu0 %758 }
 0x999   : > { %v760_v56 = vcvt.f32.s32 %v759_v55 }
 0x99b   : > { %v763_v57 = vadd.s32 %v762_v26, %v760_v56  ;;  %v774_v58 = vpop.xlane.xlu1 %773 }
 0x99c   : > { %v775_v61 = vcvt.f32.s32 %v774_v58  ;;  %v789_v51 = vpop.xlane.xlu0 %788 }
 0x99d   : > { %v1613_v43 = vsel %vm1088_vm0, %v1561_v59, %v763_v57  ;;  %v790_v0 = vcvt.f32.s32 %v789_v51  ;;  %vm809_vm2 = vcmp.eq.s32.totalorder %v1389_v44, %v763_v57 }
 0x99e   : > { %v778_v1 = vadd.s32 %v777_v38, %v775_v61  ;;  %v1617_v2 = vsel %vm809_vm2, -inf, %v1565_v60 }
 0x99f   : > { %v793_v3 = vadd.s32 %v792_v63, %v790_v0  ;;  %v804_v42 = vpop.xlane.xlu1 %803  ;;  %v817_v47 = vsel %vm376_vm1, %v1617_v2, -inf }
 0x9a0   : > { %v1623_v5 = vsel %vm1088_vm0, %v1571_v49, %v778_v1  ;;  %v805_v6 = vcvt.f32.s32 %v804_v42  ;;  %818 = vmax.xlane.f32.xlu0 %v817_v47  ;;  %vm810_vm3 = vcmp.eq.s32.totalorder %v1389_v44, %v778_v1 }
 0x9a1   : > { %v1628_v59 = vsel %vm1088_vm0, %v1576_v53, %v793_v3  ;;  %v1631_v60 = vsel %vm810_vm3, -inf, %v1579_v54  ;;  %vm811_vm4 = vcmp.eq.s32.totalorder %v1389_v44, %v793_v3 }
 0x9a2   : > { %v808_v50 = vadd.s32 %v807_v4, %v805_v6  ;;  %v820_v7 = vsel %vm376_vm1, %v1631_v60, -inf  ;;  %v1637_v49 = vsel %vm811_vm4, -inf, %v1585_v37 }
 0x9a3   : > { %821 = vmax.xlane.f32.xlu1 %v820_v7  ;;  %v823_v8 = vsel %vm376_vm1, %v1637_v49, -inf }
 0x9a4   : > { %v1643_v53 = vsel %vm1088_vm0, %v1591_v45, %v808_v50  ;;  %824 = vmax.xlane.f32.xlu0 %v823_v8  ;;  %vm812_vm5 = vcmp.eq.s32.totalorder %v1389_v44, %v808_v50 }
 0x9a5   : > { %v1647_v54 = vsel %vm812_vm5, -inf, %v1595_v30 }
 0x9a6   : > { %v826_v62 = vsel %vm376_vm1, %v1647_v54, -inf }
 0x9a7   : > { %827 = vmax.xlane.f32.xlu1 %v826_v62 }
 0xa2d   : > { %v819_v37 = vpop.xlane.xlu0 %818 }
 0xa2e   : > { %vm829_vm6 = vcmp.eq.f32.partialorder %v1617_v2, %v819_v37 }
 0xa2f   : > { %v833_v9 = vsel %vm829_vm6, %v1389_v44, 32 }
 0xa30   : > { %v837_v10 = vsel %vm376_vm1, %v833_v9, 2147483647  ;;  %v822_v11 = vpop.xlane.xlu1 %821 }
 0xa31   : > { %vm830_vm7 = vcmp.eq.f32.partialorder %v1631_v60, %v822_v11  ;;  %v825_v45 = vpop.xlane.xlu0 %824  ;;  %v839_v12 = vshra.s32 %v837_v10, 16  ;;  %v838_v27 = vand.u32 65535, %v837_v10 }
 0xa32   : > { %v834_v13 = vsel %vm830_vm7, %v1389_v44, 32  ;;  %vm831_vm8 = vcmp.eq.f32.partialorder %v1637_v49, %v825_v45 }
 0xa33   : > { %v852_v30 = vsel %vm376_vm1, %v834_v13, 2147483647  ;;  %v835_v14 = vsel %vm831_vm8, %v1389_v44, 32  ;;  %v841_v15 = vcvt.s32.f32 %v839_v12  ;;  %v840_v32 = vcvt.s32.f32 %v838_v27 }
 0xa34   : > { %v867_v16 = vsel %vm376_vm1, %v835_v14, 2147483647  ;;  %v828_v17 = vpop.xlane.xlu1 %827  ;;  %v854_v18 = vshra.s32 %v852_v30, 16  ;;  %v853_v29 = vand.u32 65535, %v852_v30 }
 0xa35   : > { %vm832_vm9 = vcmp.eq.f32.partialorder %v1647_v54, %v828_v17  ;;  %842 = vmin.xlane.f32.xlu0 %v841_v15  ;;  %v869_v19 = vshra.s32 %v867_v16, 16  ;;  %v868_v40 = vand.u32 65535, %v867_v16 }
 0xa36   : > { %v836_v20 = vsel %vm832_vm9, %v1389_v44, 32  ;;  %v856_v21 = vcvt.s32.f32 %v854_v18  ;;  %v855_v48 = vcvt.s32.f32 %v853_v29 }
 0xa37   : > { %v882_v22 = vsel %vm376_vm1, %v836_v20, 2147483647  ;;  %v871_v23 = vcvt.s32.f32 %v869_v19  ;;  %v870_v52 = vcvt.s32.f32 %v868_v40 }
 0xa38   : > { %857 = vmin.xlane.f32.xlu1 %v856_v21  ;;  %v884_v24 = vshra.s32 %v882_v22, 16  ;;  %v883_v36 = vand.u32 65535, %v882_v22 }
 0xa39   : > { %872 = vmin.xlane.f32.xlu0 %v871_v23 }
 0xa3a   : > { %v886_v25 = vcvt.s32.f32 %v884_v24  ;;  %v885_v26 = vcvt.s32.f32 %v883_v36 }
 0xa3c   : > { %887 = vmin.xlane.f32.xlu1 %v886_v25 }
 0xac2   : > { %v843_v31 = vpop.xlane.xlu0 %842 }
 0xac3   : > { %vm844_vm10 = vcmp.eq.f32.partialorder %v841_v15, %v843_v31  ;;  %v849_v56 = vcvt.f32.s32 %v843_v31 }
 0xac4   : > { %v845_v41 = vsel %vm844_vm10, %v840_v32, inf }
 0xac5   : > { %v858_v46 = vpop.xlane.xlu1 %857  ;;  %846 = vmin.xlane.f32.xlu0 %v845_v41  ;;  %v850_v38 = vshll.u32 %v849_v56, 16 }
 0xac6   : > { %v873_v35 = vpop.xlane.xlu0 %872  ;;  %vm859_vm11 = vcmp.eq.f32.partialorder %v856_v21, %v858_v46  ;;  %v864_v57 = vcvt.f32.s32 %v858_v46 }
 0xac7   : > { %v860_v39 = vsel %vm859_vm11, %v855_v48, inf  ;;  %vm874_vm12 = vcmp.eq.f32.partialorder %v871_v23, %v873_v35  ;;  %v879_v34 = vcvt.f32.s32 %v873_v35 }
 0xac8   : > { %861 = vmin.xlane.f32.xlu1 %v860_v39  ;;  %v875_v33 = vsel %vm874_vm12, %v870_v52, inf  ;;  %v865_v0 = vshll.u32 %v864_v57, 16  ;;  %vm1098_vm12 = vcmask 48128  }
 0xac9   : > { %v888_v55 = vpop.xlane.xlu1 %887  ;;  %876 = vmin.xlane.f32.xlu0 %v875_v33  ;;  %v880_v47 = vshll.u32 %v879_v34, 16 }
 0xaca   : > { %vm889_vm13 = vcmp.eq.f32.partialorder %v886_v25, %v888_v55  ;;  %v894_v1 = vcvt.f32.s32 %v888_v55 }
 0xacb   : > { %v890_v28 = vsel %vm889_vm13, %v885_v26, inf }
 0xacc   : > { %891 = vmin.xlane.f32.xlu1 %v890_v28  ;;  %v895_v9 = vshll.u32 %v894_v1, 16 }
 0xb52   : > { %v847_v58 = vpop.xlane.xlu0 %846 }
 0xb53   : > { %v848_v61 = vcvt.f32.s32 %v847_v58 }
 0xb55   : > { %v851_v51 = vadd.s32 %v850_v38, %v848_v61  ;;  %v862_v63 = vpop.xlane.xlu1 %861 }
 0xb56   : > { %v863_v3 = vcvt.f32.s32 %v862_v63  ;;  %v877_v42 = vpop.xlane.xlu0 %876 }
 0xb57   : > { %v1665_v4 = vsel %vm1093_vm14, %v1613_v43, %v851_v51  ;;  %v878_v6 = vcvt.f32.s32 %v877_v42  ;;  %vm897_vm15 = vcmp.eq.s32.totalorder %v1389_v44, %v851_v51 }
 0xb58   : > { %v866_v50 = vadd.s32 %v865_v0, %v863_v3  ;;  %v1669_v7 = vsel %vm897_vm15, -inf, %v1617_v2 }
 0xb59   : > { %v881_v8 = vadd.s32 %v880_v47, %v878_v6  ;;  %v892_v62 = vpop.xlane.xlu1 %891  ;;  %v905_v37 = vsel %vm376_vm1, %v1669_v7, -inf }
 0xb5a   : > { %v1675_v10 = vsel %vm1093_vm14, %v1623_v5, %v866_v50  ;;  %v893_v11 = vcvt.f32.s32 %v892_v62  ;;  %906 = vmax.xlane.f32.xlu0 %v905_v37  ;;  %vm898_vm0 = vcmp.eq.s32.totalorder %v1389_v44, %v866_v50 }
 0xb5b   : > { %v1680_v43 = vsel %vm1093_vm14, %v1628_v59, %v881_v8  ;;  %v1683_v2 = vsel %vm898_vm0, -inf, %v1631_v60  ;;  %vm899_vm2 = vcmp.eq.s32.totalorder %v1389_v44, %v881_v8 }
 0xb5c   : > { %v896_v45 = vadd.s32 %v895_v9, %v893_v11  ;;  %v908_v12 = vsel %vm376_vm1, %v1683_v2, -inf  ;;  %v1689_v5 = vsel %vm899_vm2, -inf, %v1637_v49 }
 0xb5d   : > { %909 = vmax.xlane.f32.xlu1 %v908_v12  ;;  %v911_v13 = vsel %vm376_vm1, %v1689_v5, -inf }
 0xb5e   : > { %v1695_v59 = vsel %vm1093_vm14, %v1643_v53, %v896_v45  ;;  %912 = vmax.xlane.f32.xlu0 %v911_v13  ;;  %vm900_vm3 = vcmp.eq.s32.totalorder %v1389_v44, %v896_v45 }
 0xb5f   : > { %v1699_v60 = vsel %vm900_vm3, -inf, %v1647_v54 }
 0xb60   : > { %v914_v30 = vsel %vm376_vm1, %v1699_v60, -inf }
 0xb61   : > { %915 = vmax.xlane.f32.xlu1 %v914_v30 }
 0xbe7   : > { %v907_v49 = vpop.xlane.xlu0 %906 }
 0xbe8   : > { %vm917_vm4 = vcmp.eq.f32.partialorder %v1669_v7, %v907_v49 }
 0xbe9   : > { %v921_v14 = vsel %vm917_vm4, %v1389_v44, 32 }
 0xbea   : > { %v925_v15 = vsel %vm376_vm1, %v921_v14, 2147483647  ;;  %v910_v16 = vpop.xlane.xlu1 %909 }
 0xbeb   : > { %vm918_vm5 = vcmp.eq.f32.partialorder %v1683_v2, %v910_v16  ;;  %v913_v53 = vpop.xlane.xlu0 %912  ;;  %v927_v17 = vshra.s32 %v925_v15, 16  ;;  %v926_v41 = vand.u32 65535, %v925_v15 }
 0xbec   : > { %v922_v18 = vsel %vm918_vm5, %v1389_v44, 32  ;;  %vm919_vm6 = vcmp.eq.f32.partialorder %v1689_v5, %v913_v53 }
 0xbed   : > { %v940_v54 = vsel %vm376_vm1, %v922_v18, 2147483647  ;;  %v923_v19 = vsel %vm919_vm6, %v1389_v44, 32  ;;  %v929_v20 = vcvt.s32.f32 %v927_v17  ;;  %v928_v36 = vcvt.s32.f32 %v926_v41 }
 0xbee   : > { %v955_v21 = vsel %vm376_vm1, %v923_v19, 2147483647  ;;  %v916_v22 = vpop.xlane.xlu1 %915  ;;  %v942_v23 = vshra.s32 %v940_v54, 16  ;;  %v941_v46 = vand.u32 65535, %v940_v54 }
 0xbef   : > { %vm920_vm7 = vcmp.eq.f32.partialorder %v1699_v60, %v916_v22  ;;  %930 = vmin.xlane.f32.xlu0 %v929_v20  ;;  %v957_v24 = vshra.s32 %v955_v21, 16  ;;  %v956_v35 = vand.u32 65535, %v955_v21 }
 0xbf0   : > { %v924_v25 = vsel %vm920_vm7, %v1389_v44, 32  ;;  %v944_v27 = vcvt.s32.f32 %v942_v23  ;;  %v943_v33 = vcvt.s32.f32 %v941_v46 }
 0xbf1   : > { %v970_v29 = vsel %vm376_vm1, %v924_v25, 2147483647  ;;  %v959_v31 = vcvt.s32.f32 %v957_v24  ;;  %v958_v28 = vcvt.s32.f32 %v956_v35 }
 0xbf2   : > { %945 = vmin.xlane.f32.xlu1 %v944_v27  ;;  %v972_v32 = vshra.s32 %v970_v29, 16  ;;  %v971_v55 = vand.u32 65535, %v970_v29 }
 0xbf3   : > { %960 = vmin.xlane.f32.xlu0 %v959_v31 }
 0xbf4   : > { %v974_v40 = vcvt.s32.f32 %v972_v32  ;;  %v973_v38 = vcvt.s32.f32 %v971_v55 }
 0xbf6   : > { %975 = vmin.xlane.f32.xlu1 %v974_v40 }
 0xc7c   : > { %v931_v48 = vpop.xlane.xlu0 %930 }
 0xc7d   : > { %vm932_vm8 = vcmp.eq.f32.partialorder %v929_v20, %v931_v48  ;;  %v937_v61 = vcvt.f32.s32 %v931_v48 }
 0xc7e   : > { %v933_v52 = vsel %vm932_vm8, %v928_v36, inf }
 0xc7f   : > { %v946_v39 = vpop.xlane.xlu1 %945  ;;  %934 = vmin.xlane.f32.xlu0 %v933_v52  ;;  %v938_v0 = vshll.u32 %v937_v61, 16 }
 0xc80   : > { %v961_v26 = vpop.xlane.xlu0 %960  ;;  %vm947_vm9 = vcmp.eq.f32.partialorder %v944_v27, %v946_v39  ;;  %v952_v51 = vcvt.f32.s32 %v946_v39 }
 0xc81   : > { %v948_v56 = vsel %vm947_vm9, %v943_v33, inf  ;;  %vm962_vm10 = vcmp.eq.f32.partialorder %v959_v31, %v961_v26  ;;  %v967_v1 = vcvt.f32.s32 %v961_v26  ;;  %vm1103_vm9 = vcmask 56320  }
 0xc82   : > { %949 = vmin.xlane.f32.xlu1 %v948_v56  ;;  %v963_v57 = vsel %vm962_vm10, %v958_v28, inf  ;;  %v953_v6 = vshll.u32 %v952_v51, 16  ;;  %vm1108_vm10 = vcmask 64512  }
 0xc83   : > { %v976_v58 = vpop.xlane.xlu1 %975  ;;  %964 = vmin.xlane.f32.xlu0 %v963_v57  ;;  %v968_v37 = vshll.u32 %v967_v1, 16 }
 0xc84   : > { %vm977_vm11 = vcmp.eq.f32.partialorder %v974_v40, %v976_v58  ;;  %v982_v50 = vcvt.f32.s32 %v976_v58 }
 0xc85   : > { %v978_v34 = vsel %vm977_vm11, %v973_v38, inf }
 0xc86   : > { %979 = vmin.xlane.f32.xlu1 %v978_v34  ;;  %v983_v14 = vshll.u32 %v982_v50, 16 }
 0xd0c   : > { %v935_v63 = vpop.xlane.xlu0 %934 }
 0xd0d   : > { %v936_v3 = vcvt.f32.s32 %v935_v63 }
 0xd0f   : > { %v939_v42 = vadd.s32 %v938_v0, %v936_v3  ;;  %v950_v47 = vpop.xlane.xlu1 %949 }
 0xd10   : > { %v951_v8 = vcvt.f32.s32 %v950_v47  ;;  %v965_v62 = vpop.xlane.xlu0 %964 }
 0xd11   : > { %v1717_v9 = vsel %vm1098_vm12, %v1665_v4, %v939_v42  ;;  %v966_v11 = vcvt.f32.s32 %v965_v62  ;;  %vm985_vm13 = vcmp.eq.s32.totalorder %v1389_v44, %v939_v42 }
 0xd12   : > { %v954_v45 = vadd.s32 %v953_v6, %v951_v8  ;;  %v989_v12 = vsel %vm985_vm13, -inf, %v1669_v7 }
 0xd13   : > { %v969_v13 = vadd.s32 %v968_v37, %v966_v11  ;;  %v980_v30 = vpop.xlane.xlu1 %979  ;;  %v993_v49 = vsel %vm376_vm1, %v989_v12, -inf }
 0xd14   : > { %v1724_v15 = vsel %vm1098_vm12, %v1675_v10, %v954_v45  ;;  %v981_v16 = vcvt.f32.s32 %v980_v30  ;;  %994 = vmax.xlane.f32.xlu0 %v993_v49  ;;  %vm986_vm14 = vcmp.eq.s32.totalorder %v1389_v44, %v954_v45 }
 0xd15   : > { %v1729_v4 = vsel %vm1098_vm12, %v1680_v43, %v969_v13  ;;  %v990_v53 = vsel %vm986_vm14, -inf, %v1683_v2  ;;  %vm987_vm15 = vcmp.eq.s32.totalorder %v1389_v44, %v969_v13 }
 0xd16   : > { %v984_v7 = vadd.s32 %v983_v14, %v981_v16  ;;  %v996_v17 = vsel %vm376_vm1, %v990_v53, -inf  ;;  %v991_v18 = vsel %vm987_vm15, -inf, %v1689_v5 }
 0xd17   : > { %997 = vmax.xlane.f32.xlu1 %v996_v17  ;;  %v999_v10 = vsel %vm376_vm1, %v991_v18, -inf }
 0xd18   : > { %v1738_v54 = vsel %vm1098_vm12, %v1695_v59, %v984_v7  ;;  %1000 = vmax.xlane.f32.xlu0 %v999_v10  ;;  %vm988_vm0 = vcmp.eq.s32.totalorder %v1389_v44, %v984_v7 }
 0xd19   : > { %v992_v43 = vsel %vm988_vm0, -inf, %v1699_v60 }
 0xd1a   : > { %v1002_v2 = vsel %vm376_vm1, %v992_v43, -inf }
 0xd1b   : > { %1003 = vmax.xlane.f32.xlu1 %v1002_v2 }
 0xda1   : > { %v995_v19 = vpop.xlane.xlu0 %994 }
 0xda2   : > { %vm1005_vm2 = vcmp.eq.f32.partialorder %v989_v12, %v995_v19 }
 0xda3   : > { %v1009_v20 = vsel %vm1005_vm2, %v1389_v44, 32 }
 0xda4   : > { %v1013_v5 = vsel %vm376_vm1, %v1009_v20, 2147483647  ;;  %v998_v21 = vpop.xlane.xlu1 %997 }
 0xda5   : > { %vm1006_vm3 = vcmp.eq.f32.partialorder %v990_v53, %v998_v21  ;;  %v1001_v22 = vpop.xlane.xlu0 %1000  ;;  %v1015_v23 = vshra.s32 %v1013_v5, 16  ;;  %v1014_v52 = vand.u32 65535, %v1013_v5 }
 0xda6   : > { %v1010_v59 = vsel %vm1006_vm3, %v1389_v44, 32  ;;  %vm1007_vm4 = vcmp.eq.f32.partialorder %v991_v18, %v1001_v22 }
 0xda7   : > { %v1028_v24 = vsel %vm376_vm1, %v1010_v59, 2147483647  ;;  %v1011_v60 = vsel %vm1007_vm4, %v1389_v44, 32  ;;  %v1017_v25 = vcvt.s32.f32 %v1015_v23  ;;  %v1016_v26 = vcvt.s32.f32 %v1014_v52 }
 0xda8   : > { %v1043_v27 = vsel %vm376_vm1, %v1011_v60, 2147483647  ;;  %v1004_v29 = vpop.xlane.xlu1 %1003  ;;  %v1030_v31 = vshra.s32 %v1028_v24, 16  ;;  %v1029_v39 = vand.u32 65535, %v1028_v24 }
 0xda9   : > { %vm1008_vm5 = vcmp.eq.f32.partialorder %v992_v43, %v1004_v29  ;;  %1018 = vmin.xlane.f32.xlu0 %v1017_v25  ;;  %v1045_v32 = vshra.s32 %v1043_v27, 16  ;;  %v1044_v33 = vand.u32 65535, %v1043_v27 }
 0xdaa   : > { %v1012_v40 = vsel %vm1008_vm5, %v1389_v44, 32  ;;  %v1032_v41 = vcvt.s32.f32 %v1030_v31  ;;  %v1031_v44 = vcvt.s32.f32 %v1029_v39 }
 0xdab   : > { %v1058_v46 = vsel %vm376_vm1, %v1012_v40, 2147483647  ;;  %v1047_v48 = vcvt.s32.f32 %v1045_v32  ;;  %v1046_v38 = vcvt.s32.f32 %v1044_v33 }
 0xdac   : > { %1033 = vmin.xlane.f32.xlu1 %v1032_v41  ;;  %v1060_v36 = vshra.s32 %v1058_v46, 16  ;;  %v1059_v56 = vand.u32 65535, %v1058_v46 }
 0xdad   : > { %1048 = vmin.xlane.f32.xlu0 %v1047_v48 }
 0xdae   : > { %v1062_v35 = vcvt.s32.f32 %v1060_v36  ;;  %v1061_v63 = vcvt.s32.f32 %v1059_v56 }
 0xdb0   : > { %1063 = vmin.xlane.f32.xlu1 %v1062_v35 }
 0xe36   : > { %v1019_v55 = vpop.xlane.xlu0 %1018 }
 0xe37   : > { %vm1020_vm6 = vcmp.eq.f32.partialorder %v1017_v25, %v1019_v55  ;;  %v1025_v1 = vcvt.f32.s32 %v1019_v55 }
 0xe38   : > { %v1021_v28 = vsel %vm1020_vm6, %v1016_v26, inf }
 0xe39   : > { %v1034_v57 = vpop.xlane.xlu1 %1033  ;;  %1022 = vmin.xlane.f32.xlu0 %v1021_v28  ;;  %v1026_v47 = vshll.u32 %v1025_v1, 16 }
 0xe3a   : > { %v1049_v58 = vpop.xlane.xlu0 %1048  ;;  %vm1035_vm1 = vcmp.eq.f32.partialorder %v1032_v41, %v1034_v57  ;;  %v1040_v3 = vcvt.f32.s32 %v1034_v57 }
 0xe3b   : > { %vm1050_vm7 = vcmp.eq.f32.partialorder %v1047_v48, %v1049_v58  ;;  %v1036_v34 = vsel %vm1035_vm1, %v1031_v44, inf  ;;  %v1055_v6 = vcvt.f32.s32 %v1049_v58 }
 0xe3c   : > { %1037 = vmin.xlane.f32.xlu1 %v1036_v34  ;;  %v1051_v61 = vsel %vm1050_vm7, %v1046_v38, inf  ;;  %v1041_v37 = vshll.u32 %v1040_v3, 16 }
 0xe3d   : > { %v1064_v51 = vpop.xlane.xlu1 %1063  ;;  %1052 = vmin.xlane.f32.xlu0 %v1051_v61  ;;  %v1056_v13 = vshll.u32 %v1055_v6, 16 }
 0xe3e   : > { %vm1065_vm8 = vcmp.eq.f32.partialorder %v1062_v35, %v1064_v51  ;;  %v1070_v11 = vcvt.f32.s32 %v1064_v51 }
 0xe3f   : > { %v1066_v0 = vsel %vm1065_vm8, %v1061_v63, inf }
 0xe40   : > { %1067 = vmin.xlane.f32.xlu1 %v1066_v0  ;;  %v1071_v7 = vshll.u32 %v1070_v11, 16 }
 0xec6   : > { %v1023_v42 = vpop.xlane.xlu0 %1022 }
 0xec7   : > { %v1024_v50 = vcvt.f32.s32 %v1023_v42 }
 0xec9   : > { %v1027_v8 = vadd.s32 %v1026_v47, %v1024_v50  ;;  %v1038_v62 = vpop.xlane.xlu1 %1037 }
 0xeca   : > { %v1039_v45 = vcvt.f32.s32 %v1038_v62  ;;  %v1053_v12 = vpop.xlane.xlu0 %1052 }
 0xecb   : > { %v1104_v30 = vsel %vm1103_vm9, %v1717_v9, %v1027_v8  ;;  %v1054_v49 = vcvt.f32.s32 %v1053_v12 }
 0xecc   : > { %1109 = vst.msk [vmem:[%s242_s29] sm:$0xff] %vm1108_vm10, %v1104_v30  ;;  %v1042_v14 = vadd.s32 %v1041_v37, %v1039_v45 }
 0xecd   : > { %v1057_v16 = vadd.s32 %v1056_v13, %v1054_v49  ;;  %v1068_v53 = vpop.xlane.xlu1 %1067 }
 0xece   : > { %v1105_v17 = vsel %vm1103_vm9, %v1724_v15, %v1042_v14  ;;  %v1069_v18 = vcvt.f32.s32 %v1068_v53 }
 0xecf   : > { %1110 = vst.msk [vmem:[%s242_s29 + $0x8] sm:$0xff] %vm1108_vm10, %v1105_v17  ;;  %v1106_v10 = vsel %vm1103_vm9, %v1729_v4, %v1057_v16 }
 0xed0   : > { %1111 = vst.msk [vmem:[%s242_s29 + $0x10] sm:$0xff] %vm1108_vm10, %v1106_v10  ;;  %v1072_v43 = vadd.s32 %v1071_v7, %v1069_v18 }
 0xed2   : > { %v1107_v9 = vsel %vm1103_vm9, %v1738_v54, %v1072_v43 }
 0xed3   : > { %1112 = vst.msk [vmem:[%s242_s29 + $0x18] sm:$0xff] %vm1108_vm10, %v1107_v9 }
 0xed4 PF: > { %s13_s14 = sadd.s32 1, %s1310_s14   ;;  %s1780_s12 = smov %s1306_s13 }
 0xed5   : > { %p10_p5 = scmp.ge.s32.totalorder %s13_s14, 4   ;;  %s1781_s13 = smov %s1783_s15 }
 0xed7   :  { %12 = sbr.rel (!%p10_p5) target bundleno = 2 (0x2), region = 68 }

// kernel: neg.33
= control target key start
LH: loop header
LB: loop body
LE: loop exit
PB: predicated region body
PF: predicated region fallthrough
CT: control target
= control target key end

     0   :  { %s24_s0 = inlined_call_operand.vmem [shape: f32[64], index: 0, kind: input, shape index: {}]   ;;  %s25_s1 = inlined_call_operand.vmem [shape: f32[64], index: 1, kind: output, shape index: {}]  }
   0x1   :  { %v2_v0 = vld [vmem:[%s24_s0] sm:$0x1] }
   0x2   :  { %v5_v1 = vxor.u32 2147483648, %v2_v0 }
   0x4   :  { %7 = vst [vmem:[%s25_s1] sm:$0x1] %v5_v1 }

// kernel: dgcnn_with_color_forward.18
= control target key start
LH: loop header
LB: loop body
LE: loop exit
PB: predicated region body
PF: predicated region fallthrough
CT: control target
= control target key end

     0   :  { %v167_v6 = vlaneseq  ;;  %v2299_v12 = vmov 1966171168   ;;  %s4704_s0 = inlined_call_operand.vmem [shape: bf16[64,8,64], index: 0, kind: input, shape index: {}]   ;;  %s4705_s1 = inlined_call_operand.vmem [shape: bf16[64,64], index: 1, kind: input, shape index: {}]   ;;  %s4706_s2 = inlined_call_operand.vmem [shape: bf16[64,64], index: 2, kind: output, shape index: {}]  }
   0x1   :  { %v2318_v0 = vld [vmem:[%s4704_s0] sm:$0xff]   ;;  %v2323_v1 = vld [vmem:[%s4704_s0 + $0x8] sm:$0xff]   ;;  %v2328_v2 = vld [vmem:[%s4704_s0 + $0x10] sm:$0xff]   ;;  %v2358_v13 = vunpack.c.l.s4 %v2299_v12 }
   0x2   :  { %v2333_v3 = vld [vmem:[%s4704_s0 + $0x18] sm:$0xff]   ;;  %v2338_v4 = vld [vmem:[%s4704_s0 + $0x20] sm:$0xff]   ;;  %v2343_v5 = vld [vmem:[%s4704_s0 + $0x28] sm:$0xff]   ;;  %v2464_v60 = vshrl.u32 %v167_v6, 7 }
   0x3   :  { %4833 = vst [vmem:[#allocation2_spill] sm:$0xff] %v2343_v5  ;;  %v2351_v10 = vld [vmem:[%s4704_s0 + $0x30] sm:$0xff]   ;;  %v2356_v11 = vld [vmem:[%s4704_s0 + $0x38] sm:$0xff]   ;;  %v2367_v18 = vld [vmem:[%s4704_s0 + $0x40] sm:$0xff]   ;;  %v166_v59 = vunpack.c.0.s8 %v2358_v13 }
   0x4   :  { %4834 = vst [vmem:[#allocation3_spill] sm:$0xff] %v2351_v10  ;;  %4835 = vst [vmem:[#allocation4_spill] sm:$0xff] %v2356_v11  ;;  %v2372_v19 = vld [vmem:[%s4704_s0 + $0x48] sm:$0xff]   ;;  %v2381_v24 = vld [vmem:[%s4704_s0 + $0x50] sm:$0xff]   ;;  %v2594_v9 = vsub.s32 0, %v2464_v60 }
   0x5   :  { %4836 = vst [vmem:[#allocation5_spill] sm:$0xff] %v2367_v18  ;;  %4837 = vst [vmem:[#allocation6_spill] sm:$0xff] %v2372_v19  ;;  %v2386_v25 = vld [vmem:[%s4704_s0 + $0x58] sm:$0xff]   ;;  %v2395_v30 = vld [vmem:[%s4704_s0 + $0x60] sm:$0xff]   ;;  %v2509_v49 = vsub.s32 %v166_v59, %v2464_v60 }
   0x6   :  { %4838 = vst [vmem:[#allocation7_spill] sm:$0xff] %v2381_v24  ;;  %4839 = vst [vmem:[#allocation8_spill] sm:$0xff] %v2386_v25  ;;  %v2400_v31 = vld [vmem:[%s4704_s0 + $0x68] sm:$0xff]   ;;  %v2409_v36 = vld [vmem:[%s4704_s0 + $0x70] sm:$0xff]  }
   0x7   :  { %4840 = vst [vmem:[#allocation9_spill] sm:$0xff] %v2395_v30  ;;  %4841 = vst [vmem:[#allocation10_spill] sm:$0xff] %v2400_v31  ;;  %v2414_v37 = vld [vmem:[%s4704_s0 + $0x78] sm:$0xff]   ;;  %v2423_v42 = vld [vmem:[%s4704_s0 + $0x80] sm:$0xff]  }
   0x8   :  { %4842 = vst [vmem:[#allocation11_spill] sm:$0xff] %v2409_v36  ;;  %4843 = vst [vmem:[#allocation12_spill] sm:$0xff] %v2414_v37  ;;  %v2432_v47 = vld [vmem:[%s4704_s0 + $0x88] sm:$0xff]   ;;  %v2437_v48 = vld [vmem:[%s4704_s0 + $0x90] sm:$0xff]  }
   0x9   :  { %4844 = vst [vmem:[#allocation13_spill] sm:$0xff] %v2423_v42  ;;  %4845 = vst [vmem:[#allocation14_spill] sm:$0xff] %v2432_v47  ;;  %v2446_v53 = vld [vmem:[%s4704_s0 + $0x98] sm:$0xff]   ;;  %v2249_v54 = vld [vmem:[%s4705_s1] sm:$0xff]  }
   0xa   :  { %4846 = vst [vmem:[#allocation15_spill] sm:$0xff] %v2437_v48  ;;  %4847 = vst [vmem:[#allocation16_spill] sm:$0xff] %v2446_v53  ;;  %v2456_v57 = vld [vmem:[%s4704_s0 + $0xa0] sm:$0xff]   ;;  %v2461_v58 = vld [vmem:[%s4704_s0 + $0xa8] sm:$0xff]   ;;  %v2250_v62 = vunpack.c.l.bf16 %v2249_v54  ;;  %v2251_v52 = vunpack.c.h.bf16 %v2249_v54 }
   0xb   :  { %4848 = vst [vmem:[#allocation17_spill] sm:$0xff] %v2456_v57  ;;  %4849 = vst [vmem:[#allocation18_spill] sm:$0xff] %v2461_v58  ;;  %v2473_v56 = vld [vmem:[%s4704_s0 + $0xb0] sm:$0xff]   ;;  %v2481_v13 = vld [vmem:[%s4704_s0 + $0xb8] sm:$0xff]  }
   0xc   :  { %4850 = vst [vmem:[#allocation19_spill] sm:$0xff] %v2473_v56  ;;  %4851 = vst [vmem:[#allocation20_spill] sm:$0xff] %v2481_v13  ;;  %v2489_v55 = vld [vmem:[%s4704_s0 + $0xc0] sm:$0xff]   ;;  %v2494_v6 = vld [vmem:[%s4704_s0 + $0xc8] sm:$0xff]   ;;  %v163_v63 = vcombine.high %v2250_v62, %v2250_v62  ;;  %v212_v44 = vcombine.high %v2251_v52, %v2251_v52  ;;  %v170_v39 = vrot.slane %v2250_v62, %v2509_v49 }
   0xd   :  { %4852 = vst [vmem:[#allocation21_spill] sm:$0xff] %v2489_v55  ;;  %4853 = vst [vmem:[#allocation22_spill] sm:$0xff] %v2494_v6  ;;  %v2501_v12 = vld [vmem:[%s4704_s0 + $0xd0] sm:$0xff]   ;;  %v2506_v61 = vld [vmem:[%s4704_s0 + $0xd8] sm:$0xff]   ;;  %v219_v51 = vrot.slane %v2251_v52, %v2509_v49 }
   0xe   :  { %4854 = vst [vmem:[#allocation23_spill] sm:$0xff] %v2501_v12  ;;  %4855 = vst [vmem:[#allocation24_spill] sm:$0xff] %v2506_v61  ;;  %v2517_v46 = vld [vmem:[%s4704_s0 + $0xe0] sm:$0xff]   ;;  %v2295_v45 = vld [vmem:[%s4705_s1 + $0x8] sm:$0xff]   ;;  %v177_v38 = vrot.slane %v163_v63, %v2509_v49  ;;  %v226_v34 = vrot.slane %v212_v44, %v2509_v49  ;;  %v178_v26 = vcombine.high %v170_v39, %v170_v39 }
   0xf   :  { %4856 = vst [vmem:[#allocation25_spill] sm:$0xff] %v2517_v46  ;;  %v2529_v50 = vld [vmem:[%s4704_s0 + $0xe8] sm:$0xff]   ;;  %v2538_v59 = vld [vmem:[%s4704_s0 + $0xf0] sm:$0xff]   ;;  %v2544_v54 = vld [vmem:[%s4704_s0 + $0xf8] sm:$0xff]   ;;  %v2254_v43 = vunpack.c.l.bf16 %v2295_v45  ;;  %v2255_v29 = vunpack.c.h.bf16 %v2295_v45  ;;  %v227_v22 = vcombine.high %v219_v51, %v219_v51  ;;  %v2565_v20 = vrot.slane %v170_v39, %v2509_v49 }
  0x10   :  { %4857 = vst [vmem:[#allocation26_spill] sm:$0xff] %v2529_v50  ;;  %4858 = vst [vmem:[#allocation27_spill] sm:$0xff] %v2538_v59  ;;  %v2296_v40 = vld [vmem:[%s4705_s1 + $0x10] sm:$0xff]   ;;  %v2297_v28 = vld [vmem:[%s4705_s1 + $0x18] sm:$0xff]   ;;  %v179_v44 = vcombine.high %v177_v38, %v177_v38  ;;  %v228_v32 = vcombine.high %v226_v34, %v226_v34  ;;  %v2569_v41 = vrot.slane %v177_v38, %v2509_v49 }
  0x11   :  { %4859 = vst [vmem:[#allocation28_spill] sm:$0xff] %v2544_v54  ;;  %v261_v62 = vcombine.high %v2254_v43, %v2254_v43  ;;  %v2258_v27 = vunpack.c.l.bf16 %v2296_v40  ;;  %v2259_v52 = vunpack.c.h.bf16 %v2296_v40  ;;  %v310_v23 = vcombine.high %v2255_v29, %v2255_v29 }
  0x12   :  { %v2262_v33 = vunpack.c.l.bf16 %v2297_v28  ;;  %v268_v45 = vrot.slane %v2254_v43, %v2509_v49  ;;  %v2263_v21 = vunpack.c.h.bf16 %v2297_v28  ;;  %v2572_v40 = vrot.slane %v219_v51, %v2509_v49 }
  0x13   :  { %v275_v63 = vrot.slane %v261_v62, %v2509_v49  ;;  %v359_v17 = vcombine.high %v2258_v27, %v2258_v27  ;;  %v2575_v35 = vrot.slane %v226_v34, %v2509_v49  ;;  %v317_v16 = vrot.slane %v2255_v29, %v2509_v49 }
  0x14   :  { %v2579_v43 = vrot.slane %v178_v26, %v2509_v49  ;;  %v2582_v28 = vrot.slane %v179_v44, %v2509_v49  ;;  %v324_v39 = vrot.slane %v310_v23, %v2509_v49  ;;  %v408_v62 = vcombine.high %v2259_v52, %v2259_v52 }
  0x15   :  { %v2586_v38 = vrot.slane %v227_v22, %v2509_v49  ;;  %v2589_v51 = vrot.slane %v228_v32, %v2509_v49  ;;  %v276_v15 = vcombine.high %v268_v45, %v268_v45  ;;  %v457_v34 = vcombine.high %v2262_v33, %v2262_v33 }
  0x16   :  { %v277_v14 = vcombine.high %v275_v63, %v275_v63  ;;  %v506_v26 = vcombine.high %v2263_v21, %v2263_v21  ;;  %v325_v44 = vcombine.high %v317_v16, %v317_v16  ;;  %v2607_v29 = vrot.slane %v268_v45, %v2509_v49 }
  0x17   :  { %v326_v60 = vcombine.high %v324_v39, %v324_v39  ;;  %v2614_v54 = vrot.slane %v275_v63, %v2509_v49  ;;  %v2617_v32 = vrot.slane %v276_v15, %v2509_v49  ;;  %v366_v7 = vrot.slane %v2258_v27, %v2509_v49 }
  0x18   :  { %v2620_v8 = vrot.slane %v277_v14, %v2509_v49  ;;  %v373_v45 = vrot.slane %v359_v17, %v2509_v49  ;;  %v415_v59 = vrot.slane %v2259_v52, %v2509_v49  ;;  %v2626_v23 = vrot.slane %v317_v16, %v2509_v49 }
  0x19   :  { %v2629_v22 = vrot.slane %v324_v39, %v2509_v49  ;;  %v2632_v63 = vrot.slane %v325_v44, %v2509_v49  ;;  %v422_v15 = vrot.slane %v408_v62, %v2509_v49  ;;  %v2638_v27 = vrot.slane %v326_v60, %v2509_v49 }
  0x1a   :  { %v464_v17 = vrot.slane %v2262_v33, %v2509_v49  ;;  %v471_v52 = vrot.slane %v457_v34, %v2509_v49  ;;  %v513_v44 = vrot.slane %v2263_v21, %v2509_v49  ;;  %v520_v62 = vrot.slane %v506_v26, %v2509_v49 }
  0x1b   :  { %v374_v50 = vcombine.high %v366_v7, %v366_v7  ;;  %v375_v60 = vcombine.high %v373_v45, %v373_v45  ;;  %v423_v46 = vcombine.high %v415_v59, %v415_v59  ;;  %v424_v39 = vcombine.high %v422_v15, %v422_v15 }
  0x1c   :  { %v2659_v26 = vrot.slane %v366_v7, %v2509_v49  ;;  %v472_v14 = vcombine.high %v464_v17, %v464_v17  ;;  %v473_v61 = vcombine.high %v471_v52, %v471_v52  ;;  %v2662_v12 = vrot.slane %v373_v45, %v2509_v49 }
  0x1d   :  { %v2665_v33 = vrot.slane %v415_v59, %v2509_v49  ;;  %v521_v6 = vcombine.high %v513_v44, %v513_v44  ;;  %v522_v34 = vcombine.high %v520_v62, %v520_v62  ;;  %v2668_v55 = vrot.slane %v374_v50, %v2509_v49 }
  0x1e   :  { %v2671_v16 = vrot.slane %v375_v60, %v2509_v49  ;;  %v2674_v21 = vrot.slane %v422_v15, %v2509_v49  ;;  %v2677_v7 = vrot.slane %v423_v46, %v2509_v49  ;;  %v2680_v45 = vrot.slane %v424_v39, %v2509_v49 }
  0x1f   :  { %v2683_v59 = vrot.slane %v464_v17, %v2509_v49  ;;  %v2686_v13 = vrot.slane %v471_v52, %v2509_v49  ;;  %v2689_v50 = vrot.slane %v513_v44, %v2509_v49  ;;  %v404_v60 = vcombine.high %v2659_v26, %v2659_v26 }
  0x20   :  { %v2694_v15 = vrot.slane %v472_v14, %v2509_v49  ;;  %v2697_v46 = vrot.slane %v473_v61, %v2509_v49  ;;  %v2700_v39 = vrot.slane %v520_v62, %v2509_v49  ;;  %v405_v17 = vcombine.high %v2662_v12, %v2662_v12 }
  0x21   :  { %v453_v52 = vcombine.high %v2665_v33, %v2665_v33  ;;  %v2707_v44 = vrot.slane %v521_v6, %v2509_v49  ;;  %v2710_v56 = vrot.slane %v522_v34, %v2509_v49  ;;  %v406_v14 = vcombine.high %v2668_v55, %v2668_v55 }
  0x22   :  { %4860 = vst [vmem:[#allocation29_spill] sm:$0xff] %v2700_v39  ;;  %v407_v61 = vcombine.high %v2671_v16, %v2671_v16  ;;  %v454_v62 = vcombine.high %v2674_v21, %v2674_v21  ;;  %v455_v58 = vcombine.high %v2677_v7, %v2677_v7  ;;  %v456_v57 = vcombine.high %v2680_v45, %v2680_v45 }
  0x23   :  { %4861 = vst [vmem:[#allocation30_spill] sm:$0xff] %v2710_v56  ;;  %v502_v6 = vcombine.high %v2683_v59, %v2683_v59  ;;  %v503_v49 = vcombine.high %v2686_v13, %v2686_v13  ;;  %v504_v53 = vcombine.high %v2694_v15, %v2694_v15  ;;  %v505_v48 = vcombine.high %v2697_v46, %v2697_v46 }
  0x24   :  { %v553_v37 = vcombine.high %v2707_v44, %v2707_v44  ;;  %v4862_v31 = vcombine.high %v2565_v20, %v2565_v20  ;;  %v4863_v47 = vcombine.high %v2579_v43, %v2579_v43  ;;  %v4864_v34 = vcombine.high %v2569_v41, %v2569_v41 }
  0x25   :  { %v4866_v36 = vcombine.high %v2572_v40, %v2572_v40  ;;  %v4869_v25 = vcombine.high %v2575_v35, %v2575_v35 }
  0x26   :  { %v2746_v30 = vrot.slane %v4862_v31, %v2594_v9  ;;  %v2752_v42 = vrot.slane %v4863_v47, %v2594_v9  ;;  %v2762_v24 = vrot.slane %v4864_v34, %v2594_v9  ;;  %v4865_v31 = vcombine.high %v2582_v28, %v2582_v28 }
  0x27   :  { %v2778_v18 = vrot.slane %v4866_v36, %v2594_v9  ;;  %v4867_v34 = vcombine.high %v2586_v38, %v2586_v38  ;;  %v2794_v10 = vrot.slane %v4869_v25, %v2594_v9  ;;  %v4871_v36 = vcombine.high %v2589_v51, %v2589_v51 }
  0x28   :  { %v2768_v19 = vrot.slane %v4865_v31, %v2594_v9  ;;  %v4873_v47 = vcombine.high %v2607_v29, %v2607_v29  ;;  %v4875_v25 = vcombine.high %v2617_v32, %v2617_v32  ;;  %v4877_v31 = vcombine.high %v2614_v54, %v2614_v54 }
  0x29   :  { %v2784_v11 = vrot.slane %v4867_v34, %v2594_v9  ;;  %4870 = vst [vmem:[#allocation32_spill] sm:$0xff] %v2794_v10  ;;  %v2800_v5 = vrot.slane %v4871_v36, %v2594_v9  ;;  %v4881_v34 = vcombine.high %v2626_v23, %v2626_v23  ;;  %v4885_v36 = vcombine.high %v2629_v22, %v2629_v22 }
  0x2a   :  { %v2816_v10 = vrot.slane %v4875_v25, %v2594_v9  ;;  %v2871_v25 = vrot.slane %v404_v60, %v2594_v9  ;;  %v2924_v60 = vrot.slane %v505_v48, %v2594_v9  ;;  %v4896_v48 = vrot.slane %v2579_v43, %v2594_v9 }
  0x2b   :  { %4868 = vst [vmem:[#allocation31_spill] sm:$0xff] %v2784_v11  ;;  %4872 = vst [vmem:[#allocation33_spill] sm:$0xff] %v2800_v5  ;;  %v2810_v11 = vrot.slane %v4873_v47, %v2594_v9  ;;  %v2826_v5 = vrot.slane %v4877_v31, %v2594_v9  ;;  %v4879_v47 = vcombine.high %v2620_v8, %v2620_v8 }
  0x2c   :  { %4876 = vst [vmem:[#allocation35_spill] sm:$0xff] %v2816_v10  ;;  %v2842_v10 = vrot.slane %v4881_v34, %v2594_v9  ;;  %v4883_v31 = vcombine.high %v2632_v63, %v2632_v63  ;;  %v4887_v34 = vcombine.high %v2638_v27, %v2638_v27 }
  0x2d   :  { %4874 = vst [vmem:[#allocation34_spill] sm:$0xff] %v2810_v11  ;;  %4878 = vst [vmem:[#allocation36_spill] sm:$0xff] %v2826_v5  ;;  %v2832_v11 = vrot.slane %v4879_v47, %v2594_v9  ;;  %v2904_v47 = vrot.slane %v456_v57, %v2594_v9  ;;  %v2921_v57 = vrot.slane %v503_v49, %v2594_v9  ;;  %v4895_v49 = vunpack.c.l.bf16 %v2318_v0 }
  0x2e   :  { %4882 = vst [vmem:[#allocation38_spill] sm:$0xff] %v2842_v10  ;;  %v2848_v5 = vrot.slane %v4883_v31, %v2594_v9  ;;  %v2864_v10 = vrot.slane %v4887_v34, %v2594_v9  ;;  %v2881_v34 = vrot.slane %v405_v17, %v2594_v9  ;;  %v2884_v31 = vrot.slane %v407_v61, %v2594_v9 }
  0x2f   :  { %4880 = vst [vmem:[#allocation37_spill] sm:$0xff] %v2832_v11  ;;  %v2858_v11 = vrot.slane %v4885_v36, %v2594_v9  ;;  %v2894_v36 = vrot.slane %v455_v58, %v2594_v9  ;;  %v2901_v61 = vrot.slane %v454_v62, %v2594_v9  ;;  %v2911_v58 = vrot.slane %v502_v6, %v2594_v9 }
  0x30   :  { %4884 = vst [vmem:[#allocation39_spill] sm:$0xff] %v2848_v5  ;;  %v2874_v5 = vrot.slane %v406_v14, %v2594_v9  ;;  %v2891_v14 = vrot.slane %v453_v52, %v2594_v9  ;;  %v2937_v62 = vrot.slane %v553_v37, %v2594_v9  ;;  %v4891_v52 = vcombine.high %v2700_v39, %v2700_v39 }
  0x31   :  { %4886 = vst [vmem:[#allocation40_spill] sm:$0xff] %v2858_v11  ;;  %v2914_v11 = vrot.slane %v504_v53, %v2594_v9  ;;  %v4888_v53 = vcombine.high %v2689_v50, %v2689_v50  ;;  %v4894_v37 = vrot.slane %v2565_v20, %v2594_v9  ;;  %v4897_v39 = vunpack.c.h.bf16 %v2318_v0 }
  0x32   :  { %4890 = vst [vmem:[#allocation42_spill] sm:$0xff] %v2937_v62  ;;  %v2947_v6 = vrot.slane %v4891_v52, %v2594_v9  ;;  %v4902_v0 = vrot.slane %v2582_v28, %v2594_v9 }
  0x33   :  { %v2934_v17 = vrot.slane %v4888_v53, %v2594_v9  ;;  %v4893_v53 = vcombine.high %v2710_v56, %v2710_v56  ;;  %v2960_v62 = vadd.f32 %v4895_v49, %v4894_v37  ;;  %v2967_v52 = vadd.f32 %v4897_v39, %v4896_v48 }
  0x34   :  { %4892 = vst [vmem:[#allocation43_spill] sm:$0xff] %v2947_v6  ;;  %v4898_v6 = vunpack.c.l.bf16 %v2323_v1  ;;  %v4900_v49 = vrot.slane %v2569_v41, %v2594_v9  ;;  %v4901_v37 = vunpack.c.l.bf16 %v2328_v2  ;;  %v4903_v39 = vunpack.c.h.bf16 %v2328_v2 }
  0x35   :  { %4889 = vst [vmem:[#allocation41_spill] sm:$0xff] %v2934_v17  ;;  %v2953_v17 = vrot.slane %v4893_v53, %v2594_v9  ;;  %v4899_v53 = vunpack.c.h.bf16 %v2323_v1  ;;  %v4908_v2 = vrot.slane %v2586_v38, %v2594_v9  ;;  %vm939_vm0 = vcmp.gt.f32.partialorder %v2960_v62, 0.0 }
  0x36   :  { %v2972_v56 = vadd.f32 %v4898_v6, %v2746_v30  ;;  %v2984_v43 = vadd.f32 %v4901_v37, %v4900_v49  ;;  %v2991_v48 = vadd.f32 %v4903_v39, %v4902_v0  ;;  %v4904_v30 = vunpack.c.l.bf16 %v2333_v3 }
  0x37   :  { %v2977_v20 = vadd.f32 %v4899_v53, %v2752_v42  ;;  %v4905_v42 = vunpack.c.h.bf16 %v2333_v3  ;;  %v4906_v6 = vrot.slane %v2572_v40, %v2594_v9  ;;  %v4907_v53 = vunpack.c.l.bf16 %v2338_v4 }
  0x38   :  { %v2996_v1 = vadd.f32 %v4904_v30, %v2762_v24  ;;  %v4909_v49 = vunpack.c.h.bf16 %v2338_v4  ;;  %v4910_v24 = vld [vmem:[#allocation2_spill] sm:$0xff]  ;;  %v4914_v30 = vrot.slane %v2575_v35, %v2594_v9  ;;  %v4918_v4 = vrot.slane %v2589_v51, %v2594_v9 }
  0x39   :  { %v3001_v41 = vadd.f32 %v4905_v42, %v2768_v19  ;;  %v3008_v28 = vadd.f32 %v4907_v53, %v4906_v6  ;;  %v4911_v0 = vunpack.c.l.bf16 %v4910_v24  ;;  %v4912_v19 = vld [vmem:[#allocation31_spill] sm:$0xff]  ;;  %v4913_v39 = vunpack.c.h.bf16 %v4910_v24 }
  0x3a   :  { %v3015_v37 = vadd.f32 %v4909_v49, %v4908_v2  ;;  %v4915_v42 = vld [vmem:[#allocation3_spill] sm:$0xff]  ;;  %v4921_v49 = vld [vmem:[#allocation4_spill] sm:$0xff]  ;;  %vm940_vm1 = vcmp.gt.f32.partialorder %v2967_v52, 0.0  ;;  %vm941_vm2 = vcmp.gt.f32.partialorder %v2972_v56, 0.0  ;;  %vm942_vm3 = vcmp.gt.f32.partialorder %v2977_v20, 0.0 }
  0x3b   :  { %v3020_v3 = vadd.f32 %v4911_v0, %v2778_v18  ;;  %v3025_v40 = vadd.f32 %v4913_v39, %v4912_v19  ;;  %v4916_v6 = vunpack.c.l.bf16 %v4915_v42  ;;  %v4919_v53 = vunpack.c.h.bf16 %v4915_v42  ;;  %v4920_v18 = vld [vmem:[#allocation32_spill] sm:$0xff]  ;;  %v4924_v19 = vld [vmem:[#allocation33_spill] sm:$0xff] }
  0x3c   :  { %v4922_v0 = vunpack.c.l.bf16 %v4921_v49  ;;  %v4925_v39 = vunpack.c.h.bf16 %v4921_v49  ;;  %v4930_v42 = vrot.slane %v2617_v32, %v2594_v9  ;;  %vm943_vm4 = vcmp.gt.f32.partialorder %v2984_v43, 0.0 }
  0x3d   :  { %v3032_v38 = vadd.f32 %v4916_v6, %v4914_v30  ;;  %v3039_v2 = vadd.f32 %v4919_v53, %v4918_v4  ;;  %v4926_v30 = vrot.slane %v2607_v29, %v2594_v9  ;;  %v4927_v6 = vld [vmem:[#allocation5_spill] sm:$0xff]  ;;  %vm944_vm5 = vcmp.gt.f32.partialorder %v2991_v48, 0.0 }
  0x3e   :  { %v3044_v24 = vadd.f32 %v4922_v0, %v4920_v18  ;;  %v3049_v35 = vadd.f32 %v4925_v39, %v4924_v19  ;;  %v4931_v4 = vunpack.c.h.bf16 %v4927_v6  ;;  %v4932_v18 = vld [vmem:[#allocation34_spill] sm:$0xff]  ;;  %v4936_v19 = vld [vmem:[#allocation35_spill] sm:$0xff]  ;;  %vm945_vm6 = vcmp.gt.f32.partialorder %v2996_v1, 0.0 }
  0x3f   :  { %4917 = vst [vmem:[#allocation2_spill] sm:$0xff] %v3032_v38  ;;  %v4928_v38 = vunpack.c.l.bf16 %v4927_v6  ;;  %v4933_v0 = vld [vmem:[#allocation6_spill] sm:$0xff]  ;;  %v4942_v6 = vrot.slane %v2620_v8, %v2594_v9  ;;  %vm946_vm7 = vcmp.gt.f32.partialorder %v3001_v41, 0.0  ;;  %vm947_vm8 = vcmp.gt.f32.partialorder %v3008_v28, 0.0 }
  0x40   :  { %4923 = vst [vmem:[#allocation31_spill] sm:$0xff] %v3044_v24  ;;  %v3063_v53 = vadd.f32 %v4931_v4, %v4930_v42  ;;  %v4934_v24 = vunpack.c.l.bf16 %v4933_v0  ;;  %v4937_v39 = vunpack.c.h.bf16 %v4933_v0  ;;  %vm948_vm9 = vcmp.gt.f32.partialorder %v3015_v37, 0.0 }
  0x41   :  { %v3056_v51 = vadd.f32 %v4928_v38, %v4926_v30  ;;  %v4938_v38 = vrot.slane %v2614_v54, %v2594_v9  ;;  %v4939_v30 = vld [vmem:[#allocation7_spill] sm:$0xff]  ;;  %vm949_vm10 = vcmp.gt.f32.partialorder %v3020_v3, 0.0  ;;  %vm950_vm11 = vcmp.gt.f32.partialorder %v3025_v40, 0.0 }
  0x42   :  { %v3068_v49 = vadd.f32 %v4934_v24, %v4932_v18  ;;  %v3073_v29 = vadd.f32 %v4937_v39, %v4936_v19  ;;  %v4943_v42 = vunpack.c.h.bf16 %v4939_v30  ;;  %v4944_v24 = vld [vmem:[#allocation36_spill] sm:$0xff]  ;;  %v4948_v19 = vld [vmem:[#allocation37_spill] sm:$0xff]  ;;  %vm952_vm13 = vcmp.gt.f32.partialorder %v3039_v2, 0.0 }
  0x43   :  { %4929 = vst [vmem:[#allocation3_spill] sm:$0xff] %v3056_v51  ;;  %v4940_v51 = vunpack.c.l.bf16 %v4939_v30  ;;  %v4945_v18 = vld [vmem:[#allocation8_spill] sm:$0xff]  ;;  %v4954_v30 = vrot.slane %v2632_v63, %v2594_v9  ;;  %vm954_vm15 = vcmp.gt.f32.partialorder %v3049_v35, 0.0 }
  0x44   :  { %4935 = vst [vmem:[#allocation32_spill] sm:$0xff] %v3068_v49  ;;  %v3087_v4 = vadd.f32 %v4943_v42, %v4942_v6  ;;  %v4946_v49 = vunpack.c.l.bf16 %v4945_v18  ;;  %v4949_v39 = vunpack.c.h.bf16 %v4945_v18 }
  0x45   :  { %v3080_v32 = vadd.f32 %v4940_v51, %v4938_v38  ;;  %v4950_v51 = vrot.slane %v2626_v23, %v2594_v9  ;;  %v4951_v38 = vld [vmem:[#allocation9_spill] sm:$0xff] }
  0x46   :  { %v3092_v0 = vadd.f32 %v4946_v49, %v4944_v24  ;;  %v3097_v54 = vadd.f32 %v4949_v39, %v4948_v19  ;;  %v4955_v6 = vunpack.c.h.bf16 %v4951_v38  ;;  %v4956_v49 = vld [vmem:[#allocation38_spill] sm:$0xff]  ;;  %v4960_v19 = vld [vmem:[#allocation39_spill] sm:$0xff] }
  0x47   :  { %4941 = vst [vmem:[#allocation4_spill] sm:$0xff] %v3080_v32  ;;  %v4952_v32 = vunpack.c.l.bf16 %v4951_v38  ;;  %v4957_v24 = vld [vmem:[#allocation10_spill] sm:$0xff]  ;;  %v4965_v38 = vrot.slane %v2638_v27, %v2594_v9 }
  0x48   :  { %4947 = vst [vmem:[#allocation33_spill] sm:$0xff] %v3092_v0  ;;  %v3111_v42 = vadd.f32 %v4955_v6, %v4954_v30  ;;  %v4958_v0 = vunpack.c.l.bf16 %v4957_v24  ;;  %v4961_v39 = vunpack.c.h.bf16 %v4957_v24 }
  0x49   :  { %v3104_v8 = vadd.f32 %v4952_v32, %v4950_v51  ;;  %v4962_v32 = vrot.slane %v2629_v22, %v2594_v9  ;;  %v4963_v51 = vld [vmem:[#allocation11_spill] sm:$0xff] }
  0x4a   :  { %v3116_v18 = vadd.f32 %v4958_v0, %v4956_v49  ;;  %v3121_v23 = vadd.f32 %v4961_v39, %v4960_v19  ;;  %v4966_v30 = vunpack.c.h.bf16 %v4963_v51  ;;  %v4967_v0 = vld [vmem:[#allocation40_spill] sm:$0xff]  ;;  %v4972_v39 = vld [vmem:[#allocation13_spill] sm:$0xff] }
  0x4b   :  { %4953 = vst [vmem:[#allocation5_spill] sm:$0xff] %v3104_v8  ;;  %v4964_v8 = vunpack.c.l.bf16 %v4963_v51  ;;  %v4968_v49 = vld [vmem:[#allocation12_spill] sm:$0xff]  ;;  %v4974_v51 = vrot.slane %v2668_v55, %v2594_v9 }
  0x4c   :  { %4959 = vst [vmem:[#allocation34_spill] sm:$0xff] %v3116_v18  ;;  %v3135_v6 = vadd.f32 %v4966_v30, %v4965_v38  ;;  %v4969_v18 = vunpack.c.l.bf16 %v4968_v49  ;;  %v4970_v19 = vunpack.c.h.bf16 %v4968_v49  ;;  %v4975_v38 = vunpack.c.h.bf16 %v4972_v39 }
  0x4d   :  { %v3128_v63 = vadd.f32 %v4964_v8, %v4962_v32  ;;  %v4971_v8 = vrot.slane %v2659_v26, %v2594_v9  ;;  %v4973_v32 = vunpack.c.l.bf16 %v4972_v39  ;;  %v4982_v39 = vrot.slane %v2671_v16, %v2594_v9 }
  0x4e   :  { %v3140_v24 = vadd.f32 %v4969_v18, %v4967_v0  ;;  %v3145_v22 = vadd.f32 %v4970_v19, %v2864_v10  ;;  %v3159_v30 = vadd.f32 %v4975_v38, %v4974_v51  ;;  %v4976_v18 = vld [vmem:[#allocation14_spill] sm:$0xff]  ;;  %v4979_v19 = vrot.slane %v2662_v12, %v2594_v9 }
  0x4f   :  { %v3152_v27 = vadd.f32 %v4973_v32, %v4971_v8  ;;  %v4977_v0 = vunpack.c.l.bf16 %v4976_v18  ;;  %v4978_v10 = vunpack.c.h.bf16 %v4976_v18  ;;  %v4980_v8 = vld [vmem:[#allocation15_spill] sm:$0xff] }
  0x50   :  { %v4981_v32 = vunpack.c.l.bf16 %v4980_v8  ;;  %v4983_v51 = vunpack.c.h.bf16 %v4980_v8  ;;  %v4990_v8 = vrot.slane %v2677_v7, %v2594_v9 }
  0x51   :  { %v3164_v49 = vadd.f32 %v4977_v0, %v2871_v25  ;;  %v3169_v26 = vadd.f32 %v4978_v10, %v2874_v5  ;;  %v4984_v25 = vld [vmem:[#allocation16_spill] sm:$0xff]  ;;  %v4987_v10 = vrot.slane %v2665_v33, %v2594_v9 }
  0x52   :  { %v3176_v55 = vadd.f32 %v4981_v32, %v4979_v19  ;;  %v3183_v38 = vadd.f32 %v4983_v51, %v4982_v39  ;;  %v4985_v0 = vunpack.c.l.bf16 %v4984_v25  ;;  %v4986_v5 = vunpack.c.h.bf16 %v4984_v25  ;;  %v4988_v19 = vld [vmem:[#allocation17_spill] sm:$0xff] }
  0x53   :  { %v4989_v32 = vunpack.c.l.bf16 %v4988_v19  ;;  %v4991_v39 = vunpack.c.h.bf16 %v4988_v19  ;;  %v4998_v19 = vrot.slane %v2680_v45, %v2594_v9 }
  0x54   :  { %v3188_v18 = vadd.f32 %v4985_v0, %v2881_v34  ;;  %v3193_v12 = vadd.f32 %v4986_v5, %v2884_v31  ;;  %v4992_v34 = vld [vmem:[#allocation18_spill] sm:$0xff]  ;;  %v4995_v5 = vrot.slane %v2674_v21, %v2594_v9 }
  0x55   :  { %v3200_v16 = vadd.f32 %v4989_v32, %v4987_v10  ;;  %v3207_v51 = vadd.f32 %v4991_v39, %v4990_v8  ;;  %v4993_v0 = vunpack.c.l.bf16 %v4992_v34  ;;  %v4994_v31 = vunpack.c.h.bf16 %v4992_v34  ;;  %v4996_v10 = vld [vmem:[#allocation19_spill] sm:$0xff] }
  0x56   :  { %v4997_v32 = vunpack.c.l.bf16 %v4996_v10  ;;  %v4999_v8 = vunpack.c.h.bf16 %v4996_v10  ;;  %v5008_v10 = vrot.slane %v2694_v15, %v2594_v9 }
  0x57   :  { %v3212_v25 = vadd.f32 %v4993_v0, %v2891_v14  ;;  %v3217_v33 = vadd.f32 %v4994_v31, %v2894_v36  ;;  %v5000_v14 = vld [vmem:[#allocation20_spill] sm:$0xff]  ;;  %v5004_v31 = vrot.slane %v2683_v59, %v2594_v9 }
  0x58   :  { %v3224_v7 = vadd.f32 %v4997_v32, %v4995_v5  ;;  %v3231_v39 = vadd.f32 %v4999_v8, %v4998_v19  ;;  %v5001_v0 = vunpack.c.l.bf16 %v5000_v14  ;;  %v5002_v36 = vunpack.c.h.bf16 %v5000_v14  ;;  %v5005_v5 = vld [vmem:[#allocation21_spill] sm:$0xff] }
  0x59   :  { %v5006_v32 = vunpack.c.l.bf16 %v5005_v5  ;;  %v5009_v19 = vunpack.c.h.bf16 %v5005_v5  ;;  %v5020_v5 = vrot.slane %v2697_v46, %v2594_v9 }
  0x5a   :  { %v3236_v34 = vadd.f32 %v5001_v0, %v2901_v61  ;;  %v3241_v21 = vadd.f32 %v5002_v36, %v2904_v47  ;;  %v5011_v61 = vld [vmem:[#allocation22_spill] sm:$0xff]  ;;  %v5016_v36 = vrot.slane %v2686_v13, %v2594_v9 }
  0x5b   :  { %v3248_v45 = vadd.f32 %v5006_v32, %v5004_v31  ;;  %v3255_v8 = vadd.f32 %v5009_v19, %v5008_v10  ;;  %v5012_v0 = vunpack.c.l.bf16 %v5011_v61  ;;  %v5014_v47 = vunpack.c.h.bf16 %v5011_v61  ;;  %v5017_v31 = vld [vmem:[#allocation23_spill] sm:$0xff] }
  0x5c   :  { %5003 = vst [vmem:[#allocation6_spill] sm:$0xff] %v3241_v21  ;;  %v5018_v32 = vunpack.c.l.bf16 %v5017_v31  ;;  %v5021_v10 = vunpack.c.h.bf16 %v5017_v31  ;;  %v5032_v31 = vrot.slane %v2707_v44, %v2594_v9 }
  0x5d   :  { %5007 = vst [vmem:[#allocation35_spill] sm:$0xff] %v3248_v45  ;;  %5010 = vst [vmem:[#allocation7_spill] sm:$0xff] %v3255_v8  ;;  %v3260_v14 = vadd.f32 %v5012_v0, %v2911_v58  ;;  %v3265_v59 = vadd.f32 %v5014_v47, %v2914_v11  ;;  %v5023_v58 = vld [vmem:[#allocation24_spill] sm:$0xff]  ;;  %v5028_v47 = vrot.slane %v2689_v50, %v2594_v9 }
  0x5e   :  { %v3272_v15 = vadd.f32 %v5018_v32, %v5016_v36  ;;  %v3279_v19 = vadd.f32 %v5021_v10, %v5020_v5  ;;  %v5024_v0 = vunpack.c.l.bf16 %v5023_v58  ;;  %v5026_v11 = vunpack.c.h.bf16 %v5023_v58  ;;  %v5029_v36 = vld [vmem:[#allocation25_spill] sm:$0xff] }
  0x5f   :  { %5013 = vst [vmem:[#allocation36_spill] sm:$0xff] %v3260_v14  ;;  %5015 = vst [vmem:[#allocation8_spill] sm:$0xff] %v3265_v59  ;;  %v5030_v32 = vunpack.c.l.bf16 %v5029_v36  ;;  %v5033_v5 = vunpack.c.h.bf16 %v5029_v36  ;;  %v5047_v36 = vld [vmem:[#allocation30_spill] sm:$0xff] }
  0x60   :  { %5019 = vst [vmem:[#allocation37_spill] sm:$0xff] %v3272_v15  ;;  %5022 = vst [vmem:[#allocation9_spill] sm:$0xff] %v3279_v19  ;;  %v3284_v61 = vadd.f32 %v5024_v0, %v2921_v57  ;;  %v3289_v13 = vadd.f32 %v5026_v11, %v2924_v60  ;;  %v5035_v57 = vld [vmem:[#allocation41_spill] sm:$0xff]  ;;  %v5036_v0 = vld [vmem:[#allocation26_spill] sm:$0xff] }
  0x61   :  { %v3296_v46 = vadd.f32 %v5030_v32, %v5028_v47  ;;  %v3303_v10 = vadd.f32 %v5033_v5, %v5032_v31  ;;  %v5039_v60 = vld [vmem:[#allocation42_spill] sm:$0xff]  ;;  %v5040_v11 = vunpack.c.h.bf16 %v5036_v0  ;;  %v5044_v32 = vld [vmem:[#allocation27_spill] sm:$0xff]  ;;  %v5048_v31 = vrot.slane %v5047_v36, %v2594_v9 }
  0x62   :  { %5025 = vst [vmem:[#allocation38_spill] sm:$0xff] %v3284_v61  ;;  %5027 = vst [vmem:[#allocation10_spill] sm:$0xff] %v3289_v13  ;;  %v5037_v61 = vunpack.c.l.bf16 %v5036_v0  ;;  %v5042_v13 = vld [vmem:[#allocation29_spill] sm:$0xff]  ;;  %v5049_v5 = vunpack.c.h.bf16 %v5044_v32  ;;  %v1004_v0 = vmul.f32 0.2, %v2967_v52 }
  0x63   :  { %5031 = vst [vmem:[#allocation39_spill] sm:$0xff] %v3296_v46  ;;  %5034 = vst [vmem:[#allocation11_spill] sm:$0xff] %v3303_v10  ;;  %v3313_v50 = vadd.f32 %v5040_v11, %v5039_v60  ;;  %v5043_v47 = vrot.slane %v5042_v13, %v2594_v9  ;;  %v5045_v46 = vunpack.c.l.bf16 %v5044_v32  ;;  %v5051_v9 = vld [vmem:[#allocation43_spill] sm:$0xff]  ;;  %v1005_v60 = vmul.f32 0.2, %v2972_v56 }
  0x64   :  { %v3308_v58 = vadd.f32 %v5037_v61, %v5035_v57  ;;  %v3327_v10 = vadd.f32 %v5049_v5, %v5048_v31  ;;  %v5052_v61 = vld [vmem:[#allocation28_spill] sm:$0xff]  ;;  %v1003_v57 = vmul.f32 0.2, %v2960_v62  ;;  %v1006_v32 = vmul.f32 0.2, %v2977_v20 }
  0x65   :  { %5041 = vst [vmem:[#allocation12_spill] sm:$0xff] %v3313_v50  ;;  %v3320_v44 = vadd.f32 %v5045_v46, %v5043_v47  ;;  %v5053_v13 = vunpack.c.l.bf16 %v5052_v61  ;;  %v5055_v11 = vunpack.c.h.bf16 %v5052_v61  ;;  %v1007_v36 = vmul.f32 0.2, %v2984_v43  ;;  %v5058_v61 = vld [vmem:[#allocation2_spill] sm:$0xff] }
  0x66   :  { %5038 = vst [vmem:[#allocation40_spill] sm:$0xff] %v3308_v58  ;;  %5050 = vst [vmem:[#allocation14_spill] sm:$0xff] %v3327_v10  ;;  %v1008_v31 = vmul.f32 0.2, %v2991_v48  ;;  %v1009_v5 = vmul.f32 0.2, %v2996_v1  ;;  %v3374_v10 = vsel %vm940_vm1, %v2967_v52, %v1004_v0  ;;  %v3389_v50 = vsel %vm941_vm2, %v2972_v56, %v1005_v60 }
  0x67   :  { %5046 = vst [vmem:[#allocation13_spill] sm:$0xff] %v3320_v44  ;;  %v3341_v46 = vadd.f32 %v5053_v13, %v5051_v9  ;;  %v3350_v47 = vadd.f32 %v5055_v11, %v2953_v17  ;;  %v1010_v9 = vmul.f32 0.2, %v3001_v41  ;;  %v1011_v13 = vmul.f32 0.2, %v3008_v28  ;;  %5059 = vst [vmem:[#allocation18_spill] sm:$0xff] %v3374_v10 }
  0x68   :  { %v3363_v17 = vsel %vm939_vm0, %v2960_v62, %v1003_v57  ;;  %vm951_vm12 = vcmp.gt.f32.partialorder %v5058_v61, 0.0  ;;  %v1012_v11 = vmul.f32 0.2, %v3015_v37  ;;  %v3378_v44 = vmul.f32 0.2, %v5058_v61  ;;  %v5060_v57 = vld [vmem:[#allocation31_spill] sm:$0xff] }
  0x69   :  { %5054 = vst [vmem:[#allocation15_spill] sm:$0xff] %v3341_v46  ;;  %5056 = vst [vmem:[#allocation16_spill] sm:$0xff] %v3350_v47  ;;  %v1013_v47 = vmul.f32 0.2, %v3020_v3  ;;  %v3369_v46 = vmul.f32 0.2, %v3025_v40  ;;  %v3404_v19 = vsel %vm942_vm3, %v2977_v20, %v1006_v32 }
  0x6a   :  { %5057 = vst [vmem:[#allocation17_spill] sm:$0xff] %v3363_v17  ;;  %v3381_v62 = vmul.f32 0.2, %v3039_v2  ;;  %v3384_v17 = vmul.f32 0.2, %v5060_v57  ;;  %5061 = vst [vmem:[#allocation19_spill] sm:$0xff] %v3389_v50 }
  0x6b   :  { %vm953_vm14 = vcmp.gt.f32.partialorder %v5060_v57, 0.0  ;;  %v3393_v52 = vmul.f32 0.2, %v3049_v35  ;;  %v5063_v0 = vld [vmem:[#allocation3_spill] sm:$0xff]  ;;  %v3399_v58 = vmul.f32 0.2, %v3063_v53 }
  0x6c   :  { %v3396_v10 = vmul.f32 0.2, %v5063_v0  ;;  %5065 = vst [vmem:[#allocation22_spill] sm:$0xff] %v3404_v19  ;;  %v5066_v56 = vld [vmem:[#allocation32_spill] sm:$0xff]  ;;  %v3411_v50 = vmul.f32 0.2, %v3073_v29 }
  0x6d   :  { %5062 = vst [vmem:[#allocation20_spill] sm:$0xff] %v3393_v52  ;;  %5064 = vst [vmem:[#allocation21_spill] sm:$0xff] %v3399_v58  ;;  %v3408_v60 = vmul.f32 0.2, %v5066_v56  ;;  %v5069_v52 = vld [vmem:[#allocation4_spill] sm:$0xff]  ;;  %v3419_v58 = vsel %vm943_vm4, %v2984_v43, %v1007_v36  ;;  %vm955_vm0 = vcmp.gt.f32.partialorder %v5063_v0, 0.0 }
  0x6e   :  { %5068 = vst [vmem:[#allocation24_spill] sm:$0xff] %v3411_v50  ;;  %v3414_v15 = vmul.f32 0.2, %v5069_v52  ;;  %5071 = vst [vmem:[#allocation41_spill] sm:$0xff] %v3419_v58  ;;  %v3423_v20 = vmul.f32 0.2, %v3087_v4 }
  0x6f   :  { %5067 = vst [vmem:[#allocation23_spill] sm:$0xff] %v3408_v60  ;;  %v5073_v32 = vld [vmem:[#allocation33_spill] sm:$0xff]  ;;  %v3429_v60 = vmul.f32 0.2, %v3097_v54  ;;  %vm956_vm1 = vcmp.gt.f32.partialorder %v3063_v53, 0.0  ;;  %vm957_vm2 = vcmp.gt.f32.partialorder %v5066_v56, 0.0 }
  0x70   :  { %5070 = vst [vmem:[#allocation25_spill] sm:$0xff] %v3414_v15  ;;  %5072 = vst [vmem:[#allocation26_spill] sm:$0xff] %v3423_v20  ;;  %v3426_v19 = vmul.f32 0.2, %v5073_v32  ;;  %v3434_v15 = vsel %vm944_vm5, %v2991_v48, %v1008_v31  ;;  %v5076_v43 = vld [vmem:[#allocation5_spill] sm:$0xff]  ;;  %v5077_v20 = vld [vmem:[#allocation34_spill] sm:$0xff] }
  0x71   :  { %5074 = vst [vmem:[#allocation42_spill] sm:$0xff] %v3429_v60  ;;  %5075 = vst [vmem:[#allocation29_spill] sm:$0xff] %v3434_v15  ;;  %v3438_v36 = vmul.f32 0.2, %v5076_v43  ;;  %v3441_v58 = vmul.f32 0.2, %v3111_v42  ;;  %v3449_v60 = vsel %vm945_vm6, %v2996_v1, %v1009_v5 }
  0x72   :  { %v3444_v50 = vmul.f32 0.2, %v5077_v20  ;;  %5079 = vst [vmem:[#allocation30_spill] sm:$0xff] %v3449_v60  ;;  %v3453_v48 = vmul.f32 0.2, %v3121_v23  ;;  %vm958_vm3 = vcmp.gt.f32.partialorder %v3073_v29, 0.0 }
  0x73   :  { %v3456_v31 = vmul.f32 0.2, %v3128_v63  ;;  %v3459_v15 = vmul.f32 0.2, %v3135_v6  ;;  %v3470_v1 = vmul.f32 0.2, %v3140_v24 }
  0x74   :  { %5078 = vst [vmem:[#allocation27_spill] sm:$0xff] %v3444_v50  ;;  %v3464_v50 = vsel %vm946_vm7, %v3001_v41, %v1010_v9  ;;  %v3473_v5 = vmul.f32 0.2, %v3145_v22  ;;  %v3476_v60 = vmul.f32 0.2, %v3152_v27  ;;  %v3481_v41 = vsel %vm947_vm8, %v3008_v28, %v1011_v13 }
  0x75   :  { %5080 = vst [vmem:[#allocation43_spill] sm:$0xff] %v3464_v50  ;;  %5082 = vst [vmem:[#allocation2_spill] sm:$0xff] %v3481_v41  ;;  %vm961_vm6 = vcmp.gt.f32.partialorder %v5073_v32, 0.0  ;;  %v3488_v9 = vmul.f32 0.2, %v3159_v30  ;;  %v3499_v28 = vsel %vm948_vm9, %v3015_v37, %v1012_v11  ;;  %vm965_vm8 = vcmp.gt.f32.partialorder %v5077_v20, 0.0 }
  0x76   :  { %5081 = vst [vmem:[#allocation28_spill] sm:$0xff] %v3476_v60  ;;  %v3491_v50 = vmul.f32 0.2, %v3164_v49  ;;  %v3494_v60 = vmul.f32 0.2, %v3169_v26  ;;  %5084 = vst [vmem:[#allocation3_spill] sm:$0xff] %v3499_v28  ;;  %v3517_v37 = vsel %vm949_vm10, %v3020_v3, %v1013_v47  ;;  %v3536_v3 = vsel %vm950_vm11, %v3025_v40, %v3369_v46 }
  0x77   :  { %v3506_v13 = vmul.f32 0.2, %v3176_v55  ;;  %v3509_v41 = vmul.f32 0.2, %v3183_v38  ;;  %5086 = vst [vmem:[#allocation4_spill] sm:$0xff] %v3517_v37  ;;  %vm969_vm9 = vcmp.gt.f32.partialorder %v3140_v24, 0.0  ;;  %v3555_v40 = vsel %vm951_vm12, %v5058_v61, %v3378_v44 }
  0x78   :  { %5083 = vst [vmem:[#allocation31_spill] sm:$0xff] %v3494_v60  ;;  %v3512_v60 = vmul.f32 0.2, %v3188_v18  ;;  %v3524_v11 = vmul.f32 0.2, %v3193_v12  ;;  %5088 = vst [vmem:[#allocation5_spill] sm:$0xff] %v3536_v3  ;;  %v3574_v44 = vsel %vm952_vm13, %v3039_v2, %v3381_v62  ;;  %v3593_v2 = vsel %vm953_vm14, %v5060_v57, %v3384_v17 }
  0x79   :  { %v3527_v28 = vmul.f32 0.2, %v3200_v16  ;;  %vm973_vm10 = vcmp.gt.f32.partialorder %v3164_v49, 0.0  ;;  %v3543_v47 = vmul.f32 0.2, %v3212_v25  ;;  %5090 = vst [vmem:[#allocation44_spill] sm:$0xff] %v3555_v40 }
  0x7a   :  { %5085 = vst [vmem:[#allocation32_spill] sm:$0xff] %v3512_v60  ;;  %v3530_v60 = vmul.f32 0.2, %v3207_v51  ;;  %v3546_v37 = vmul.f32 0.2, %v3217_v33  ;;  %vm977_vm11 = vcmp.gt.f32.partialorder %v3188_v18, 0.0 }
  0x7b   :  { %v3562_v46 = vmul.f32 0.2, %v3231_v39  ;;  %v3565_v3 = vmul.f32 0.2, %v3236_v34  ;;  %5093 = vst [vmem:[#allocation47_spill] sm:$0xff] %v3574_v44  ;;  %vm981_vm12 = vcmp.gt.f32.partialorder %v3212_v25, 0.0 }
  0x7c   :  { %5087 = vst [vmem:[#allocation33_spill] sm:$0xff] %v3530_v60  ;;  %v3549_v60 = vmul.f32 0.2, %v3224_v7  ;;  %v3581_v61 = vmul.f32 0.2, %v3248_v45  ;;  %5097 = vst [vmem:[#allocation51_spill] sm:$0xff] %v3593_v2 }
  0x7d   :  { %5091 = vst [vmem:[#allocation45_spill] sm:$0xff] %v3565_v3  ;;  %v3584_v40 = vmul.f32 0.2, %v3255_v8  ;;  %vm985_vm13 = vcmp.gt.f32.partialorder %v3236_v34, 0.0  ;;  %v3600_v62 = vmul.f32 0.2, %v3265_v59 }
  0x7e   :  { %5089 = vst [vmem:[#allocation34_spill] sm:$0xff] %v3549_v60  ;;  %v3568_v60 = vmul.f32 0.2, %v3241_v21  ;;  %5094 = vst [vmem:[#allocation48_spill] sm:$0xff] %v3581_v61  ;;  %v5099_v44 = vld [vmem:[#allocation37_spill] sm:$0xff]  ;;  %v5103_v3 = vld [vmem:[#allocation20_spill] sm:$0xff] }
  0x7f   :  { %5095 = vst [vmem:[#allocation49_spill] sm:$0xff] %v3584_v40  ;;  %5098 = vst [vmem:[#allocation52_spill] sm:$0xff] %v3600_v62  ;;  %v3603_v40 = vmul.f32 0.2, %v5099_v44  ;;  %v3612_v17 = vsel %vm954_vm15, %v3049_v35, %v5103_v3  ;;  %vm989_vm14 = vcmp.gt.f32.partialorder %v3260_v14, 0.0  ;;  %v5105_v57 = vld [vmem:[#allocation38_spill] sm:$0xff]  ;;  %v3625_v35 = vsel %vm955_vm0, %v5063_v0, %v3396_v10 }
  0x80   :  { %5092 = vst [vmem:[#allocation46_spill] sm:$0xff] %v3568_v60  ;;  %v3587_v60 = vmul.f32 0.2, %v3260_v14  ;;  %5104 = vst [vmem:[#allocation20_spill] sm:$0xff] %v3612_v17  ;;  %v1057_v2 = vmul.f32 0.2, %v5105_v57 }
  0x81   :  { %5100 = vst [vmem:[#allocation53_spill] sm:$0xff] %v3603_v40  ;;  %v5106_v40 = vld [vmem:[#allocation10_spill] sm:$0xff]  ;;  %v5107_v8 = vld [vmem:[#allocation39_spill] sm:$0xff]  ;;  %5108 = vst [vmem:[#allocation55_spill] sm:$0xff] %v3625_v35  ;;  %vm993_vm15 = vcmp.gt.f32.partialorder %v5105_v57, 0.0  ;;  %vm5122_vm7 = vcmp.gt.f32.partialorder %v5069_v52, 0.0 }
  0x82   :  { %5096 = vst [vmem:[#allocation50_spill] sm:$0xff] %v3587_v60  ;;  %v5101_v60 = vld [vmem:[#allocation9_spill] sm:$0xff]  ;;  %v1058_v62 = vmul.f32 0.2, %v5106_v40  ;;  %v5109_v3 = vld [vmem:[#allocation11_spill] sm:$0xff]  ;;  %v5111_v59 = vld [vmem:[#allocation12_spill] sm:$0xff] }
  0x83   :  { %v3606_v61 = vmul.f32 0.2, %v5101_v60  ;;  %v1060_v17 = vmul.f32 0.2, %v5109_v3  ;;  %v5110_v60 = vld [vmem:[#allocation40_spill] sm:$0xff]  ;;  %v5112_v45 = vld [vmem:[#allocation21_spill] sm:$0xff] }
  0x84   :  { %v1061_v44 = vmul.f32 0.2, %v5110_v60  ;;  %v1062_v14 = vmul.f32 0.2, %v5111_v59  ;;  %v3638_v10 = vsel %vm956_vm1, %v3063_v53, %v5112_v45  ;;  %vm997_vm0 = vcmp.gt.f32.partialorder %v5110_v60, 0.0  ;;  %v5114_v0 = vld [vmem:[#allocation13_spill] sm:$0xff] }
  0x85   :  { %5102 = vst [vmem:[#allocation54_spill] sm:$0xff] %v3606_v61  ;;  %v1059_v61 = vmul.f32 0.2, %v5107_v8  ;;  %5113 = vst [vmem:[#allocation21_spill] sm:$0xff] %v3638_v10  ;;  %vm999_vm4 = vcmp.gt.f32.partialorder %v5114_v0, 0.0  ;;  %v5115_v35 = vld [vmem:[#allocation14_spill] sm:$0xff] }
  0x86   :  { %v1063_v3 = vmul.f32 0.2, %v5114_v0  ;;  %v1064_v8 = vmul.f32 0.2, %v5115_v35  ;;  %v5116_v40 = vld [vmem:[#allocation15_spill] sm:$0xff]  ;;  %v5119_v45 = vld [vmem:[#allocation16_spill] sm:$0xff] }
  0x87   :  { %v1065_v57 = vmul.f32 0.2, %v5116_v40  ;;  %v5117_v21 = vld [vmem:[#allocation23_spill] sm:$0xff]  ;;  %vm1001_vm1 = vcmp.gt.f32.partialorder %v5116_v40, 0.0  ;;  %v1066_v10 = vmul.f32 0.2, %v5119_v45 }
  0x88   :  { %v3651_v53 = vsel %vm957_vm2, %v5066_v56, %v5117_v21  ;;  %v5120_v59 = vld [vmem:[#allocation24_spill] sm:$0xff]  ;;  %v5121_v35 = vld [vmem:[#allocation25_spill] sm:$0xff]  ;;  %v5123_v21 = vld [vmem:[#allocation26_spill] sm:$0xff]  ;;  %vm5124_vm2 = vcmp.gt.f32.partialorder %v3087_v4, 0.0  ;;  %vm1131_vm5 = vcmask 523264  }
  0x89   :  { %5118 = vst [vmem:[#allocation15_spill] sm:$0xff] %v3651_v53  ;;  %v3660_v0 = vsel %vm958_vm3, %v3073_v29, %v5120_v59  ;;  %v3666_v60 = vsel %vm5122_vm7, %v5069_v52, %v5121_v35  ;;  %v3672_v56 = vsel %vm5124_vm2, %v3087_v4, %v5123_v21  ;;  %v3678_v53 = vsel %vm961_vm6, %v5073_v32, %v3426_v19  ;;  %v5125_v29 = vld [vmem:[#allocation42_spill] sm:$0xff]  ;;  %v5129_v19 = vld [vmem:[#allocation27_spill] sm:$0xff]  ;;  %v5168_v21 = vld [vmem:[#allocation53_spill] sm:$0xff] }
  0x8a   :  { %vm5126_vm3 = vcmp.gt.f32.partialorder %v3097_v54, 0.0  ;;  %vm5127_vm7 = vcmp.gt.f32.partialorder %v5076_v43, 0.0  ;;  %vm5128_vm2 = vcmp.gt.f32.partialorder %v3111_v42, 0.0  ;;  %v3702_v32 = vsel %vm965_vm8, %v5077_v20, %v5129_v19 }
  0x8b   :  { %v3684_v59 = vsel %vm5126_vm3, %v3097_v54, %v5125_v29  ;;  %v3690_v52 = vsel %vm5127_vm7, %v5076_v43, %v3438_v36  ;;  %v3696_v4 = vsel %vm5128_vm2, %v3111_v42, %v3441_v58  ;;  %vm5130_vm6 = vcmp.gt.f32.partialorder %v3121_v23, 0.0  ;;  %v5169_v29 = vld [vmem:[#allocation37_spill] sm:$0xff] }
  0x8c   :  { %v3708_v54 = vsel %vm5130_vm6, %v3121_v23, %v3453_v48  ;;  %vm5131_vm3 = vcmp.gt.f32.partialorder %v3128_v63, 0.0  ;;  %vm5132_vm7 = vcmp.gt.f32.partialorder %v3135_v6, 0.0  ;;  %v3726_v58 = vsel %vm969_vm9, %v3140_v24, %v3470_v1  ;;  %v5152_v1 = vld [vmem:[#allocation6_spill] sm:$0xff] }
  0x8d   :  { %v3714_v43 = vsel %vm5131_vm3, %v3128_v63, %v3456_v31  ;;  %v3720_v42 = vsel %vm5132_vm7, %v3135_v6, %v3459_v15  ;;  %vm5133_vm8 = vcmp.gt.f32.partialorder %v3145_v22, 0.0  ;;  %v5134_v63 = vld [vmem:[#allocation28_spill] sm:$0xff]  ;;  %vm5135_vm2 = vcmp.gt.f32.partialorder %v3152_v27, 0.0 }
  0x8e   :  { %v3732_v23 = vsel %vm5133_vm8, %v3145_v22, %v3473_v5  ;;  %v3738_v20 = vsel %vm5135_vm2, %v3152_v27, %v5134_v63  ;;  %vm5136_vm6 = vcmp.gt.f32.partialorder %v3159_v30, 0.0  ;;  %v3750_v24 = vsel %vm973_vm10, %v3164_v49, %v3491_v50  ;;  %v5137_v22 = vld [vmem:[#allocation31_spill] sm:$0xff]  ;;  %v5141_v49 = vld [vmem:[#allocation32_spill] sm:$0xff]  ;;  %v5172_v63 = vld [vmem:[#allocation54_spill] sm:$0xff] }
  0x8f   :  { %v3744_v6 = vsel %vm5136_vm6, %v3159_v30, %v3488_v9  ;;  %vm5138_vm9 = vcmp.gt.f32.partialorder %v3169_v26, 0.0  ;;  %vm5139_vm3 = vcmp.gt.f32.partialorder %v3176_v55, 0.0  ;;  %vm5140_vm7 = vcmp.gt.f32.partialorder %v3183_v38, 0.0 }
  0x90   :  { %v3756_v15 = vsel %vm5138_vm9, %v3169_v26, %v5137_v22  ;;  %v3762_v27 = vsel %vm5139_vm3, %v3176_v55, %v3506_v13  ;;  %v3768_v30 = vsel %vm5140_vm7, %v3183_v38, %v3509_v41  ;;  %v3774_v50 = vsel %vm977_vm11, %v3188_v18, %v5141_v49  ;;  %v5144_v38 = vld [vmem:[#allocation33_spill] sm:$0xff]  ;;  %v5155_v41 = vld [vmem:[#allocation35_spill] sm:$0xff] }
  0x91   :  { %vm5142_vm10 = vcmp.gt.f32.partialorder %v3193_v12, 0.0  ;;  %vm5143_vm8 = vcmp.gt.f32.partialorder %v3200_v16, 0.0  ;;  %vm5145_vm2 = vcmp.gt.f32.partialorder %v3207_v51, 0.0  ;;  %v3798_v18 = vsel %vm981_vm12, %v3212_v25, %v3543_v47  ;;  %v5150_v25 = vld [vmem:[#allocation45_spill] sm:$0xff]  ;;  %v5164_v47 = vld [vmem:[#allocation52_spill] sm:$0xff] }
  0x92   :  { %v3780_v26 = vsel %vm5142_vm10, %v3193_v12, %v3524_v11  ;;  %v3786_v55 = vsel %vm5143_vm8, %v3200_v16, %v3527_v28  ;;  %v3792_v36 = vsel %vm5145_vm2, %v3207_v51, %v5144_v38  ;;  %vm5146_vm11 = vcmp.gt.f32.partialorder %v3217_v33, 0.0  ;;  %v5147_v16 = vld [vmem:[#allocation34_spill] sm:$0xff]  ;;  %v5158_v28 = vld [vmem:[#allocation7_spill] sm:$0xff]  ;;  %v5173_v22 = vld [vmem:[#allocation9_spill] sm:$0xff] }
  0x93   :  { %v3804_v12 = vsel %vm5146_vm11, %v3217_v33, %v3546_v37  ;;  %vm5148_vm6 = vcmp.gt.f32.partialorder %v3224_v7, 0.0  ;;  %vm5149_vm9 = vcmp.gt.f32.partialorder %v3231_v39, 0.0  ;;  %v3822_v31 = vsel %vm985_vm13, %v3236_v34, %v5150_v25  ;;  %v5151_v33 = vld [vmem:[#allocation46_spill] sm:$0xff]  ;;  %v5162_v37 = vld [vmem:[#allocation36_spill] sm:$0xff] }
  0x94   :  { %v3810_v48 = vsel %vm5148_vm6, %v3224_v7, %v5147_v16  ;;  %v3816_v51 = vsel %vm5149_vm9, %v3231_v39, %v3562_v46  ;;  %vm5153_vm12 = vcmp.gt.f32.partialorder %v5152_v1, 0.0  ;;  %v5154_v7 = vld [vmem:[#allocation48_spill] sm:$0xff]  ;;  %vm5156_vm3 = vcmp.gt.f32.partialorder %v5155_v41, 0.0  ;;  %v5157_v39 = vld [vmem:[#allocation49_spill] sm:$0xff]  ;;  %v5161_v34 = vld [vmem:[#allocation50_spill] sm:$0xff] }
  0x95   :  { %v3828_v5 = vsel %vm5153_vm12, %v5152_v1, %v5151_v33  ;;  %v3834_v9 = vsel %vm5156_vm3, %v5155_v41, %v5154_v7  ;;  %vm5159_vm7 = vcmp.gt.f32.partialorder %v5158_v28, 0.0  ;;  %v3846_v11 = vsel %vm989_vm14, %v5162_v37, %v5161_v34  ;;  %v5165_v46 = vld [vmem:[#allocation8_spill] sm:$0xff]  ;;  %v5176_v38 = vld [vmem:[#allocation38_spill] sm:$0xff]  ;;  %v5181_v1 = vld [vmem:[#allocation39_spill] sm:$0xff] }
  0x96   :  { %v3840_v13 = vsel %vm5159_vm7, %v5158_v28, %v5157_v39  ;;  %5163 = vst [vmem:[#allocation16_spill] sm:$0xff] %v3846_v11  ;;  %vm5166_vm13 = vcmp.gt.f32.partialorder %v5165_v46, 0.0  ;;  %vm5170_vm10 = vcmp.gt.f32.partialorder %v5169_v29, 0.0  ;;  %vm5174_vm8 = vcmp.gt.f32.partialorder %v5173_v22, 0.0  ;;  %v5178_v25 = vld [vmem:[#allocation10_spill] sm:$0xff]  ;;  %v5184_v41 = vld [vmem:[#allocation11_spill] sm:$0xff] }
  0x97   :  { %5160 = vst [vmem:[#allocation23_spill] sm:$0xff] %v3840_v13  ;;  %v3852_v35 = vsel %vm5166_vm13, %v5165_v46, %v5164_v47  ;;  %v3858_v19 = vsel %vm5170_vm10, %v5169_v29, %v5168_v21  ;;  %v3864_v49 = vsel %vm5174_vm8, %v5173_v22, %v5172_v63  ;;  %v3869_v16 = vsel %vm993_vm15, %v5176_v38, %v1057_v2  ;;  %v5187_v28 = vld [vmem:[#allocation40_spill] sm:$0xff]  ;;  %v5192_v37 = vld [vmem:[#allocation13_spill] sm:$0xff]  ;;  %v5194_v47 = vld [vmem:[#allocation14_spill] sm:$0xff] }
  0x98   :  { %5167 = vst [vmem:[#allocation24_spill] sm:$0xff] %v3852_v35  ;;  %5171 = vst [vmem:[#allocation25_spill] sm:$0xff] %v3858_v19  ;;  %vm5179_vm14 = vcmp.gt.f32.partialorder %v5178_v25, 0.0  ;;  %vm5182_vm2 = vcmp.gt.f32.partialorder %v5181_v1, 0.0  ;;  %vm5185_vm11 = vcmp.gt.f32.partialorder %v5184_v41, 0.0  ;;  %v3889_v2 = vsel %vm997_vm0, %v5187_v28, %v1061_v44  ;;  %v5189_v34 = vld [vmem:[#allocation12_spill] sm:$0xff] }
  0x99   :  { %5175 = vst [vmem:[#allocation26_spill] sm:$0xff] %v3864_v49  ;;  %5177 = vst [vmem:[#allocation42_spill] sm:$0xff] %v3869_v16  ;;  %v3874_v33 = vsel %vm5179_vm14, %v5178_v25, %v1058_v62  ;;  %v3879_v7 = vsel %vm5182_vm2, %v5181_v1, %v1059_v61  ;;  %v3884_v39 = vsel %vm5185_vm11, %v5184_v41, %v1060_v17  ;;  %vm5190_vm15 = vcmp.gt.f32.partialorder %v5189_v34, 0.0  ;;  %v5200_v46 = vld [vmem:[#allocation17_spill] sm:$0xff]  ;;  %v5203_v25 = vld [vmem:[#allocation22_spill] sm:$0xff] }
  0x9a   :  { %5180 = vst [vmem:[#allocation27_spill] sm:$0xff] %v3874_v33  ;;  %5183 = vst [vmem:[#allocation28_spill] sm:$0xff] %v3879_v7  ;;  %v3894_v62 = vsel %vm5190_vm15, %v5189_v34, %v1062_v14  ;;  %v3899_v61 = vsel %vm999_vm4, %v5192_v37, %v1063_v3  ;;  %vm5195_vm6 = vcmp.gt.f32.partialorder %v5194_v47, 0.0  ;;  %v3909_v44 = vsel %vm1001_vm1, %v5116_v40, %v1065_v57  ;;  %v5201_v3 = vld [vmem:[#allocation18_spill] sm:$0xff]  ;;  %v5204_v41 = vld [vmem:[#allocation41_spill] sm:$0xff] }
  0x9b   :  { %5186 = vst [vmem:[#allocation31_spill] sm:$0xff] %v3884_v39  ;;  %5188 = vst [vmem:[#allocation32_spill] sm:$0xff] %v3889_v2  ;;  %v3904_v17 = vsel %vm5195_vm6, %v5194_v47, %v1064_v8  ;;  %vm5198_vm0 = vcmp.gt.f32.partialorder %v5119_v45, 0.0  ;;  %v1132_v21 = vsel %vm1131_vm5, %v5200_v46, -inf  ;;  %v1139_v29 = vsel %vm1131_vm5, %v5201_v3, -inf  ;;  %v5202_v8 = vld [vmem:[#allocation19_spill] sm:$0xff] }
  0x9c   :  { %5191 = vst [vmem:[#allocation33_spill] sm:$0xff] %v3894_v62  ;;  %5193 = vst [vmem:[#allocation34_spill] sm:$0xff] %v3899_v61  ;;  %v3914_v14 = vsel %vm5198_vm0, %v5119_v45, %v1066_v10  ;;  %v1133_v63 = vrot.slane %v1132_v21, 4  ;;  %v1140_v22 = vrot.slane %v1139_v29, 4  ;;  %v1146_v38 = vsel %vm1131_vm5, %v5202_v8, -inf  ;;  %v5205_v45 = vld [vmem:[#allocation29_spill] sm:$0xff] }
  0x9d   :  { %5196 = vst [vmem:[#allocation45_spill] sm:$0xff] %v3904_v17  ;;  %5197 = vst [vmem:[#allocation46_spill] sm:$0xff] %v3909_v44  ;;  %v1153_v40 = vsel %vm1131_vm5, %v5203_v25, -inf  ;;  %v1147_v57 = vrot.slane %v1146_v38, 4  ;;  %v1160_v10 = vsel %vm1131_vm5, %v5204_v41, -inf  ;;  %v1167_v28 = vsel %vm1131_vm5, %v5205_v45, -inf }
  0x9e   :  { %5199 = vst [vmem:[#allocation6_spill] sm:$0xff] %v3914_v14  ;;  %v1154_v1 = vrot.slane %v1153_v40, 4  ;;  %v1134_v34 = vmax.f32 %v1132_v21, %v1133_v63  ;;  %v1141_v37 = vmax.f32 %v1139_v29, %v1140_v22  ;;  %v1161_v47 = vrot.slane %v1160_v10, 4  ;;  %v5206_v44 = vld [vmem:[#allocation30_spill] sm:$0xff]  ;;  %v5207_v17 = vld [vmem:[#allocation43_spill] sm:$0xff] }
  0x9f   :  { %v1168_v46 = vrot.slane %v1167_v28, 4  ;;  %v1148_v3 = vmax.f32 %v1146_v38, %v1147_v57  ;;  %v1174_v8 = vsel %vm1131_vm5, %v5206_v44, -inf  ;;  %v1181_v25 = vsel %vm1131_vm5, %v5207_v17, -inf }
  0xa0   :  { %v1155_v14 = vmax.f32 %v1153_v40, %v1154_v1  ;;  %v1135_v61 = vrot.slane %v1134_v34, 2  ;;  %v1142_v62 = vrot.slane %v1141_v37, 2  ;;  %v1162_v2 = vmax.f32 %v1160_v10, %v1161_v47 }
  0xa1   :  { %v1169_v39 = vmax.f32 %v1167_v28, %v1168_v46  ;;  %v1149_v41 = vrot.slane %v1148_v3, 2  ;;  %v1175_v33 = vrot.slane %v1174_v8, 4  ;;  %v1182_v45 = vrot.slane %v1181_v25, 4 }
  0xa2   :  { %v1156_v7 = vrot.slane %v1155_v14, 2  ;;  %v1136_v21 = vmax.f32 %v1134_v34, %v1135_v61  ;;  %v1143_v29 = vmax.f32 %v1141_v37, %v1142_v62  ;;  %v1163_v63 = vrot.slane %v1162_v2, 2 }
  0xa3   :  { %v1170_v22 = vrot.slane %v1169_v39, 2  ;;  %v1150_v38 = vmax.f32 %v1148_v3, %v1149_v41  ;;  %v1176_v57 = vmax.f32 %v1174_v8, %v1175_v33  ;;  %v1183_v1 = vmax.f32 %v1181_v25, %v1182_v45  ;;  %v5215_v8 = vld [vmem:[#allocation3_spill] sm:$0xff] }
  0xa4   :  { %v1157_v40 = vmax.f32 %v1155_v14, %v1156_v7  ;;  %v1137_v44 = vrot.slane %v1136_v21, 1  ;;  %v1144_v16 = vrot.slane %v1143_v29, 1  ;;  %v1164_v49 = vmax.f32 %v1162_v2, %v1163_v63 }
  0xa5   :  { %v1171_v17 = vmax.f32 %v1169_v39, %v1170_v22  ;;  %v1151_v19 = vrot.slane %v1150_v38, 1  ;;  %v1177_v10 = vrot.slane %v1176_v57, 2  ;;  %v1184_v28 = vrot.slane %v1183_v1, 2  ;;  %v5214_v39 = vld [vmem:[#allocation2_spill] sm:$0xff] }
  0xa6   :  { %v1158_v35 = vrot.slane %v1157_v40, 1  ;;  %v3932_v47 = vmax.f32 %v1136_v21, %v1137_v44  ;;  %v3934_v46 = vmax.f32 %v1143_v29, %v1144_v16  ;;  %v1165_v61 = vrot.slane %v1164_v49, 1  ;;  %v5217_v29 = vld [vmem:[#allocation5_spill] sm:$0xff] }
  0xa7   :  { %v1172_v62 = vrot.slane %v1171_v17, 1  ;;  %v3936_v34 = vmax.f32 %v1150_v38, %v1151_v19  ;;  %v1178_v33 = vmax.f32 %v1176_v57, %v1177_v10  ;;  %v1185_v7 = vmax.f32 %v1183_v1, %v1184_v28  ;;  %v5216_v19 = vld [vmem:[#allocation4_spill] sm:$0xff]  ;;  %v5219_v38 = vld [vmem:[#allocation47_spill] sm:$0xff] }
  0xa8   :  { %5208 = vst [vmem:[#allocation48_spill] sm:$0xff] %v3932_v47  ;;  %5209 = vst [vmem:[#allocation35_spill] sm:$0xff] %v3934_v46  ;;  %v3938_v37 = vmax.f32 %v1157_v40, %v1158_v35  ;;  %v3940_v14 = vmax.f32 %v1164_v49, %v1165_v61  ;;  %v1188_v3 = vsel %vm1131_vm5, %v5214_v39, -inf  ;;  %v1195_v25 = vsel %vm1131_vm5, %v5215_v8, -inf  ;;  %v5218_v49 = vld [vmem:[#allocation44_spill] sm:$0xff] }
  0xa9   :  { %5210 = vst [vmem:[#allocation49_spill] sm:$0xff] %v3936_v34  ;;  %v3942_v2 = vmax.f32 %v1171_v17, %v1172_v62  ;;  %v1179_v16 = vrot.slane %v1178_v33, 1  ;;  %v1186_v41 = vrot.slane %v1185_v7, 1  ;;  %v1189_v45 = vrot.slane %v1188_v3, 4 }
  0xaa   :  { %5211 = vst [vmem:[#allocation7_spill] sm:$0xff] %v3938_v37  ;;  %5212 = vst [vmem:[#allocation50_spill] sm:$0xff] %v3940_v14  ;;  %v1196_v21 = vrot.slane %v1195_v25, 4  ;;  %v1202_v35 = vsel %vm1131_vm5, %v5216_v19, -inf  ;;  %v1209_v63 = vsel %vm1131_vm5, %v5217_v29, -inf  ;;  %v1216_v22 = vsel %vm1131_vm5, %v5218_v49, -inf }
  0xab   :  { %5213 = vst [vmem:[#allocation36_spill] sm:$0xff] %v3942_v2  ;;  %v1223_v40 = vsel %vm1131_vm5, %v5219_v38, -inf  ;;  %v3956_v57 = vmax.f32 %v1178_v33, %v1179_v16  ;;  %v3958_v1 = vmax.f32 %v1185_v7, %v1186_v41  ;;  %v1190_v44 = vmax.f32 %v1188_v3, %v1189_v45  ;;  %v5222_v19 = vld [vmem:[#allocation51_spill] sm:$0xff]  ;;  %v5223_v2 = vld [vmem:[#allocation20_spill] sm:$0xff] }
  0xac   :  { %v1197_v17 = vmax.f32 %v1195_v25, %v1196_v21  ;;  %v1203_v10 = vrot.slane %v1202_v35, 4  ;;  %v1210_v28 = vrot.slane %v1209_v63, 4  ;;  %v1217_v61 = vrot.slane %v1216_v22, 4 }
  0xad   :  { %5220 = vst [vmem:[#allocation52_spill] sm:$0xff] %v3956_v57  ;;  %5221 = vst [vmem:[#allocation8_spill] sm:$0xff] %v3958_v1  ;;  %v1224_v62 = vrot.slane %v1223_v40, 4  ;;  %v1191_v39 = vrot.slane %v1190_v44, 2  ;;  %v1230_v29 = vsel %vm1131_vm5, %v5222_v19, -inf  ;;  %v1237_v49 = vsel %vm1131_vm5, %v5223_v2, -inf }
  0xae   :  { %v1198_v8 = vrot.slane %v1197_v17, 2  ;;  %v1204_v14 = vmax.f32 %v1202_v35, %v1203_v10  ;;  %v1211_v38 = vmax.f32 %v1209_v63, %v1210_v28  ;;  %v1218_v33 = vmax.f32 %v1216_v22, %v1217_v61 }
  0xaf   :  { %v1225_v16 = vmax.f32 %v1223_v40, %v1224_v62  ;;  %v1192_v7 = vmax.f32 %v1190_v44, %v1191_v39  ;;  %v1231_v3 = vrot.slane %v1230_v29, 4  ;;  %v1238_v25 = vrot.slane %v1237_v49, 4  ;;  %v5224_v39 = vld [vmem:[#allocation55_spill] sm:$0xff] }
  0xb0   :  { %v1199_v41 = vmax.f32 %v1197_v17, %v1198_v8  ;;  %v1205_v45 = vrot.slane %v1204_v14, 2  ;;  %v1212_v21 = vrot.slane %v1211_v38, 2  ;;  %v1219_v1 = vrot.slane %v1218_v33, 2 }
  0xb1   :  { %v1226_v57 = vrot.slane %v1225_v16, 2  ;;  %v1193_v37 = vrot.slane %v1192_v7, 1  ;;  %v1232_v46 = vmax.f32 %v1230_v29, %v1231_v3  ;;  %v1239_v47 = vmax.f32 %v1237_v49, %v1238_v25  ;;  %v5225_v29 = vld [vmem:[#allocation21_spill] sm:$0xff] }
  0xb2   :  { %v1200_v34 = vrot.slane %v1199_v41, 1  ;;  %v1206_v19 = vmax.f32 %v1204_v14, %v1205_v45  ;;  %v1213_v11 = vmax.f32 %v1211_v38, %v1212_v21  ;;  %v1220_v13 = vmax.f32 %v1218_v33, %v1219_v1 }
  0xb3   :  { %v1227_v2 = vmax.f32 %v1225_v16, %v1226_v57  ;;  %v3964_v35 = vmax.f32 %v1192_v7, %v1193_v37  ;;  %v1233_v22 = vrot.slane %v1232_v46, 2  ;;  %v1240_v40 = vrot.slane %v1239_v47, 2 }
  0xb4   :  { %v3966_v63 = vmax.f32 %v1199_v41, %v1200_v34  ;;  %v1207_v44 = vrot.slane %v1206_v19, 1  ;;  %v1214_v17 = vrot.slane %v1213_v11, 1  ;;  %v1221_v10 = vrot.slane %v1220_v13, 1 }
  0xb5   :  { %v1228_v28 = vrot.slane %v1227_v2, 1  ;;  %v1234_v61 = vmax.f32 %v1232_v46, %v1233_v22  ;;  %v1241_v62 = vmax.f32 %v1239_v47, %v1240_v40  ;;  %v1244_v8 = vsel %vm1131_vm5, %v5224_v39, -inf  ;;  %v5227_v46 = vld [vmem:[#allocation15_spill] sm:$0xff] }
  0xb6   :  { %v1251_v14 = vsel %vm1131_vm5, %v5225_v29, -inf  ;;  %v3972_v1 = vmax.f32 %v1206_v19, %v1207_v44  ;;  %v3974_v37 = vmax.f32 %v1213_v11, %v1214_v17  ;;  %v3976_v34 = vmax.f32 %v1220_v13, %v1221_v10 }
  0xb7   :  { %v3978_v57 = vmax.f32 %v1227_v2, %v1228_v28  ;;  %v1235_v49 = vrot.slane %v1234_v61, 1  ;;  %v1242_v38 = vrot.slane %v1241_v62, 1  ;;  %v1245_v33 = vrot.slane %v1244_v8, 4 }
  0xb8   :  { %v1252_v16 = vrot.slane %v1251_v14, 4  ;;  %v1258_v47 = vsel %vm1131_vm5, %v5227_v46, -inf  ;;  %v1265_v7 = vsel %vm1131_vm5, %v3660_v0, -inf  ;;  %v1272_v41 = vsel %vm1131_vm5, %v3666_v60, -inf }
  0xb9   :  { %5226 = vst [vmem:[#allocation53_spill] sm:$0xff] %v3978_v57  ;;  %v1279_v11 = vsel %vm1131_vm5, %v3672_v56, -inf  ;;  %v3988_v13 = vmax.f32 %v1234_v61, %v1235_v49  ;;  %v3990_v3 = vmax.f32 %v1241_v62, %v1242_v38  ;;  %v1246_v25 = vmax.f32 %v1244_v8, %v1245_v33 }
  0xba   :  { %v1253_v45 = vmax.f32 %v1251_v14, %v1252_v16  ;;  %v1259_v21 = vrot.slane %v1258_v47, 4  ;;  %v1266_v19 = vrot.slane %v1265_v7, 4  ;;  %v1273_v2 = vrot.slane %v1272_v41, 4 }
  0xbb   :  { %5228 = vst [vmem:[#allocation37_spill] sm:$0xff] %v3988_v13  ;;  %5229 = vst [vmem:[#allocation54_spill] sm:$0xff] %v3990_v3  ;;  %v1280_v22 = vrot.slane %v1279_v11, 4  ;;  %v1247_v40 = vrot.slane %v1246_v25, 2  ;;  %v1286_v0 = vsel %vm1131_vm5, %v3678_v53, -inf  ;;  %v1293_v60 = vsel %vm1131_vm5, %v3684_v59, -inf }
  0xbc   :  { %v1254_v44 = vrot.slane %v1253_v45, 2  ;;  %v1260_v17 = vmax.f32 %v1258_v47, %v1259_v21  ;;  %v1267_v56 = vmax.f32 %v1265_v7, %v1266_v19  ;;  %v1274_v10 = vmax.f32 %v1272_v41, %v1273_v2 }
  0xbd   :  { %v1281_v28 = vmax.f32 %v1279_v11, %v1280_v22  ;;  %v1248_v61 = vmax.f32 %v1246_v25, %v1247_v40  ;;  %v1287_v39 = vrot.slane %v1286_v0, 4  ;;  %v1294_v8 = vrot.slane %v1293_v60, 4 }
  0xbe   :  { %v1255_v62 = vmax.f32 %v1253_v45, %v1254_v44  ;;  %v1261_v29 = vrot.slane %v1260_v17, 2  ;;  %v1268_v14 = vrot.slane %v1267_v56, 2  ;;  %v1275_v49 = vrot.slane %v1274_v10, 2 }
  0xbf   :  { %v1282_v38 = vrot.slane %v1281_v28, 2  ;;  %v1249_v33 = vrot.slane %v1248_v61, 1  ;;  %v1288_v46 = vmax.f32 %v1286_v0, %v1287_v39  ;;  %v1295_v3 = vmax.f32 %v1293_v60, %v1294_v8 }
  0xc0   :  { %v1256_v16 = vrot.slane %v1255_v62, 1  ;;  %v1262_v53 = vmax.f32 %v1260_v17, %v1261_v29  ;;  %v1269_v13 = vmax.f32 %v1267_v56, %v1268_v14  ;;  %v1276_v57 = vmax.f32 %v1274_v10, %v1275_v49 }
  0xc1   :  { %v1283_v59 = vmax.f32 %v1281_v28, %v1282_v38  ;;  %v3996_v47 = vmax.f32 %v1248_v61, %v1249_v33  ;;  %v1289_v41 = vrot.slane %v1288_v46, 2  ;;  %v1296_v11 = vrot.slane %v1295_v3, 2 }
  0xc2   :  { %v3998_v7 = vmax.f32 %v1255_v62, %v1256_v16  ;;  %v1263_v25 = vrot.slane %v1262_v53, 1  ;;  %v1270_v45 = vrot.slane %v1269_v13, 1  ;;  %v1277_v21 = vrot.slane %v1276_v57, 1 }
  0xc3   :  { %v1284_v19 = vrot.slane %v1283_v59, 1  ;;  %v1290_v2 = vmax.f32 %v1288_v46, %v1289_v41  ;;  %v1297_v22 = vmax.f32 %v1295_v3, %v1296_v11  ;;  %v1300_v40 = vsel %vm1131_vm5, %v3690_v52, -inf }
  0xc4   :  { %v1307_v44 = vsel %vm1131_vm5, %v3696_v4, -inf  ;;  %v4004_v0 = vmax.f32 %v1262_v53, %v1263_v25  ;;  %v4006_v60 = vmax.f32 %v1269_v13, %v1270_v45  ;;  %v4008_v17 = vmax.f32 %v1276_v57, %v1277_v21 }
  0xc5   :  { %v4010_v56 = vmax.f32 %v1283_v59, %v1284_v19  ;;  %v1291_v10 = vrot.slane %v1290_v2, 1  ;;  %v1298_v28 = vrot.slane %v1297_v22, 1  ;;  %v1301_v61 = vrot.slane %v1300_v40, 4 }
  0xc6   :  { %v1308_v62 = vrot.slane %v1307_v44, 4  ;;  %v1314_v3 = vsel %vm1131_vm5, %v3702_v32, -inf  ;;  %v1321_v52 = vsel %vm1131_vm5, %v3708_v54, -inf  ;;  %v1328_v4 = vsel %vm1131_vm5, %v3714_v43, -inf }
  0xc7   :  { %v1335_v13 = vsel %vm1131_vm5, %v3720_v42, -inf  ;;  %v4020_v57 = vmax.f32 %v1290_v2, %v1291_v10  ;;  %v4022_v39 = vmax.f32 %v1297_v22, %v1298_v28  ;;  %v1302_v8 = vmax.f32 %v1300_v40, %v1301_v61 }
  0xc8   :  { %v1309_v29 = vmax.f32 %v1307_v44, %v1308_v62  ;;  %v1315_v14 = vrot.slane %v1314_v3, 4  ;;  %v1322_v49 = vrot.slane %v1321_v52, 4  ;;  %v1329_v38 = vrot.slane %v1328_v4, 4 }
  0xc9   :  { %v1336_v33 = vrot.slane %v1335_v13, 4  ;;  %v1303_v32 = vrot.slane %v1302_v8, 2  ;;  %v1342_v54 = vsel %vm1131_vm5, %v3726_v58, -inf  ;;  %v1349_v43 = vsel %vm1131_vm5, %v3732_v23, -inf }
  0xca   :  { %v1310_v16 = vrot.slane %v1309_v29, 2  ;;  %v1316_v46 = vmax.f32 %v1314_v3, %v1315_v14  ;;  %v1323_v42 = vmax.f32 %v1321_v52, %v1322_v49  ;;  %v1330_v53 = vmax.f32 %v1328_v4, %v1329_v38 }
  0xcb   :  { %v1337_v59 = vmax.f32 %v1335_v13, %v1336_v33  ;;  %v1304_v41 = vmax.f32 %v1302_v8, %v1303_v32  ;;  %v1343_v25 = vrot.slane %v1342_v54, 4  ;;  %v1350_v45 = vrot.slane %v1349_v43, 4 }
  0xcc   :  { %v1311_v11 = vmax.f32 %v1309_v29, %v1310_v16  ;;  %v1317_v21 = vrot.slane %v1316_v46, 2  ;;  %v1324_v19 = vrot.slane %v1323_v42, 2  ;;  %v1331_v2 = vrot.slane %v1330_v53, 2 }
  0xcd   :  { %v1338_v22 = vrot.slane %v1337_v59, 2  ;;  %v1305_v40 = vrot.slane %v1304_v41, 1  ;;  %v1344_v10 = vmax.f32 %v1342_v54, %v1343_v25  ;;  %v1351_v28 = vmax.f32 %v1349_v43, %v1350_v45 }
  0xce   :  { %v1312_v44 = vrot.slane %v1311_v11, 1  ;;  %v1318_v58 = vmax.f32 %v1316_v46, %v1317_v21  ;;  %v1325_v61 = vmax.f32 %v1323_v42, %v1324_v19  ;;  %v1332_v62 = vmax.f32 %v1330_v53, %v1331_v2 }
  0xcf   :  { %v1339_v23 = vmax.f32 %v1337_v59, %v1338_v22  ;;  %v4028_v3 = vmax.f32 %v1304_v41, %v1305_v40  ;;  %v1345_v4 = vrot.slane %v1344_v10, 2  ;;  %v1352_v13 = vrot.slane %v1351_v28, 2 }
  0xd0   :  { %v4030_v52 = vmax.f32 %v1311_v11, %v1312_v44  ;;  %v1319_v8 = vrot.slane %v1318_v58, 1  ;;  %v1326_v29 = vrot.slane %v1325_v61, 1  ;;  %v1333_v14 = vrot.slane %v1332_v62, 1 }
  0xd1   :  { %v1340_v49 = vrot.slane %v1339_v23, 1  ;;  %v1346_v38 = vmax.f32 %v1344_v10, %v1345_v4  ;;  %v1353_v33 = vmax.f32 %v1351_v28, %v1352_v13  ;;  %v1356_v32 = vsel %vm1131_vm5, %v3738_v20, -inf }
  0xd2   :  { %v1363_v16 = vsel %vm1131_vm5, %v3744_v6, -inf  ;;  %v4036_v54 = vmax.f32 %v1318_v58, %v1319_v8  ;;  %v4038_v43 = vmax.f32 %v1325_v61, %v1326_v29  ;;  %v4040_v46 = vmax.f32 %v1332_v62, %v1333_v14 }
  0xd3   :  { %v4042_v42 = vmax.f32 %v1339_v23, %v1340_v49  ;;  %v1347_v53 = vrot.slane %v1346_v38, 1  ;;  %v1354_v59 = vrot.slane %v1353_v33, 1  ;;  %v1357_v41 = vrot.slane %v1356_v32, 4 }
  0xd4   :  { %v1364_v11 = vrot.slane %v1363_v16, 4  ;;  %v1370_v25 = vsel %vm1131_vm5, %v3750_v24, -inf  ;;  %v1377_v20 = vsel %vm1131_vm5, %v3756_v15, -inf  ;;  %v1384_v6 = vsel %vm1131_vm5, %v3762_v27, -inf }
  0xd5   :  { %v1391_v45 = vsel %vm1131_vm5, %v3768_v30, -inf  ;;  %v4052_v21 = vmax.f32 %v1346_v38, %v1347_v53  ;;  %v4054_v19 = vmax.f32 %v1353_v33, %v1354_v59  ;;  %v1358_v2 = vmax.f32 %v1356_v32, %v1357_v41 }
  0xd6   :  { %v1365_v22 = vmax.f32 %v1363_v16, %v1364_v11  ;;  %v1371_v40 = vrot.slane %v1370_v25, 4  ;;  %v1378_v44 = vrot.slane %v1377_v20, 4  ;;  %v1385_v10 = vrot.slane %v1384_v6, 4 }
  0xd7   :  { %v1392_v28 = vrot.slane %v1391_v45, 4  ;;  %v1359_v24 = vrot.slane %v1358_v2, 2  ;;  %v1398_v15 = vsel %vm1131_vm5, %v3774_v50, -inf  ;;  %v1405_v27 = vsel %vm1131_vm5, %v3780_v26, -inf }
  0xd8   :  { %v1366_v58 = vrot.slane %v1365_v22, 2  ;;  %v1372_v61 = vmax.f32 %v1370_v25, %v1371_v40  ;;  %v1379_v30 = vmax.f32 %v1377_v20, %v1378_v44  ;;  %v1386_v62 = vmax.f32 %v1384_v6, %v1385_v10 }
  0xd9   :  { %v1393_v23 = vmax.f32 %v1391_v45, %v1392_v28  ;;  %v1360_v4 = vmax.f32 %v1358_v2, %v1359_v24  ;;  %v1399_v8 = vrot.slane %v1398_v15, 4  ;;  %v1406_v29 = vrot.slane %v1405_v27, 4 }
  0xda   :  { %v1367_v13 = vmax.f32 %v1365_v22, %v1366_v58  ;;  %v1373_v14 = vrot.slane %v1372_v61, 2  ;;  %v1380_v49 = vrot.slane %v1379_v30, 2  ;;  %v1387_v38 = vrot.slane %v1386_v62, 2 }
  0xdb   :  { %v1394_v33 = vrot.slane %v1393_v23, 2  ;;  %v1361_v32 = vrot.slane %v1360_v4, 1  ;;  %v1400_v53 = vmax.f32 %v1398_v15, %v1399_v8  ;;  %v1407_v59 = vmax.f32 %v1405_v27, %v1406_v29 }
  0xdc   :  { %v1368_v16 = vrot.slane %v1367_v13, 1  ;;  %v1374_v50 = vmax.f32 %v1372_v61, %v1373_v14  ;;  %v1381_v41 = vmax.f32 %v1379_v30, %v1380_v49  ;;  %v1388_v11 = vmax.f32 %v1386_v62, %v1387_v38 }
  0xdd   :  { %v1395_v26 = vmax.f32 %v1393_v23, %v1394_v33  ;;  %v4060_v25 = vmax.f32 %v1360_v4, %v1361_v32  ;;  %v1401_v6 = vrot.slane %v1400_v53, 2  ;;  %v1408_v45 = vrot.slane %v1407_v59, 2 }
  0xde   :  { %v4062_v20 = vmax.f32 %v1367_v13, %v1368_v16  ;;  %v1375_v2 = vrot.slane %v1374_v50, 1  ;;  %v1382_v22 = vrot.slane %v1381_v41, 1  ;;  %v1389_v40 = vrot.slane %v1388_v11, 1 }
  0xdf   :  { %v1396_v44 = vrot.slane %v1395_v26, 1  ;;  %v1402_v10 = vmax.f32 %v1400_v53, %v1401_v6  ;;  %v1409_v28 = vmax.f32 %v1407_v59, %v1408_v45  ;;  %v1412_v24 = vsel %vm1131_vm5, %v3786_v55, -inf }
  0xe0   :  { %v1419_v58 = vsel %vm1131_vm5, %v3792_v36, -inf  ;;  %v4068_v15 = vmax.f32 %v1374_v50, %v1375_v2  ;;  %v4070_v27 = vmax.f32 %v1381_v41, %v1382_v22  ;;  %v4072_v61 = vmax.f32 %v1388_v11, %v1389_v40 }
  0xe1   :  { %v4074_v30 = vmax.f32 %v1395_v26, %v1396_v44  ;;  %v1403_v62 = vrot.slane %v1402_v10, 1  ;;  %v1410_v23 = vrot.slane %v1409_v28, 1  ;;  %v1413_v4 = vrot.slane %v1412_v24, 4 }
  0xe2   :  { %v1420_v13 = vrot.slane %v1419_v58, 4  ;;  %v1426_v8 = vsel %vm1131_vm5, %v3798_v18, -inf  ;;  %v1433_v55 = vsel %vm1131_vm5, %v3804_v12, -inf  ;;  %v1440_v36 = vsel %vm1131_vm5, %v3810_v48, -inf }
  0xe3   :  { %v1447_v29 = vsel %vm1131_vm5, %v3816_v51, -inf  ;;  %v4084_v14 = vmax.f32 %v1402_v10, %v1403_v62  ;;  %v4086_v49 = vmax.f32 %v1409_v28, %v1410_v23  ;;  %v1414_v38 = vmax.f32 %v1412_v24, %v1413_v4 }
  0xe4   :  { %v1421_v33 = vmax.f32 %v1419_v58, %v1420_v13  ;;  %v1427_v32 = vrot.slane %v1426_v8, 4  ;;  %v1434_v16 = vrot.slane %v1433_v55, 4  ;;  %v1441_v53 = vrot.slane %v1440_v36, 4 }
  0xe5   :  { %v1448_v59 = vrot.slane %v1447_v29, 4  ;;  %v1415_v18 = vrot.slane %v1414_v38, 2  ;;  %v1454_v12 = vsel %vm1131_vm5, %v3822_v31, -inf  ;;  %v1461_v48 = vsel %vm1131_vm5, %v3828_v5, -inf }
  0xe6   :  { %v1422_v50 = vrot.slane %v1421_v33, 2  ;;  %v1428_v41 = vmax.f32 %v1426_v8, %v1427_v32  ;;  %v1435_v51 = vmax.f32 %v1433_v55, %v1434_v16  ;;  %v1442_v11 = vmax.f32 %v1440_v36, %v1441_v53 }
  0xe7   :  { %v1449_v26 = vmax.f32 %v1447_v29, %v1448_v59  ;;  %v1416_v6 = vmax.f32 %v1414_v38, %v1415_v18  ;;  %v1455_v2 = vrot.slane %v1454_v12, 4  ;;  %v1462_v22 = vrot.slane %v1461_v48, 4 }
  0xe8   :  { %v1423_v45 = vmax.f32 %v1421_v33, %v1422_v50  ;;  %v1429_v40 = vrot.slane %v1428_v41, 2  ;;  %v1436_v44 = vrot.slane %v1435_v51, 2  ;;  %v1443_v10 = vrot.slane %v1442_v11, 2  ;;  %v5231_v50 = vld [vmem:[#allocation23_spill] sm:$0xff] }
  0xe9   :  { %v1450_v28 = vrot.slane %v1449_v26, 2  ;;  %v1417_v24 = vrot.slane %v1416_v6, 1  ;;  %v1456_v62 = vmax.f32 %v1454_v12, %v1455_v2  ;;  %v1463_v23 = vmax.f32 %v1461_v48, %v1462_v22  ;;  %v5236_v22 = vld [vmem:[#allocation16_spill] sm:$0xff] }
  0xea   :  { %v1424_v58 = vrot.slane %v1423_v45, 1  ;;  %v1430_v31 = vmax.f32 %v1428_v41, %v1429_v40  ;;  %v1437_v4 = vmax.f32 %v1435_v51, %v1436_v44  ;;  %v1444_v13 = vmax.f32 %v1442_v11, %v1443_v10  ;;  %v5237_v44 = vld [vmem:[#allocation24_spill] sm:$0xff]  ;;  %v5238_v10 = vld [vmem:[#allocation25_spill] sm:$0xff] }
  0xeb   :  { %v1451_v5 = vmax.f32 %v1449_v26, %v1450_v28  ;;  %v4092_v8 = vmax.f32 %v1416_v6, %v1417_v24  ;;  %v1457_v36 = vrot.slane %v1456_v62, 2  ;;  %v1464_v29 = vrot.slane %v1463_v23, 2  ;;  %v5239_v24 = vld [vmem:[#allocation26_spill] sm:$0xff] }
  0xec   :  { %v4094_v55 = vmax.f32 %v1423_v45, %v1424_v58  ;;  %v1431_v38 = vrot.slane %v1430_v31, 1  ;;  %v1438_v33 = vrot.slane %v1437_v4, 1  ;;  %v1445_v32 = vrot.slane %v1444_v13, 1 }
  0xed   :  { %v1452_v16 = vrot.slane %v1451_v5, 1  ;;  %v1458_v53 = vmax.f32 %v1456_v62, %v1457_v36  ;;  %v1465_v59 = vmax.f32 %v1463_v23, %v1464_v29  ;;  %v1468_v18 = vsel %vm1131_vm5, %v3834_v9, -inf }
  0xee   :  { %5230 = vst [vmem:[#allocation9_spill] sm:$0xff] %v4094_v55  ;;  %v1475_v12 = vsel %vm1131_vm5, %v5231_v50, -inf  ;;  %v4100_v48 = vmax.f32 %v1430_v31, %v1431_v38  ;;  %v4102_v41 = vmax.f32 %v1437_v4, %v1438_v33  ;;  %v4104_v51 = vmax.f32 %v1444_v13, %v1445_v32  ;;  %v5242_v32 = vld [vmem:[#allocation42_spill] sm:$0xff]  ;;  %v5243_v50 = vld [vmem:[#allocation27_spill] sm:$0xff] }
  0xef   :  { %v4106_v11 = vmax.f32 %v1451_v5, %v1452_v16  ;;  %v1459_v26 = vrot.slane %v1458_v53, 1  ;;  %v1466_v6 = vrot.slane %v1465_v59, 1  ;;  %v1469_v45 = vrot.slane %v1468_v18, 4 }
  0xf0   :  { %5232 = vst [vmem:[#allocation38_spill] sm:$0xff] %v4100_v48  ;;  %5233 = vst [vmem:[#allocation10_spill] sm:$0xff] %v4102_v41  ;;  %v1476_v2 = vrot.slane %v1475_v12, 4  ;;  %v1482_v40 = vsel %vm1131_vm5, %v5236_v22, -inf  ;;  %v1489_v9 = vsel %vm1131_vm5, %v5237_v44, -inf  ;;  %v1496_v28 = vsel %vm1131_vm5, %v5238_v10, -inf }
  0xf1   :  { %5234 = vst [vmem:[#allocation39_spill] sm:$0xff] %v4104_v51  ;;  %5235 = vst [vmem:[#allocation11_spill] sm:$0xff] %v4106_v11  ;;  %v1503_v58 = vsel %vm1131_vm5, %v5239_v24, -inf  ;;  %v4116_v62 = vmax.f32 %v1458_v53, %v1459_v26  ;;  %v4118_v23 = vmax.f32 %v1465_v59, %v1466_v6  ;;  %v1470_v31 = vmax.f32 %v1468_v18, %v1469_v45 }
  0xf2   :  { %v1477_v4 = vmax.f32 %v1475_v12, %v1476_v2  ;;  %v1483_v13 = vrot.slane %v1482_v40, 4  ;;  %v1490_v5 = vrot.slane %v1489_v9, 4  ;;  %v1497_v36 = vrot.slane %v1496_v28, 4 }
  0xf3   :  { %5240 = vst [vmem:[#allocation40_spill] sm:$0xff] %v4116_v62  ;;  %5241 = vst [vmem:[#allocation12_spill] sm:$0xff] %v4118_v23  ;;  %v1504_v29 = vrot.slane %v1503_v58, 4  ;;  %v1471_v38 = vrot.slane %v1470_v31, 2  ;;  %v1510_v16 = vsel %vm1131_vm5, %v5242_v32, -inf  ;;  %v1517_v22 = vsel %vm1131_vm5, %v5243_v50, -inf }
  0xf4   :  { %v1478_v33 = vrot.slane %v1477_v4, 2  ;;  %v1484_v44 = vmax.f32 %v1482_v40, %v1483_v13  ;;  %v1491_v10 = vmax.f32 %v1489_v9, %v1490_v5  ;;  %v1498_v53 = vmax.f32 %v1496_v28, %v1497_v36 }
  0xf5   :  { %v1505_v26 = vmax.f32 %v1503_v58, %v1504_v29  ;;  %v1472_v59 = vmax.f32 %v1470_v31, %v1471_v38  ;;  %v1511_v18 = vrot.slane %v1510_v16, 4  ;;  %v1518_v12 = vrot.slane %v1517_v22, 4  ;;  %v5246_v38 = vld [vmem:[#allocation28_spill] sm:$0xff] }
  0xf6   :  { %v1479_v6 = vmax.f32 %v1477_v4, %v1478_v33  ;;  %v1485_v45 = vrot.slane %v1484_v44, 2  ;;  %v1492_v2 = vrot.slane %v1491_v10, 2  ;;  %v1499_v24 = vrot.slane %v1498_v53, 2 }
  0xf7   :  { %v1506_v23 = vrot.slane %v1505_v26, 2  ;;  %v1473_v62 = vrot.slane %v1472_v59, 1  ;;  %v1512_v51 = vmax.f32 %v1510_v16, %v1511_v18  ;;  %v1519_v41 = vmax.f32 %v1517_v22, %v1518_v12  ;;  %v5247_v16 = vld [vmem:[#allocation31_spill] sm:$0xff]  ;;  %v5254_v12 = vld [vmem:[#allocation34_spill] sm:$0xff] }
  0xf8   :  { %v1480_v11 = vrot.slane %v1479_v6, 1  ;;  %v1486_v32 = vmax.f32 %v1484_v44, %v1485_v45  ;;  %v1493_v48 = vmax.f32 %v1491_v10, %v1492_v2  ;;  %v1500_v55 = vmax.f32 %v1498_v53, %v1499_v24  ;;  %v5255_v2 = vld [vmem:[#allocation45_spill] sm:$0xff] }
  0xf9   :  { %v1507_v50 = vmax.f32 %v1505_v26, %v1506_v23  ;;  %v4124_v40 = vmax.f32 %v1472_v59, %v1473_v62  ;;  %v1513_v28 = vrot.slane %v1512_v51, 2  ;;  %v1520_v58 = vrot.slane %v1519_v41, 2 }
  0xfa   :  { %v4126_v9 = vmax.f32 %v1479_v6, %v1480_v11  ;;  %v1487_v31 = vrot.slane %v1486_v32, 1  ;;  %v1494_v4 = vrot.slane %v1493_v48, 1  ;;  %v1501_v13 = vrot.slane %v1500_v55, 1  ;;  %v5253_v6 = vld [vmem:[#allocation33_spill] sm:$0xff] }
  0xfb   :  { %5244 = vst [vmem:[#allocation13_spill] sm:$0xff] %v4124_v40  ;;  %v1508_v5 = vrot.slane %v1507_v50, 1  ;;  %v1514_v36 = vmax.f32 %v1512_v51, %v1513_v28  ;;  %v1521_v29 = vmax.f32 %v1519_v41, %v1520_v58  ;;  %v1524_v33 = vsel %vm1131_vm5, %v5246_v38, -inf  ;;  %v5252_v51 = vld [vmem:[#allocation32_spill] sm:$0xff]  ;;  %v5258_v38 = vld [vmem:[#allocation46_spill] sm:$0xff] }
  0xfc   :  { %5245 = vst [vmem:[#allocation14_spill] sm:$0xff] %v4126_v9  ;;  %v1531_v22 = vsel %vm1131_vm5, %v5247_v16, -inf  ;;  %v4132_v44 = vmax.f32 %v1486_v32, %v1487_v31  ;;  %v4134_v62 = vmax.f32 %v1493_v48, %v1494_v4  ;;  %v4136_v11 = vmax.f32 %v1500_v55, %v1501_v13 }
  0xfd   :  { %v4138_v23 = vmax.f32 %v1507_v50, %v1508_v5  ;;  %v1515_v10 = vrot.slane %v1514_v36, 1  ;;  %v1522_v53 = vrot.slane %v1521_v29, 1  ;;  %v1525_v26 = vrot.slane %v1524_v33, 4 }
  0xfe   :  { %5248 = vst [vmem:[#allocation17_spill] sm:$0xff] %v4132_v44  ;;  %5249 = vst [vmem:[#allocation18_spill] sm:$0xff] %v4134_v62  ;;  %v1532_v59 = vrot.slane %v1531_v22, 4  ;;  %v1538_v41 = vsel %vm1131_vm5, %v5252_v51, -inf  ;;  %v1545_v18 = vsel %vm1131_vm5, %v5253_v6, -inf  ;;  %v1552_v45 = vsel %vm1131_vm5, %v5254_v12, -inf }
  0xff   :  { %5250 = vst [vmem:[#allocation19_spill] sm:$0xff] %v4136_v11  ;;  %5251 = vst [vmem:[#allocation22_spill] sm:$0xff] %v4138_v23  ;;  %v1559_v48 = vsel %vm1131_vm5, %v5255_v2, -inf  ;;  %v4148_v55 = vmax.f32 %v1514_v36, %v1515_v10  ;;  %v4150_v24 = vmax.f32 %v1521_v29, %v1522_v53  ;;  %v1526_v32 = vmax.f32 %v1524_v33, %v1525_v26  ;;  %v5259_v51 = vld [vmem:[#allocation6_spill] sm:$0xff] }
 0x100   :  { %v1533_v50 = vmax.f32 %v1531_v22, %v1532_v59  ;;  %v1539_v28 = vrot.slane %v1538_v41, 4  ;;  %v1546_v58 = vrot.slane %v1545_v18, 4  ;;  %v1553_v31 = vrot.slane %v1552_v45, 4 }
 0x101   :  { %5256 = vst [vmem:[#allocation41_spill] sm:$0xff] %v4148_v55  ;;  %5257 = vst [vmem:[#allocation29_spill] sm:$0xff] %v4150_v24  ;;  %v1560_v4 = vrot.slane %v1559_v48, 4  ;;  %v1527_v13 = vrot.slane %v1526_v32, 2  ;;  %v1566_v16 = vsel %vm1131_vm5, %v5258_v38, -inf  ;;  %v1573_v6 = vsel %vm1131_vm5, %v5259_v51, -inf }
 0x102   :  { %v1534_v5 = vrot.slane %v1533_v50, 2  ;;  %v1540_v12 = vmax.f32 %v1538_v41, %v1539_v28  ;;  %v1547_v2 = vmax.f32 %v1545_v18, %v1546_v58  ;;  %v1554_v36 = vmax.f32 %v1552_v45, %v1553_v31 }
 0x103   :  { %v1561_v10 = vmax.f32 %v1559_v48, %v1560_v4  ;;  %v1528_v29 = vmax.f32 %v1526_v32, %v1527_v13  ;;  %v1567_v33 = vrot.slane %v1566_v16, 4  ;;  %v1574_v22 = vrot.slane %v1573_v6, 4  ;;  %v5261_v13 = vld [vmem:[#allocation48_spill] sm:$0xff] }
 0x104   :  { %v1535_v53 = vmax.f32 %v1533_v50, %v1534_v5  ;;  %v1541_v26 = vrot.slane %v1540_v12, 2  ;;  %v1548_v59 = vrot.slane %v1547_v2, 2  ;;  %v1555_v24 = vrot.slane %v1554_v36, 2  ;;  %v5280_v5 = vld [vmem:[#allocation13_spill] sm:$0xff] }
 0x105   :  { %v1562_v55 = vrot.slane %v1561_v10, 2  ;;  %v1529_v23 = vrot.slane %v1528_v29, 1  ;;  %v1568_v62 = vmax.f32 %v1566_v16, %v1567_v33  ;;  %v1575_v44 = vmax.f32 %v1573_v6, %v1574_v22  ;;  %v5262_v16 = vld [vmem:[#allocation35_spill] sm:$0xff]  ;;  %v5266_v33 = vld [vmem:[#allocation36_spill] sm:$0xff]  ;;  %v5283_v22 = vld [vmem:[#allocation18_spill] sm:$0xff] }
 0x106   :  { %v1536_v11 = vrot.slane %v1535_v53, 1  ;;  %v1542_v38 = vmax.f32 %v1540_v12, %v1541_v26  ;;  %v1549_v9 = vmax.f32 %v1547_v2, %v1548_v59  ;;  %v1556_v40 = vmax.f32 %v1554_v36, %v1555_v24  ;;  %v5263_v36 = vld [vmem:[#allocation49_spill] sm:$0xff]  ;;  %v5268_v26 = vld [vmem:[#allocation8_spill] sm:$0xff]  ;;  %v5281_v59 = vld [vmem:[#allocation14_spill] sm:$0xff] }
 0x107   :  { %v1563_v51 = vmax.f32 %v1561_v10, %v1562_v55  ;;  %v4156_v41 = vmax.f32 %v1528_v29, %v1529_v23  ;;  %v1569_v45 = vrot.slane %v1568_v62, 2  ;;  %v1576_v48 = vrot.slane %v1575_v44, 2  ;;  %v5265_v29 = vld [vmem:[#allocation50_spill] sm:$0xff] }
 0x108   :  { %v4158_v18 = vmax.f32 %v1535_v53, %v1536_v11  ;;  %v1543_v32 = vrot.slane %v1542_v38, 1  ;;  %v1550_v50 = vrot.slane %v1549_v9, 1  ;;  %v1557_v28 = vrot.slane %v1556_v40, 1  ;;  %v5284_v53 = vld [vmem:[#allocation19_spill] sm:$0xff]  ;;  %v5285_v10 = vld [vmem:[#allocation22_spill] sm:$0xff]  ;;  %v5287_v6 = vld [vmem:[#allocation29_spill] sm:$0xff] }
 0x109   :  { %v1564_v58 = vrot.slane %v1563_v51, 1  ;;  %v1570_v31 = vmax.f32 %v1568_v62, %v1569_v45  ;;  %v1577_v4 = vmax.f32 %v1575_v44, %v1576_v48  ;;  %v5264_v44 = vld [vmem:[#allocation7_spill] sm:$0xff]  ;;  %v5286_v62 = vld [vmem:[#allocation41_spill] sm:$0xff]  ;;  %v5288_v45 = vpack.c.bf16 %v5261_v13, %v5261_v13 }
 0x10a   :  { %5260 = vst [vmem:[#allocation30_spill] sm:$0xff] %v4158_v18  ;;  %v4164_v24 = vmax.f32 %v1542_v38, %v1543_v32  ;;  %v4166_v23 = vmax.f32 %v1549_v9, %v1550_v50  ;;  %v4168_v11 = vmax.f32 %v1556_v40, %v1557_v28  ;;  %v5267_v9 = vld [vmem:[#allocation52_spill] sm:$0xff]  ;;  %v5282_v40 = vld [vmem:[#allocation17_spill] sm:$0xff]  ;;  %v5289_v32 = vpack.c.bf16 %v5262_v16, %v5262_v16 }
 0x10b   :  { %v4170_v55 = vmax.f32 %v1563_v51, %v1564_v58  ;;  %v1571_v12 = vrot.slane %v1570_v31, 1  ;;  %v1578_v2 = vrot.slane %v1577_v4, 1  ;;  %v5270_v58 = vld [vmem:[#allocation53_spill] sm:$0xff]  ;;  %v4303_v18 = vunpack.c.l.b16 %v5288_v45 }
 0x10c   :  { %v4308_v48 = vunpack.c.l.b16 %v5289_v32  ;;  %v5290_v50 = vpack.c.bf16 %v5263_v36, %v5263_v36  ;;  %v5292_v13 = vpack.c.bf16 %v5265_v29, %v5265_v29  ;;  %v5293_v16 = vpack.c.bf16 %v5266_v33, %v5266_v33 }
 0x10d   :  { %v4184_v38 = vmax.f32 %v1570_v31, %v1571_v12  ;;  %v4186_v51 = vmax.f32 %v1577_v4, %v1578_v2  ;;  %v5271_v4 = vld [vmem:[#allocation37_spill] sm:$0xff]  ;;  %v5272_v2 = vld [vmem:[#allocation54_spill] sm:$0xff]  ;;  %v5291_v31 = vpack.c.bf16 %v5264_v44, %v5264_v44  ;;  %v5294_v36 = vpack.c.bf16 %v5267_v9, %v5267_v9 }
 0x10e   :  { %v4313_v28 = vunpack.c.l.b16 %v5290_v50  ;;  %v4323_v45 = vunpack.c.l.b16 %v5292_v13  ;;  %v4328_v32 = vunpack.c.l.b16 %v5293_v16  ;;  %v5295_v44 = vpack.c.bf16 %v5268_v26, %v5268_v26 }
 0x10f   :  { %5269 = vst [vmem:[#allocation43_spill] sm:$0xff] %v4184_v38  ;;  %v4318_v38 = vunpack.c.l.b16 %v5291_v31  ;;  %v4333_v50 = vunpack.c.l.b16 %v5294_v36  ;;  %v5297_v29 = vpack.c.bf16 %v3964_v35, %v3964_v35  ;;  %v5298_v33 = vpack.c.bf16 %v3966_v63, %v3966_v63 }
 0x110   :  { %v4338_v31 = vunpack.c.l.b16 %v5295_v44  ;;  %v5299_v9 = vpack.c.bf16 %v3972_v1, %v3972_v1  ;;  %v5300_v26 = vpack.c.bf16 %v3974_v37, %v3974_v37  ;;  %v5301_v35 = vpack.c.bf16 %v3976_v34, %v3976_v34 }
 0x111   :  { %v4343_v13 = vunpack.c.l.b16 %v5297_v29  ;;  %v4348_v16 = vunpack.c.l.b16 %v5298_v33  ;;  %v5302_v63 = vpack.c.bf16 %v5270_v58, %v5270_v58  ;;  %v5303_v1 = vpack.c.bf16 %v5271_v4, %v5271_v4 }
 0x112   :  { %5296 = vst [vmem:[#allocation2_spill] sm:$0xff] %v4338_v31  ;;  %v4353_v36 = vunpack.c.l.b16 %v5299_v9  ;;  %v4358_v44 = vunpack.c.l.b16 %v5300_v26  ;;  %v4363_v29 = vunpack.c.l.b16 %v5301_v35  ;;  %v5304_v37 = vpack.c.bf16 %v5272_v2, %v5272_v2 }
 0x113   :  { %v4368_v33 = vunpack.c.l.b16 %v5302_v63  ;;  %v4373_v9 = vunpack.c.l.b16 %v5303_v1  ;;  %v5305_v34 = vpack.c.bf16 %v3996_v47, %v3996_v47  ;;  %v5306_v12 = vpack.c.bf16 %v3998_v7, %v3998_v7 }
 0x114   :  { %v4378_v26 = vunpack.c.l.b16 %v5304_v37  ;;  %v5307_v63 = vpack.c.bf16 %v4004_v0, %v4004_v0  ;;  %v5308_v4 = vpack.c.bf16 %v4006_v60, %v4006_v60  ;;  %v5309_v2 = vpack.c.bf16 %v4008_v17, %v4008_v17 }
 0x115   :  { %v1852_v35 = vunpack.c.l.b16 %v5305_v34  ;;  %v1853_v58 = vunpack.c.l.b16 %v5306_v12  ;;  %v5310_v47 = vpack.c.bf16 %v4010_v56, %v4010_v56  ;;  %v5311_v0 = vpack.c.bf16 %v4020_v57, %v4020_v57 }
 0x116   :  { %v4389_v31 = vunpack.c.l.b16 %v5307_v63  ;;  %v4394_v1 = vunpack.c.l.b16 %v5308_v4  ;;  %v4399_v37 = vunpack.c.l.b16 %v5309_v2  ;;  %v5312_v60 = vpack.c.bf16 %v4022_v39, %v4022_v39 }
 0x117   :  { %v4404_v7 = vunpack.c.l.b16 %v5310_v47  ;;  %v4409_v12 = vunpack.c.l.b16 %v5311_v0  ;;  %v5313_v17 = vpack.c.bf16 %v4028_v3, %v4028_v3  ;;  %v5314_v4 = vpack.c.bf16 %v4030_v52, %v4030_v52 }
 0x118   :  { %v4414_v34 = vunpack.c.l.b16 %v5312_v60  ;;  %v5315_v2 = vpack.c.bf16 %v4036_v54, %v4036_v54  ;;  %v5316_v57 = vpack.c.bf16 %v4038_v43, %v4038_v43  ;;  %v5317_v39 = vpack.c.bf16 %v4040_v46, %v4040_v46 }
 0x119   :  { %v1860_v63 = vunpack.c.l.b16 %v5313_v17  ;;  %v1861_v56 = vunpack.c.l.b16 %v5314_v4  ;;  %v5318_v3 = vpack.c.bf16 %v4042_v42, %v4042_v42  ;;  %v5319_v52 = vpack.c.bf16 %v4052_v21, %v4052_v21 }
 0x11a   :  { %v1862_v47 = vunpack.c.l.b16 %v5315_v2  ;;  %v1863_v0 = vunpack.c.l.b16 %v5316_v57  ;;  %v1864_v60 = vunpack.c.l.b16 %v5317_v39  ;;  %v5320_v54 = vpack.c.bf16 %v4054_v19, %v4054_v19 }
 0x11b   :  { %v4434_v17 = vunpack.c.l.b16 %v5318_v3  ;;  %v4439_v4 = vunpack.c.l.b16 %v5319_v52  ;;  %v5321_v43 = vpack.c.bf16 %v4060_v25, %v4060_v25  ;;  %v5322_v42 = vpack.c.bf16 %v4062_v20, %v4062_v20 }
 0x11c   :  { %v4444_v2 = vunpack.c.l.b16 %v5320_v54  ;;  %v5323_v21 = vpack.c.bf16 %v4068_v15, %v4068_v15  ;;  %v5324_v19 = vpack.c.bf16 %v4070_v27, %v4070_v27  ;;  %v5326_v25 = vpack.c.bf16 %v4072_v61, %v4072_v61 }
 0x11d   :  { %v4449_v46 = vunpack.c.l.b16 %v5321_v43  ;;  %v4454_v57 = vunpack.c.l.b16 %v5322_v42  ;;  %v5328_v20 = vpack.c.bf16 %v4074_v30, %v4074_v30  ;;  %v5330_v15 = vpack.c.bf16 %v4084_v14, %v4084_v14  ;;  %v5339_v14 = vld [vmem:[#allocation10_spill] sm:$0xff] }
 0x11e   :  { %v4459_v39 = vunpack.c.l.b16 %v5323_v21  ;;  %v4464_v3 = vunpack.c.l.b16 %v5324_v19  ;;  %v4469_v52 = vunpack.c.l.b16 %v5326_v25  ;;  %v5332_v27 = vpack.c.bf16 %v4086_v49, %v4086_v49  ;;  %v5335_v19 = vld [vmem:[#allocation9_spill] sm:$0xff]  ;;  %v5341_v49 = vld [vmem:[#allocation39_spill] sm:$0xff] }
 0x11f   :  { %v4474_v54 = vunpack.c.l.b16 %v5328_v20  ;;  %v4479_v43 = vunpack.c.l.b16 %v5330_v15  ;;  %v5334_v61 = vpack.c.bf16 %v4092_v8, %v4092_v8  ;;  %v5336_v25 = vpack.c.bf16 %v5335_v19, %v5335_v19  ;;  %v5337_v20 = vld [vmem:[#allocation38_spill] sm:$0xff]  ;;  %v5344_v8 = vld [vmem:[#allocation11_spill] sm:$0xff]  ;;  %v5347_v19 = vld [vmem:[#allocation40_spill] sm:$0xff] }
 0x120   :  { %5325 = vst [vmem:[#allocation3_spill] sm:$0xff] %v4464_v3  ;;  %5327 = vst [vmem:[#allocation4_spill] sm:$0xff] %v4469_v52  ;;  %v4484_v42 = vunpack.c.l.b16 %v5332_v27  ;;  %v5340_v15 = vpack.c.bf16 %v5339_v14, %v5339_v14  ;;  %v5342_v27 = vpack.c.bf16 %v5341_v49, %v5341_v49  ;;  %v5352_v49 = vpack.c.bf16 %v5280_v5, %v5280_v5 }
 0x121   :  { %5329 = vst [vmem:[#allocation5_spill] sm:$0xff] %v4474_v54  ;;  %5331 = vst [vmem:[#allocation44_spill] sm:$0xff] %v4479_v43  ;;  %v1876_v21 = vunpack.c.l.b16 %v5334_v61  ;;  %v1877_v30 = vunpack.c.l.b16 %v5336_v25  ;;  %v5338_v54 = vpack.c.bf16 %v5337_v20, %v5337_v20  ;;  %v5345_v61 = vpack.c.bf16 %v5344_v8, %v5344_v8 }
 0x122   :  { %5333 = vst [vmem:[#allocation47_spill] sm:$0xff] %v4484_v42  ;;  %v4498_v43 = vunpack.c.l.b16 %v5340_v15  ;;  %v4503_v42 = vunpack.c.l.b16 %v5342_v27  ;;  %v5348_v25 = vpack.c.bf16 %v5347_v19, %v5347_v19  ;;  %v1884_v27 = vunpack.c.l.b16 %v5352_v49 }
 0x123   :  { %v1878_v52 = vunpack.c.l.b16 %v5338_v54  ;;  %v4508_v3 = vunpack.c.l.b16 %v5345_v61  ;;  %v5349_v54 = vld [vmem:[#allocation12_spill] sm:$0xff]  ;;  %v5354_v61 = vpack.c.bf16 %v5282_v40, %v5282_v40  ;;  %v5355_v19 = vpack.c.bf16 %v5283_v22, %v5283_v22 }
 0x124   :  { %5343 = vst [vmem:[#allocation51_spill] sm:$0xff] %v4503_v42  ;;  %v4513_v20 = vunpack.c.l.b16 %v5348_v25  ;;  %v5350_v14 = vpack.c.bf16 %v5349_v54, %v5349_v54  ;;  %v5353_v42 = vpack.c.bf16 %v5281_v59, %v5281_v59  ;;  %v5356_v54 = vpack.c.bf16 %v5284_v53, %v5284_v53 }
 0x125   :  { %5346 = vst [vmem:[#allocation20_spill] sm:$0xff] %v4508_v3  ;;  %v1886_v3 = vunpack.c.l.b16 %v5354_v61  ;;  %v1887_v25 = vunpack.c.l.b16 %v5355_v19  ;;  %v5357_v5 = vpack.c.bf16 %v5285_v10, %v5285_v10  ;;  %v5358_v59 = vpack.c.bf16 %v5286_v62, %v5286_v62  ;;  %v5362_v19 = vld [vmem:[#allocation30_spill] sm:$0xff] }
 0x126   :  { %v4518_v15 = vunpack.c.l.b16 %v5350_v14  ;;  %v1885_v8 = vunpack.c.l.b16 %v5353_v42  ;;  %v4535_v14 = vunpack.c.l.b16 %v5356_v54  ;;  %v5359_v40 = vpack.c.bf16 %v5287_v6, %v5287_v6 }
 0x127   :  { %v4540_v49 = vunpack.c.l.b16 %v5357_v5  ;;  %v4545_v42 = vunpack.c.l.b16 %v5358_v59  ;;  %v5361_v53 = vpack.c.bf16 %v4156_v41, %v4156_v41  ;;  %v5363_v54 = vpack.c.bf16 %v5362_v19, %v5362_v19 }
 0x128   :  { %5351 = vst [vmem:[#allocation55_spill] sm:$0xff] %v4518_v15  ;;  %v4550_v22 = vunpack.c.l.b16 %v5359_v40  ;;  %v5364_v5 = vpack.c.bf16 %v4164_v24, %v4164_v24  ;;  %v5365_v62 = vpack.c.bf16 %v4166_v23, %v4166_v23  ;;  %v5366_v6 = vpack.c.bf16 %v4168_v11, %v4168_v11 }
 0x129   :  { %v1892_v61 = vunpack.c.l.b16 %v5361_v53  ;;  %v1893_v10 = vunpack.c.l.b16 %v5363_v54  ;;  %v5367_v41 = vpack.c.bf16 %v4170_v55, %v4170_v55  ;;  %v5370_v24 = vpack.c.bf16 %v4186_v51, %v4186_v51 }
 0x12a   :  { %5360 = vst [vmem:[#allocation21_spill] sm:$0xff] %v4550_v22  ;;  %v1894_v15 = vunpack.c.l.b16 %v5364_v5  ;;  %v1895_v59 = vunpack.c.l.b16 %v5365_v62  ;;  %v1896_v40 = vunpack.c.l.b16 %v5366_v6  ;;  %v5368_v22 = vld [vmem:[#allocation43_spill] sm:$0xff]  ;;  %vm1900_vm4 = vcmask 1041409  }
 0x12b   :  { %v1897_v53 = vunpack.c.l.b16 %v5367_v41  ;;  %v5369_v19 = vpack.c.bf16 %v5368_v22, %v5368_v22  ;;  %v4578_v5 = vunpack.c.l.b16 %v5370_v24  ;;  %vm1902_vm5 = vcmask 1042434  }
 0x12c   :  { %v1901_v23 = vsel %vm1900_vm4, %v4308_v48, %v4303_v18  ;;  %vm1904_vm1 = vcmask 1043459   ;;  %vm1906_vm9 = vcmask 1044484   ;;  %vm1908_vm12 = vcmask 1045509   ;;  %v5377_v24 = vld [vmem:[#allocation20_spill] sm:$0xff] }
 0x12d   :  { %v4573_v54 = vunpack.c.l.b16 %v5369_v19  ;;  %v1903_v11 = vsel %vm1902_vm5, %v4313_v28, %v1901_v23  ;;  %vm1910_vm3 = vcmask 1046534   ;;  %vm1912_vm7 = vcmask 1047559   ;;  %v5375_v19 = vld [vmem:[#allocation51_spill] sm:$0xff] }
 0x12e   :  { %v1914_v55 = vsel %vm1900_vm4, %v4348_v16, %v4343_v13  ;;  %v1905_v51 = vsel %vm1904_vm1, %v4318_v38, %v1903_v11  ;;  %v1921_v18 = vsel %vm1900_vm4, %v1853_v58, %v1852_v35  ;;  %v1928_v48 = vsel %vm1900_vm4, %v1861_v56, %v1860_v63  ;;  %v5378_v23 = vld [vmem:[#allocation47_spill] sm:$0xff] }
 0x12f   :  { %v1915_v22 = vsel %vm1902_vm5, %v4353_v36, %v1914_v55  ;;  %v1907_v62 = vsel %vm1906_vm9, %v4323_v45, %v1905_v51  ;;  %v1922_v6 = vsel %vm1902_vm5, %v4389_v31, %v1921_v18  ;;  %v1929_v13 = vsel %vm1902_vm5, %v1862_v47, %v1928_v48  ;;  %v5379_v51 = vld [vmem:[#allocation55_spill] sm:$0xff] }
 0x130   :  { %v1916_v28 = vsel %vm1904_vm1, %v4358_v44, %v1915_v22  ;;  %v1909_v38 = vsel %vm1908_vm12, %v4328_v32, %v1907_v62  ;;  %v1923_v36 = vsel %vm1904_vm1, %v4394_v1, %v1922_v6  ;;  %v1930_v35 = vsel %vm1904_vm1, %v1863_v0, %v1929_v13  ;;  %v5371_v32 = vld [vmem:[#allocation2_spill] sm:$0xff] }
 0x131   :  { %v1917_v16 = vsel %vm1906_vm9, %v4363_v29, %v1916_v28  ;;  %v1911_v45 = vsel %vm1910_vm3, %v4333_v50, %v1909_v38  ;;  %v1924_v31 = vsel %vm1906_vm9, %v4399_v37, %v1923_v36  ;;  %v1931_v58 = vsel %vm1906_vm9, %v1864_v60, %v1930_v35  ;;  %v5372_v60 = vld [vmem:[#allocation3_spill] sm:$0xff]  ;;  %v5380_v48 = vld [vmem:[#allocation21_spill] sm:$0xff] }
 0x132   :  { %v1918_v44 = vsel %vm1908_vm12, %v4368_v33, %v1917_v16  ;;  %v1913_v63 = vsel %vm1912_vm7, %v5371_v32, %v1911_v45  ;;  %v1925_v1 = vsel %vm1908_vm12, %v4404_v7, %v1924_v31  ;;  %v1932_v50 = vsel %vm1908_vm12, %v4434_v17, %v1931_v58 }
 0x133   :  { %v1919_v29 = vsel %vm1910_vm3, %v4373_v9, %v1918_v44  ;;  %v1926_v37 = vsel %vm1910_vm3, %v4409_v12, %v1925_v1  ;;  %v1933_v56 = vsel %vm1910_vm3, %v4439_v4, %v1932_v50  ;;  %v1935_v47 = vsel %vm1900_vm4, %v4454_v57, %v4449_v46  ;;  %v5373_v57 = vld [vmem:[#allocation4_spill] sm:$0xff] }
 0x134   :  { %v1920_v33 = vsel %vm1912_vm7, %v4378_v26, %v1919_v29  ;;  %v1927_v9 = vsel %vm1912_vm7, %v4414_v34, %v1926_v37  ;;  %v1934_v7 = vsel %vm1912_vm7, %v4444_v2, %v1933_v56  ;;  %v1936_v0 = vsel %vm1902_vm5, %v4459_v39, %v1935_v47 }
 0x135   :  { %v1942_v26 = vsel %vm1900_vm4, %v1877_v30, %v1876_v21  ;;  %v1937_v12 = vsel %vm1904_vm1, %v5372_v60, %v1936_v0  ;;  %v1949_v4 = vsel %vm1900_vm4, %v1885_v8, %v1884_v27  ;;  %v1956_v46 = vsel %vm1900_vm4, %v1893_v10, %v1892_v61  ;;  %v5374_v21 = vld [vmem:[#allocation5_spill] sm:$0xff]  ;;  %v5376_v61 = vld [vmem:[#allocation44_spill] sm:$0xff] }
 0x136   :  { %v1943_v17 = vsel %vm1902_vm5, %v1878_v52, %v1942_v26  ;;  %v1938_v34 = vsel %vm1906_vm9, %v5373_v57, %v1937_v12  ;;  %v1950_v41 = vsel %vm1902_vm5, %v1886_v3, %v1949_v4  ;;  %v1957_v39 = vsel %vm1902_vm5, %v1894_v15, %v1956_v46 }
 0x137   :  { %v1944_v2 = vsel %vm1904_vm1, %v4498_v43, %v1943_v17  ;;  %v1939_v30 = vsel %vm1908_vm12, %v5374_v21, %v1938_v34  ;;  %v1951_v27 = vsel %vm1904_vm1, %v1887_v25, %v1950_v41  ;;  %v1958_v8 = vsel %vm1904_vm1, %v1895_v59, %v1957_v39 }
 0x138   :  { %v1945_v52 = vsel %vm1906_vm9, %v5375_v19, %v1944_v2  ;;  %v1940_v10 = vsel %vm1910_vm3, %v5376_v61, %v1939_v30  ;;  %v1952_v3 = vsel %vm1906_vm9, %v4535_v14, %v1951_v27  ;;  %v1959_v15 = vsel %vm1906_vm9, %v1896_v40, %v1958_v8 }
 0x139   :  { %v1946_v43 = vsel %vm1908_vm12, %v5377_v24, %v1945_v52  ;;  %v1941_v11 = vsel %vm1912_vm7, %v5378_v23, %v1940_v10  ;;  %v1953_v25 = vsel %vm1908_vm12, %v4540_v49, %v1952_v3  ;;  %v1960_v59 = vsel %vm1908_vm12, %v1897_v53, %v1959_v15 }
 0x13a   :  { %v1947_v55 = vsel %vm1910_vm3, %v4513_v20, %v1946_v43  ;;  %v1954_v18 = vsel %vm1910_vm3, %v4545_v42, %v1953_v25  ;;  %v1961_v14 = vsel %vm1910_vm3, %v4573_v54, %v1960_v59  ;;  %v1963_v40 = vpack.c.b16 %v1913_v63, %v1913_v63 }
 0x13b   :  { %v1948_v22 = vsel %vm1912_vm7, %v5379_v51, %v1947_v55  ;;  %v1955_v62 = vsel %vm1912_vm7, %v5380_v48, %v1954_v18  ;;  %v1962_v20 = vsel %vm1912_vm7, %v4578_v5, %v1961_v14  ;;  %v1964_v28 = vpack.c.b16 %v1920_v33, %v1920_v33 }
 0x13c   :  { %v1965_v49 = vpack.c.b16 %v1927_v9, %v1927_v9  ;;  %v1966_v6 = vpack.c.b16 %v1934_v7, %v1934_v7  ;;  %v1967_v53 = vpack.c.b16 %v1941_v11, %v1941_v11  ;;  %v1968_v13 = vpack.c.b16 %v1948_v22, %v1948_v22 }
 0x13d   :  { %v1969_v38 = vpack.c.b16 %v1955_v62, %v1955_v62  ;;  %v1970_v16 = vpack.c.b16 %v1962_v20, %v1962_v20  ;;  %vm1979_vm13 = vcmask 519168  }
 0x13e   :  { %1980 = vst.msk [vmem:[%s4706_s2] sm:$0xf] %vm1979_vm13, %v1963_v40  ;;  %1981 = vst.msk [vmem:[%s4706_s2 + $0x4] sm:$0xf] %vm1979_vm13, %v1964_v28 }
 0x13f   :  { %1982 = vst.msk [vmem:[%s4706_s2 + $0x8] sm:$0xf] %vm1979_vm13, %v1965_v49  ;;  %1983 = vst.msk [vmem:[%s4706_s2 + $0xc] sm:$0xf] %vm1979_vm13, %v1966_v6 }
 0x140   :  { %1984 = vst.msk [vmem:[%s4706_s2 + $0x10] sm:$0xf] %vm1979_vm13, %v1967_v53  ;;  %1985 = vst.msk [vmem:[%s4706_s2 + $0x14] sm:$0xf] %vm1979_vm13, %v1968_v13 }
 0x141   :  { %1986 = vst.msk [vmem:[%s4706_s2 + $0x18] sm:$0xf] %vm1979_vm13, %v1969_v38  ;;  %1987 = vst.msk [vmem:[%s4706_s2 + $0x1c] sm:$0xf] %vm1979_vm13, %v1970_v16 }

// kernel: dgcnn_with_color_forward.19
= control target key start
LH: loop header
LB: loop body
LE: loop exit
PB: predicated region body
PF: predicated region fallthrough
CT: control target
= control target key end

     0   :  { %s1332_s12 = smov 0   ;;  %s1334_s13 = smov 0   ;;  %s1776_s0 = inlined_call_operand.vmem [shape: bf16[2,32,64], index: 0, kind: input, shape index: {}, may-alias: {0,1}]   ;;  %s1777_s1 = inlined_call_operand.vmem [shape: bf16[2,32,64], index: 1, kind: input, shape index: {}, may-alias: {0,1}]   ;;  %s1778_s2 = inlined_call_operand.vmem [shape: f32[2,1,32], index: 2, kind: input, shape index: {}]   ;;  %s1779_s3 = inlined_call_operand.vmem [shape: s32[2,32,8], index: 3, kind: output, shape index: {}]  }
   0x1   :  { %s1336_s14 = smov 0  }
   0x2 LB: > { %s25_s15 = sadd.s32 1, %s1306_s13  ;;  %p1225_p0 = scmp.ge.s32.totalorder %s1310_s14, 1  ;;  %s1310_s14 = sphi %s1336_s14, %s13_s14   ;;  %s1306_s13 = sphi %s1334_s13, %s1781_s13   ;;  %s1302_s12 = sphi %s1332_s12, %s1780_s12  }
   0x3   : > { %p27_p1 = scmp.ge.s32.totalorder %s25_s15, 2  ;;  %p176_p2 = scmp.lt.s32.totalorder %s1310_s14, 3 }
   0x5   : > { %s1783_s15 = smov (%p27_p1, %s25_s15), 0  ;;  %p177_p3 = pnand %p1225_p0, %p176_p2 }
   0x6   : > { %p217_p4 = scmp.lt.s32.totalorder (!%p177_p3), %s1302_s12, 1  ;;  %vm261_vm0 = vcmask (!%p177_p3), 523264   ;;  %vm376_vm1 = vcmask (!%p177_p3), 261120   ;;  %v374_v43 = vlaneseq (!%p177_p3) }
   0x7   : > { %180 = sbr.rel (%p177_p3) target bundleno = 3796 (0xed4), region = 32 }
   0x8   : > { %v1389_v44 = vand.u32 (!%p177_p3), 127, %v374_v43 }
   0xe   : > { %s1785_s12 = smov (!%p217_p4, %s1302_s12), 1 }
   0xf   : > { %s1241_s16 = sshll.u32 %s1785_s12, 4  ;;  %s233_s25 = scalar_lea.vmem %s1778_s2, %s1785_s12 }
  0x10   : > { %s230_s19 = scalar_lea.vmem %s1777_s1, %s1241_s16  ;;  %s224_s22 = scalar_lea.vmem %s1776_s0, %s1241_s16  ;;  %v1238_v26 = vld [vmem:[%s233_s25] ss:$0 sm:$0xff] }
  0x11   : > { %v1282_v0 = vld [vmem:[%s230_s19] sm:$0xff]   ;;  %v1283_v1 = vld [vmem:[%s230_s19 + $0x8] sm:$0xff]   ;;  %s1243_s26 = sshll.u32 %s1785_s12, 5 }
  0x12   : > { %1256 = vmatprep.subr.msk.bf16.mxu0 %vm261_vm0, %v1282_v0  ;;  %v301_v2 = vsel %vm261_vm0, %v1282_v0, 0  ;;  %v245_v3 = vld [vmem:[%s224_s22] sm:$0xff]   ;;  %v247_v4 = vld [vmem:[%s224_s22 + $0x8] sm:$0xff]   ;;  %v304_v14 = vsel %vm261_vm0, %v1283_v1, 0  ;;  %s242_s29 = scalar_lea.vmem %s1779_s3, %s1243_s26 }
  0x13   : > { %1249 = vmatpush3.bf16.xpose.msra.mxu0 %v301_v2  ;;  %v255_v5 = vunpack.c.l.bf16 %v247_v4  ;;  %v253_v6 = vunpack.c.l.bf16 %v245_v3  ;;  %v256_v7 = vunpack.c.h.bf16 %v247_v4  ;;  %v254_v8 = vunpack.c.h.bf16 %v245_v3  ;;  %1252 = vmatprep.mubr.msk.bf16.mxu0 %vm261_vm0, %v245_v3 }
  0x14   : > { %1257 = vmatprep.subr.msk.bf16.mxu0 %vm261_vm0, %v1283_v1 }
  0x15   : > { %v259_v9 = vmul.f32 %v255_v5, %v255_v5  ;;  %v257_v10 = vmul.f32 %v253_v6, %v253_v6  ;;  %v260_v11 = vmul.f32 %v256_v7, %v256_v7  ;;  %v258_v12 = vmul.f32 %v254_v8, %v254_v8 }
  0x17   : > { %v268_v13 = vsel %vm261_vm0, %v259_v9, 0.0  ;;  %v262_v15 = vsel %vm261_vm0, %v257_v10, 0.0  ;;  %v271_v16 = vsel %vm261_vm0, %v260_v11, 0.0  ;;  %v265_v17 = vsel %vm261_vm0, %v258_v12, 0.0 }
  0x18   : > { %269 = vadd.xlane.f32.xlu1 %v268_v13  ;;  %263 = vadd.xlane.f32.xlu0 %v262_v15 }
  0x1b   : > { %1251 = vmatpush3.bf16.xpose.msra.mxu0 %v304_v14 }
  0x1c   : > { %272 = vadd.xlane.f32.xlu1 %v271_v16  ;;  %266 = vadd.xlane.f32.xlu0 %v265_v17 }
  0x22   : > { %1253 = vmatmul.mubr.msk.bf16.vlgmr.msra.gmra.mrb[0].mxu0 %vm261_vm0, %v247_v4 }
  0xa5   : > { %v270_v18 = vpop.xlane.xlu1 %269  ;;  %v264_v19 = vpop.xlane.xlu0 %263 }
  0xa9   : > { %v273_v25 = vpop.xlane.xlu1 %272  ;;  %v267_v29 = vpop.xlane.xlu0 %266 }
  0xf5   : > { %v1254_v20 = vpop.f32.mrb[0].mxu0 }
  0xf6   : > { %v357_v21 = vmul.f32 2.0, %v1254_v20  ;;  %v340_v22 = vpop.f32.mrb[1].mxu0 }
  0xf7   : > { %v355_v23 = vmul.f32 2.0, %v340_v22  ;;  %v1255_v24 = vpop.f32.mrb[2].mxu0 }
  0xf8   : > { %v358_v27 = vmul.f32 2.0, %v1255_v24  ;;  %v343_v28 = vpop.f32.mrb[3].mxu0  ;;  %v361_v30 = vsub.f32 %v357_v21, %v270_v18 }
  0xf9   : > { %v359_v31 = vsub.f32 %v355_v23, %v264_v19  ;;  %v356_v32 = vmul.f32 2.0, %v343_v28 }
  0xfa   : > { %v362_v34 = vsub.f32 %v358_v27, %v273_v25  ;;  %v1375_v36 = vadd.f32 %v1238_v26, %v361_v30 }
  0xfb   : > { %v1373_v33 = vadd.f32 %v1238_v26, %v359_v31  ;;  %v360_v35 = vsub.f32 %v356_v32, %v267_v29 }
  0xfc   : > { %v1381_v39 = vadd.f32 %v1238_v26, %v362_v34  ;;  %v383_v41 = vsel %vm376_vm1, %v1375_v36, -inf }
  0xfd   : > { %v1377_v37 = vadd.f32 %v1238_v26, %v360_v35  ;;  %v377_v38 = vsel %vm376_vm1, %v1373_v33, -inf }
  0xfe   : > { %378 = vmax.xlane.f32.xlu0 %v377_v38  ;;  %v386_v42 = vsel %vm376_vm1, %v1381_v39, -inf }
  0xff   : > { %v380_v40 = vsel %vm376_vm1, %v1377_v37, -inf }
 0x100   : > { %381 = vmax.xlane.f32.xlu1 %v380_v40 }
 0x102   : > { %384 = vmax.xlane.f32.xlu0 %v383_v41 }
 0x104   : > { %387 = vmax.xlane.f32.xlu1 %v386_v42 }
 0x18b   : > { %v379_v45 = vpop.xlane.xlu0 %378 }
 0x18c   : > { %vm389_vm2 = vcmp.eq.f32.partialorder %v1373_v33, %v379_v45 }
 0x18d   : > { %v393_v46 = vsel %vm389_vm2, %v1389_v44, 32  ;;  %v382_v47 = vpop.xlane.xlu1 %381 }
 0x18e   : > { %v397_v48 = vsel %vm376_vm1, %v393_v46, 2147483647  ;;  %vm390_vm3 = vcmp.eq.f32.partialorder %v1377_v37, %v382_v47 }
 0x18f   : > { %v394_v49 = vsel %vm390_vm3, %v1389_v44, 32  ;;  %v385_v50 = vpop.xlane.xlu0 %384  ;;  %v399_v51 = vshra.s32 %v397_v48, 16  ;;  %v398_v1 = vand.u32 65535, %v397_v48 }
 0x190   : > { %v412_v52 = vsel %vm376_vm1, %v394_v49, 2147483647  ;;  %vm391_vm4 = vcmp.eq.f32.partialorder %v1375_v36, %v385_v50 }
 0x191   : > { %v395_v53 = vsel %vm391_vm4, %v1389_v44, 32  ;;  %v388_v54 = vpop.xlane.xlu1 %387  ;;  %v401_v55 = vcvt.s32.f32 %v399_v51  ;;  %v414_v56 = vshra.s32 %v412_v52, 16  ;;  %v413_v2 = vand.u32 65535, %v412_v52 }
 0x192   : > { %v427_v57 = vsel %vm376_vm1, %v395_v53, 2147483647  ;;  %vm392_vm5 = vcmp.eq.f32.partialorder %v1381_v39, %v388_v54  ;;  %v400_v4 = vcvt.s32.f32 %v398_v1 }
 0x193   : > { %v396_v58 = vsel %vm392_vm5, %v1389_v44, 32  ;;  %402 = vmin.xlane.f32.xlu0 %v401_v55  ;;  %v416_v59 = vcvt.s32.f32 %v414_v56  ;;  %v429_v60 = vshra.s32 %v427_v57, 16  ;;  %v428_v5 = vand.u32 65535, %v427_v57 }
 0x194   : > { %v442_v61 = vsel %vm376_vm1, %v396_v58, 2147483647  ;;  %v415_v8 = vcvt.s32.f32 %v413_v2 }
 0x195   : > { %417 = vmin.xlane.f32.xlu1 %v416_v59  ;;  %v431_v62 = vcvt.s32.f32 %v429_v60  ;;  %v444_v63 = vshra.s32 %v442_v61, 16  ;;  %v443_v9 = vand.u32 65535, %v442_v61  ;;  %v430_v12 = vcvt.s32.f32 %v428_v5 }
 0x197   : > { %432 = vmin.xlane.f32.xlu0 %v431_v62  ;;  %v446_v0 = vcvt.s32.f32 %v444_v63  ;;  %v445_v15 = vcvt.s32.f32 %v443_v9 }
 0x199   : > { %447 = vmin.xlane.f32.xlu1 %v446_v0 }
 0x220   : > { %v403_v3 = vpop.xlane.xlu0 %402 }
 0x221   : > { %vm404_vm6 = vcmp.eq.f32.partialorder %v401_v55, %v403_v3  ;;  %v409_v17 = vcvt.f32.s32 %v403_v3 }
 0x222   : > { %v418_v6 = vpop.xlane.xlu1 %417  ;;  %v405_v7 = vsel %vm404_vm6, %v400_v4, inf }
 0x223   : > { %406 = vmin.xlane.f32.xlu0 %v405_v7  ;;  %vm419_vm7 = vcmp.eq.f32.partialorder %v416_v59, %v418_v6  ;;  %v424_v18 = vcvt.f32.s32 %v418_v6  ;;  %v410_v20 = vshll.u32 %v409_v17, 16 }
 0x224   : > { %v433_v10 = vpop.xlane.xlu0 %432  ;;  %v420_v11 = vsel %vm419_vm7, %v415_v8, inf }
 0x225   : > { %421 = vmin.xlane.f32.xlu1 %v420_v11  ;;  %vm434_vm8 = vcmp.eq.f32.partialorder %v431_v62, %v433_v10  ;;  %v439_v21 = vcvt.f32.s32 %v433_v10  ;;  %v425_v25 = vshll.u32 %v424_v18, 16 }
 0x226   : > { %v448_v13 = vpop.xlane.xlu1 %447  ;;  %v435_v14 = vsel %vm434_vm8, %v430_v12, inf }
 0x227   : > { %436 = vmin.xlane.f32.xlu0 %v435_v14  ;;  %vm449_vm9 = vcmp.eq.f32.partialorder %v446_v0, %v448_v13  ;;  %v454_v23 = vcvt.f32.s32 %v448_v13  ;;  %v440_v29 = vshll.u32 %v439_v21, 16 }
 0x228   : > { %v450_v16 = vsel %vm449_vm9, %v445_v15, inf }
 0x229   : > { %451 = vmin.xlane.f32.xlu1 %v450_v16  ;;  %v455_v32 = vshll.u32 %v454_v23, 16 }
 0x2b0   : > { %v407_v19 = vpop.xlane.xlu0 %406 }
 0x2b1   : > { %v408_v22 = vcvt.f32.s32 %v407_v19 }
 0x2b2   : > { %v422_v24 = vpop.xlane.xlu1 %421 }
 0x2b3   : > { %v1403_v26 = vadd.s32 %v410_v20, %v408_v22  ;;  %v423_v27 = vcvt.f32.s32 %v422_v24 }
 0x2b4   : > { %v437_v28 = vpop.xlane.xlu0 %436 }
 0x2b5   : > { %v1405_v30 = vadd.s32 %v425_v25, %v423_v27  ;;  %v438_v31 = vcvt.f32.s32 %v437_v28  ;;  %vm457_vm10 = vcmp.eq.s32.totalorder %v1389_v44, %v1403_v26 }
 0x2b6   : > { %v452_v34 = vpop.xlane.xlu1 %451  ;;  %v1410_v35 = vsel %vm457_vm10, -inf, %v1373_v33 }
 0x2b7   : > { %v1412_v38 = vadd.s32 %v440_v29, %v438_v31  ;;  %v453_v40 = vcvt.f32.s32 %v452_v34  ;;  %v465_v41 = vsel %vm376_vm1, %v1410_v35, -inf  ;;  %vm458_vm11 = vcmp.eq.s32.totalorder %v1389_v44, %v1405_v30 }
 0x2b8   : > { %466 = vmax.xlane.f32.xlu0 %v465_v41  ;;  %v1419_v42 = vsel %vm458_vm11, -inf, %v1377_v37 }
 0x2b9   : > { %v1421_v43 = vadd.s32 %v455_v32, %v453_v40  ;;  %v468_v45 = vsel %vm376_vm1, %v1419_v42, -inf  ;;  %vm459_vm12 = vcmp.eq.s32.totalorder %v1389_v44, %v1412_v38 }
 0x2ba   : > { %469 = vmax.xlane.f32.xlu1 %v468_v45  ;;  %v1428_v33 = vsel %vm459_vm12, -inf, %v1375_v36 }
 0x2bb   : > { %v471_v46 = vsel %vm376_vm1, %v1428_v33, -inf  ;;  %vm460_vm13 = vcmp.eq.s32.totalorder %v1389_v44, %v1421_v43 }
 0x2bc   : > { %472 = vmax.xlane.f32.xlu0 %v471_v46  ;;  %v1435_v37 = vsel %vm460_vm13, -inf, %v1381_v39 }
 0x2bd   : > { %v474_v47 = vsel %vm376_vm1, %v1435_v37, -inf }
 0x2be   : > { %475 = vmax.xlane.f32.xlu1 %v474_v47 }
 0x345   : > { %v467_v48 = vpop.xlane.xlu0 %466 }
 0x346   : > { %vm477_vm14 = vcmp.eq.f32.partialorder %v1410_v35, %v467_v48 }
 0x347   : > { %v481_v36 = vsel %vm477_vm14, %v1389_v44, 32  ;;  %v470_v49 = vpop.xlane.xlu1 %469 }
 0x348   : > { %v485_v50 = vsel %vm376_vm1, %v481_v36, 2147483647  ;;  %vm478_vm15 = vcmp.eq.f32.partialorder %v1419_v42, %v470_v49 }
 0x349   : > { %v482_v51 = vsel %vm478_vm15, %v1389_v44, 32  ;;  %v473_v52 = vpop.xlane.xlu0 %472  ;;  %v487_v53 = vshra.s32 %v485_v50, 16  ;;  %v486_v2 = vand.u32 65535, %v485_v50 }
 0x34a   : > { %v500_v39 = vsel %vm376_vm1, %v482_v51, 2147483647  ;;  %vm479_vm0 = vcmp.eq.f32.partialorder %v1428_v33, %v473_v52 }
 0x34b   : > { %v483_v54 = vsel %vm479_vm0, %v1389_v44, 32  ;;  %v476_v55 = vpop.xlane.xlu1 %475  ;;  %v489_v56 = vcvt.s32.f32 %v487_v53  ;;  %v502_v57 = vshra.s32 %v500_v39, 16  ;;  %v501_v3 = vand.u32 65535, %v500_v39 }
 0x34c   : > { %v515_v58 = vsel %vm376_vm1, %v483_v54, 2147483647  ;;  %vm480_vm2 = vcmp.eq.f32.partialorder %v1435_v37, %v476_v55  ;;  %v488_v5 = vcvt.s32.f32 %v486_v2 }
 0x34d   : > { %v484_v59 = vsel %vm480_vm2, %v1389_v44, 32  ;;  %490 = vmin.xlane.f32.xlu0 %v489_v56  ;;  %v504_v60 = vcvt.s32.f32 %v502_v57  ;;  %v517_v61 = vshra.s32 %v515_v58, 16  ;;  %v516_v6 = vand.u32 65535, %v515_v58 }
 0x34e   : > { %v530_v62 = vsel %vm376_vm1, %v484_v59, 2147483647  ;;  %v503_v9 = vcvt.s32.f32 %v501_v3 }
 0x34f   : > { %505 = vmin.xlane.f32.xlu1 %v504_v60  ;;  %v519_v63 = vcvt.s32.f32 %v517_v61  ;;  %v532_v0 = vshra.s32 %v530_v62, 16  ;;  %v531_v10 = vand.u32 65535, %v530_v62  ;;  %v518_v13 = vcvt.s32.f32 %v516_v6 }
 0x351   : > { %520 = vmin.xlane.f32.xlu0 %v519_v63  ;;  %v534_v1 = vcvt.s32.f32 %v532_v0  ;;  %v533_v16 = vcvt.s32.f32 %v531_v10 }
 0x353   : > { %535 = vmin.xlane.f32.xlu1 %v534_v1 }
 0x3da   : > { %v491_v4 = vpop.xlane.xlu0 %490 }
 0x3db   : > { %vm492_vm3 = vcmp.eq.f32.partialorder %v489_v56, %v491_v4  ;;  %v497_v18 = vcvt.f32.s32 %v491_v4 }
 0x3dc   : > { %v506_v7 = vpop.xlane.xlu1 %505  ;;  %v493_v8 = vsel %vm492_vm3, %v488_v5, inf }
 0x3dd   : > { %494 = vmin.xlane.f32.xlu0 %v493_v8  ;;  %vm507_vm4 = vcmp.eq.f32.partialorder %v504_v60, %v506_v7  ;;  %v512_v19 = vcvt.f32.s32 %v506_v7  ;;  %v498_v21 = vshll.u32 %v497_v18, 16 }
 0x3de   : > { %v521_v11 = vpop.xlane.xlu0 %520  ;;  %v508_v12 = vsel %vm507_vm4, %v503_v9, inf  ;;  %vm1073_vm4 = vcmask 7168  }
 0x3df   : > { %509 = vmin.xlane.f32.xlu1 %v508_v12  ;;  %vm522_vm5 = vcmp.eq.f32.partialorder %v519_v63, %v521_v11  ;;  %v527_v22 = vcvt.f32.s32 %v521_v11  ;;  %v513_v25 = vshll.u32 %v512_v19, 16 }
 0x3e0   : > { %v536_v14 = vpop.xlane.xlu1 %535  ;;  %v523_v15 = vsel %vm522_vm5, %v518_v13, inf  ;;  %vm1078_vm5 = vcmask 15360  }
 0x3e1   : > { %524 = vmin.xlane.f32.xlu0 %v523_v15  ;;  %vm537_vm6 = vcmp.eq.f32.partialorder %v534_v1, %v536_v14  ;;  %v542_v27 = vcvt.f32.s32 %v536_v14  ;;  %v528_v32 = vshll.u32 %v527_v22, 16 }
 0x3e2   : > { %v538_v17 = vsel %vm537_vm6, %v533_v16, inf }
 0x3e3   : > { %539 = vmin.xlane.f32.xlu1 %v538_v17  ;;  %v543_v46 = vshll.u32 %v542_v27, 16 }
 0x46a   : > { %v495_v20 = vpop.xlane.xlu0 %494 }
 0x46b   : > { %v496_v23 = vcvt.f32.s32 %v495_v20 }
 0x46c   : > { %v510_v24 = vpop.xlane.xlu1 %509 }
 0x46d   : > { %v1451_v28 = vadd.s32 %v498_v21, %v496_v23  ;;  %v511_v29 = vcvt.f32.s32 %v510_v24 }
 0x46e   : > { %v525_v31 = vpop.xlane.xlu0 %524 }
 0x46f   : > { %v1453_v34 = vadd.s32 %v513_v25, %v511_v29  ;;  %v526_v40 = vcvt.f32.s32 %v525_v31  ;;  %vm545_vm7 = vcmp.eq.s32.totalorder %v1389_v44, %v1451_v28 }
 0x470   : > { %v540_v41 = vpop.xlane.xlu1 %539  ;;  %v1458_v45 = vsel %vm545_vm7, -inf, %v1410_v35 }
 0x471   : > { %v1460_v47 = vadd.s32 %v528_v32, %v526_v40  ;;  %v541_v48 = vcvt.f32.s32 %v540_v41  ;;  %v553_v36 = vsel %vm376_vm1, %v1458_v45, -inf  ;;  %vm546_vm8 = vcmp.eq.s32.totalorder %v1389_v44, %v1453_v34 }
 0x472   : > { %554 = vmax.xlane.f32.xlu0 %v553_v36  ;;  %v1469_v50 = vsel %vm546_vm8, -inf, %v1419_v42  ;;  %v1074_v41 = vsel %vm1073_vm4, %v1403_v26, %v1451_v28 }
 0x473   : > { %v1466_v49 = vadd.s32 %v543_v46, %v541_v48  ;;  %vm547_vm9 = vcmp.eq.s32.totalorder %v1389_v44, %v1460_v47  ;;  %v556_v35 = vsel %vm376_vm1, %v1469_v50, -inf  ;;  %v1076_v26 = vsel %vm1073_vm4, %v1412_v38, %v1460_v47 }
 0x474   : > { %v1476_v51 = vsel %vm547_vm9, -inf, %v1428_v33  ;;  %557 = vmax.xlane.f32.xlu1 %v556_v35 }
 0x475   : > { %v559_v52 = vsel %vm376_vm1, %v1476_v51, -inf  ;;  %vm548_vm10 = vcmp.eq.s32.totalorder %v1389_v44, %v1466_v49 }
 0x476   : > { %560 = vmax.xlane.f32.xlu0 %v559_v52  ;;  %v1483_v42 = vsel %vm548_vm10, -inf, %v1435_v37 }
 0x477   : > { %v562_v53 = vsel %vm376_vm1, %v1483_v42, -inf }
 0x478   : > { %563 = vmax.xlane.f32.xlu1 %v562_v53 }
 0x4ff   : > { %v555_v39 = vpop.xlane.xlu0 %554 }
 0x500   : > { %vm565_vm11 = vcmp.eq.f32.partialorder %v1458_v45, %v555_v39 }
 0x501   : > { %v569_v33 = vsel %vm565_vm11, %v1389_v44, 32  ;;  %v558_v55 = vpop.xlane.xlu1 %557 }
 0x502   : > { %v573_v54 = vsel %vm376_vm1, %v569_v33, 2147483647  ;;  %vm566_vm12 = vcmp.eq.f32.partialorder %v1469_v50, %v558_v55  ;;  %v1075_v55 = vsel %vm1073_vm4, %v1405_v30, %v1453_v34 }
 0x503   : > { %v561_v56 = vpop.xlane.xlu0 %560  ;;  %v575_v57 = vshra.s32 %v573_v54, 16  ;;  %v570_v58 = vsel %vm566_vm12, %v1389_v44, 32  ;;  %v574_v7 = vand.u32 65535, %v573_v54 }
 0x504   : > { %vm567_vm13 = vcmp.eq.f32.partialorder %v1476_v51, %v561_v56  ;;  %v588_v37 = vsel %vm376_vm1, %v570_v58, 2147483647 }
 0x505   : > { %v571_v59 = vsel %vm567_vm13, %v1389_v44, 32  ;;  %v577_v60 = vcvt.s32.f32 %v575_v57  ;;  %v564_v62 = vpop.xlane.xlu1 %563  ;;  %v590_v63 = vshra.s32 %v588_v37, 16  ;;  %v589_v8 = vand.u32 65535, %v588_v37 }
 0x506   : > { %v603_v61 = vsel %vm376_vm1, %v571_v59, 2147483647  ;;  %vm568_vm14 = vcmp.eq.f32.partialorder %v1483_v42, %v564_v62  ;;  %v576_v10 = vcvt.s32.f32 %v574_v7 }
 0x507   : > { %578 = vmin.xlane.f32.xlu0 %v577_v60  ;;  %v605_v0 = vshra.s32 %v603_v61, 16  ;;  %v572_v1 = vsel %vm568_vm14, %v1389_v44, 32  ;;  %v592_v2 = vcvt.s32.f32 %v590_v63  ;;  %v604_v11 = vand.u32 65535, %v603_v61 }
 0x508   : > { %v618_v3 = vsel %vm376_vm1, %v572_v1, 2147483647  ;;  %v591_v14 = vcvt.s32.f32 %v589_v8 }
 0x509   : > { %v607_v4 = vcvt.s32.f32 %v605_v0  ;;  %593 = vmin.xlane.f32.xlu1 %v592_v2  ;;  %v620_v5 = vshra.s32 %v618_v3, 16  ;;  %v619_v15 = vand.u32 65535, %v618_v3  ;;  %v606_v17 = vcvt.s32.f32 %v604_v11 }
 0x50b   : > { %608 = vmin.xlane.f32.xlu0 %v607_v4  ;;  %v622_v6 = vcvt.s32.f32 %v620_v5  ;;  %v621_v21 = vcvt.s32.f32 %v619_v15 }
 0x50d   : > { %623 = vmin.xlane.f32.xlu1 %v622_v6 }
 0x594   : > { %v579_v9 = vpop.xlane.xlu0 %578 }
 0x595   : > { %vm580_vm15 = vcmp.eq.f32.partialorder %v577_v60, %v579_v9  ;;  %v585_v23 = vcvt.f32.s32 %v579_v9  ;;  %v1077_v60 = vsel %vm1073_vm4, %v1421_v43, %v1466_v49 }
 0x596   : > { %v581_v12 = vsel %vm580_vm15, %v576_v10, inf  ;;  %v594_v13 = vpop.xlane.xlu1 %593 }
 0x597   : > { %582 = vmin.xlane.f32.xlu0 %v581_v12  ;;  %vm595_vm0 = vcmp.eq.f32.partialorder %v592_v2, %v594_v13  ;;  %v600_v24 = vcvt.f32.s32 %v594_v13  ;;  %v586_v27 = vshll.u32 %v585_v23, 16 }
 0x598   : > { %v609_v16 = vpop.xlane.xlu0 %608  ;;  %v596_v18 = vsel %vm595_vm0, %v591_v14, inf }
 0x599   : > { %vm610_vm2 = vcmp.eq.f32.partialorder %v607_v4, %v609_v16  ;;  %597 = vmin.xlane.f32.xlu1 %v596_v18  ;;  %v615_v29 = vcvt.f32.s32 %v609_v16  ;;  %v601_v46 = vshll.u32 %v600_v24, 16 }
 0x59a   : > { %v611_v19 = vsel %vm610_vm2, %v606_v17, inf  ;;  %v624_v20 = vpop.xlane.xlu1 %623 }
 0x59b   : > { %612 = vmin.xlane.f32.xlu0 %v611_v19  ;;  %vm625_vm3 = vcmp.eq.f32.partialorder %v622_v6, %v624_v20  ;;  %v630_v48 = vcvt.f32.s32 %v624_v20  ;;  %v616_v52 = vshll.u32 %v615_v29, 16 }
 0x59c   : > { %v626_v22 = vsel %vm625_vm3, %v621_v21, inf  ;;  %vm1083_vm3 = vcmask 23552  }
 0x59d   : > { %627 = vmin.xlane.f32.xlu1 %v626_v22  ;;  %v631_v58 = vshll.u32 %v630_v48, 16 }
 0x624   : > { %v583_v25 = vpop.xlane.xlu0 %582 }
 0x625   : > { %v584_v31 = vcvt.f32.s32 %v583_v25 }
 0x626   : > { %v598_v40 = vpop.xlane.xlu1 %597 }
 0x627   : > { %v587_v32 = vadd.s32 %v586_v27, %v584_v31  ;;  %v599_v36 = vcvt.f32.s32 %v598_v40 }
 0x628   : > { %v613_v35 = vpop.xlane.xlu0 %612 }
 0x629   : > { %v1503_v53 = vsel %vm1078_vm5, %v1074_v41, %v587_v32  ;;  %v614_v39 = vcvt.f32.s32 %v613_v35  ;;  %vm633_vm6 = vcmp.eq.s32.totalorder %v1389_v44, %v587_v32  ;;  %v602_v33 = vadd.s32 %v601_v46, %v599_v36 }
 0x62a   : > { %v1507_v54 = vsel %vm633_vm6, -inf, %v1458_v45  ;;  %v628_v56 = vpop.xlane.xlu1 %627 }
 0x62b   : > { %v617_v28 = vadd.s32 %v616_v52, %v614_v39  ;;  %v641_v57 = vsel %vm376_vm1, %v1507_v54, -inf  ;;  %v1518_v37 = vsel %vm1078_vm5, %v1075_v55, %v602_v33  ;;  %v629_v59 = vcvt.f32.s32 %v628_v56 }
 0x62c   : > { %642 = vmax.xlane.f32.xlu0 %v641_v57  ;;  %vm634_vm7 = vcmp.eq.s32.totalorder %v1389_v44, %v602_v33 }
 0x62d   : > { %v1522_v45 = vsel %vm1078_vm5, %v1076_v26, %v617_v28  ;;  %v1525_v30 = vsel %vm634_vm7, -inf, %v1469_v50  ;;  %vm635_vm8 = vcmp.eq.s32.totalorder %v1389_v44, %v617_v28  ;;  %v632_v38 = vadd.s32 %v631_v58, %v629_v59 }
 0x62e   : > { %v644_v34 = vsel %vm376_vm1, %v1525_v30, -inf  ;;  %v1531_v47 = vsel %vm635_vm8, -inf, %v1476_v51 }
 0x62f   : > { %645 = vmax.xlane.f32.xlu1 %v644_v34  ;;  %v647_v61 = vsel %vm376_vm1, %v1531_v47, -inf  ;;  %v1539_v50 = vsel %vm1078_vm5, %v1077_v60, %v632_v38  ;;  %vm636_vm9 = vcmp.eq.s32.totalorder %v1389_v44, %v632_v38 }
 0x630   : > { %648 = vmax.xlane.f32.xlu0 %v647_v61  ;;  %v1543_v62 = vsel %vm636_vm9, -inf, %v1483_v42 }
 0x631   : > { %v650_v51 = vsel %vm376_vm1, %v1543_v62, -inf }
 0x633   : > { %651 = vmax.xlane.f32.xlu1 %v650_v51 }
 0x6b9   : > { %v643_v63 = vpop.xlane.xlu0 %642 }
 0x6ba   : > { %vm653_vm10 = vcmp.eq.f32.partialorder %v1507_v54, %v643_v63 }
 0x6bb   : > { %v657_v43 = vsel %vm653_vm10, %v1389_v44, 32 }
 0x6bc   : > { %v661_v49 = vsel %vm376_vm1, %v657_v43, 2147483647  ;;  %v646_v0 = vpop.xlane.xlu1 %645 }
 0x6bd   : > { %vm654_vm11 = vcmp.eq.f32.partialorder %v1525_v30, %v646_v0  ;;  %v649_v1 = vpop.xlane.xlu0 %648  ;;  %v663_v2 = vshra.s32 %v661_v49, 16  ;;  %v662_v16 = vand.u32 65535, %v661_v49 }
 0x6be   : > { %v658_v3 = vsel %vm654_vm11, %v1389_v44, 32  ;;  %vm655_vm12 = vcmp.eq.f32.partialorder %v1531_v47, %v649_v1 }
 0x6bf   : > { %v676_v42 = vsel %vm376_vm1, %v658_v3, 2147483647  ;;  %v659_v4 = vsel %vm655_vm12, %v1389_v44, 32  ;;  %v665_v5 = vcvt.s32.f32 %v663_v2  ;;  %v664_v19 = vcvt.s32.f32 %v662_v16 }
 0x6c0   : > { %v691_v6 = vsel %vm376_vm1, %v659_v4, 2147483647  ;;  %v652_v7 = vpop.xlane.xlu1 %651  ;;  %v678_v8 = vshra.s32 %v676_v42, 16  ;;  %v677_v17 = vand.u32 65535, %v676_v42 }
 0x6c1   : > { %vm656_vm13 = vcmp.eq.f32.partialorder %v1543_v62, %v652_v7  ;;  %666 = vmin.xlane.f32.xlu0 %v665_v5  ;;  %v693_v9 = vshra.s32 %v691_v6, 16  ;;  %v692_v20 = vand.u32 65535, %v691_v6 }
 0x6c2   : > { %v660_v10 = vsel %vm656_vm13, %v1389_v44, 32  ;;  %v680_v11 = vcvt.s32.f32 %v678_v8  ;;  %v679_v23 = vcvt.s32.f32 %v677_v17 }
 0x6c3   : > { %v706_v12 = vsel %vm376_vm1, %v660_v10, 2147483647  ;;  %v695_v13 = vcvt.s32.f32 %v693_v9  ;;  %v694_v27 = vcvt.s32.f32 %v692_v20 }
 0x6c4   : > { %681 = vmin.xlane.f32.xlu1 %v680_v11  ;;  %v708_v14 = vshra.s32 %v706_v12, 16  ;;  %v707_v24 = vand.u32 65535, %v706_v12 }
 0x6c5   : > { %696 = vmin.xlane.f32.xlu0 %v695_v13 }
 0x6c6   : > { %v710_v15 = vcvt.s32.f32 %v708_v14  ;;  %v709_v40 = vcvt.s32.f32 %v707_v24 }
 0x6c8   : > { %711 = vmin.xlane.f32.xlu1 %v710_v15 }
 0x74e   : > { %v667_v18 = vpop.xlane.xlu0 %666 }
 0x74f   : > { %vm668_vm14 = vcmp.eq.f32.partialorder %v665_v5, %v667_v18  ;;  %v673_v46 = vcvt.f32.s32 %v667_v18 }
 0x750   : > { %v669_v21 = vsel %vm668_vm14, %v664_v19, inf }
 0x751   : > { %v682_v22 = vpop.xlane.xlu1 %681  ;;  %670 = vmin.xlane.f32.xlu0 %v669_v21  ;;  %v674_v35 = vshll.u32 %v673_v46, 16 }
 0x752   : > { %v697_v25 = vpop.xlane.xlu0 %696  ;;  %vm683_vm15 = vcmp.eq.f32.partialorder %v680_v11, %v682_v22  ;;  %v688_v48 = vcvt.f32.s32 %v682_v22 }
 0x753   : > { %v684_v29 = vsel %vm683_vm15, %v679_v23, inf  ;;  %vm698_vm0 = vcmp.eq.f32.partialorder %v695_v13, %v697_v25  ;;  %v703_v52 = vcvt.f32.s32 %v697_v25 }
 0x754   : > { %685 = vmin.xlane.f32.xlu1 %v684_v29  ;;  %v699_v31 = vsel %vm698_vm0, %v694_v27, inf  ;;  %v689_v26 = vshll.u32 %v688_v48, 16  ;;  %vm1088_vm0 = vcmask 31744  }
 0x755   : > { %v712_v32 = vpop.xlane.xlu1 %711  ;;  %700 = vmin.xlane.f32.xlu0 %v699_v31  ;;  %v704_v58 = vshll.u32 %v703_v52, 16 }
 0x756   : > { %vm713_vm2 = vcmp.eq.f32.partialorder %v710_v15, %v712_v32  ;;  %v718_v28 = vcvt.f32.s32 %v712_v32 }
 0x757   : > { %v714_v41 = vsel %vm713_vm2, %v709_v40, inf }
 0x758   : > { %715 = vmin.xlane.f32.xlu1 %v714_v41  ;;  %v719_v43 = vshll.u32 %v718_v28, 16 }
 0x7de   : > { %v671_v36 = vpop.xlane.xlu0 %670 }
 0x7df   : > { %v672_v39 = vcvt.f32.s32 %v671_v36 }
 0x7e1   : > { %v675_v33 = vadd.s32 %v674_v35, %v672_v39  ;;  %v686_v55 = vpop.xlane.xlu1 %685 }
 0x7e2   : > { %v687_v56 = vcvt.f32.s32 %v686_v55  ;;  %v701_v57 = vpop.xlane.xlu0 %700 }
 0x7e3   : > { %v1561_v59 = vsel %vm1083_vm3, %v1503_v53, %v675_v33  ;;  %v702_v38 = vcvt.f32.s32 %v701_v57  ;;  %vm721_vm4 = vcmp.eq.s32.totalorder %v1389_v44, %v675_v33 }
 0x7e4   : > { %v690_v34 = vadd.s32 %v689_v26, %v687_v56  ;;  %v1565_v60 = vsel %vm721_vm4, -inf, %v1507_v54 }
 0x7e5   : > { %v705_v61 = vadd.s32 %v704_v58, %v702_v38  ;;  %v716_v51 = vpop.xlane.xlu1 %715  ;;  %v729_v63 = vsel %vm376_vm1, %v1565_v60, -inf }
 0x7e6   : > { %v1571_v49 = vsel %vm1083_vm3, %v1518_v37, %v690_v34  ;;  %v717_v0 = vcvt.f32.s32 %v716_v51  ;;  %730 = vmax.xlane.f32.xlu0 %v729_v63  ;;  %vm722_vm5 = vcmp.eq.s32.totalorder %v1389_v44, %v690_v34 }
 0x7e7   : > { %v1576_v53 = vsel %vm1083_vm3, %v1522_v45, %v705_v61  ;;  %v1579_v54 = vsel %vm722_vm5, -inf, %v1525_v30  ;;  %vm723_vm6 = vcmp.eq.s32.totalorder %v1389_v44, %v705_v61 }
 0x7e8   : > { %v720_v1 = vadd.s32 %v719_v43, %v717_v0  ;;  %v732_v2 = vsel %vm376_vm1, %v1579_v54, -inf  ;;  %v1585_v37 = vsel %vm723_vm6, -inf, %v1531_v47 }
 0x7e9   : > { %733 = vmax.xlane.f32.xlu1 %v732_v2  ;;  %v735_v3 = vsel %vm376_vm1, %v1585_v37, -inf }
 0x7ea   : > { %v1591_v45 = vsel %vm1083_vm3, %v1539_v50, %v720_v1  ;;  %736 = vmax.xlane.f32.xlu0 %v735_v3  ;;  %vm724_vm7 = vcmp.eq.s32.totalorder %v1389_v44, %v720_v1 }
 0x7eb   : > { %v1595_v30 = vsel %vm724_vm7, -inf, %v1543_v62 }
 0x7ec   : > { %v738_v42 = vsel %vm376_vm1, %v1595_v30, -inf }
 0x7ed   : > { %739 = vmax.xlane.f32.xlu1 %v738_v42 }
 0x873   : > { %v731_v47 = vpop.xlane.xlu0 %730 }
 0x874   : > { %vm741_vm8 = vcmp.eq.f32.partialorder %v1565_v60, %v731_v47 }
 0x875   : > { %v745_v4 = vsel %vm741_vm8, %v1389_v44, 32 }
 0x876   : > { %v749_v5 = vsel %vm376_vm1, %v745_v4, 2147483647  ;;  %v734_v6 = vpop.xlane.xlu1 %733 }
 0x877   : > { %vm742_vm9 = vcmp.eq.f32.partialorder %v1579_v54, %v734_v6  ;;  %v737_v50 = vpop.xlane.xlu0 %736  ;;  %v751_v7 = vshra.s32 %v749_v5, 16  ;;  %v750_v21 = vand.u32 65535, %v749_v5 }
 0x878   : > { %v746_v8 = vsel %vm742_vm9, %v1389_v44, 32  ;;  %vm743_vm10 = vcmp.eq.f32.partialorder %v1585_v37, %v737_v50 }
 0x879   : > { %v764_v62 = vsel %vm376_vm1, %v746_v8, 2147483647  ;;  %v747_v9 = vsel %vm743_vm10, %v1389_v44, 32  ;;  %v753_v10 = vcvt.s32.f32 %v751_v7  ;;  %v752_v24 = vcvt.s32.f32 %v750_v21 }
 0x87a   : > { %v779_v11 = vsel %vm376_vm1, %v747_v9, 2147483647  ;;  %v740_v12 = vpop.xlane.xlu1 %739  ;;  %v766_v13 = vshra.s32 %v764_v62, 16  ;;  %v765_v22 = vand.u32 65535, %v764_v62 }
 0x87b   : > { %vm744_vm11 = vcmp.eq.f32.partialorder %v1595_v30, %v740_v12  ;;  %754 = vmin.xlane.f32.xlu0 %v753_v10  ;;  %v781_v14 = vshra.s32 %v779_v11, 16  ;;  %v780_v25 = vand.u32 65535, %v779_v11 }
 0x87c   : > { %v748_v15 = vsel %vm744_vm11, %v1389_v44, 32  ;;  %v768_v16 = vcvt.s32.f32 %v766_v13  ;;  %v767_v31 = vcvt.s32.f32 %v765_v22 }
 0x87d   : > { %v794_v17 = vsel %vm376_vm1, %v748_v15, 2147483647  ;;  %v783_v18 = vcvt.s32.f32 %v781_v14  ;;  %v782_v41 = vcvt.s32.f32 %v780_v25 }
 0x87e   : > { %769 = vmin.xlane.f32.xlu1 %v768_v16  ;;  %v796_v19 = vshra.s32 %v794_v17, 16  ;;  %v795_v32 = vand.u32 65535, %v794_v17 }
 0x87f   : > { %784 = vmin.xlane.f32.xlu0 %v783_v18 }
 0x880   : > { %v798_v20 = vcvt.s32.f32 %v796_v19  ;;  %v797_v35 = vcvt.s32.f32 %v795_v32 }
 0x882   : > { %799 = vmin.xlane.f32.xlu1 %v798_v20 }
 0x908   : > { %v755_v23 = vpop.xlane.xlu0 %754 }
 0x909   : > { %vm756_vm12 = vcmp.eq.f32.partialorder %v753_v10, %v755_v23  ;;  %v761_v39 = vcvt.f32.s32 %v755_v23 }
 0x90a   : > { %v757_v27 = vsel %vm756_vm12, %v752_v24, inf }
 0x90b   : > { %v770_v29 = vpop.xlane.xlu1 %769  ;;  %758 = vmin.xlane.f32.xlu0 %v757_v27  ;;  %v762_v26 = vshll.u32 %v761_v39, 16 }
 0x90c   : > { %v785_v40 = vpop.xlane.xlu0 %784  ;;  %vm771_vm13 = vcmp.eq.f32.partialorder %v768_v16, %v770_v29  ;;  %v776_v33 = vcvt.f32.s32 %v770_v29 }
 0x90d   : > { %v772_v46 = vsel %vm771_vm13, %v767_v31, inf  ;;  %vm786_vm14 = vcmp.eq.f32.partialorder %v783_v18, %v785_v40  ;;  %v791_v28 = vcvt.f32.s32 %v785_v40 }
 0x90e   : > { %773 = vmin.xlane.f32.xlu1 %v772_v46  ;;  %v787_v48 = vsel %vm786_vm14, %v782_v41, inf  ;;  %v777_v38 = vshll.u32 %v776_v33, 16  ;;  %vm1093_vm14 = vcmask 39936  }
 0x90f   : > { %v800_v36 = vpop.xlane.xlu1 %799  ;;  %788 = vmin.xlane.f32.xlu0 %v787_v48  ;;  %v792_v63 = vshll.u32 %v791_v28, 16 }
 0x910   : > { %vm801_vm15 = vcmp.eq.f32.partialorder %v798_v20, %v800_v36  ;;  %v806_v34 = vcvt.f32.s32 %v800_v36 }
 0x911   : > { %v802_v52 = vsel %vm801_vm15, %v797_v35, inf }
 0x912   : > { %803 = vmin.xlane.f32.xlu1 %v802_v52  ;;  %v807_v4 = vshll.u32 %v806_v34, 16 }
 0x998   : > { %v759_v55 = vpop.xlane.xlu0 %758 }
 0x999   : > { %v760_v56 = vcvt.f32.s32 %v759_v55 }
 0x99b   : > { %v763_v57 = vadd.s32 %v762_v26, %v760_v56  ;;  %v774_v58 = vpop.xlane.xlu1 %773 }
 0x99c   : > { %v775_v61 = vcvt.f32.s32 %v774_v58  ;;  %v789_v51 = vpop.xlane.xlu0 %788 }
 0x99d   : > { %v1613_v43 = vsel %vm1088_vm0, %v1561_v59, %v763_v57  ;;  %v790_v0 = vcvt.f32.s32 %v789_v51  ;;  %vm809_vm2 = vcmp.eq.s32.totalorder %v1389_v44, %v763_v57 }
 0x99e   : > { %v778_v1 = vadd.s32 %v777_v38, %v775_v61  ;;  %v1617_v2 = vsel %vm809_vm2, -inf, %v1565_v60 }
 0x99f   : > { %v793_v3 = vadd.s32 %v792_v63, %v790_v0  ;;  %v804_v42 = vpop.xlane.xlu1 %803  ;;  %v817_v47 = vsel %vm376_vm1, %v1617_v2, -inf }
 0x9a0   : > { %v1623_v5 = vsel %vm1088_vm0, %v1571_v49, %v778_v1  ;;  %v805_v6 = vcvt.f32.s32 %v804_v42  ;;  %818 = vmax.xlane.f32.xlu0 %v817_v47  ;;  %vm810_vm3 = vcmp.eq.s32.totalorder %v1389_v44, %v778_v1 }
 0x9a1   : > { %v1628_v59 = vsel %vm1088_vm0, %v1576_v53, %v793_v3  ;;  %v1631_v60 = vsel %vm810_vm3, -inf, %v1579_v54  ;;  %vm811_vm4 = vcmp.eq.s32.totalorder %v1389_v44, %v793_v3 }
 0x9a2   : > { %v808_v50 = vadd.s32 %v807_v4, %v805_v6  ;;  %v820_v7 = vsel %vm376_vm1, %v1631_v60, -inf  ;;  %v1637_v49 = vsel %vm811_vm4, -inf, %v1585_v37 }
 0x9a3   : > { %821 = vmax.xlane.f32.xlu1 %v820_v7  ;;  %v823_v8 = vsel %vm376_vm1, %v1637_v49, -inf }
 0x9a4   : > { %v1643_v53 = vsel %vm1088_vm0, %v1591_v45, %v808_v50  ;;  %824 = vmax.xlane.f32.xlu0 %v823_v8  ;;  %vm812_vm5 = vcmp.eq.s32.totalorder %v1389_v44, %v808_v50 }
 0x9a5   : > { %v1647_v54 = vsel %vm812_vm5, -inf, %v1595_v30 }
 0x9a6   : > { %v826_v62 = vsel %vm376_vm1, %v1647_v54, -inf }
 0x9a7   : > { %827 = vmax.xlane.f32.xlu1 %v826_v62 }
 0xa2d   : > { %v819_v37 = vpop.xlane.xlu0 %818 }
 0xa2e   : > { %vm829_vm6 = vcmp.eq.f32.partialorder %v1617_v2, %v819_v37 }
 0xa2f   : > { %v833_v9 = vsel %vm829_vm6, %v1389_v44, 32 }
 0xa30   : > { %v837_v10 = vsel %vm376_vm1, %v833_v9, 2147483647  ;;  %v822_v11 = vpop.xlane.xlu1 %821 }
 0xa31   : > { %vm830_vm7 = vcmp.eq.f32.partialorder %v1631_v60, %v822_v11  ;;  %v825_v45 = vpop.xlane.xlu0 %824  ;;  %v839_v12 = vshra.s32 %v837_v10, 16  ;;  %v838_v27 = vand.u32 65535, %v837_v10 }
 0xa32   : > { %v834_v13 = vsel %vm830_vm7, %v1389_v44, 32  ;;  %vm831_vm8 = vcmp.eq.f32.partialorder %v1637_v49, %v825_v45 }
 0xa33   : > { %v852_v30 = vsel %vm376_vm1, %v834_v13, 2147483647  ;;  %v835_v14 = vsel %vm831_vm8, %v1389_v44, 32  ;;  %v841_v15 = vcvt.s32.f32 %v839_v12  ;;  %v840_v32 = vcvt.s32.f32 %v838_v27 }
 0xa34   : > { %v867_v16 = vsel %vm376_vm1, %v835_v14, 2147483647  ;;  %v828_v17 = vpop.xlane.xlu1 %827  ;;  %v854_v18 = vshra.s32 %v852_v30, 16  ;;  %v853_v29 = vand.u32 65535, %v852_v30 }
 0xa35   : > { %vm832_vm9 = vcmp.eq.f32.partialorder %v1647_v54, %v828_v17  ;;  %842 = vmin.xlane.f32.xlu0 %v841_v15  ;;  %v869_v19 = vshra.s32 %v867_v16, 16  ;;  %v868_v40 = vand.u32 65535, %v867_v16 }
 0xa36   : > { %v836_v20 = vsel %vm832_vm9, %v1389_v44, 32  ;;  %v856_v21 = vcvt.s32.f32 %v854_v18  ;;  %v855_v48 = vcvt.s32.f32 %v853_v29 }
 0xa37   : > { %v882_v22 = vsel %vm376_vm1, %v836_v20, 2147483647  ;;  %v871_v23 = vcvt.s32.f32 %v869_v19  ;;  %v870_v52 = vcvt.s32.f32 %v868_v40 }
 0xa38   : > { %857 = vmin.xlane.f32.xlu1 %v856_v21  ;;  %v884_v24 = vshra.s32 %v882_v22, 16  ;;  %v883_v36 = vand.u32 65535, %v882_v22 }
 0xa39   : > { %872 = vmin.xlane.f32.xlu0 %v871_v23 }
 0xa3a   : > { %v886_v25 = vcvt.s32.f32 %v884_v24  ;;  %v885_v26 = vcvt.s32.f32 %v883_v36 }
 0xa3c   : > { %887 = vmin.xlane.f32.xlu1 %v886_v25 }
 0xac2   : > { %v843_v31 = vpop.xlane.xlu0 %842 }
 0xac3   : > { %vm844_vm10 = vcmp.eq.f32.partialorder %v841_v15, %v843_v31  ;;  %v849_v56 = vcvt.f32.s32 %v843_v31 }
 0xac4   : > { %v845_v41 = vsel %vm844_vm10, %v840_v32, inf }
 0xac5   : > { %v858_v46 = vpop.xlane.xlu1 %857  ;;  %846 = vmin.xlane.f32.xlu0 %v845_v41  ;;  %v850_v38 = vshll.u32 %v849_v56, 16 }
 0xac6   : > { %v873_v35 = vpop.xlane.xlu0 %872  ;;  %vm859_vm11 = vcmp.eq.f32.partialorder %v856_v21, %v858_v46  ;;  %v864_v57 = vcvt.f32.s32 %v858_v46 }
 0xac7   : > { %v860_v39 = vsel %vm859_vm11, %v855_v48, inf  ;;  %vm874_vm12 = vcmp.eq.f32.partialorder %v871_v23, %v873_v35  ;;  %v879_v34 = vcvt.f32.s32 %v873_v35 }
 0xac8   : > { %861 = vmin.xlane.f32.xlu1 %v860_v39  ;;  %v875_v33 = vsel %vm874_vm12, %v870_v52, inf  ;;  %v865_v0 = vshll.u32 %v864_v57, 16  ;;  %vm1098_vm12 = vcmask 48128  }
 0xac9   : > { %v888_v55 = vpop.xlane.xlu1 %887  ;;  %876 = vmin.xlane.f32.xlu0 %v875_v33  ;;  %v880_v47 = vshll.u32 %v879_v34, 16 }
 0xaca   : > { %vm889_vm13 = vcmp.eq.f32.partialorder %v886_v25, %v888_v55  ;;  %v894_v1 = vcvt.f32.s32 %v888_v55 }
 0xacb   : > { %v890_v28 = vsel %vm889_vm13, %v885_v26, inf }
 0xacc   : > { %891 = vmin.xlane.f32.xlu1 %v890_v28  ;;  %v895_v9 = vshll.u32 %v894_v1, 16 }
 0xb52   : > { %v847_v58 = vpop.xlane.xlu0 %846 }
 0xb53   : > { %v848_v61 = vcvt.f32.s32 %v847_v58 }
 0xb55   : > { %v851_v51 = vadd.s32 %v850_v38, %v848_v61  ;;  %v862_v63 = vpop.xlane.xlu1 %861 }
 0xb56   : > { %v863_v3 = vcvt.f32.s32 %v862_v63  ;;  %v877_v42 = vpop.xlane.xlu0 %876 }
 0xb57   : > { %v1665_v4 = vsel %vm1093_vm14, %v1613_v43, %v851_v51  ;;  %v878_v6 = vcvt.f32.s32 %v877_v42  ;;  %vm897_vm15 = vcmp.eq.s32.totalorder %v1389_v44, %v851_v51 }
 0xb58   : > { %v866_v50 = vadd.s32 %v865_v0, %v863_v3  ;;  %v1669_v7 = vsel %vm897_vm15, -inf, %v1617_v2 }
 0xb59   : > { %v881_v8 = vadd.s32 %v880_v47, %v878_v6  ;;  %v892_v62 = vpop.xlane.xlu1 %891  ;;  %v905_v37 = vsel %vm376_vm1, %v1669_v7, -inf }
 0xb5a   : > { %v1675_v10 = vsel %vm1093_vm14, %v1623_v5, %v866_v50  ;;  %v893_v11 = vcvt.f32.s32 %v892_v62  ;;  %906 = vmax.xlane.f32.xlu0 %v905_v37  ;;  %vm898_vm0 = vcmp.eq.s32.totalorder %v1389_v44, %v866_v50 }
 0xb5b   : > { %v1680_v43 = vsel %vm1093_vm14, %v1628_v59, %v881_v8  ;;  %v1683_v2 = vsel %vm898_vm0, -inf, %v1631_v60  ;;  %vm899_vm2 = vcmp.eq.s32.totalorder %v1389_v44, %v881_v8 }
 0xb5c   : > { %v896_v45 = vadd.s32 %v895_v9, %v893_v11  ;;  %v908_v12 = vsel %vm376_vm1, %v1683_v2, -inf  ;;  %v1689_v5 = vsel %vm899_vm2, -inf, %v1637_v49 }
 0xb5d   : > { %909 = vmax.xlane.f32.xlu1 %v908_v12  ;;  %v911_v13 = vsel %vm376_vm1, %v1689_v5, -inf }
 0xb5e   : > { %v1695_v59 = vsel %vm1093_vm14, %v1643_v53, %v896_v45  ;;  %912 = vmax.xlane.f32.xlu0 %v911_v13  ;;  %vm900_vm3 = vcmp.eq.s32.totalorder %v1389_v44, %v896_v45 }
 0xb5f   : > { %v1699_v60 = vsel %vm900_vm3, -inf, %v1647_v54 }
 0xb60   : > { %v914_v30 = vsel %vm376_vm1, %v1699_v60, -inf }
 0xb61   : > { %915 = vmax.xlane.f32.xlu1 %v914_v30 }
 0xbe7   : > { %v907_v49 = vpop.xlane.xlu0 %906 }
 0xbe8   : > { %vm917_vm4 = vcmp.eq.f32.partialorder %v1669_v7, %v907_v49 }
 0xbe9   : > { %v921_v14 = vsel %vm917_vm4, %v1389_v44, 32 }
 0xbea   : > { %v925_v15 = vsel %vm376_vm1, %v921_v14, 2147483647  ;;  %v910_v16 = vpop.xlane.xlu1 %909 }
 0xbeb   : > { %vm918_vm5 = vcmp.eq.f32.partialorder %v1683_v2, %v910_v16  ;;  %v913_v53 = vpop.xlane.xlu0 %912  ;;  %v927_v17 = vshra.s32 %v925_v15, 16  ;;  %v926_v41 = vand.u32 65535, %v925_v15 }
 0xbec   : > { %v922_v18 = vsel %vm918_vm5, %v1389_v44, 32  ;;  %vm919_vm6 = vcmp.eq.f32.partialorder %v1689_v5, %v913_v53 }
 0xbed   : > { %v940_v54 = vsel %vm376_vm1, %v922_v18, 2147483647  ;;  %v923_v19 = vsel %vm919_vm6, %v1389_v44, 32  ;;  %v929_v20 = vcvt.s32.f32 %v927_v17  ;;  %v928_v36 = vcvt.s32.f32 %v926_v41 }
 0xbee   : > { %v955_v21 = vsel %vm376_vm1, %v923_v19, 2147483647  ;;  %v916_v22 = vpop.xlane.xlu1 %915  ;;  %v942_v23 = vshra.s32 %v940_v54, 16  ;;  %v941_v46 = vand.u32 65535, %v940_v54 }
 0xbef   : > { %vm920_vm7 = vcmp.eq.f32.partialorder %v1699_v60, %v916_v22  ;;  %930 = vmin.xlane.f32.xlu0 %v929_v20  ;;  %v957_v24 = vshra.s32 %v955_v21, 16  ;;  %v956_v35 = vand.u32 65535, %v955_v21 }
 0xbf0   : > { %v924_v25 = vsel %vm920_vm7, %v1389_v44, 32  ;;  %v944_v27 = vcvt.s32.f32 %v942_v23  ;;  %v943_v33 = vcvt.s32.f32 %v941_v46 }
 0xbf1   : > { %v970_v29 = vsel %vm376_vm1, %v924_v25, 2147483647  ;;  %v959_v31 = vcvt.s32.f32 %v957_v24  ;;  %v958_v28 = vcvt.s32.f32 %v956_v35 }
 0xbf2   : > { %945 = vmin.xlane.f32.xlu1 %v944_v27  ;;  %v972_v32 = vshra.s32 %v970_v29, 16  ;;  %v971_v55 = vand.u32 65535, %v970_v29 }
 0xbf3   : > { %960 = vmin.xlane.f32.xlu0 %v959_v31 }
 0xbf4   : > { %v974_v40 = vcvt.s32.f32 %v972_v32  ;;  %v973_v38 = vcvt.s32.f32 %v971_v55 }
 0xbf6   : > { %975 = vmin.xlane.f32.xlu1 %v974_v40 }
 0xc7c   : > { %v931_v48 = vpop.xlane.xlu0 %930 }
 0xc7d   : > { %vm932_vm8 = vcmp.eq.f32.partialorder %v929_v20, %v931_v48  ;;  %v937_v61 = vcvt.f32.s32 %v931_v48 }
 0xc7e   : > { %v933_v52 = vsel %vm932_vm8, %v928_v36, inf }
 0xc7f   : > { %v946_v39 = vpop.xlane.xlu1 %945  ;;  %934 = vmin.xlane.f32.xlu0 %v933_v52  ;;  %v938_v0 = vshll.u32 %v937_v61, 16 }
 0xc80   : > { %v961_v26 = vpop.xlane.xlu0 %960  ;;  %vm947_vm9 = vcmp.eq.f32.partialorder %v944_v27, %v946_v39  ;;  %v952_v51 = vcvt.f32.s32 %v946_v39 }
 0xc81   : > { %v948_v56 = vsel %vm947_vm9, %v943_v33, inf  ;;  %vm962_vm10 = vcmp.eq.f32.partialorder %v959_v31, %v961_v26  ;;  %v967_v1 = vcvt.f32.s32 %v961_v26  ;;  %vm1103_vm9 = vcmask 56320  }
 0xc82   : > { %949 = vmin.xlane.f32.xlu1 %v948_v56  ;;  %v963_v57 = vsel %vm962_vm10, %v958_v28, inf  ;;  %v953_v6 = vshll.u32 %v952_v51, 16  ;;  %vm1108_vm10 = vcmask 64512  }
 0xc83   : > { %v976_v58 = vpop.xlane.xlu1 %975  ;;  %964 = vmin.xlane.f32.xlu0 %v963_v57  ;;  %v968_v37 = vshll.u32 %v967_v1, 16 }
 0xc84   : > { %vm977_vm11 = vcmp.eq.f32.partialorder %v974_v40, %v976_v58  ;;  %v982_v50 = vcvt.f32.s32 %v976_v58 }
 0xc85   : > { %v978_v34 = vsel %vm977_vm11, %v973_v38, inf }
 0xc86   : > { %979 = vmin.xlane.f32.xlu1 %v978_v34  ;;  %v983_v14 = vshll.u32 %v982_v50, 16 }
 0xd0c   : > { %v935_v63 = vpop.xlane.xlu0 %934 }
 0xd0d   : > { %v936_v3 = vcvt.f32.s32 %v935_v63 }
 0xd0f   : > { %v939_v42 = vadd.s32 %v938_v0, %v936_v3  ;;  %v950_v47 = vpop.xlane.xlu1 %949 }
 0xd10   : > { %v951_v8 = vcvt.f32.s32 %v950_v47  ;;  %v965_v62 = vpop.xlane.xlu0 %964 }
 0xd11   : > { %v1717_v9 = vsel %vm1098_vm12, %v1665_v4, %v939_v42  ;;  %v966_v11 = vcvt.f32.s32 %v965_v62  ;;  %vm985_vm13 = vcmp.eq.s32.totalorder %v1389_v44, %v939_v42 }
 0xd12   : > { %v954_v45 = vadd.s32 %v953_v6, %v951_v8  ;;  %v989_v12 = vsel %vm985_vm13, -inf, %v1669_v7 }
 0xd13   : > { %v969_v13 = vadd.s32 %v968_v37, %v966_v11  ;;  %v980_v30 = vpop.xlane.xlu1 %979  ;;  %v993_v49 = vsel %vm376_vm1, %v989_v12, -inf }
 0xd14   : > { %v1724_v15 = vsel %vm1098_vm12, %v1675_v10, %v954_v45  ;;  %v981_v16 = vcvt.f32.s32 %v980_v30  ;;  %994 = vmax.xlane.f32.xlu0 %v993_v49  ;;  %vm986_vm14 = vcmp.eq.s32.totalorder %v1389_v44, %v954_v45 }
 0xd15   : > { %v1729_v4 = vsel %vm1098_vm12, %v1680_v43, %v969_v13  ;;  %v990_v53 = vsel %vm986_vm14, -inf, %v1683_v2  ;;  %vm987_vm15 = vcmp.eq.s32.totalorder %v1389_v44, %v969_v13 }
 0xd16   : > { %v984_v7 = vadd.s32 %v983_v14, %v981_v16  ;;  %v996_v17 = vsel %vm376_vm1, %v990_v53, -inf  ;;  %v991_v18 = vsel %vm987_vm15, -inf, %v1689_v5 }
 0xd17   : > { %997 = vmax.xlane.f32.xlu1 %v996_v17  ;;  %v999_v10 = vsel %vm376_vm1, %v991_v18, -inf }
 0xd18   : > { %v1738_v54 = vsel %vm1098_vm12, %v1695_v59, %v984_v7  ;;  %1000 = vmax.xlane.f32.xlu0 %v999_v10  ;;  %vm988_vm0 = vcmp.eq.s32.totalorder %v1389_v44, %v984_v7 }
 0xd19   : > { %v992_v43 = vsel %vm988_vm0, -inf, %v1699_v60 }
 0xd1a   : > { %v1002_v2 = vsel %vm376_vm1, %v992_v43, -inf }
 0xd1b   : > { %1003 = vmax.xlane.f32.xlu1 %v1002_v2 }
 0xda1   : > { %v995_v19 = vpop.xlane.xlu0 %994 }
 0xda2   : > { %vm1005_vm2 = vcmp.eq.f32.partialorder %v989_v12, %v995_v19 }
 0xda3   : > { %v1009_v20 = vsel %vm1005_vm2, %v1389_v44, 32 }
 0xda4   : > { %v1013_v5 = vsel %vm376_vm1, %v1009_v20, 2147483647  ;;  %v998_v21 = vpop.xlane.xlu1 %997 }
 0xda5   : > { %vm1006_vm3 = vcmp.eq.f32.partialorder %v990_v53, %v998_v21  ;;  %v1001_v22 = vpop.xlane.xlu0 %1000  ;;  %v1015_v23 = vshra.s32 %v1013_v5, 16  ;;  %v1014_v52 = vand.u32 65535, %v1013_v5 }
 0xda6   : > { %v1010_v59 = vsel %vm1006_vm3, %v1389_v44, 32  ;;  %vm1007_vm4 = vcmp.eq.f32.partialorder %v991_v18, %v1001_v22 }
 0xda7   : > { %v1028_v24 = vsel %vm376_vm1, %v1010_v59, 2147483647  ;;  %v1011_v60 = vsel %vm1007_vm4, %v1389_v44, 32  ;;  %v1017_v25 = vcvt.s32.f32 %v1015_v23  ;;  %v1016_v26 = vcvt.s32.f32 %v1014_v52 }
 0xda8   : > { %v1043_v27 = vsel %vm376_vm1, %v1011_v60, 2147483647  ;;  %v1004_v29 = vpop.xlane.xlu1 %1003  ;;  %v1030_v31 = vshra.s32 %v1028_v24, 16  ;;  %v1029_v39 = vand.u32 65535, %v1028_v24 }
 0xda9   : > { %vm1008_vm5 = vcmp.eq.f32.partialorder %v992_v43, %v1004_v29  ;;  %1018 = vmin.xlane.f32.xlu0 %v1017_v25  ;;  %v1045_v32 = vshra.s32 %v1043_v27, 16  ;;  %v1044_v33 = vand.u32 65535, %v1043_v27 }
 0xdaa   : > { %v1012_v40 = vsel %vm1008_vm5, %v1389_v44, 32  ;;  %v1032_v41 = vcvt.s32.f32 %v1030_v31  ;;  %v1031_v44 = vcvt.s32.f32 %v1029_v39 }
 0xdab   : > { %v1058_v46 = vsel %vm376_vm1, %v1012_v40, 2147483647  ;;  %v1047_v48 = vcvt.s32.f32 %v1045_v32  ;;  %v1046_v38 = vcvt.s32.f32 %v1044_v33 }
 0xdac   : > { %1033 = vmin.xlane.f32.xlu1 %v1032_v41  ;;  %v1060_v36 = vshra.s32 %v1058_v46, 16  ;;  %v1059_v56 = vand.u32 65535, %v1058_v46 }
 0xdad   : > { %1048 = vmin.xlane.f32.xlu0 %v1047_v48 }
 0xdae   : > { %v1062_v35 = vcvt.s32.f32 %v1060_v36  ;;  %v1061_v63 = vcvt.s32.f32 %v1059_v56 }
 0xdb0   : > { %1063 = vmin.xlane.f32.xlu1 %v1062_v35 }
 0xe36   : > { %v1019_v55 = vpop.xlane.xlu0 %1018 }
 0xe37   : > { %vm1020_vm6 = vcmp.eq.f32.partialorder %v1017_v25, %v1019_v55  ;;  %v1025_v1 = vcvt.f32.s32 %v1019_v55 }
 0xe38   : > { %v1021_v28 = vsel %vm1020_vm6, %v1016_v26, inf }
 0xe39   : > { %v1034_v57 = vpop.xlane.xlu1 %1033  ;;  %1022 = vmin.xlane.f32.xlu0 %v1021_v28  ;;  %v1026_v47 = vshll.u32 %v1025_v1, 16 }
 0xe3a   : > { %v1049_v58 = vpop.xlane.xlu0 %1048  ;;  %vm1035_vm1 = vcmp.eq.f32.partialorder %v1032_v41, %v1034_v57  ;;  %v1040_v3 = vcvt.f32.s32 %v1034_v57 }
 0xe3b   : > { %vm1050_vm7 = vcmp.eq.f32.partialorder %v1047_v48, %v1049_v58  ;;  %v1036_v34 = vsel %vm1035_vm1, %v1031_v44, inf  ;;  %v1055_v6 = vcvt.f32.s32 %v1049_v58 }
 0xe3c   : > { %1037 = vmin.xlane.f32.xlu1 %v1036_v34  ;;  %v1051_v61 = vsel %vm1050_vm7, %v1046_v38, inf  ;;  %v1041_v37 = vshll.u32 %v1040_v3, 16 }
 0xe3d   : > { %v1064_v51 = vpop.xlane.xlu1 %1063  ;;  %1052 = vmin.xlane.f32.xlu0 %v1051_v61  ;;  %v1056_v13 = vshll.u32 %v1055_v6, 16 }
 0xe3e   : > { %vm1065_vm8 = vcmp.eq.f32.partialorder %v1062_v35, %v1064_v51  ;;  %v1070_v11 = vcvt.f32.s32 %v1064_v51 }
 0xe3f   : > { %v1066_v0 = vsel %vm1065_vm8, %v1061_v63, inf }
 0xe40   : > { %1067 = vmin.xlane.f32.xlu1 %v1066_v0  ;;  %v1071_v7 = vshll.u32 %v1070_v11, 16 }
 0xec6   : > { %v1023_v42 = vpop.xlane.xlu0 %1022 }
 0xec7   : > { %v1024_v50 = vcvt.f32.s32 %v1023_v42 }
 0xec9   : > { %v1027_v8 = vadd.s32 %v1026_v47, %v1024_v50  ;;  %v1038_v62 = vpop.xlane.xlu1 %1037 }
 0xeca   : > { %v1039_v45 = vcvt.f32.s32 %v1038_v62  ;;  %v1053_v12 = vpop.xlane.xlu0 %1052 }
 0xecb   : > { %v1104_v30 = vsel %vm1103_vm9, %v1717_v9, %v1027_v8  ;;  %v1054_v49 = vcvt.f32.s32 %v1053_v12 }
 0xecc   : > { %1109 = vst.msk [vmem:[%s242_s29] sm:$0xff] %vm1108_vm10, %v1104_v30  ;;  %v1042_v14 = vadd.s32 %v1041_v37, %v1039_v45 }
 0xecd   : > { %v1057_v16 = vadd.s32 %v1056_v13, %v1054_v49  ;;  %v1068_v53 = vpop.xlane.xlu1 %1067 }
 0xece   : > { %v1105_v17 = vsel %vm1103_vm9, %v1724_v15, %v1042_v14  ;;  %v1069_v18 = vcvt.f32.s32 %v1068_v53 }
 0xecf   : > { %1110 = vst.msk [vmem:[%s242_s29 + $0x8] sm:$0xff] %vm1108_vm10, %v1105_v17  ;;  %v1106_v10 = vsel %vm1103_vm9, %v1729_v4, %v1057_v16 }
 0xed0   : > { %1111 = vst.msk [vmem:[%s242_s29 + $0x10] sm:$0xff] %vm1108_vm10, %v1106_v10  ;;  %v1072_v43 = vadd.s32 %v1071_v7, %v1069_v18 }
 0xed2   : > { %v1107_v9 = vsel %vm1103_vm9, %v1738_v54, %v1072_v43 }
 0xed3   : > { %1112 = vst.msk [vmem:[%s242_s29 + $0x18] sm:$0xff] %vm1108_vm10, %v1107_v9 }
 0xed4 PF: > { %s13_s14 = sadd.s32 1, %s1310_s14   ;;  %s1780_s12 = smov %s1306_s13 }
 0xed5   : > { %p10_p5 = scmp.ge.s32.totalorder %s13_s14, 4   ;;  %s1781_s13 = smov %s1783_s15 }
 0xed7   :  { %12 = sbr.rel (!%p10_p5) target bundleno = 2 (0x2), region = 68 }

// kernel: dgcnn_with_color_forward.20
= control target key start
LH: loop header
LB: loop body
LE: loop exit
PB: predicated region body
PF: predicated region fallthrough
CT: control target
= control target key end

     0   :  { %vm82_vm0 = vcmask 523264   ;;  %s359_s1 = inlined_call_operand.vmem [shape: bf16[64,128], index: 1, kind: input, shape index: {}]   ;;  %s360_s0 = inlined_call_operand.vmem [shape: bf16[64,64], index: 0, kind: input, shape index: {}]   ;;  %s361_s2 = inlined_call_operand.vmem [shape: f32[1,128], index: 2, kind: input, shape index: {}]   ;;  %s362_s3 = inlined_call_operand.vmem [shape: bf16[64,128], index: 3, kind: output, shape index: {}]  }
   0x1   :  { %v288_v0 = vld [vmem:[%s359_s1] sm:$0xff]   ;;  %v289_v1 = vld [vmem:[%s359_s1 + $0x8] sm:$0xff]   ;;  %v290_v2 = vld [vmem:[%s359_s1 + $0x10] sm:$0xff]  }
   0x2   :  { %264 = vmatprep.subr.bf16.mxu0 %v288_v0  ;;  %280 = vmatprep.subr.bf16.mxu1 %v288_v0  ;;  %v292_v3 = vld [vmem:[%s360_s0] sm:$0xff]   ;;  %v293_v4 = vld [vmem:[%s360_s0 + $0x10] sm:$0xff]   ;;  %v291_v5 = vld [vmem:[%s359_s1 + $0x18] sm:$0xff]  }
   0x3   :  { %265 = vmatpush3.bf16.msra.mxu0 %v288_v0  ;;  %284 = vmatpush3.bf16.msra.mxu1 %v288_v0  ;;  %v294_v6 = vld [vmem:[%s360_s0 + $0x8] sm:$0xff]   ;;  %v295_v7 = vld [vmem:[%s360_s0 + $0x18] sm:$0xff]   ;;  %v204_v9 = vld [vmem:[%s361_s2] ss:$0 sm:$0xff] }
   0x4   :  { %266 = vmatprep.subr.bf16.mxu0 %v289_v1  ;;  %281 = vmatprep.subr.bf16.mxu1 %v289_v1 }
   0x5   :  { %272 = vmatprep.mubr.msk.bf16.mxu0 %vm82_vm0, %v292_v3  ;;  %276 = vmatprep.mubr.msk.bf16.mxu1 %vm82_vm0, %v293_v4 }
   0x7   :  { %267 = vmatpush3.bf16.msra.mxu0 %v289_v1  ;;  %285 = vmatpush3.bf16.msra.mxu1 %v289_v1 }
   0x8   :  { %268 = vmatprep.subr.bf16.mxu0 %v290_v2  ;;  %282 = vmatprep.subr.bf16.mxu1 %v290_v2 }
   0xb   :  { %269 = vmatpush3.bf16.msra.mxu0 %v290_v2  ;;  %286 = vmatpush3.bf16.msra.mxu1 %v290_v2 }
   0xc   :  { %270 = vmatprep.subr.bf16.mxu0 %v291_v5  ;;  %283 = vmatprep.subr.bf16.mxu1 %v291_v5 }
   0xf   :  { %271 = vmatpush3.bf16.msra.mxu0 %v291_v5  ;;  %287 = vmatpush3.bf16.msra.mxu1 %v291_v5 }
  0x12   :  { %273 = vmatmul.mubr.msk.bf16.vlgmr.msra.gmra.mrb[0].mxu0 %vm82_vm0, %v294_v6  ;;  %277 = vmatmul.mubr.msk.bf16.vlgmr.msra.gmra.mrb[0].mxu1 %vm82_vm0, %v295_v7 }
  0xe5   :  { %v274_v8 = vpop.f32.mrb[0].mxu0  ;;  %v278_v10 = vpop.f32.mrb[0].mxu1 }
  0xe6   :  { %v129_v11 = vpop.f32.mrb[1].mxu0  ;;  %v145_v12 = vpop.f32.mrb[1].mxu1  ;;  %v138_v15 = vadd.f32 %v274_v8, %v204_v9  ;;  %v154_v16 = vadd.f32 %v278_v10, %v204_v9 }
  0xe7   :  { %v275_v13 = vpop.f32.mrb[2].mxu0  ;;  %v279_v14 = vpop.f32.mrb[2].mxu1  ;;  %v130_v21 = vadd.f32 %v204_v9, %v129_v11  ;;  %v146_v22 = vadd.f32 %v204_v9, %v145_v12 }
  0xe8   :  { %v141_v17 = vadd.f32 %v275_v13, %v204_v9  ;;  %v157_v18 = vadd.f32 %v279_v14, %v204_v9  ;;  %v132_v19 = vpop.f32.mrb[3].mxu0  ;;  %v148_v20 = vpop.f32.mrb[3].mxu1 }
  0xe9   :  { %v133_v23 = vadd.f32 %v204_v9, %v132_v19  ;;  %v149_v24 = vadd.f32 %v204_v9, %v148_v20 }
  0xea   :  { %v241_v25 = vpack.c.bf16 %v141_v17, %v138_v15  ;;  %v251_v26 = vpack.c.bf16 %v157_v18, %v154_v16 }
  0xeb   :  { %v236_v27 = vpack.c.bf16 %v133_v23, %v130_v21  ;;  %v246_v28 = vpack.c.bf16 %v149_v24, %v146_v22 }
  0xec   :  { %253 = vst [vmem:[%s362_s3 + $0x8] sm:$0xff] %v241_v25   ;;  %255 = vst [vmem:[%s362_s3 + $0x18] sm:$0xff] %v251_v26  }
  0xed   :  { %237 = vst [vmem:[%s362_s3] sm:$0xff] %v236_v27   ;;  %254 = vst [vmem:[%s362_s3 + $0x10] sm:$0xff] %v246_v28  }

// kernel: dgcnn_with_color_forward.26
= control target key start
LH: loop header
LB: loop body
LE: loop exit
PB: predicated region body
PF: predicated region fallthrough
CT: control target
= control target key end

     0   :  { %v306_v1 = vmov 0   ;;  %vm103_vm0 = vcmask 523264   ;;  %v33_v13 = vlaneseq  ;;  %s390_s1 = inlined_call_operand.vmem [shape: bf16[64,256], index: 1, kind: input, shape index: {}]   ;;  %s391_s0 = inlined_call_operand.vmem [shape: bf16[64,64], index: 0, kind: input, shape index: {}]   ;;  %s392_s2 = inlined_call_operand.vmem [shape: f32[1,256], index: 2, kind: input, shape index: {}]   ;;  %s393_s3 = inlined_call_operand.vmem [shape: bf16[64,256], index: 3, kind: output, shape index: {}]  }
   0x1   :  { %v290_v0 = vld [vmem:[%s390_s1 + $0x4] ss:$8 sps:$4 sm:$0xff]   ;;  %148 = vmatprep.mubr.bf16.mxu0 %v306_v1  ;;  %168 = vmatprep.mubr.bf16.mxu1 %v306_v1  ;;  %v292_v2 = vld [vmem:[%s390_s1] ss:$8 sps:$4 sm:$0xff]   ;;  %v293_v3 = vld [vmem:[%s390_s1 + $0x14] ss:$8 sps:$4 sm:$0xff]  }
   0x2   :  { %116 = vmatprep.subr.bf16.mxu0 %v290_v0  ;;  %281 = vmatprep.subr.bf16.mxu1 %v290_v0  ;;  %v295_v4 = vld [vmem:[%s390_s1 + $0x10] ss:$8 sps:$4 sm:$0xff]   ;;  %v296_v5 = vld [vmem:[%s390_s1 + $0x24] ss:$8 sps:$4 sm:$0xff]   ;;  %v298_v6 = vld [vmem:[%s390_s1 + $0x20] ss:$8 sps:$4 sm:$0xff]  }
   0x3   :  { %117 = vmatpush1.bf16.msra.mxu0 %v292_v2  ;;  %285 = vmatpush1.bf16.msra.mxu1 %v292_v2  ;;  %v299_v7 = vld [vmem:[%s390_s1 + $0x34] ss:$8 sps:$4 sm:$0xff]   ;;  %v301_v8 = vld [vmem:[%s390_s1 + $0x30] ss:$8 sps:$4 sm:$0xff]   ;;  %v302_v9 = vld [vmem:[%s391_s0] sm:$0xff]   ;;  %v34_v14 = vshrl.u32 %v33_v13, 7 }
   0x4   :  { %118 = vmatprep.subr.bf16.mxu0 %v293_v3  ;;  %282 = vmatprep.subr.bf16.mxu1 %v293_v3  ;;  %v303_v10 = vld [vmem:[%s391_s0 + $0x10] sm:$0xff]   ;;  %v304_v11 = vld [vmem:[%s391_s0 + $0x8] sm:$0xff]   ;;  %v305_v12 = vld [vmem:[%s391_s0 + $0x18] sm:$0xff]  }
   0x5   :  { %v35_v15 = vsub.s32 0, %v34_v14  ;;  %v31_v16 = vld [vmem:[%s392_s2] sm:$0x3]  ;;  %v39_v17 = vsub.s32 1, %v34_v14 }
   0x7   :  { %119 = vmatpush1.bf16.msra.mxu0 %v295_v4  ;;  %286 = vmatpush1.bf16.msra.mxu1 %v295_v4  ;;  %v36_v18 = vrot.slane %v31_v16, %v35_v15  ;;  %v40_v19 = vrot.slane %v31_v16, %v39_v17 }
   0x8   :  { %120 = vmatprep.subr.bf16.mxu0 %v296_v5  ;;  %283 = vmatprep.subr.bf16.mxu1 %v296_v5 }
   0xb   :  { %121 = vmatpush1.bf16.msra.mxu0 %v298_v6  ;;  %287 = vmatpush1.bf16.msra.mxu1 %v298_v6 }
   0xc   :  { %122 = vmatprep.subr.bf16.mxu0 %v299_v7  ;;  %284 = vmatprep.subr.bf16.mxu1 %v299_v7 }
   0xf   :  { %123 = vmatpush1.bf16.msra.mxu0 %v301_v8  ;;  %288 = vmatpush1.bf16.msra.mxu1 %v301_v8 }
  0x12   :  { %261 = vmatmul.mubr.msk.bf16.vlgmr.msra.gmra.mrb[0].mxu0 %vm103_vm0, %v302_v9  ;;  %263 = vmatmul.mubr.msk.bf16.vlgmr.msra.gmra.mrb[0].mxu1 %vm103_vm0, %v303_v10 }
  0x13   :  { %158 = vmatprep.mubr.bf16.mxu0 %v306_v1  ;;  %178 = vmatprep.mubr.bf16.mxu1 %v306_v1 }
  0x1a   :  { %262 = vmatmul.mubr.msk.bf16.gmra.mrb[4].mxu0 %vm103_vm0, %v304_v11  ;;  %264 = vmatmul.mubr.msk.bf16.gmra.mrb[4].mxu1 %vm103_vm0, %v305_v12 }
  0xe5   :  { %v150_v20 = vpop.f32.mrb[0].mxu0  ;;  %v170_v21 = vpop.f32.mrb[0].mxu1 }
  0xe6   :  { %v151_v22 = vadd.f32 %v150_v20, %v36_v18  ;;  %v171_v23 = vadd.f32 %v170_v21, %v36_v18  ;;  %v152_v24 = vpop.f32.mrb[1].mxu0  ;;  %v172_v25 = vpop.f32.mrb[1].mxu1 }
  0xe7   :  { %v153_v26 = vadd.f32 %v152_v24, %v40_v19  ;;  %v173_v27 = vadd.f32 %v172_v25, %v40_v19  ;;  %v154_v28 = vpop.f32.mrb[2].mxu0  ;;  %v174_v29 = vpop.f32.mrb[2].mxu1 }
  0xe8   :  { %v155_v30 = vadd.f32 %v154_v28, %v36_v18  ;;  %v175_v31 = vadd.f32 %v174_v29, %v36_v18  ;;  %v156_v32 = vpop.f32.mrb[3].mxu0  ;;  %v176_v33 = vpop.f32.mrb[3].mxu1 }
  0xe9   :  { %v273_v34 = vpack.c.bf16 %v153_v26, %v151_v22  ;;  %v277_v35 = vpack.c.bf16 %v173_v27, %v171_v23  ;;  %v157_v36 = vadd.f32 %v156_v32, %v40_v19  ;;  %v177_v37 = vadd.f32 %v176_v33, %v40_v19 }
  0xeb   :  { %237 = vst [vmem:[%s393_s3] sm:$0xff] %v273_v34  ;;  %241 = vst [vmem:[%s393_s3 + $0x20] sm:$0xff] %v277_v35  ;;  %v274_v38 = vpack.c.bf16 %v157_v36, %v155_v30  ;;  %v278_v39 = vpack.c.bf16 %v177_v37, %v175_v31 }
  0xed   :  { %238 = vst [vmem:[%s393_s3 + $0x8] sm:$0xff] %v274_v38  ;;  %242 = vst [vmem:[%s393_s3 + $0x28] sm:$0xff] %v278_v39  ;;  %v160_v40 = vpop.f32.mrb[4].mxu0  ;;  %v180_v41 = vpop.f32.mrb[4].mxu1 }
  0xee   :  { %v161_v42 = vadd.f32 %v160_v40, %v36_v18  ;;  %v181_v43 = vadd.f32 %v180_v41, %v36_v18  ;;  %v162_v44 = vpop.f32.mrb[5].mxu0  ;;  %v182_v45 = vpop.f32.mrb[5].mxu1 }
  0xef   :  { %v163_v46 = vadd.f32 %v162_v44, %v40_v19  ;;  %v183_v47 = vadd.f32 %v182_v45, %v40_v19  ;;  %v164_v48 = vpop.f32.mrb[6].mxu0  ;;  %v184_v49 = vpop.f32.mrb[6].mxu1 }
  0xf0   :  { %v165_v50 = vadd.f32 %v164_v48, %v36_v18  ;;  %v185_v51 = vadd.f32 %v184_v49, %v36_v18  ;;  %v166_v52 = vpop.f32.mrb[7].mxu0  ;;  %v186_v53 = vpop.f32.mrb[7].mxu1 }
  0xf1   :  { %v275_v54 = vpack.c.bf16 %v163_v46, %v161_v42  ;;  %v279_v55 = vpack.c.bf16 %v183_v47, %v181_v43  ;;  %v167_v56 = vadd.f32 %v166_v52, %v40_v19  ;;  %v187_v57 = vadd.f32 %v186_v53, %v40_v19 }
  0xf3   :  { %239 = vst [vmem:[%s393_s3 + $0x10] sm:$0xff] %v275_v54  ;;  %243 = vst [vmem:[%s393_s3 + $0x30] sm:$0xff] %v279_v55  ;;  %v276_v58 = vpack.c.bf16 %v167_v56, %v165_v50  ;;  %v280_v59 = vpack.c.bf16 %v187_v57, %v185_v51 }
  0xf5   :  { %240 = vst [vmem:[%s393_s3 + $0x18] sm:$0xff] %v276_v58  ;;  %244 = vst [vmem:[%s393_s3 + $0x38] sm:$0xff] %v280_v59 }

// kernel: dgcnn_with_color_forward.28
= control target key start
LH: loop header
LB: loop body
LE: loop exit
PB: predicated region body
PF: predicated region fallthrough
CT: control target
= control target key end

     0   :  { %vm58_vm0 = vcmask 130048   ;;  %vm192_vm1 = vcmask 519168   ;;  %s323_s1 = inlined_call_operand.vmem [shape: bf16[16,64], index: 1, kind: input, shape index: {}]   ;;  %s324_s0 = inlined_call_operand.vmem [shape: bf16[64,16], index: 0, kind: input, shape index: {}]   ;;  %s325_s2 = inlined_call_operand.vmem [shape: f32[1,64], index: 2, kind: input, shape index: {}]   ;;  %s326_s3 = inlined_call_operand.vmem [shape: bf16[64,64], index: 3, kind: output, shape index: {}]  }
   0x1   :  { %v248_v0 = vld [vmem:[%s323_s1] sm:$0xff]   ;;  %v250_v2 = vld [vmem:[%s324_s0 + $0x10] sm:$0xff]   ;;  %v251_v3 = vld [vmem:[%s324_s0 + $0x8] sm:$0xff]  }
   0x2   :  { %v249_v1 = vld [vmem:[%s324_s0] sm:$0xff]   ;;  %236 = vmatprep.subr.bf16.mxu0 %v248_v0  ;;  %246 = vmatprep.subr.bf16.mxu1 %v248_v0  ;;  %v252_v4 = vld [vmem:[%s324_s0 + $0x18] sm:$0xff]  }
   0x3   :  { %237 = vmatpush3.bf16.msra.mxu0 %v248_v0  ;;  %247 = vmatpush3.bf16.msra.mxu1 %v248_v0  ;;  %v205_v5 = vld [vmem:[%s325_s2] ss:$0 sm:$0xff] }
   0x4   :  { %238 = vmatprep.mubr.msk.bf16.mxu0 %vm58_vm0, %v249_v1  ;;  %242 = vmatprep.mubr.msk.bf16.mxu1 %vm58_vm0, %v250_v2 }
   0x6   :  { %239 = vmatmul.mubr.msk.bf16.vlgmr.msra.gmra.mrb[0].mxu0 %vm58_vm0, %v251_v3  ;;  %243 = vmatmul.mubr.msk.bf16.vlgmr.msra.gmra.mrb[0].mxu1 %vm58_vm0, %v252_v4 }
  0xd9   :  { %v240_v6 = vpop.f32.mrb[0].mxu0  ;;  %v244_v7 = vpop.f32.mrb[0].mxu1 }
  0xda   :  { %v114_v8 = vadd.f32 %v240_v6, %v205_v5  ;;  %v130_v9 = vadd.f32 %v244_v7, %v205_v5  ;;  %v105_v10 = vpop.f32.mrb[1].mxu0  ;;  %v121_v11 = vpop.f32.mrb[1].mxu1 }
  0xdb   :  { %v106_v12 = vadd.f32 %v205_v5, %v105_v10  ;;  %v122_v13 = vadd.f32 %v205_v5, %v121_v11  ;;  %v241_v14 = vpop.f32.mrb[2].mxu0  ;;  %v245_v15 = vpop.f32.mrb[2].mxu1 }
  0xdc   :  { %vm138_vm2 = vcmp.gt.f32.partialorder %v114_v8, 0.0  ;;  %v146_v16 = vmul.f32 0.2, %v114_v8  ;;  %vm142_vm3 = vcmp.gt.f32.partialorder %v130_v9, 0.0  ;;  %v150_v17 = vmul.f32 0.2, %v130_v9 }
  0xdd   :  { %vm136_vm4 = vcmp.gt.f32.partialorder %v106_v12, 0.0  ;;  %v144_v18 = vmul.f32 0.2, %v106_v12  ;;  %vm140_vm5 = vcmp.gt.f32.partialorder %v122_v13, 0.0  ;;  %v148_v19 = vmul.f32 0.2, %v122_v13 }
  0xde   :  { %v154_v20 = vsel %vm138_vm2, %v114_v8, %v146_v16  ;;  %v158_v21 = vsel %vm142_vm3, %v130_v9, %v150_v17  ;;  %v117_v22 = vadd.f32 %v241_v14, %v205_v5  ;;  %v133_v23 = vadd.f32 %v245_v15, %v205_v5  ;;  %v108_v24 = vpop.f32.mrb[3].mxu0  ;;  %v124_v25 = vpop.f32.mrb[3].mxu1 }
  0xdf   :  { %v225_v26 = vpack.c.bf16 %v154_v20, %v154_v20  ;;  %v229_v27 = vpack.c.bf16 %v158_v21, %v158_v21  ;;  %v152_v28 = vsel %vm136_vm4, %v106_v12, %v144_v18  ;;  %v156_v29 = vsel %vm140_vm5, %v122_v13, %v148_v19 }
  0xe0   :  { %v223_v30 = vpack.c.bf16 %v152_v28, %v152_v28  ;;  %v227_v31 = vpack.c.bf16 %v156_v29, %v156_v29  ;;  %vm139_vm6 = vcmp.gt.f32.partialorder %v117_v22, 0.0  ;;  %v147_v32 = vmul.f32 0.2, %v117_v22 }
  0xe1   :  { %195 = vst.msk [vmem:[%s326_s3 + $0x8] sm:$0xf] %vm192_vm1, %v225_v26  ;;  %199 = vst.msk [vmem:[%s326_s3 + $0x18] sm:$0xf] %vm192_vm1, %v229_v27  ;;  %vm143_vm7 = vcmp.gt.f32.partialorder %v133_v23, 0.0  ;;  %v109_v34 = vadd.f32 %v205_v5, %v108_v24  ;;  %v125_v35 = vadd.f32 %v205_v5, %v124_v25 }
  0xe2   :  { %v151_v33 = vmul.f32 0.2, %v133_v23  ;;  %193 = vst.msk [vmem:[%s326_s3] sm:$0xf] %vm192_vm1, %v223_v30  ;;  %197 = vst.msk [vmem:[%s326_s3 + $0x10] sm:$0xf] %vm192_vm1, %v227_v31  ;;  %v155_v36 = vsel %vm139_vm6, %v117_v22, %v147_v32 }
  0xe3   :  { %v226_v37 = vpack.c.bf16 %v155_v36, %v155_v36  ;;  %vm137_vm8 = vcmp.gt.f32.partialorder %v109_v34, 0.0  ;;  %v145_v39 = vmul.f32 0.2, %v109_v34  ;;  %vm141_vm9 = vcmp.gt.f32.partialorder %v125_v35, 0.0 }
  0xe4   :  { %v159_v38 = vsel %vm143_vm7, %v133_v23, %v151_v33  ;;  %v149_v41 = vmul.f32 0.2, %v125_v35 }
  0xe5   :  { %v230_v40 = vpack.c.bf16 %v159_v38, %v159_v38  ;;  %196 = vst.msk [vmem:[%s326_s3 + $0xc] sm:$0xf] %vm192_vm1, %v226_v37  ;;  %v153_v42 = vsel %vm137_vm8, %v109_v34, %v145_v39 }
  0xe6   :  { %v224_v43 = vpack.c.bf16 %v153_v42, %v153_v42  ;;  %v157_v44 = vsel %vm141_vm9, %v125_v35, %v149_v41 }
  0xe7   :  { %200 = vst.msk [vmem:[%s326_s3 + $0x1c] sm:$0xf] %vm192_vm1, %v230_v40  ;;  %v228_v45 = vpack.c.bf16 %v157_v44, %v157_v44 }
  0xe8   :  { %194 = vst.msk [vmem:[%s326_s3 + $0x4] sm:$0xf] %vm192_vm1, %v224_v43 }
  0xe9   :  { %198 = vst.msk [vmem:[%s326_s3 + $0x14] sm:$0xf] %vm192_vm1, %v228_v45 }

// kernel: dgcnn_with_color_forward.27
= control target key start
LH: loop header
LB: loop body
LE: loop exit
PB: predicated region body
PF: predicated region fallthrough
CT: control target
= control target key end

     0   :  { %v167_v6 = vlaneseq  ;;  %v2233_v12 = vmov 1966171168   ;;  %s4638_s0 = inlined_call_operand.vmem [shape: bf16[64,8,128], index: 0, kind: input, shape index: {}]   ;;  %s4639_s1 = inlined_call_operand.vmem [shape: bf16[64,128], index: 1, kind: input, shape index: {}]   ;;  %s4640_s2 = inlined_call_operand.vmem [shape: bf16[64,128], index: 2, kind: output, shape index: {}]  }
   0x1   :  { %v2252_v0 = vld [vmem:[%s4638_s0] sm:$0xff]   ;;  %v2257_v1 = vld [vmem:[%s4638_s0 + $0x8] sm:$0xff]   ;;  %v2262_v2 = vld [vmem:[%s4638_s0 + $0x10] sm:$0xff]   ;;  %v2292_v13 = vunpack.c.l.s4 %v2233_v12 }
   0x2   :  { %v2267_v3 = vld [vmem:[%s4638_s0 + $0x18] sm:$0xff]   ;;  %v2272_v4 = vld [vmem:[%s4638_s0 + $0x20] sm:$0xff]   ;;  %v2277_v5 = vld [vmem:[%s4638_s0 + $0x28] sm:$0xff]   ;;  %v2398_v60 = vshrl.u32 %v167_v6, 7 }
   0x3   :  { %4801 = vst [vmem:[#allocation2_spill] sm:$0xff] %v2277_v5  ;;  %v2285_v10 = vld [vmem:[%s4638_s0 + $0x30] sm:$0xff]   ;;  %v2290_v11 = vld [vmem:[%s4638_s0 + $0x38] sm:$0xff]   ;;  %v2301_v18 = vld [vmem:[%s4638_s0 + $0x40] sm:$0xff]   ;;  %v166_v59 = vunpack.c.0.s8 %v2292_v13 }
   0x4   :  { %4802 = vst [vmem:[#allocation3_spill] sm:$0xff] %v2285_v10  ;;  %4803 = vst [vmem:[#allocation4_spill] sm:$0xff] %v2290_v11  ;;  %v2306_v19 = vld [vmem:[%s4638_s0 + $0x48] sm:$0xff]   ;;  %v2315_v24 = vld [vmem:[%s4638_s0 + $0x50] sm:$0xff]   ;;  %v2528_v9 = vsub.s32 0, %v2398_v60 }
   0x5   :  { %4804 = vst [vmem:[#allocation5_spill] sm:$0xff] %v2301_v18  ;;  %4805 = vst [vmem:[#allocation6_spill] sm:$0xff] %v2306_v19  ;;  %v2320_v25 = vld [vmem:[%s4638_s0 + $0x58] sm:$0xff]   ;;  %v2329_v30 = vld [vmem:[%s4638_s0 + $0x60] sm:$0xff]   ;;  %v2443_v49 = vsub.s32 %v166_v59, %v2398_v60 }
   0x6   :  { %4806 = vst [vmem:[#allocation7_spill] sm:$0xff] %v2315_v24  ;;  %4807 = vst [vmem:[#allocation8_spill] sm:$0xff] %v2320_v25  ;;  %v2334_v31 = vld [vmem:[%s4638_s0 + $0x68] sm:$0xff]   ;;  %v2343_v36 = vld [vmem:[%s4638_s0 + $0x70] sm:$0xff]  }
   0x7   :  { %4808 = vst [vmem:[#allocation9_spill] sm:$0xff] %v2329_v30  ;;  %4809 = vst [vmem:[#allocation10_spill] sm:$0xff] %v2334_v31  ;;  %v2348_v37 = vld [vmem:[%s4638_s0 + $0x78] sm:$0xff]   ;;  %v2357_v42 = vld [vmem:[%s4638_s0 + $0x80] sm:$0xff]  }
   0x8   :  { %4810 = vst [vmem:[#allocation11_spill] sm:$0xff] %v2343_v36  ;;  %4811 = vst [vmem:[#allocation12_spill] sm:$0xff] %v2348_v37  ;;  %v2366_v47 = vld [vmem:[%s4638_s0 + $0x88] sm:$0xff]   ;;  %v2371_v48 = vld [vmem:[%s4638_s0 + $0x90] sm:$0xff]  }
   0x9   :  { %4812 = vst [vmem:[#allocation13_spill] sm:$0xff] %v2357_v42  ;;  %4813 = vst [vmem:[#allocation14_spill] sm:$0xff] %v2366_v47  ;;  %v2380_v53 = vld [vmem:[%s4638_s0 + $0x98] sm:$0xff]   ;;  %v2183_v54 = vld [vmem:[%s4639_s1] sm:$0xff]  }
   0xa   :  { %4814 = vst [vmem:[#allocation15_spill] sm:$0xff] %v2371_v48  ;;  %4815 = vst [vmem:[#allocation16_spill] sm:$0xff] %v2380_v53  ;;  %v2390_v57 = vld [vmem:[%s4638_s0 + $0xa0] sm:$0xff]   ;;  %v2395_v58 = vld [vmem:[%s4638_s0 + $0xa8] sm:$0xff]   ;;  %v2184_v62 = vunpack.c.l.bf16 %v2183_v54  ;;  %v2185_v52 = vunpack.c.h.bf16 %v2183_v54 }
   0xb   :  { %4816 = vst [vmem:[#allocation17_spill] sm:$0xff] %v2390_v57  ;;  %4817 = vst [vmem:[#allocation18_spill] sm:$0xff] %v2395_v58  ;;  %v2407_v56 = vld [vmem:[%s4638_s0 + $0xb0] sm:$0xff]   ;;  %v2415_v13 = vld [vmem:[%s4638_s0 + $0xb8] sm:$0xff]  }
   0xc   :  { %4818 = vst [vmem:[#allocation19_spill] sm:$0xff] %v2407_v56  ;;  %4819 = vst [vmem:[#allocation20_spill] sm:$0xff] %v2415_v13  ;;  %v2423_v55 = vld [vmem:[%s4638_s0 + $0xc0] sm:$0xff]   ;;  %v2428_v6 = vld [vmem:[%s4638_s0 + $0xc8] sm:$0xff]   ;;  %v163_v63 = vcombine.high %v2184_v62, %v2184_v62  ;;  %v212_v44 = vcombine.high %v2185_v52, %v2185_v52  ;;  %v170_v39 = vrot.slane %v2184_v62, %v2443_v49 }
   0xd   :  { %4820 = vst [vmem:[#allocation21_spill] sm:$0xff] %v2423_v55  ;;  %4821 = vst [vmem:[#allocation22_spill] sm:$0xff] %v2428_v6  ;;  %v2435_v12 = vld [vmem:[%s4638_s0 + $0xd0] sm:$0xff]   ;;  %v2440_v61 = vld [vmem:[%s4638_s0 + $0xd8] sm:$0xff]   ;;  %v219_v51 = vrot.slane %v2185_v52, %v2443_v49 }
   0xe   :  { %4822 = vst [vmem:[#allocation23_spill] sm:$0xff] %v2435_v12  ;;  %4823 = vst [vmem:[#allocation24_spill] sm:$0xff] %v2440_v61  ;;  %v2451_v46 = vld [vmem:[%s4638_s0 + $0xe0] sm:$0xff]   ;;  %v2229_v45 = vld [vmem:[%s4639_s1 + $0x8] sm:$0xff]   ;;  %v177_v38 = vrot.slane %v163_v63, %v2443_v49  ;;  %v226_v34 = vrot.slane %v212_v44, %v2443_v49  ;;  %v178_v26 = vcombine.high %v170_v39, %v170_v39 }
   0xf   :  { %4824 = vst [vmem:[#allocation25_spill] sm:$0xff] %v2451_v46  ;;  %v2463_v50 = vld [vmem:[%s4638_s0 + $0xe8] sm:$0xff]   ;;  %v2472_v59 = vld [vmem:[%s4638_s0 + $0xf0] sm:$0xff]   ;;  %v2478_v54 = vld [vmem:[%s4638_s0 + $0xf8] sm:$0xff]   ;;  %v2188_v43 = vunpack.c.l.bf16 %v2229_v45  ;;  %v2189_v29 = vunpack.c.h.bf16 %v2229_v45  ;;  %v227_v22 = vcombine.high %v219_v51, %v219_v51  ;;  %v2499_v20 = vrot.slane %v170_v39, %v2443_v49 }
  0x10   :  { %4825 = vst [vmem:[#allocation26_spill] sm:$0xff] %v2463_v50  ;;  %4826 = vst [vmem:[#allocation27_spill] sm:$0xff] %v2472_v59  ;;  %v2230_v40 = vld [vmem:[%s4639_s1 + $0x10] sm:$0xff]   ;;  %v2231_v28 = vld [vmem:[%s4639_s1 + $0x18] sm:$0xff]   ;;  %v179_v44 = vcombine.high %v177_v38, %v177_v38  ;;  %v228_v32 = vcombine.high %v226_v34, %v226_v34  ;;  %v2503_v41 = vrot.slane %v177_v38, %v2443_v49 }
  0x11   :  { %4827 = vst [vmem:[#allocation28_spill] sm:$0xff] %v2478_v54  ;;  %v261_v62 = vcombine.high %v2188_v43, %v2188_v43  ;;  %v2192_v27 = vunpack.c.l.bf16 %v2230_v40  ;;  %v2193_v52 = vunpack.c.h.bf16 %v2230_v40  ;;  %v310_v23 = vcombine.high %v2189_v29, %v2189_v29 }
  0x12   :  { %v2196_v33 = vunpack.c.l.bf16 %v2231_v28  ;;  %v268_v45 = vrot.slane %v2188_v43, %v2443_v49  ;;  %v2197_v21 = vunpack.c.h.bf16 %v2231_v28  ;;  %v2506_v40 = vrot.slane %v219_v51, %v2443_v49 }
  0x13   :  { %v275_v63 = vrot.slane %v261_v62, %v2443_v49  ;;  %v359_v17 = vcombine.high %v2192_v27, %v2192_v27  ;;  %v2509_v35 = vrot.slane %v226_v34, %v2443_v49  ;;  %v317_v16 = vrot.slane %v2189_v29, %v2443_v49 }
  0x14   :  { %v2513_v43 = vrot.slane %v178_v26, %v2443_v49  ;;  %v2516_v28 = vrot.slane %v179_v44, %v2443_v49  ;;  %v324_v39 = vrot.slane %v310_v23, %v2443_v49  ;;  %v408_v62 = vcombine.high %v2193_v52, %v2193_v52 }
  0x15   :  { %v2520_v38 = vrot.slane %v227_v22, %v2443_v49  ;;  %v2523_v51 = vrot.slane %v228_v32, %v2443_v49  ;;  %v276_v15 = vcombine.high %v268_v45, %v268_v45  ;;  %v457_v34 = vcombine.high %v2196_v33, %v2196_v33 }
  0x16   :  { %v277_v14 = vcombine.high %v275_v63, %v275_v63  ;;  %v506_v26 = vcombine.high %v2197_v21, %v2197_v21  ;;  %v325_v44 = vcombine.high %v317_v16, %v317_v16  ;;  %v2541_v29 = vrot.slane %v268_v45, %v2443_v49 }
  0x17   :  { %v326_v60 = vcombine.high %v324_v39, %v324_v39  ;;  %v2548_v54 = vrot.slane %v275_v63, %v2443_v49  ;;  %v2551_v32 = vrot.slane %v276_v15, %v2443_v49  ;;  %v366_v7 = vrot.slane %v2192_v27, %v2443_v49 }
  0x18   :  { %v2554_v8 = vrot.slane %v277_v14, %v2443_v49  ;;  %v373_v45 = vrot.slane %v359_v17, %v2443_v49  ;;  %v415_v59 = vrot.slane %v2193_v52, %v2443_v49  ;;  %v2560_v23 = vrot.slane %v317_v16, %v2443_v49 }
  0x19   :  { %v2563_v22 = vrot.slane %v324_v39, %v2443_v49  ;;  %v2566_v63 = vrot.slane %v325_v44, %v2443_v49  ;;  %v422_v15 = vrot.slane %v408_v62, %v2443_v49  ;;  %v2572_v27 = vrot.slane %v326_v60, %v2443_v49 }
  0x1a   :  { %v464_v17 = vrot.slane %v2196_v33, %v2443_v49  ;;  %v471_v52 = vrot.slane %v457_v34, %v2443_v49  ;;  %v513_v44 = vrot.slane %v2197_v21, %v2443_v49  ;;  %v520_v62 = vrot.slane %v506_v26, %v2443_v49 }
  0x1b   :  { %v374_v50 = vcombine.high %v366_v7, %v366_v7  ;;  %v375_v60 = vcombine.high %v373_v45, %v373_v45  ;;  %v423_v46 = vcombine.high %v415_v59, %v415_v59  ;;  %v424_v39 = vcombine.high %v422_v15, %v422_v15 }
  0x1c   :  { %v2593_v26 = vrot.slane %v366_v7, %v2443_v49  ;;  %v472_v14 = vcombine.high %v464_v17, %v464_v17  ;;  %v473_v61 = vcombine.high %v471_v52, %v471_v52  ;;  %v2596_v12 = vrot.slane %v373_v45, %v2443_v49 }
  0x1d   :  { %v2599_v33 = vrot.slane %v415_v59, %v2443_v49  ;;  %v521_v6 = vcombine.high %v513_v44, %v513_v44  ;;  %v522_v34 = vcombine.high %v520_v62, %v520_v62  ;;  %v2602_v55 = vrot.slane %v374_v50, %v2443_v49 }
  0x1e   :  { %v2605_v16 = vrot.slane %v375_v60, %v2443_v49  ;;  %v2608_v21 = vrot.slane %v422_v15, %v2443_v49  ;;  %v2611_v7 = vrot.slane %v423_v46, %v2443_v49  ;;  %v2614_v45 = vrot.slane %v424_v39, %v2443_v49 }
  0x1f   :  { %v2617_v59 = vrot.slane %v464_v17, %v2443_v49  ;;  %v2620_v13 = vrot.slane %v471_v52, %v2443_v49  ;;  %v2623_v50 = vrot.slane %v513_v44, %v2443_v49  ;;  %v404_v60 = vcombine.high %v2593_v26, %v2593_v26 }
  0x20   :  { %v2628_v15 = vrot.slane %v472_v14, %v2443_v49  ;;  %v2631_v46 = vrot.slane %v473_v61, %v2443_v49  ;;  %v2634_v39 = vrot.slane %v520_v62, %v2443_v49  ;;  %v405_v17 = vcombine.high %v2596_v12, %v2596_v12 }
  0x21   :  { %v453_v52 = vcombine.high %v2599_v33, %v2599_v33  ;;  %v2641_v44 = vrot.slane %v521_v6, %v2443_v49  ;;  %v2644_v56 = vrot.slane %v522_v34, %v2443_v49  ;;  %v406_v14 = vcombine.high %v2602_v55, %v2602_v55 }
  0x22   :  { %4828 = vst [vmem:[#allocation29_spill] sm:$0xff] %v2634_v39  ;;  %v407_v61 = vcombine.high %v2605_v16, %v2605_v16  ;;  %v454_v62 = vcombine.high %v2608_v21, %v2608_v21  ;;  %v455_v58 = vcombine.high %v2611_v7, %v2611_v7  ;;  %v456_v57 = vcombine.high %v2614_v45, %v2614_v45 }
  0x23   :  { %4829 = vst [vmem:[#allocation30_spill] sm:$0xff] %v2644_v56  ;;  %v502_v6 = vcombine.high %v2617_v59, %v2617_v59  ;;  %v503_v49 = vcombine.high %v2620_v13, %v2620_v13  ;;  %v504_v53 = vcombine.high %v2628_v15, %v2628_v15  ;;  %v505_v48 = vcombine.high %v2631_v46, %v2631_v46 }
  0x24   :  { %v553_v37 = vcombine.high %v2641_v44, %v2641_v44  ;;  %v4830_v31 = vcombine.high %v2499_v20, %v2499_v20  ;;  %v4831_v47 = vcombine.high %v2513_v43, %v2513_v43  ;;  %v4832_v34 = vcombine.high %v2503_v41, %v2503_v41 }
  0x25   :  { %v4834_v36 = vcombine.high %v2506_v40, %v2506_v40  ;;  %v4837_v25 = vcombine.high %v2509_v35, %v2509_v35 }
  0x26   :  { %v2680_v30 = vrot.slane %v4830_v31, %v2528_v9  ;;  %v2686_v42 = vrot.slane %v4831_v47, %v2528_v9  ;;  %v2696_v24 = vrot.slane %v4832_v34, %v2528_v9  ;;  %v4833_v31 = vcombine.high %v2516_v28, %v2516_v28 }
  0x27   :  { %v2712_v18 = vrot.slane %v4834_v36, %v2528_v9  ;;  %v4835_v34 = vcombine.high %v2520_v38, %v2520_v38  ;;  %v2728_v10 = vrot.slane %v4837_v25, %v2528_v9  ;;  %v4839_v36 = vcombine.high %v2523_v51, %v2523_v51 }
  0x28   :  { %v2702_v19 = vrot.slane %v4833_v31, %v2528_v9  ;;  %v4841_v47 = vcombine.high %v2541_v29, %v2541_v29  ;;  %v4843_v25 = vcombine.high %v2551_v32, %v2551_v32  ;;  %v4845_v31 = vcombine.high %v2548_v54, %v2548_v54 }
  0x29   :  { %v2718_v11 = vrot.slane %v4835_v34, %v2528_v9  ;;  %4838 = vst [vmem:[#allocation32_spill] sm:$0xff] %v2728_v10  ;;  %v2734_v5 = vrot.slane %v4839_v36, %v2528_v9  ;;  %v4849_v34 = vcombine.high %v2560_v23, %v2560_v23  ;;  %v4853_v36 = vcombine.high %v2563_v22, %v2563_v22 }
  0x2a   :  { %v2750_v10 = vrot.slane %v4843_v25, %v2528_v9  ;;  %v2805_v25 = vrot.slane %v404_v60, %v2528_v9  ;;  %v2858_v60 = vrot.slane %v505_v48, %v2528_v9  ;;  %v4864_v48 = vrot.slane %v2513_v43, %v2528_v9 }
  0x2b   :  { %4836 = vst [vmem:[#allocation31_spill] sm:$0xff] %v2718_v11  ;;  %4840 = vst [vmem:[#allocation33_spill] sm:$0xff] %v2734_v5  ;;  %v2744_v11 = vrot.slane %v4841_v47, %v2528_v9  ;;  %v2760_v5 = vrot.slane %v4845_v31, %v2528_v9  ;;  %v4847_v47 = vcombine.high %v2554_v8, %v2554_v8 }
  0x2c   :  { %4844 = vst [vmem:[#allocation35_spill] sm:$0xff] %v2750_v10  ;;  %v2776_v10 = vrot.slane %v4849_v34, %v2528_v9  ;;  %v4851_v31 = vcombine.high %v2566_v63, %v2566_v63  ;;  %v4855_v34 = vcombine.high %v2572_v27, %v2572_v27 }
  0x2d   :  { %4842 = vst [vmem:[#allocation34_spill] sm:$0xff] %v2744_v11  ;;  %4846 = vst [vmem:[#allocation36_spill] sm:$0xff] %v2760_v5  ;;  %v2766_v11 = vrot.slane %v4847_v47, %v2528_v9  ;;  %v2838_v47 = vrot.slane %v456_v57, %v2528_v9  ;;  %v2855_v57 = vrot.slane %v503_v49, %v2528_v9  ;;  %v4863_v49 = vunpack.c.l.bf16 %v2252_v0 }
  0x2e   :  { %4850 = vst [vmem:[#allocation38_spill] sm:$0xff] %v2776_v10  ;;  %v2782_v5 = vrot.slane %v4851_v31, %v2528_v9  ;;  %v2798_v10 = vrot.slane %v4855_v34, %v2528_v9  ;;  %v2815_v34 = vrot.slane %v405_v17, %v2528_v9  ;;  %v2818_v31 = vrot.slane %v407_v61, %v2528_v9 }
  0x2f   :  { %4848 = vst [vmem:[#allocation37_spill] sm:$0xff] %v2766_v11  ;;  %v2792_v11 = vrot.slane %v4853_v36, %v2528_v9  ;;  %v2828_v36 = vrot.slane %v455_v58, %v2528_v9  ;;  %v2835_v61 = vrot.slane %v454_v62, %v2528_v9  ;;  %v2845_v58 = vrot.slane %v502_v6, %v2528_v9 }
  0x30   :  { %4852 = vst [vmem:[#allocation39_spill] sm:$0xff] %v2782_v5  ;;  %v2808_v5 = vrot.slane %v406_v14, %v2528_v9  ;;  %v2825_v14 = vrot.slane %v453_v52, %v2528_v9  ;;  %v2871_v62 = vrot.slane %v553_v37, %v2528_v9  ;;  %v4859_v52 = vcombine.high %v2634_v39, %v2634_v39 }
  0x31   :  { %4854 = vst [vmem:[#allocation40_spill] sm:$0xff] %v2792_v11  ;;  %v2848_v11 = vrot.slane %v504_v53, %v2528_v9  ;;  %v4856_v53 = vcombine.high %v2623_v50, %v2623_v50  ;;  %v4862_v37 = vrot.slane %v2499_v20, %v2528_v9  ;;  %v4865_v39 = vunpack.c.h.bf16 %v2252_v0 }
  0x32   :  { %4858 = vst [vmem:[#allocation42_spill] sm:$0xff] %v2871_v62  ;;  %v2881_v6 = vrot.slane %v4859_v52, %v2528_v9  ;;  %v4870_v0 = vrot.slane %v2516_v28, %v2528_v9 }
  0x33   :  { %v2868_v17 = vrot.slane %v4856_v53, %v2528_v9  ;;  %v4861_v53 = vcombine.high %v2644_v56, %v2644_v56  ;;  %v2894_v62 = vadd.f32 %v4863_v49, %v4862_v37  ;;  %v2901_v52 = vadd.f32 %v4865_v39, %v4864_v48 }
  0x34   :  { %4860 = vst [vmem:[#allocation43_spill] sm:$0xff] %v2881_v6  ;;  %v4866_v6 = vunpack.c.l.bf16 %v2257_v1  ;;  %v4868_v49 = vrot.slane %v2503_v41, %v2528_v9  ;;  %v4869_v37 = vunpack.c.l.bf16 %v2262_v2  ;;  %v4871_v39 = vunpack.c.h.bf16 %v2262_v2 }
  0x35   :  { %4857 = vst [vmem:[#allocation41_spill] sm:$0xff] %v2868_v17  ;;  %v2887_v17 = vrot.slane %v4861_v53, %v2528_v9  ;;  %v4867_v53 = vunpack.c.h.bf16 %v2257_v1  ;;  %v4876_v2 = vrot.slane %v2520_v38, %v2528_v9  ;;  %vm939_vm0 = vcmp.gt.f32.partialorder %v2894_v62, 0.0 }
  0x36   :  { %v2906_v56 = vadd.f32 %v4866_v6, %v2680_v30  ;;  %v2918_v43 = vadd.f32 %v4869_v37, %v4868_v49  ;;  %v2925_v48 = vadd.f32 %v4871_v39, %v4870_v0  ;;  %v4872_v30 = vunpack.c.l.bf16 %v2267_v3 }
  0x37   :  { %v2911_v20 = vadd.f32 %v4867_v53, %v2686_v42  ;;  %v4873_v42 = vunpack.c.h.bf16 %v2267_v3  ;;  %v4874_v6 = vrot.slane %v2506_v40, %v2528_v9  ;;  %v4875_v53 = vunpack.c.l.bf16 %v2272_v4 }
  0x38   :  { %v2930_v1 = vadd.f32 %v4872_v30, %v2696_v24  ;;  %v4877_v49 = vunpack.c.h.bf16 %v2272_v4  ;;  %v4878_v24 = vld [vmem:[#allocation2_spill] sm:$0xff]  ;;  %v4882_v30 = vrot.slane %v2509_v35, %v2528_v9  ;;  %v4886_v4 = vrot.slane %v2523_v51, %v2528_v9 }
  0x39   :  { %v2935_v41 = vadd.f32 %v4873_v42, %v2702_v19  ;;  %v2942_v28 = vadd.f32 %v4875_v53, %v4874_v6  ;;  %v4879_v0 = vunpack.c.l.bf16 %v4878_v24  ;;  %v4880_v19 = vld [vmem:[#allocation31_spill] sm:$0xff]  ;;  %v4881_v39 = vunpack.c.h.bf16 %v4878_v24 }
  0x3a   :  { %v2949_v37 = vadd.f32 %v4877_v49, %v4876_v2  ;;  %v4883_v42 = vld [vmem:[#allocation3_spill] sm:$0xff]  ;;  %v4889_v49 = vld [vmem:[#allocation4_spill] sm:$0xff]  ;;  %vm940_vm1 = vcmp.gt.f32.partialorder %v2901_v52, 0.0  ;;  %vm941_vm2 = vcmp.gt.f32.partialorder %v2906_v56, 0.0  ;;  %vm942_vm3 = vcmp.gt.f32.partialorder %v2911_v20, 0.0 }
  0x3b   :  { %v2954_v3 = vadd.f32 %v4879_v0, %v2712_v18  ;;  %v2959_v40 = vadd.f32 %v4881_v39, %v4880_v19  ;;  %v4884_v6 = vunpack.c.l.bf16 %v4883_v42  ;;  %v4887_v53 = vunpack.c.h.bf16 %v4883_v42  ;;  %v4888_v18 = vld [vmem:[#allocation32_spill] sm:$0xff]  ;;  %v4892_v19 = vld [vmem:[#allocation33_spill] sm:$0xff] }
  0x3c   :  { %v4890_v0 = vunpack.c.l.bf16 %v4889_v49  ;;  %v4893_v39 = vunpack.c.h.bf16 %v4889_v49  ;;  %v4898_v42 = vrot.slane %v2551_v32, %v2528_v9  ;;  %vm943_vm4 = vcmp.gt.f32.partialorder %v2918_v43, 0.0 }
  0x3d   :  { %v2966_v38 = vadd.f32 %v4884_v6, %v4882_v30  ;;  %v2973_v2 = vadd.f32 %v4887_v53, %v4886_v4  ;;  %v4894_v30 = vrot.slane %v2541_v29, %v2528_v9  ;;  %v4895_v6 = vld [vmem:[#allocation5_spill] sm:$0xff]  ;;  %vm944_vm5 = vcmp.gt.f32.partialorder %v2925_v48, 0.0 }
  0x3e   :  { %v2978_v24 = vadd.f32 %v4890_v0, %v4888_v18  ;;  %v2983_v35 = vadd.f32 %v4893_v39, %v4892_v19  ;;  %v4899_v4 = vunpack.c.h.bf16 %v4895_v6  ;;  %v4900_v18 = vld [vmem:[#allocation34_spill] sm:$0xff]  ;;  %v4904_v19 = vld [vmem:[#allocation35_spill] sm:$0xff]  ;;  %vm945_vm6 = vcmp.gt.f32.partialorder %v2930_v1, 0.0 }
  0x3f   :  { %4885 = vst [vmem:[#allocation2_spill] sm:$0xff] %v2966_v38  ;;  %v4896_v38 = vunpack.c.l.bf16 %v4895_v6  ;;  %v4901_v0 = vld [vmem:[#allocation6_spill] sm:$0xff]  ;;  %v4910_v6 = vrot.slane %v2554_v8, %v2528_v9  ;;  %vm946_vm7 = vcmp.gt.f32.partialorder %v2935_v41, 0.0  ;;  %vm947_vm8 = vcmp.gt.f32.partialorder %v2942_v28, 0.0 }
  0x40   :  { %4891 = vst [vmem:[#allocation31_spill] sm:$0xff] %v2978_v24  ;;  %v2997_v53 = vadd.f32 %v4899_v4, %v4898_v42  ;;  %v4902_v24 = vunpack.c.l.bf16 %v4901_v0  ;;  %v4905_v39 = vunpack.c.h.bf16 %v4901_v0  ;;  %vm948_vm9 = vcmp.gt.f32.partialorder %v2949_v37, 0.0 }
  0x41   :  { %v2990_v51 = vadd.f32 %v4896_v38, %v4894_v30  ;;  %v4906_v38 = vrot.slane %v2548_v54, %v2528_v9  ;;  %v4907_v30 = vld [vmem:[#allocation7_spill] sm:$0xff]  ;;  %vm949_vm10 = vcmp.gt.f32.partialorder %v2954_v3, 0.0  ;;  %vm950_vm11 = vcmp.gt.f32.partialorder %v2959_v40, 0.0 }
  0x42   :  { %v3002_v49 = vadd.f32 %v4902_v24, %v4900_v18  ;;  %v3007_v29 = vadd.f32 %v4905_v39, %v4904_v19  ;;  %v4911_v42 = vunpack.c.h.bf16 %v4907_v30  ;;  %v4912_v24 = vld [vmem:[#allocation36_spill] sm:$0xff]  ;;  %v4916_v19 = vld [vmem:[#allocation37_spill] sm:$0xff]  ;;  %vm952_vm13 = vcmp.gt.f32.partialorder %v2973_v2, 0.0 }
  0x43   :  { %4897 = vst [vmem:[#allocation3_spill] sm:$0xff] %v2990_v51  ;;  %v4908_v51 = vunpack.c.l.bf16 %v4907_v30  ;;  %v4913_v18 = vld [vmem:[#allocation8_spill] sm:$0xff]  ;;  %v4922_v30 = vrot.slane %v2566_v63, %v2528_v9  ;;  %vm954_vm15 = vcmp.gt.f32.partialorder %v2983_v35, 0.0 }
  0x44   :  { %4903 = vst [vmem:[#allocation32_spill] sm:$0xff] %v3002_v49  ;;  %v3021_v4 = vadd.f32 %v4911_v42, %v4910_v6  ;;  %v4914_v49 = vunpack.c.l.bf16 %v4913_v18  ;;  %v4917_v39 = vunpack.c.h.bf16 %v4913_v18 }
  0x45   :  { %v3014_v32 = vadd.f32 %v4908_v51, %v4906_v38  ;;  %v4918_v51 = vrot.slane %v2560_v23, %v2528_v9  ;;  %v4919_v38 = vld [vmem:[#allocation9_spill] sm:$0xff] }
  0x46   :  { %v3026_v0 = vadd.f32 %v4914_v49, %v4912_v24  ;;  %v3031_v54 = vadd.f32 %v4917_v39, %v4916_v19  ;;  %v4923_v6 = vunpack.c.h.bf16 %v4919_v38  ;;  %v4924_v49 = vld [vmem:[#allocation38_spill] sm:$0xff]  ;;  %v4928_v19 = vld [vmem:[#allocation39_spill] sm:$0xff] }
  0x47   :  { %4909 = vst [vmem:[#allocation4_spill] sm:$0xff] %v3014_v32  ;;  %v4920_v32 = vunpack.c.l.bf16 %v4919_v38  ;;  %v4925_v24 = vld [vmem:[#allocation10_spill] sm:$0xff]  ;;  %v4933_v38 = vrot.slane %v2572_v27, %v2528_v9 }
  0x48   :  { %4915 = vst [vmem:[#allocation33_spill] sm:$0xff] %v3026_v0  ;;  %v3045_v42 = vadd.f32 %v4923_v6, %v4922_v30  ;;  %v4926_v0 = vunpack.c.l.bf16 %v4925_v24  ;;  %v4929_v39 = vunpack.c.h.bf16 %v4925_v24 }
  0x49   :  { %v3038_v8 = vadd.f32 %v4920_v32, %v4918_v51  ;;  %v4930_v32 = vrot.slane %v2563_v22, %v2528_v9  ;;  %v4931_v51 = vld [vmem:[#allocation11_spill] sm:$0xff] }
  0x4a   :  { %v3050_v18 = vadd.f32 %v4926_v0, %v4924_v49  ;;  %v3055_v23 = vadd.f32 %v4929_v39, %v4928_v19  ;;  %v4934_v30 = vunpack.c.h.bf16 %v4931_v51  ;;  %v4935_v0 = vld [vmem:[#allocation40_spill] sm:$0xff]  ;;  %v4940_v39 = vld [vmem:[#allocation13_spill] sm:$0xff] }
  0x4b   :  { %4921 = vst [vmem:[#allocation5_spill] sm:$0xff] %v3038_v8  ;;  %v4932_v8 = vunpack.c.l.bf16 %v4931_v51  ;;  %v4936_v49 = vld [vmem:[#allocation12_spill] sm:$0xff]  ;;  %v4942_v51 = vrot.slane %v2602_v55, %v2528_v9 }
  0x4c   :  { %4927 = vst [vmem:[#allocation34_spill] sm:$0xff] %v3050_v18  ;;  %v3069_v6 = vadd.f32 %v4934_v30, %v4933_v38  ;;  %v4937_v18 = vunpack.c.l.bf16 %v4936_v49  ;;  %v4938_v19 = vunpack.c.h.bf16 %v4936_v49  ;;  %v4943_v38 = vunpack.c.h.bf16 %v4940_v39 }
  0x4d   :  { %v3062_v63 = vadd.f32 %v4932_v8, %v4930_v32  ;;  %v4939_v8 = vrot.slane %v2593_v26, %v2528_v9  ;;  %v4941_v32 = vunpack.c.l.bf16 %v4940_v39  ;;  %v4950_v39 = vrot.slane %v2605_v16, %v2528_v9 }
  0x4e   :  { %v3074_v24 = vadd.f32 %v4937_v18, %v4935_v0  ;;  %v3079_v22 = vadd.f32 %v4938_v19, %v2798_v10  ;;  %v3093_v30 = vadd.f32 %v4943_v38, %v4942_v51  ;;  %v4944_v18 = vld [vmem:[#allocation14_spill] sm:$0xff]  ;;  %v4947_v19 = vrot.slane %v2596_v12, %v2528_v9 }
  0x4f   :  { %v3086_v27 = vadd.f32 %v4941_v32, %v4939_v8  ;;  %v4945_v0 = vunpack.c.l.bf16 %v4944_v18  ;;  %v4946_v10 = vunpack.c.h.bf16 %v4944_v18  ;;  %v4948_v8 = vld [vmem:[#allocation15_spill] sm:$0xff] }
  0x50   :  { %v4949_v32 = vunpack.c.l.bf16 %v4948_v8  ;;  %v4951_v51 = vunpack.c.h.bf16 %v4948_v8  ;;  %v4958_v8 = vrot.slane %v2611_v7, %v2528_v9 }
  0x51   :  { %v3098_v49 = vadd.f32 %v4945_v0, %v2805_v25  ;;  %v3103_v26 = vadd.f32 %v4946_v10, %v2808_v5  ;;  %v4952_v25 = vld [vmem:[#allocation16_spill] sm:$0xff]  ;;  %v4955_v10 = vrot.slane %v2599_v33, %v2528_v9 }
  0x52   :  { %v3110_v55 = vadd.f32 %v4949_v32, %v4947_v19  ;;  %v3117_v38 = vadd.f32 %v4951_v51, %v4950_v39  ;;  %v4953_v0 = vunpack.c.l.bf16 %v4952_v25  ;;  %v4954_v5 = vunpack.c.h.bf16 %v4952_v25  ;;  %v4956_v19 = vld [vmem:[#allocation17_spill] sm:$0xff] }
  0x53   :  { %v4957_v32 = vunpack.c.l.bf16 %v4956_v19  ;;  %v4959_v39 = vunpack.c.h.bf16 %v4956_v19  ;;  %v4966_v19 = vrot.slane %v2614_v45, %v2528_v9 }
  0x54   :  { %v3122_v18 = vadd.f32 %v4953_v0, %v2815_v34  ;;  %v3127_v12 = vadd.f32 %v4954_v5, %v2818_v31  ;;  %v4960_v34 = vld [vmem:[#allocation18_spill] sm:$0xff]  ;;  %v4963_v5 = vrot.slane %v2608_v21, %v2528_v9 }
  0x55   :  { %v3134_v16 = vadd.f32 %v4957_v32, %v4955_v10  ;;  %v3141_v51 = vadd.f32 %v4959_v39, %v4958_v8  ;;  %v4961_v0 = vunpack.c.l.bf16 %v4960_v34  ;;  %v4962_v31 = vunpack.c.h.bf16 %v4960_v34  ;;  %v4964_v10 = vld [vmem:[#allocation19_spill] sm:$0xff] }
  0x56   :  { %v4965_v32 = vunpack.c.l.bf16 %v4964_v10  ;;  %v4967_v8 = vunpack.c.h.bf16 %v4964_v10  ;;  %v4976_v10 = vrot.slane %v2628_v15, %v2528_v9 }
  0x57   :  { %v3146_v25 = vadd.f32 %v4961_v0, %v2825_v14  ;;  %v3151_v33 = vadd.f32 %v4962_v31, %v2828_v36  ;;  %v4968_v14 = vld [vmem:[#allocation20_spill] sm:$0xff]  ;;  %v4972_v31 = vrot.slane %v2617_v59, %v2528_v9 }
  0x58   :  { %v3158_v7 = vadd.f32 %v4965_v32, %v4963_v5  ;;  %v3165_v39 = vadd.f32 %v4967_v8, %v4966_v19  ;;  %v4969_v0 = vunpack.c.l.bf16 %v4968_v14  ;;  %v4970_v36 = vunpack.c.h.bf16 %v4968_v14  ;;  %v4973_v5 = vld [vmem:[#allocation21_spill] sm:$0xff] }
  0x59   :  { %v4974_v32 = vunpack.c.l.bf16 %v4973_v5  ;;  %v4977_v19 = vunpack.c.h.bf16 %v4973_v5  ;;  %v4988_v5 = vrot.slane %v2631_v46, %v2528_v9 }
  0x5a   :  { %v3170_v34 = vadd.f32 %v4969_v0, %v2835_v61  ;;  %v3175_v21 = vadd.f32 %v4970_v36, %v2838_v47  ;;  %v4979_v61 = vld [vmem:[#allocation22_spill] sm:$0xff]  ;;  %v4984_v36 = vrot.slane %v2620_v13, %v2528_v9 }
  0x5b   :  { %v3182_v45 = vadd.f32 %v4974_v32, %v4972_v31  ;;  %v3189_v8 = vadd.f32 %v4977_v19, %v4976_v10  ;;  %v4980_v0 = vunpack.c.l.bf16 %v4979_v61  ;;  %v4982_v47 = vunpack.c.h.bf16 %v4979_v61  ;;  %v4985_v31 = vld [vmem:[#allocation23_spill] sm:$0xff] }
  0x5c   :  { %4971 = vst [vmem:[#allocation6_spill] sm:$0xff] %v3175_v21  ;;  %v4986_v32 = vunpack.c.l.bf16 %v4985_v31  ;;  %v4989_v10 = vunpack.c.h.bf16 %v4985_v31  ;;  %v5000_v31 = vrot.slane %v2641_v44, %v2528_v9 }
  0x5d   :  { %4975 = vst [vmem:[#allocation35_spill] sm:$0xff] %v3182_v45  ;;  %4978 = vst [vmem:[#allocation7_spill] sm:$0xff] %v3189_v8  ;;  %v3194_v14 = vadd.f32 %v4980_v0, %v2845_v58  ;;  %v3199_v59 = vadd.f32 %v4982_v47, %v2848_v11  ;;  %v4991_v58 = vld [vmem:[#allocation24_spill] sm:$0xff]  ;;  %v4996_v47 = vrot.slane %v2623_v50, %v2528_v9 }
  0x5e   :  { %v3206_v15 = vadd.f32 %v4986_v32, %v4984_v36  ;;  %v3213_v19 = vadd.f32 %v4989_v10, %v4988_v5  ;;  %v4992_v0 = vunpack.c.l.bf16 %v4991_v58  ;;  %v4994_v11 = vunpack.c.h.bf16 %v4991_v58  ;;  %v4997_v36 = vld [vmem:[#allocation25_spill] sm:$0xff] }
  0x5f   :  { %4981 = vst [vmem:[#allocation36_spill] sm:$0xff] %v3194_v14  ;;  %4983 = vst [vmem:[#allocation8_spill] sm:$0xff] %v3199_v59  ;;  %v4998_v32 = vunpack.c.l.bf16 %v4997_v36  ;;  %v5001_v5 = vunpack.c.h.bf16 %v4997_v36  ;;  %v5015_v36 = vld [vmem:[#allocation30_spill] sm:$0xff] }
  0x60   :  { %4987 = vst [vmem:[#allocation37_spill] sm:$0xff] %v3206_v15  ;;  %4990 = vst [vmem:[#allocation9_spill] sm:$0xff] %v3213_v19  ;;  %v3218_v61 = vadd.f32 %v4992_v0, %v2855_v57  ;;  %v3223_v13 = vadd.f32 %v4994_v11, %v2858_v60  ;;  %v5003_v57 = vld [vmem:[#allocation41_spill] sm:$0xff]  ;;  %v5004_v0 = vld [vmem:[#allocation26_spill] sm:$0xff] }
  0x61   :  { %v3230_v46 = vadd.f32 %v4998_v32, %v4996_v47  ;;  %v3237_v10 = vadd.f32 %v5001_v5, %v5000_v31  ;;  %v5007_v60 = vld [vmem:[#allocation42_spill] sm:$0xff]  ;;  %v5008_v11 = vunpack.c.h.bf16 %v5004_v0  ;;  %v5012_v32 = vld [vmem:[#allocation27_spill] sm:$0xff]  ;;  %v5016_v31 = vrot.slane %v5015_v36, %v2528_v9 }
  0x62   :  { %4993 = vst [vmem:[#allocation38_spill] sm:$0xff] %v3218_v61  ;;  %4995 = vst [vmem:[#allocation10_spill] sm:$0xff] %v3223_v13  ;;  %v5005_v61 = vunpack.c.l.bf16 %v5004_v0  ;;  %v5010_v13 = vld [vmem:[#allocation29_spill] sm:$0xff]  ;;  %v5017_v5 = vunpack.c.h.bf16 %v5012_v32  ;;  %v1004_v0 = vmul.f32 0.2, %v2901_v52 }
  0x63   :  { %4999 = vst [vmem:[#allocation39_spill] sm:$0xff] %v3230_v46  ;;  %5002 = vst [vmem:[#allocation11_spill] sm:$0xff] %v3237_v10  ;;  %v3247_v50 = vadd.f32 %v5008_v11, %v5007_v60  ;;  %v5011_v47 = vrot.slane %v5010_v13, %v2528_v9  ;;  %v5013_v46 = vunpack.c.l.bf16 %v5012_v32  ;;  %v5019_v9 = vld [vmem:[#allocation43_spill] sm:$0xff]  ;;  %v1005_v60 = vmul.f32 0.2, %v2906_v56 }
  0x64   :  { %v3242_v58 = vadd.f32 %v5005_v61, %v5003_v57  ;;  %v3261_v10 = vadd.f32 %v5017_v5, %v5016_v31  ;;  %v5020_v61 = vld [vmem:[#allocation28_spill] sm:$0xff]  ;;  %v1003_v57 = vmul.f32 0.2, %v2894_v62  ;;  %v1006_v32 = vmul.f32 0.2, %v2911_v20 }
  0x65   :  { %5009 = vst [vmem:[#allocation12_spill] sm:$0xff] %v3247_v50  ;;  %v3254_v44 = vadd.f32 %v5013_v46, %v5011_v47  ;;  %v5021_v13 = vunpack.c.l.bf16 %v5020_v61  ;;  %v5023_v11 = vunpack.c.h.bf16 %v5020_v61  ;;  %v1007_v36 = vmul.f32 0.2, %v2918_v43  ;;  %v5026_v61 = vld [vmem:[#allocation2_spill] sm:$0xff] }
  0x66   :  { %5006 = vst [vmem:[#allocation40_spill] sm:$0xff] %v3242_v58  ;;  %5018 = vst [vmem:[#allocation14_spill] sm:$0xff] %v3261_v10  ;;  %v1008_v31 = vmul.f32 0.2, %v2925_v48  ;;  %v1009_v5 = vmul.f32 0.2, %v2930_v1  ;;  %v3308_v10 = vsel %vm940_vm1, %v2901_v52, %v1004_v0  ;;  %v3323_v50 = vsel %vm941_vm2, %v2906_v56, %v1005_v60 }
  0x67   :  { %5014 = vst [vmem:[#allocation13_spill] sm:$0xff] %v3254_v44  ;;  %v3275_v46 = vadd.f32 %v5021_v13, %v5019_v9  ;;  %v3284_v47 = vadd.f32 %v5023_v11, %v2887_v17  ;;  %v1010_v9 = vmul.f32 0.2, %v2935_v41  ;;  %v1011_v13 = vmul.f32 0.2, %v2942_v28  ;;  %5027 = vst [vmem:[#allocation18_spill] sm:$0xff] %v3308_v10 }
  0x68   :  { %v3297_v17 = vsel %vm939_vm0, %v2894_v62, %v1003_v57  ;;  %vm951_vm12 = vcmp.gt.f32.partialorder %v5026_v61, 0.0  ;;  %v1012_v11 = vmul.f32 0.2, %v2949_v37  ;;  %v3312_v44 = vmul.f32 0.2, %v5026_v61  ;;  %v5028_v57 = vld [vmem:[#allocation31_spill] sm:$0xff] }
  0x69   :  { %5022 = vst [vmem:[#allocation15_spill] sm:$0xff] %v3275_v46  ;;  %5024 = vst [vmem:[#allocation16_spill] sm:$0xff] %v3284_v47  ;;  %v1013_v47 = vmul.f32 0.2, %v2954_v3  ;;  %v3303_v46 = vmul.f32 0.2, %v2959_v40  ;;  %v3338_v19 = vsel %vm942_vm3, %v2911_v20, %v1006_v32 }
  0x6a   :  { %5025 = vst [vmem:[#allocation17_spill] sm:$0xff] %v3297_v17  ;;  %v3315_v62 = vmul.f32 0.2, %v2973_v2  ;;  %v3318_v17 = vmul.f32 0.2, %v5028_v57  ;;  %5029 = vst [vmem:[#allocation19_spill] sm:$0xff] %v3323_v50 }
  0x6b   :  { %vm953_vm14 = vcmp.gt.f32.partialorder %v5028_v57, 0.0  ;;  %v3327_v52 = vmul.f32 0.2, %v2983_v35  ;;  %v5031_v0 = vld [vmem:[#allocation3_spill] sm:$0xff]  ;;  %v3333_v58 = vmul.f32 0.2, %v2997_v53 }
  0x6c   :  { %v3330_v10 = vmul.f32 0.2, %v5031_v0  ;;  %5033 = vst [vmem:[#allocation22_spill] sm:$0xff] %v3338_v19  ;;  %v5034_v56 = vld [vmem:[#allocation32_spill] sm:$0xff]  ;;  %v3345_v50 = vmul.f32 0.2, %v3007_v29 }
  0x6d   :  { %5030 = vst [vmem:[#allocation20_spill] sm:$0xff] %v3327_v52  ;;  %5032 = vst [vmem:[#allocation21_spill] sm:$0xff] %v3333_v58  ;;  %v3342_v60 = vmul.f32 0.2, %v5034_v56  ;;  %v5037_v52 = vld [vmem:[#allocation4_spill] sm:$0xff]  ;;  %v3353_v58 = vsel %vm943_vm4, %v2918_v43, %v1007_v36  ;;  %vm955_vm0 = vcmp.gt.f32.partialorder %v5031_v0, 0.0 }
  0x6e   :  { %5036 = vst [vmem:[#allocation24_spill] sm:$0xff] %v3345_v50  ;;  %v3348_v15 = vmul.f32 0.2, %v5037_v52  ;;  %5039 = vst [vmem:[#allocation41_spill] sm:$0xff] %v3353_v58  ;;  %v3357_v20 = vmul.f32 0.2, %v3021_v4 }
  0x6f   :  { %5035 = vst [vmem:[#allocation23_spill] sm:$0xff] %v3342_v60  ;;  %v5041_v32 = vld [vmem:[#allocation33_spill] sm:$0xff]  ;;  %v3363_v60 = vmul.f32 0.2, %v3031_v54  ;;  %vm956_vm1 = vcmp.gt.f32.partialorder %v2997_v53, 0.0  ;;  %vm957_vm2 = vcmp.gt.f32.partialorder %v5034_v56, 0.0 }
  0x70   :  { %5038 = vst [vmem:[#allocation25_spill] sm:$0xff] %v3348_v15  ;;  %5040 = vst [vmem:[#allocation26_spill] sm:$0xff] %v3357_v20  ;;  %v3360_v19 = vmul.f32 0.2, %v5041_v32  ;;  %v3368_v15 = vsel %vm944_vm5, %v2925_v48, %v1008_v31  ;;  %v5044_v43 = vld [vmem:[#allocation5_spill] sm:$0xff]  ;;  %v5045_v20 = vld [vmem:[#allocation34_spill] sm:$0xff] }
  0x71   :  { %5042 = vst [vmem:[#allocation42_spill] sm:$0xff] %v3363_v60  ;;  %5043 = vst [vmem:[#allocation29_spill] sm:$0xff] %v3368_v15  ;;  %v3372_v36 = vmul.f32 0.2, %v5044_v43  ;;  %v3375_v58 = vmul.f32 0.2, %v3045_v42  ;;  %v3383_v60 = vsel %vm945_vm6, %v2930_v1, %v1009_v5 }
  0x72   :  { %v3378_v50 = vmul.f32 0.2, %v5045_v20  ;;  %5047 = vst [vmem:[#allocation30_spill] sm:$0xff] %v3383_v60  ;;  %v3387_v48 = vmul.f32 0.2, %v3055_v23  ;;  %vm958_vm3 = vcmp.gt.f32.partialorder %v3007_v29, 0.0 }
  0x73   :  { %v3390_v31 = vmul.f32 0.2, %v3062_v63  ;;  %v3393_v15 = vmul.f32 0.2, %v3069_v6  ;;  %v3404_v1 = vmul.f32 0.2, %v3074_v24 }
  0x74   :  { %5046 = vst [vmem:[#allocation27_spill] sm:$0xff] %v3378_v50  ;;  %v3398_v50 = vsel %vm946_vm7, %v2935_v41, %v1010_v9  ;;  %v3407_v5 = vmul.f32 0.2, %v3079_v22  ;;  %v3410_v60 = vmul.f32 0.2, %v3086_v27  ;;  %v3415_v41 = vsel %vm947_vm8, %v2942_v28, %v1011_v13 }
  0x75   :  { %5048 = vst [vmem:[#allocation43_spill] sm:$0xff] %v3398_v50  ;;  %5050 = vst [vmem:[#allocation2_spill] sm:$0xff] %v3415_v41  ;;  %vm961_vm6 = vcmp.gt.f32.partialorder %v5041_v32, 0.0  ;;  %v3422_v9 = vmul.f32 0.2, %v3093_v30  ;;  %v3433_v28 = vsel %vm948_vm9, %v2949_v37, %v1012_v11  ;;  %vm965_vm8 = vcmp.gt.f32.partialorder %v5045_v20, 0.0 }
  0x76   :  { %5049 = vst [vmem:[#allocation28_spill] sm:$0xff] %v3410_v60  ;;  %v3425_v50 = vmul.f32 0.2, %v3098_v49  ;;  %v3428_v60 = vmul.f32 0.2, %v3103_v26  ;;  %5052 = vst [vmem:[#allocation3_spill] sm:$0xff] %v3433_v28  ;;  %v3451_v37 = vsel %vm949_vm10, %v2954_v3, %v1013_v47  ;;  %v3470_v3 = vsel %vm950_vm11, %v2959_v40, %v3303_v46 }
  0x77   :  { %v3440_v13 = vmul.f32 0.2, %v3110_v55  ;;  %v3443_v41 = vmul.f32 0.2, %v3117_v38  ;;  %5054 = vst [vmem:[#allocation4_spill] sm:$0xff] %v3451_v37  ;;  %vm969_vm9 = vcmp.gt.f32.partialorder %v3074_v24, 0.0  ;;  %v3489_v40 = vsel %vm951_vm12, %v5026_v61, %v3312_v44 }
  0x78   :  { %5051 = vst [vmem:[#allocation31_spill] sm:$0xff] %v3428_v60  ;;  %v3446_v60 = vmul.f32 0.2, %v3122_v18  ;;  %v3458_v11 = vmul.f32 0.2, %v3127_v12  ;;  %5056 = vst [vmem:[#allocation5_spill] sm:$0xff] %v3470_v3  ;;  %v3508_v44 = vsel %vm952_vm13, %v2973_v2, %v3315_v62  ;;  %v3527_v2 = vsel %vm953_vm14, %v5028_v57, %v3318_v17 }
  0x79   :  { %v3461_v28 = vmul.f32 0.2, %v3134_v16  ;;  %vm973_vm10 = vcmp.gt.f32.partialorder %v3098_v49, 0.0  ;;  %v3477_v47 = vmul.f32 0.2, %v3146_v25  ;;  %5058 = vst [vmem:[#allocation44_spill] sm:$0xff] %v3489_v40 }
  0x7a   :  { %5053 = vst [vmem:[#allocation32_spill] sm:$0xff] %v3446_v60  ;;  %v3464_v60 = vmul.f32 0.2, %v3141_v51  ;;  %v3480_v37 = vmul.f32 0.2, %v3151_v33  ;;  %vm977_vm11 = vcmp.gt.f32.partialorder %v3122_v18, 0.0 }
  0x7b   :  { %v3496_v46 = vmul.f32 0.2, %v3165_v39  ;;  %v3499_v3 = vmul.f32 0.2, %v3170_v34  ;;  %5061 = vst [vmem:[#allocation47_spill] sm:$0xff] %v3508_v44  ;;  %vm981_vm12 = vcmp.gt.f32.partialorder %v3146_v25, 0.0 }
  0x7c   :  { %5055 = vst [vmem:[#allocation33_spill] sm:$0xff] %v3464_v60  ;;  %v3483_v60 = vmul.f32 0.2, %v3158_v7  ;;  %v3515_v61 = vmul.f32 0.2, %v3182_v45  ;;  %5065 = vst [vmem:[#allocation51_spill] sm:$0xff] %v3527_v2 }
  0x7d   :  { %5059 = vst [vmem:[#allocation45_spill] sm:$0xff] %v3499_v3  ;;  %v3518_v40 = vmul.f32 0.2, %v3189_v8  ;;  %vm985_vm13 = vcmp.gt.f32.partialorder %v3170_v34, 0.0  ;;  %v3534_v62 = vmul.f32 0.2, %v3199_v59 }
  0x7e   :  { %5057 = vst [vmem:[#allocation34_spill] sm:$0xff] %v3483_v60  ;;  %v3502_v60 = vmul.f32 0.2, %v3175_v21  ;;  %5062 = vst [vmem:[#allocation48_spill] sm:$0xff] %v3515_v61  ;;  %v5067_v44 = vld [vmem:[#allocation37_spill] sm:$0xff]  ;;  %v5071_v3 = vld [vmem:[#allocation20_spill] sm:$0xff] }
  0x7f   :  { %5063 = vst [vmem:[#allocation49_spill] sm:$0xff] %v3518_v40  ;;  %5066 = vst [vmem:[#allocation52_spill] sm:$0xff] %v3534_v62  ;;  %v3537_v40 = vmul.f32 0.2, %v5067_v44  ;;  %v3546_v17 = vsel %vm954_vm15, %v2983_v35, %v5071_v3  ;;  %vm989_vm14 = vcmp.gt.f32.partialorder %v3194_v14, 0.0  ;;  %v5073_v57 = vld [vmem:[#allocation38_spill] sm:$0xff]  ;;  %v3559_v35 = vsel %vm955_vm0, %v5031_v0, %v3330_v10 }
  0x80   :  { %5060 = vst [vmem:[#allocation46_spill] sm:$0xff] %v3502_v60  ;;  %v3521_v60 = vmul.f32 0.2, %v3194_v14  ;;  %5072 = vst [vmem:[#allocation20_spill] sm:$0xff] %v3546_v17  ;;  %v1057_v2 = vmul.f32 0.2, %v5073_v57 }
  0x81   :  { %5068 = vst [vmem:[#allocation53_spill] sm:$0xff] %v3537_v40  ;;  %v5074_v40 = vld [vmem:[#allocation10_spill] sm:$0xff]  ;;  %v5075_v8 = vld [vmem:[#allocation39_spill] sm:$0xff]  ;;  %5076 = vst [vmem:[#allocation55_spill] sm:$0xff] %v3559_v35  ;;  %vm993_vm15 = vcmp.gt.f32.partialorder %v5073_v57, 0.0  ;;  %vm5090_vm7 = vcmp.gt.f32.partialorder %v5037_v52, 0.0 }
  0x82   :  { %5064 = vst [vmem:[#allocation50_spill] sm:$0xff] %v3521_v60  ;;  %v5069_v60 = vld [vmem:[#allocation9_spill] sm:$0xff]  ;;  %v1058_v62 = vmul.f32 0.2, %v5074_v40  ;;  %v5077_v3 = vld [vmem:[#allocation11_spill] sm:$0xff]  ;;  %v5079_v59 = vld [vmem:[#allocation12_spill] sm:$0xff] }
  0x83   :  { %v3540_v61 = vmul.f32 0.2, %v5069_v60  ;;  %v1060_v17 = vmul.f32 0.2, %v5077_v3  ;;  %v5078_v60 = vld [vmem:[#allocation40_spill] sm:$0xff]  ;;  %v5080_v45 = vld [vmem:[#allocation21_spill] sm:$0xff] }
  0x84   :  { %v1061_v44 = vmul.f32 0.2, %v5078_v60  ;;  %v1062_v14 = vmul.f32 0.2, %v5079_v59  ;;  %v3572_v10 = vsel %vm956_vm1, %v2997_v53, %v5080_v45  ;;  %vm997_vm0 = vcmp.gt.f32.partialorder %v5078_v60, 0.0  ;;  %v5082_v0 = vld [vmem:[#allocation13_spill] sm:$0xff] }
  0x85   :  { %5070 = vst [vmem:[#allocation54_spill] sm:$0xff] %v3540_v61  ;;  %v1059_v61 = vmul.f32 0.2, %v5075_v8  ;;  %5081 = vst [vmem:[#allocation21_spill] sm:$0xff] %v3572_v10  ;;  %vm999_vm4 = vcmp.gt.f32.partialorder %v5082_v0, 0.0  ;;  %v5083_v35 = vld [vmem:[#allocation14_spill] sm:$0xff] }
  0x86   :  { %v1063_v3 = vmul.f32 0.2, %v5082_v0  ;;  %v1064_v8 = vmul.f32 0.2, %v5083_v35  ;;  %v5084_v40 = vld [vmem:[#allocation15_spill] sm:$0xff]  ;;  %v5087_v45 = vld [vmem:[#allocation16_spill] sm:$0xff] }
  0x87   :  { %v1065_v57 = vmul.f32 0.2, %v5084_v40  ;;  %v5085_v21 = vld [vmem:[#allocation23_spill] sm:$0xff]  ;;  %vm1001_vm1 = vcmp.gt.f32.partialorder %v5084_v40, 0.0  ;;  %vm1002_vm5 = vcmp.gt.f32.partialorder %v5087_v45, 0.0  ;;  %v5088_v59 = vld [vmem:[#allocation24_spill] sm:$0xff] }
  0x88   :  { %v3585_v53 = vsel %vm957_vm2, %v5034_v56, %v5085_v21  ;;  %v1066_v10 = vmul.f32 0.2, %v5087_v45  ;;  %v3594_v0 = vsel %vm958_vm3, %v3007_v29, %v5088_v59  ;;  %v5089_v35 = vld [vmem:[#allocation25_spill] sm:$0xff]  ;;  %v5091_v21 = vld [vmem:[#allocation26_spill] sm:$0xff]  ;;  %vm5092_vm2 = vcmp.gt.f32.partialorder %v3021_v4, 0.0 }
  0x89   :  { %5086 = vst [vmem:[#allocation15_spill] sm:$0xff] %v3585_v53  ;;  %v3600_v60 = vsel %vm5090_vm7, %v5037_v52, %v5089_v35  ;;  %v3606_v56 = vsel %vm5092_vm2, %v3021_v4, %v5091_v21  ;;  %v3612_v53 = vsel %vm961_vm6, %v5041_v32, %v3360_v19  ;;  %v5093_v29 = vld [vmem:[#allocation42_spill] sm:$0xff]  ;;  %vm5094_vm3 = vcmp.gt.f32.partialorder %v3031_v54, 0.0  ;;  %v5097_v19 = vld [vmem:[#allocation27_spill] sm:$0xff]  ;;  %v5134_v21 = vld [vmem:[#allocation53_spill] sm:$0xff] }
  0x8a   :  { %v3618_v59 = vsel %vm5094_vm3, %v3031_v54, %v5093_v29  ;;  %vm5095_vm7 = vcmp.gt.f32.partialorder %v5044_v43, 0.0  ;;  %vm5096_vm2 = vcmp.gt.f32.partialorder %v3045_v42, 0.0  ;;  %v3636_v32 = vsel %vm965_vm8, %v5045_v20, %v5097_v19  ;;  %v5135_v29 = vld [vmem:[#allocation37_spill] sm:$0xff] }
  0x8b   :  { %v3624_v52 = vsel %vm5095_vm7, %v5044_v43, %v3372_v36  ;;  %v3630_v4 = vsel %vm5096_vm2, %v3045_v42, %v3375_v58  ;;  %vm5098_vm6 = vcmp.gt.f32.partialorder %v3055_v23, 0.0  ;;  %vm5099_vm3 = vcmp.gt.f32.partialorder %v3062_v63, 0.0 }
  0x8c   :  { %v3642_v54 = vsel %vm5098_vm6, %v3055_v23, %v3387_v48  ;;  %v3648_v43 = vsel %vm5099_vm3, %v3062_v63, %v3390_v31  ;;  %vm5100_vm7 = vcmp.gt.f32.partialorder %v3069_v6, 0.0  ;;  %v3660_v58 = vsel %vm969_vm9, %v3074_v24, %v3404_v1  ;;  %v5102_v63 = vld [vmem:[#allocation28_spill] sm:$0xff]  ;;  %v5120_v1 = vld [vmem:[#allocation6_spill] sm:$0xff] }
  0x8d   :  { %v3654_v42 = vsel %vm5100_vm7, %v3069_v6, %v3393_v15  ;;  %vm5101_vm8 = vcmp.gt.f32.partialorder %v3079_v22, 0.0  ;;  %vm5103_vm2 = vcmp.gt.f32.partialorder %v3086_v27, 0.0  ;;  %vm5104_vm6 = vcmp.gt.f32.partialorder %v3093_v30, 0.0 }
  0x8e   :  { %v3666_v23 = vsel %vm5101_vm8, %v3079_v22, %v3407_v5  ;;  %v3672_v20 = vsel %vm5103_vm2, %v3086_v27, %v5102_v63  ;;  %v3678_v6 = vsel %vm5104_vm6, %v3093_v30, %v3422_v9  ;;  %v3684_v24 = vsel %vm973_vm10, %v3098_v49, %v3425_v50  ;;  %v5105_v22 = vld [vmem:[#allocation31_spill] sm:$0xff]  ;;  %v5109_v49 = vld [vmem:[#allocation32_spill] sm:$0xff]  ;;  %v5138_v63 = vld [vmem:[#allocation54_spill] sm:$0xff] }
  0x8f   :  { %vm5106_vm9 = vcmp.gt.f32.partialorder %v3103_v26, 0.0  ;;  %vm5107_vm3 = vcmp.gt.f32.partialorder %v3110_v55, 0.0  ;;  %vm5108_vm7 = vcmp.gt.f32.partialorder %v3117_v38, 0.0  ;;  %v3708_v50 = vsel %vm977_vm11, %v3122_v18, %v5109_v49 }
  0x90   :  { %v3690_v15 = vsel %vm5106_vm9, %v3103_v26, %v5105_v22  ;;  %v3696_v27 = vsel %vm5107_vm3, %v3110_v55, %v3440_v13  ;;  %v3702_v30 = vsel %vm5108_vm7, %v3117_v38, %v3443_v41  ;;  %vm5110_vm10 = vcmp.gt.f32.partialorder %v3127_v12, 0.0  ;;  %v5112_v38 = vld [vmem:[#allocation33_spill] sm:$0xff]  ;;  %v5123_v41 = vld [vmem:[#allocation35_spill] sm:$0xff] }
  0x91   :  { %v3714_v26 = vsel %vm5110_vm10, %v3127_v12, %v3458_v11  ;;  %vm5111_vm8 = vcmp.gt.f32.partialorder %v3134_v16, 0.0  ;;  %vm5113_vm2 = vcmp.gt.f32.partialorder %v3141_v51, 0.0  ;;  %v3732_v18 = vsel %vm981_vm12, %v3146_v25, %v3477_v47  ;;  %v5118_v25 = vld [vmem:[#allocation45_spill] sm:$0xff]  ;;  %v5130_v47 = vld [vmem:[#allocation52_spill] sm:$0xff] }
  0x92   :  { %v3720_v55 = vsel %vm5111_vm8, %v3134_v16, %v3461_v28  ;;  %v3726_v36 = vsel %vm5113_vm2, %v3141_v51, %v5112_v38  ;;  %vm5114_vm11 = vcmp.gt.f32.partialorder %v3151_v33, 0.0  ;;  %v5115_v16 = vld [vmem:[#allocation34_spill] sm:$0xff]  ;;  %vm5116_vm6 = vcmp.gt.f32.partialorder %v3158_v7, 0.0  ;;  %v5126_v28 = vld [vmem:[#allocation7_spill] sm:$0xff]  ;;  %v5139_v22 = vld [vmem:[#allocation9_spill] sm:$0xff] }
  0x93   :  { %v3738_v12 = vsel %vm5114_vm11, %v3151_v33, %v3480_v37  ;;  %v3744_v48 = vsel %vm5116_vm6, %v3158_v7, %v5115_v16  ;;  %vm5117_vm9 = vcmp.gt.f32.partialorder %v3165_v39, 0.0  ;;  %v3756_v31 = vsel %vm985_vm13, %v3170_v34, %v5118_v25  ;;  %v5119_v33 = vld [vmem:[#allocation46_spill] sm:$0xff]  ;;  %v5122_v7 = vld [vmem:[#allocation48_spill] sm:$0xff] }
  0x94   :  { %v3750_v51 = vsel %vm5117_vm9, %v3165_v39, %v3496_v46  ;;  %vm5121_vm12 = vcmp.gt.f32.partialorder %v5120_v1, 0.0  ;;  %vm5124_vm3 = vcmp.gt.f32.partialorder %v5123_v41, 0.0  ;;  %v5125_v39 = vld [vmem:[#allocation49_spill] sm:$0xff]  ;;  %vm5127_vm7 = vcmp.gt.f32.partialorder %v5126_v28, 0.0  ;;  %v5128_v34 = vld [vmem:[#allocation50_spill] sm:$0xff]  ;;  %v5129_v37 = vld [vmem:[#allocation36_spill] sm:$0xff] }
  0x95   :  { %v3762_v5 = vsel %vm5121_vm12, %v5120_v1, %v5119_v33  ;;  %v3768_v9 = vsel %vm5124_vm3, %v5123_v41, %v5122_v7  ;;  %v3774_v13 = vsel %vm5127_vm7, %v5126_v28, %v5125_v39  ;;  %v3780_v11 = vsel %vm989_vm14, %v5129_v37, %v5128_v34  ;;  %v5131_v46 = vld [vmem:[#allocation8_spill] sm:$0xff]  ;;  %v5142_v38 = vld [vmem:[#allocation38_spill] sm:$0xff]  ;;  %v5147_v1 = vld [vmem:[#allocation39_spill] sm:$0xff] }
  0x96   :  { %vm5132_vm13 = vcmp.gt.f32.partialorder %v5131_v46, 0.0  ;;  %vm5136_vm10 = vcmp.gt.f32.partialorder %v5135_v29, 0.0  ;;  %vm5140_vm8 = vcmp.gt.f32.partialorder %v5139_v22, 0.0  ;;  %v3803_v16 = vsel %vm993_vm15, %v5142_v38, %v1057_v2  ;;  %v5144_v25 = vld [vmem:[#allocation10_spill] sm:$0xff]  ;;  %v5150_v41 = vld [vmem:[#allocation11_spill] sm:$0xff]  ;;  %v5153_v28 = vld [vmem:[#allocation40_spill] sm:$0xff] }
  0x97   :  { %v3786_v35 = vsel %vm5132_vm13, %v5131_v46, %v5130_v47  ;;  %v3792_v19 = vsel %vm5136_vm10, %v5135_v29, %v5134_v21  ;;  %v3798_v49 = vsel %vm5140_vm8, %v5139_v22, %v5138_v63  ;;  %5143 = vst [vmem:[#allocation25_spill] sm:$0xff] %v3803_v16  ;;  %vm5145_vm14 = vcmp.gt.f32.partialorder %v5144_v25, 0.0  ;;  %v5155_v34 = vld [vmem:[#allocation12_spill] sm:$0xff]  ;;  %v5158_v37 = vld [vmem:[#allocation13_spill] sm:$0xff]  ;;  %v5160_v47 = vld [vmem:[#allocation14_spill] sm:$0xff] }
  0x98   :  { %5133 = vst [vmem:[#allocation23_spill] sm:$0xff] %v3786_v35  ;;  %5137 = vst [vmem:[#allocation16_spill] sm:$0xff] %v3792_v19  ;;  %v3808_v33 = vsel %vm5145_vm14, %v5144_v25, %v1058_v62  ;;  %vm5148_vm2 = vcmp.gt.f32.partialorder %v5147_v1, 0.0  ;;  %vm5151_vm11 = vcmp.gt.f32.partialorder %v5150_v41, 0.0  ;;  %v3823_v2 = vsel %vm997_vm0, %v5153_v28, %v1061_v44  ;;  %v5165_v46 = vld [vmem:[#allocation17_spill] sm:$0xff]  ;;  %v5166_v29 = vld [vmem:[#allocation18_spill] sm:$0xff] }
  0x99   :  { %5141 = vst [vmem:[#allocation24_spill] sm:$0xff] %v3798_v49  ;;  %5146 = vst [vmem:[#allocation26_spill] sm:$0xff] %v3808_v33  ;;  %v3813_v7 = vsel %vm5148_vm2, %v5147_v1, %v1059_v61  ;;  %v3818_v39 = vsel %vm5151_vm11, %v5150_v41, %v1060_v17  ;;  %vm5156_vm15 = vcmp.gt.f32.partialorder %v5155_v34, 0.0  ;;  %v3833_v61 = vsel %vm999_vm4, %v5158_v37, %v1063_v3  ;;  %v5167_v63 = vld [vmem:[#allocation19_spill] sm:$0xff]  ;;  %v5168_v38 = vld [vmem:[#allocation22_spill] sm:$0xff] }
  0x9a   :  { %5149 = vst [vmem:[#allocation42_spill] sm:$0xff] %v3813_v7  ;;  %5152 = vst [vmem:[#allocation27_spill] sm:$0xff] %v3818_v39  ;;  %v3828_v62 = vsel %vm5156_vm15, %v5155_v34, %v1062_v14  ;;  %vm5161_vm6 = vcmp.gt.f32.partialorder %v5160_v47, 0.0  ;;  %v3843_v44 = vsel %vm1001_vm1, %v5084_v40, %v1065_v57  ;;  %v3848_v14 = vsel %vm1002_vm5, %v5087_v45, %v1066_v10  ;;  %v5170_v41 = vld [vmem:[#allocation29_spill] sm:$0xff]  ;;  %v5171_v34 = vld [vmem:[#allocation30_spill] sm:$0xff] }
  0x9b   :  { %5154 = vst [vmem:[#allocation28_spill] sm:$0xff] %v3823_v2  ;;  %5157 = vst [vmem:[#allocation31_spill] sm:$0xff] %v3828_v62  ;;  %v3838_v17 = vsel %vm5161_vm6, %v5160_v47, %v1064_v8  ;;  %v1131_v21 = vrot.slane %v5165_v46, 4  ;;  %v1137_v3 = vrot.slane %v5166_v29, 4  ;;  %v1143_v22 = vrot.slane %v5167_v63, 4  ;;  %v5169_v8 = vld [vmem:[#allocation41_spill] sm:$0xff] }
  0x9c   :  { %5159 = vst [vmem:[#allocation32_spill] sm:$0xff] %v3833_v61  ;;  %5162 = vst [vmem:[#allocation33_spill] sm:$0xff] %v3838_v17  ;;  %v1149_v25 = vrot.slane %v5168_v38, 4  ;;  %v1155_v1 = vrot.slane %v5169_v8, 4  ;;  %v1161_v28 = vrot.slane %v5170_v41, 4  ;;  %v1167_v37 = vrot.slane %v5171_v34, 4 }
  0x9d   :  { %5163 = vst [vmem:[#allocation34_spill] sm:$0xff] %v3843_v44  ;;  %5164 = vst [vmem:[#allocation45_spill] sm:$0xff] %v3848_v14  ;;  %v1132_v40 = vmax.f32 %v5165_v46, %v1131_v21  ;;  %v1138_v57 = vmax.f32 %v5166_v29, %v1137_v3  ;;  %v5172_v10 = vld [vmem:[#allocation43_spill] sm:$0xff]  ;;  %v1144_v47 = vmax.f32 %v5167_v63, %v1143_v22  ;;  %vm1835_vm4 = vcmask 1041409  }
  0x9e   :  { %v1173_v45 = vrot.slane %v5172_v10, 4  ;;  %v1150_v14 = vmax.f32 %v5168_v38, %v1149_v25  ;;  %v1156_v44 = vmax.f32 %v5169_v8, %v1155_v1  ;;  %v1162_v17 = vmax.f32 %v5170_v41, %v1161_v28 }
  0x9f   :  { %v1133_v61 = vrot.slane %v1132_v40, 2  ;;  %v1139_v62 = vrot.slane %v1138_v57, 2  ;;  %v1168_v2 = vmax.f32 %v5171_v34, %v1167_v37  ;;  %v1145_v21 = vrot.slane %v1144_v47, 2 }
  0xa0   :  { %v1174_v46 = vmax.f32 %v5172_v10, %v1173_v45  ;;  %v1151_v29 = vrot.slane %v1150_v14, 2  ;;  %v1157_v3 = vrot.slane %v1156_v44, 2  ;;  %v1163_v39 = vrot.slane %v1162_v17, 2 }
  0xa1   :  { %v1134_v7 = vmax.f32 %v1132_v40, %v1133_v61  ;;  %v1140_v33 = vmax.f32 %v1138_v57, %v1139_v62  ;;  %v1169_v16 = vrot.slane %v1168_v2, 2  ;;  %v1146_v22 = vmax.f32 %v1144_v47, %v1145_v21  ;;  %v5184_v21 = vld [vmem:[#allocation5_spill] sm:$0xff] }
  0xa2   :  { %v1175_v63 = vrot.slane %v1174_v46, 2  ;;  %v1152_v38 = vmax.f32 %v1150_v14, %v1151_v29  ;;  %v1158_v25 = vmax.f32 %v1156_v44, %v1157_v3  ;;  %v1164_v8 = vmax.f32 %v1162_v17, %v1163_v39  ;;  %v5181_v17 = vld [vmem:[#allocation2_spill] sm:$0xff] }
  0xa3   :  { %v1135_v1 = vrot.slane %v1134_v7, 1  ;;  %v1141_v41 = vrot.slane %v1140_v33, 1  ;;  %v1170_v28 = vmax.f32 %v1168_v2, %v1169_v16  ;;  %v1147_v19 = vrot.slane %v1146_v22, 1 }
  0xa4   :  { %v1176_v49 = vmax.f32 %v1174_v46, %v1175_v63  ;;  %v1153_v34 = vrot.slane %v1152_v38, 1  ;;  %v1159_v37 = vrot.slane %v1158_v25, 1  ;;  %v1165_v10 = vrot.slane %v1164_v8, 1  ;;  %v5186_v63 = vld [vmem:[#allocation47_spill] sm:$0xff] }
  0xa5   :  { %v3866_v45 = vmax.f32 %v1134_v7, %v1135_v1  ;;  %v3868_v35 = vmax.f32 %v1140_v33, %v1141_v41  ;;  %v1171_v61 = vrot.slane %v1170_v28, 1  ;;  %v3870_v40 = vmax.f32 %v1146_v22, %v1147_v19  ;;  %v5182_v7 = vld [vmem:[#allocation3_spill] sm:$0xff]  ;;  %v5183_v33 = vld [vmem:[#allocation4_spill] sm:$0xff] }
  0xa6   :  { %v1177_v62 = vrot.slane %v1176_v49, 1  ;;  %v3872_v57 = vmax.f32 %v1152_v38, %v1153_v34  ;;  %v3874_v44 = vmax.f32 %v1158_v25, %v1159_v37  ;;  %v3876_v39 = vmax.f32 %v1164_v8, %v1165_v10  ;;  %v5185_v19 = vld [vmem:[#allocation44_spill] sm:$0xff]  ;;  %v5187_v8 = vld [vmem:[#allocation51_spill] sm:$0xff] }
  0xa7   :  { %5173 = vst [vmem:[#allocation46_spill] sm:$0xff] %v3866_v45  ;;  %5174 = vst [vmem:[#allocation6_spill] sm:$0xff] %v3868_v35  ;;  %v3878_v16 = vmax.f32 %v1170_v28, %v1171_v61  ;;  %v1179_v14 = vrot.slane %v5181_v17, 4  ;;  %v1185_v47 = vrot.slane %v5182_v7, 4  ;;  %v1191_v46 = vrot.slane %v5183_v33, 4 }
  0xa8   :  { %5175 = vst [vmem:[#allocation48_spill] sm:$0xff] %v3870_v40  ;;  %5176 = vst [vmem:[#allocation35_spill] sm:$0xff] %v3872_v57  ;;  %v3880_v2 = vmax.f32 %v1176_v49, %v1177_v62  ;;  %v1197_v29 = vrot.slane %v5184_v21, 4  ;;  %v1203_v3 = vrot.slane %v5185_v19, 4  ;;  %v1209_v22 = vrot.slane %v5186_v63, 4  ;;  %v5188_v49 = vld [vmem:[#allocation20_spill] sm:$0xff] }
  0xa9   :  { %5177 = vst [vmem:[#allocation49_spill] sm:$0xff] %v3874_v44  ;;  %5178 = vst [vmem:[#allocation7_spill] sm:$0xff] %v3876_v39  ;;  %v1180_v38 = vmax.f32 %v5181_v17, %v1179_v14  ;;  %v1186_v25 = vmax.f32 %v5182_v7, %v1185_v47  ;;  %v1215_v1 = vrot.slane %v5187_v8, 4  ;;  %v1221_v41 = vrot.slane %v5188_v49, 4 }
  0xaa   :  { %5179 = vst [vmem:[#allocation50_spill] sm:$0xff] %v3878_v16  ;;  %5180 = vst [vmem:[#allocation36_spill] sm:$0xff] %v3880_v2  ;;  %v1192_v28 = vmax.f32 %v5183_v33, %v1191_v46  ;;  %v1198_v34 = vmax.f32 %v5184_v21, %v1197_v29  ;;  %v1204_v37 = vmax.f32 %v5185_v19, %v1203_v3  ;;  %vm1837_vm5 = vcmask 1042434  }
  0xab   :  { %v1210_v10 = vmax.f32 %v5186_v63, %v1209_v22  ;;  %v1181_v61 = vrot.slane %v1180_v38, 2  ;;  %v1187_v62 = vrot.slane %v1186_v25, 2  ;;  %v1216_v2 = vmax.f32 %v5187_v8, %v1215_v1 }
  0xac   :  { %v1222_v17 = vmax.f32 %v5188_v49, %v1221_v41  ;;  %v1193_v14 = vrot.slane %v1192_v28, 2  ;;  %v1199_v7 = vrot.slane %v1198_v34, 2  ;;  %v1205_v47 = vrot.slane %v1204_v37, 2 }
  0xad   :  { %v1211_v16 = vrot.slane %v1210_v10, 2  ;;  %v1182_v39 = vmax.f32 %v1180_v38, %v1181_v61  ;;  %v1188_v44 = vmax.f32 %v1186_v25, %v1187_v62  ;;  %v1217_v57 = vrot.slane %v1216_v2, 2 }
  0xae   :  { %v1223_v33 = vrot.slane %v1222_v17, 2  ;;  %v1194_v46 = vmax.f32 %v1192_v28, %v1193_v14  ;;  %v1200_v21 = vmax.f32 %v1198_v34, %v1199_v7  ;;  %v1206_v29 = vmax.f32 %v1204_v37, %v1205_v47  ;;  %v5192_v37 = vld [vmem:[#allocation55_spill] sm:$0xff] }
  0xaf   :  { %v1212_v19 = vmax.f32 %v1210_v10, %v1211_v16  ;;  %v1183_v3 = vrot.slane %v1182_v39, 1  ;;  %v1189_v63 = vrot.slane %v1188_v44, 1  ;;  %v1218_v22 = vmax.f32 %v1216_v2, %v1217_v57 }
  0xb0   :  { %v1224_v40 = vmax.f32 %v1222_v17, %v1223_v33  ;;  %v1195_v35 = vrot.slane %v1194_v46, 1  ;;  %v1201_v8 = vrot.slane %v1200_v21, 1  ;;  %v1207_v1 = vrot.slane %v1206_v29, 1 }
  0xb1   :  { %v1213_v49 = vrot.slane %v1212_v19, 1  ;;  %v3898_v41 = vmax.f32 %v1182_v39, %v1183_v3  ;;  %v3900_v45 = vmax.f32 %v1188_v44, %v1189_v63  ;;  %v1219_v38 = vrot.slane %v1218_v22, 1  ;;  %v5193_v39 = vld [vmem:[#allocation21_spill] sm:$0xff]  ;;  %v5194_v44 = vld [vmem:[#allocation15_spill] sm:$0xff] }
  0xb2   :  { %v1225_v25 = vrot.slane %v1224_v40, 1  ;;  %v3902_v61 = vmax.f32 %v1194_v46, %v1195_v35  ;;  %v3904_v28 = vmax.f32 %v1200_v21, %v1201_v8  ;;  %v3906_v34 = vmax.f32 %v1206_v29, %v1207_v1 }
  0xb3   :  { %v3908_v16 = vmax.f32 %v1212_v19, %v1213_v49  ;;  %v3910_v57 = vmax.f32 %v1218_v22, %v1219_v38  ;;  %v1227_v10 = vrot.slane %v5192_v37, 4  ;;  %v1233_v62 = vrot.slane %v5193_v39, 4 }
  0xb4   :  { %v3912_v2 = vmax.f32 %v1224_v40, %v1225_v25  ;;  %v1239_v17 = vrot.slane %v5194_v44, 4  ;;  %v1245_v14 = vrot.slane %v3594_v0, 4  ;;  %v1251_v35 = vrot.slane %v3600_v60, 4 }
  0xb5   :  { %5189 = vst [vmem:[#allocation52_spill] sm:$0xff] %v3908_v16  ;;  %5190 = vst [vmem:[#allocation8_spill] sm:$0xff] %v3910_v57  ;;  %v1257_v7 = vrot.slane %v3606_v56, 4  ;;  %v1228_v47 = vmax.f32 %v5192_v37, %v1227_v10  ;;  %v1234_v33 = vmax.f32 %v5193_v39, %v1233_v62  ;;  %v1263_v46 = vrot.slane %v3612_v53, 4 }
  0xb6   :  { %5191 = vst [vmem:[#allocation53_spill] sm:$0xff] %v3912_v2  ;;  %v1269_v40 = vrot.slane %v3618_v59, 4  ;;  %v1240_v21 = vmax.f32 %v5194_v44, %v1239_v17  ;;  %v1246_v29 = vmax.f32 %v3594_v0, %v1245_v14  ;;  %v1252_v19 = vmax.f32 %v3600_v60, %v1251_v35 }
  0xb7   :  { %v1258_v3 = vmax.f32 %v3606_v56, %v1257_v7  ;;  %v1229_v63 = vrot.slane %v1228_v47, 2  ;;  %v1235_v22 = vrot.slane %v1234_v33, 2  ;;  %v1264_v8 = vmax.f32 %v3612_v53, %v1263_v46 }
  0xb8   :  { %v1270_v1 = vmax.f32 %v3618_v59, %v1269_v40  ;;  %v1241_v49 = vrot.slane %v1240_v21, 2  ;;  %v1247_v38 = vrot.slane %v1246_v29, 2  ;;  %v1253_v25 = vrot.slane %v1252_v19, 2 }
  0xb9   :  { %v1259_v37 = vrot.slane %v1258_v3, 2  ;;  %v1230_v10 = vmax.f32 %v1228_v47, %v1229_v63  ;;  %v1236_v39 = vmax.f32 %v1234_v33, %v1235_v22  ;;  %v1265_v62 = vrot.slane %v1264_v8, 2 }
  0xba   :  { %v1271_v44 = vrot.slane %v1270_v1, 2  ;;  %v1242_v17 = vmax.f32 %v1240_v21, %v1241_v49  ;;  %v1248_v0 = vmax.f32 %v1246_v29, %v1247_v38  ;;  %v1254_v14 = vmax.f32 %v1252_v19, %v1253_v25 }
  0xbb   :  { %v1260_v60 = vmax.f32 %v1258_v3, %v1259_v37  ;;  %v1231_v35 = vrot.slane %v1230_v10, 1  ;;  %v1237_v56 = vrot.slane %v1236_v39, 1  ;;  %v1266_v7 = vmax.f32 %v1264_v8, %v1265_v62 }
  0xbc   :  { %v1272_v2 = vmax.f32 %v1270_v1, %v1271_v44  ;;  %v1243_v57 = vrot.slane %v1242_v17, 1  ;;  %v1249_v53 = vrot.slane %v1248_v0, 1  ;;  %v1255_v46 = vrot.slane %v1254_v14, 1 }
  0xbd   :  { %v1261_v59 = vrot.slane %v1260_v60, 1  ;;  %v3930_v40 = vmax.f32 %v1230_v10, %v1231_v35  ;;  %v3932_v16 = vmax.f32 %v1236_v39, %v1237_v56  ;;  %v1267_v47 = vrot.slane %v1266_v7, 1 }
  0xbe   :  { %v1273_v33 = vrot.slane %v1272_v2, 1  ;;  %v3934_v63 = vmax.f32 %v1242_v17, %v1243_v57  ;;  %v3936_v21 = vmax.f32 %v1248_v0, %v1249_v53  ;;  %v3938_v29 = vmax.f32 %v1254_v14, %v1255_v46 }
  0xbf   :  { %v3940_v19 = vmax.f32 %v1260_v60, %v1261_v59  ;;  %v3942_v3 = vmax.f32 %v1266_v7, %v1267_v47  ;;  %v1275_v8 = vrot.slane %v3624_v52, 4  ;;  %v1281_v1 = vrot.slane %v3630_v4, 4 }
  0xc0   :  { %v3944_v22 = vmax.f32 %v1272_v2, %v1273_v33  ;;  %v1287_v49 = vrot.slane %v3636_v32, 4  ;;  %v1293_v38 = vrot.slane %v3642_v54, 4  ;;  %v1299_v57 = vrot.slane %v3648_v43, 4 }
  0xc1   :  { %v1305_v25 = vrot.slane %v3654_v42, 4  ;;  %v1276_v37 = vmax.f32 %v3624_v52, %v1275_v8  ;;  %v1282_v10 = vmax.f32 %v3630_v4, %v1281_v1  ;;  %v1311_v39 = vrot.slane %v3660_v58, 4 }
  0xc2   :  { %v1317_v2 = vrot.slane %v3666_v23, 4  ;;  %v1288_v62 = vmax.f32 %v3636_v32, %v1287_v49  ;;  %v1294_v44 = vmax.f32 %v3642_v54, %v1293_v38  ;;  %v1300_v17 = vmax.f32 %v3648_v43, %v1299_v57 }
  0xc3   :  { %v1306_v0 = vmax.f32 %v3654_v42, %v1305_v25  ;;  %v1277_v14 = vrot.slane %v1276_v37, 2  ;;  %v1283_v60 = vrot.slane %v1282_v10, 2  ;;  %v1312_v35 = vmax.f32 %v3660_v58, %v1311_v39 }
  0xc4   :  { %v1318_v52 = vmax.f32 %v3666_v23, %v1317_v2  ;;  %v1289_v56 = vrot.slane %v1288_v62, 2  ;;  %v1295_v4 = vrot.slane %v1294_v44, 2  ;;  %v1301_v7 = vrot.slane %v1300_v17, 2 }
  0xc5   :  { %v1307_v53 = vrot.slane %v1306_v0, 2  ;;  %v1278_v46 = vmax.f32 %v1276_v37, %v1277_v14  ;;  %v1284_v59 = vmax.f32 %v1282_v10, %v1283_v60  ;;  %v1313_v47 = vrot.slane %v1312_v35, 2 }
  0xc6   :  { %v1319_v32 = vrot.slane %v1318_v52, 2  ;;  %v1290_v33 = vmax.f32 %v1288_v62, %v1289_v56  ;;  %v1296_v54 = vmax.f32 %v1294_v44, %v1295_v4  ;;  %v1302_v8 = vmax.f32 %v1300_v17, %v1301_v7 }
  0xc7   :  { %v1308_v43 = vmax.f32 %v1306_v0, %v1307_v53  ;;  %v1279_v1 = vrot.slane %v1278_v46, 1  ;;  %v1285_v42 = vrot.slane %v1284_v59, 1  ;;  %v1314_v49 = vmax.f32 %v1312_v35, %v1313_v47 }
  0xc8   :  { %v1320_v38 = vmax.f32 %v1318_v52, %v1319_v32  ;;  %v1291_v57 = vrot.slane %v1290_v33, 1  ;;  %v1297_v58 = vrot.slane %v1296_v54, 1  ;;  %v1303_v25 = vrot.slane %v1302_v8, 1 }
  0xc9   :  { %v1309_v23 = vrot.slane %v1308_v43, 1  ;;  %v3962_v39 = vmax.f32 %v1278_v46, %v1279_v1  ;;  %v3964_v2 = vmax.f32 %v1284_v59, %v1285_v42  ;;  %v1315_v37 = vrot.slane %v1314_v49, 1 }
  0xca   :  { %v1321_v10 = vrot.slane %v1320_v38, 1  ;;  %v3966_v14 = vmax.f32 %v1290_v33, %v1291_v57  ;;  %v3968_v62 = vmax.f32 %v1296_v54, %v1297_v58  ;;  %v3970_v44 = vmax.f32 %v1302_v8, %v1303_v25 }
  0xcb   :  { %v3972_v17 = vmax.f32 %v1308_v43, %v1309_v23  ;;  %v3974_v0 = vmax.f32 %v1314_v49, %v1315_v37  ;;  %v1323_v35 = vrot.slane %v3672_v20, 4  ;;  %v1329_v52 = vrot.slane %v3678_v6, 4 }
  0xcc   :  { %v3976_v60 = vmax.f32 %v1320_v38, %v1321_v10  ;;  %v1335_v56 = vrot.slane %v3684_v24, 4  ;;  %v1341_v4 = vrot.slane %v3690_v15, 4  ;;  %v1347_v7 = vrot.slane %v3696_v27, 4 }
  0xcd   :  { %v1353_v53 = vrot.slane %v3702_v30, 4  ;;  %v1324_v46 = vmax.f32 %v3672_v20, %v1323_v35  ;;  %v1330_v59 = vmax.f32 %v3678_v6, %v1329_v52  ;;  %v1359_v47 = vrot.slane %v3708_v50, 4 }
  0xce   :  { %v1365_v32 = vrot.slane %v3714_v26, 4  ;;  %v1336_v33 = vmax.f32 %v3684_v24, %v1335_v56  ;;  %v1342_v54 = vmax.f32 %v3690_v15, %v1341_v4  ;;  %v1348_v8 = vmax.f32 %v3696_v27, %v1347_v7 }
  0xcf   :  { %v1354_v43 = vmax.f32 %v3702_v30, %v1353_v53  ;;  %v1325_v1 = vrot.slane %v1324_v46, 2  ;;  %v1331_v42 = vrot.slane %v1330_v59, 2  ;;  %v1360_v49 = vmax.f32 %v3708_v50, %v1359_v47 }
  0xd0   :  { %v1366_v20 = vmax.f32 %v3714_v26, %v1365_v32  ;;  %v1337_v38 = vrot.slane %v1336_v33, 2  ;;  %v1343_v6 = vrot.slane %v1342_v54, 2  ;;  %v1349_v57 = vrot.slane %v1348_v8, 2 }
  0xd1   :  { %v1355_v58 = vrot.slane %v1354_v43, 2  ;;  %v1326_v25 = vmax.f32 %v1324_v46, %v1325_v1  ;;  %v1332_v23 = vmax.f32 %v1330_v59, %v1331_v42  ;;  %v1361_v37 = vrot.slane %v1360_v49, 2 }
  0xd2   :  { %v1367_v24 = vrot.slane %v1366_v20, 2  ;;  %v1338_v10 = vmax.f32 %v1336_v33, %v1337_v38  ;;  %v1344_v15 = vmax.f32 %v1342_v54, %v1343_v6  ;;  %v1350_v35 = vmax.f32 %v1348_v8, %v1349_v57 }
  0xd3   :  { %v1356_v27 = vmax.f32 %v1354_v43, %v1355_v58  ;;  %v1327_v52 = vrot.slane %v1326_v25, 1  ;;  %v1333_v30 = vrot.slane %v1332_v23, 1  ;;  %v1362_v56 = vmax.f32 %v1360_v49, %v1361_v37 }
  0xd4   :  { %v1368_v4 = vmax.f32 %v1366_v20, %v1367_v24  ;;  %v1339_v7 = vrot.slane %v1338_v10, 1  ;;  %v1345_v50 = vrot.slane %v1344_v15, 1  ;;  %v1351_v53 = vrot.slane %v1350_v35, 1 }
  0xd5   :  { %v1357_v26 = vrot.slane %v1356_v27, 1  ;;  %v3994_v47 = vmax.f32 %v1326_v25, %v1327_v52  ;;  %v3996_v32 = vmax.f32 %v1332_v23, %v1333_v30  ;;  %v1363_v46 = vrot.slane %v1362_v56, 1 }
  0xd6   :  { %v1369_v59 = vrot.slane %v1368_v4, 1  ;;  %v3998_v1 = vmax.f32 %v1338_v10, %v1339_v7  ;;  %v4000_v33 = vmax.f32 %v1344_v15, %v1345_v50  ;;  %v4002_v54 = vmax.f32 %v1350_v35, %v1351_v53 }
  0xd7   :  { %v4004_v8 = vmax.f32 %v1356_v27, %v1357_v26  ;;  %v4006_v43 = vmax.f32 %v1362_v56, %v1363_v46  ;;  %v1371_v49 = vrot.slane %v3720_v55, 4  ;;  %v1377_v20 = vrot.slane %v3726_v36, 4 }
  0xd8   :  { %v4008_v42 = vmax.f32 %v1368_v4, %v1369_v59  ;;  %v1383_v38 = vrot.slane %v3732_v18, 4  ;;  %v1389_v6 = vrot.slane %v3738_v12, 4  ;;  %v1395_v57 = vrot.slane %v3744_v48, 4 }
  0xd9   :  { %v1401_v58 = vrot.slane %v3750_v51, 4  ;;  %v1372_v25 = vmax.f32 %v3720_v55, %v1371_v49  ;;  %v1378_v23 = vmax.f32 %v3726_v36, %v1377_v20  ;;  %v1407_v37 = vrot.slane %v3756_v31, 4 }
  0xda   :  { %v1413_v24 = vrot.slane %v3762_v5, 4  ;;  %v1384_v10 = vmax.f32 %v3732_v18, %v1383_v38  ;;  %v1390_v15 = vmax.f32 %v3738_v12, %v1389_v6  ;;  %v1396_v35 = vmax.f32 %v3744_v48, %v1395_v57 }
  0xdb   :  { %v1402_v27 = vmax.f32 %v3750_v51, %v1401_v58  ;;  %v1373_v52 = vrot.slane %v1372_v25, 2  ;;  %v1379_v30 = vrot.slane %v1378_v23, 2  ;;  %v1408_v56 = vmax.f32 %v3756_v31, %v1407_v37 }
  0xdc   :  { %v1414_v55 = vmax.f32 %v3762_v5, %v1413_v24  ;;  %v1385_v4 = vrot.slane %v1384_v10, 2  ;;  %v1391_v36 = vrot.slane %v1390_v15, 2  ;;  %v1397_v7 = vrot.slane %v1396_v35, 2 }
  0xdd   :  { %v1403_v50 = vrot.slane %v1402_v27, 2  ;;  %v1374_v53 = vmax.f32 %v1372_v25, %v1373_v52  ;;  %v1380_v26 = vmax.f32 %v1378_v23, %v1379_v30  ;;  %v1409_v46 = vrot.slane %v1408_v56, 2 }
  0xde   :  { %v1415_v18 = vrot.slane %v1414_v55, 2  ;;  %v1386_v59 = vmax.f32 %v1384_v10, %v1385_v4  ;;  %v1392_v12 = vmax.f32 %v1390_v15, %v1391_v36  ;;  %v1398_v49 = vmax.f32 %v1396_v35, %v1397_v7  ;;  %v5202_v36 = vld [vmem:[#allocation23_spill] sm:$0xff] }
  0xdf   :  { %v1404_v48 = vmax.f32 %v1402_v27, %v1403_v50  ;;  %v1375_v20 = vrot.slane %v1374_v53, 1  ;;  %v1381_v51 = vrot.slane %v1380_v26, 1  ;;  %v1410_v38 = vmax.f32 %v1408_v56, %v1409_v46  ;;  %v5203_v50 = vld [vmem:[#allocation16_spill] sm:$0xff] }
  0xe0   :  { %v1416_v6 = vmax.f32 %v1414_v55, %v1415_v18  ;;  %v1387_v57 = vrot.slane %v1386_v59, 1  ;;  %v1393_v31 = vrot.slane %v1392_v12, 1  ;;  %v1399_v58 = vrot.slane %v1398_v49, 1 }
  0xe1   :  { %v1405_v5 = vrot.slane %v1404_v48, 1  ;;  %v4026_v37 = vmax.f32 %v1374_v53, %v1375_v20  ;;  %v4028_v24 = vmax.f32 %v1380_v26, %v1381_v51  ;;  %v1411_v25 = vrot.slane %v1410_v38, 1  ;;  %v5204_v26 = vld [vmem:[#allocation24_spill] sm:$0xff] }
  0xe2   :  { %v1417_v23 = vrot.slane %v1416_v6, 1  ;;  %v4030_v52 = vmax.f32 %v1386_v59, %v1387_v57  ;;  %v4032_v10 = vmax.f32 %v1392_v12, %v1393_v31  ;;  %v4034_v15 = vmax.f32 %v1398_v49, %v1399_v58  ;;  %v5205_v12 = vld [vmem:[#allocation25_spill] sm:$0xff] }
  0xe3   :  { %5195 = vst [vmem:[#allocation37_spill] sm:$0xff] %v4028_v24  ;;  %v4036_v35 = vmax.f32 %v1404_v48, %v1405_v5  ;;  %v4038_v27 = vmax.f32 %v1410_v38, %v1411_v25  ;;  %v1419_v56 = vrot.slane %v3768_v9, 4  ;;  %v1425_v55 = vrot.slane %v3774_v13, 4  ;;  %v5206_v48 = vld [vmem:[#allocation26_spill] sm:$0xff] }
  0xe4   :  { %5196 = vst [vmem:[#allocation54_spill] sm:$0xff] %v4030_v52  ;;  %5197 = vst [vmem:[#allocation9_spill] sm:$0xff] %v4032_v10  ;;  %v4040_v30 = vmax.f32 %v1416_v6, %v1417_v23  ;;  %v1431_v4 = vrot.slane %v3780_v11, 4  ;;  %v1437_v7 = vrot.slane %v5202_v36, 4  ;;  %v1443_v53 = vrot.slane %v5203_v50, 4 }
  0xe5   :  { %5198 = vst [vmem:[#allocation38_spill] sm:$0xff] %v4034_v15  ;;  %5199 = vst [vmem:[#allocation10_spill] sm:$0xff] %v4036_v35  ;;  %v1449_v46 = vrot.slane %v5204_v26, 4  ;;  %v1420_v18 = vmax.f32 %v3768_v9, %v1419_v56  ;;  %v1426_v59 = vmax.f32 %v3774_v13, %v1425_v55  ;;  %v1455_v49 = vrot.slane %v5205_v12, 4 }
  0xe6   :  { %5200 = vst [vmem:[#allocation39_spill] sm:$0xff] %v4038_v27  ;;  %5201 = vst [vmem:[#allocation11_spill] sm:$0xff] %v4040_v30  ;;  %v1461_v20 = vrot.slane %v5206_v48, 4  ;;  %v1432_v51 = vmax.f32 %v3780_v11, %v1431_v4  ;;  %v1438_v38 = vmax.f32 %v5202_v36, %v1437_v7  ;;  %v1444_v6 = vmax.f32 %v5203_v50, %v1443_v53 }
  0xe7   :  { %v1450_v57 = vmax.f32 %v5204_v26, %v1449_v46  ;;  %v1421_v31 = vrot.slane %v1420_v18, 2  ;;  %v1427_v58 = vrot.slane %v1426_v59, 2  ;;  %v1456_v5 = vmax.f32 %v5205_v12, %v1455_v49 }
  0xe8   :  { %v1462_v9 = vmax.f32 %v5206_v48, %v1461_v20  ;;  %v1433_v25 = vrot.slane %v1432_v51, 2  ;;  %v1439_v13 = vrot.slane %v1438_v38, 2  ;;  %v1445_v23 = vrot.slane %v1444_v6, 2 }
  0xe9   :  { %v1451_v56 = vrot.slane %v1450_v57, 2  ;;  %v1422_v55 = vmax.f32 %v1420_v18, %v1421_v31  ;;  %v1428_v30 = vmax.f32 %v1426_v59, %v1427_v58  ;;  %v1457_v27 = vrot.slane %v1456_v5, 2  ;;  %v5215_v58 = vld [vmem:[#allocation42_spill] sm:$0xff] }
  0xea   :  { %v1463_v11 = vrot.slane %v1462_v9, 2  ;;  %v1434_v4 = vmax.f32 %v1432_v51, %v1433_v25  ;;  %v1440_v36 = vmax.f32 %v1438_v38, %v1439_v13  ;;  %v1446_v7 = vmax.f32 %v1444_v6, %v1445_v23  ;;  %v5218_v23 = vld [vmem:[#allocation31_spill] sm:$0xff] }
  0xeb   :  { %v1452_v50 = vmax.f32 %v1450_v57, %v1451_v56  ;;  %v1423_v53 = vrot.slane %v1422_v55, 1  ;;  %v1429_v26 = vrot.slane %v1428_v30, 1  ;;  %v1458_v46 = vmax.f32 %v1456_v5, %v1457_v27 }
  0xec   :  { %v1464_v35 = vmax.f32 %v1462_v9, %v1463_v11  ;;  %v1435_v15 = vrot.slane %v1434_v4, 1  ;;  %v1441_v12 = vrot.slane %v1440_v36, 1  ;;  %v1447_v49 = vrot.slane %v1446_v7, 1  ;;  %v5216_v9 = vld [vmem:[#allocation27_spill] sm:$0xff]  ;;  %v5220_v11 = vld [vmem:[#allocation33_spill] sm:$0xff] }
  0xed   :  { %v1453_v48 = vrot.slane %v1452_v50, 1  ;;  %v4058_v20 = vmax.f32 %v1422_v55, %v1423_v53  ;;  %v4060_v10 = vmax.f32 %v1428_v30, %v1429_v26  ;;  %v1459_v18 = vrot.slane %v1458_v46, 1  ;;  %v5217_v30 = vld [vmem:[#allocation28_spill] sm:$0xff] }
  0xee   :  { %v1465_v59 = vrot.slane %v1464_v35, 1  ;;  %v4062_v31 = vmax.f32 %v1434_v4, %v1435_v15  ;;  %v4064_v51 = vmax.f32 %v1440_v36, %v1441_v12  ;;  %v4066_v38 = vmax.f32 %v1446_v7, %v1447_v49  ;;  %v5219_v15 = vld [vmem:[#allocation32_spill] sm:$0xff] }
  0xef   :  { %5207 = vst [vmem:[#allocation40_spill] sm:$0xff] %v4058_v20  ;;  %5208 = vst [vmem:[#allocation12_spill] sm:$0xff] %v4060_v10  ;;  %v4068_v6 = vmax.f32 %v1452_v50, %v1453_v48  ;;  %v4070_v27 = vmax.f32 %v1458_v46, %v1459_v18  ;;  %v1467_v5 = vrot.slane %v5215_v58, 4  ;;  %v1473_v25 = vrot.slane %v5216_v9, 4  ;;  %v5221_v50 = vld [vmem:[#allocation34_spill] sm:$0xff] }
  0xf0   :  { %5209 = vst [vmem:[#allocation13_spill] sm:$0xff] %v4062_v31  ;;  %5210 = vst [vmem:[#allocation14_spill] sm:$0xff] %v4064_v51  ;;  %v4072_v57 = vmax.f32 %v1464_v35, %v1465_v59  ;;  %v1479_v13 = vrot.slane %v5217_v30, 4  ;;  %v1485_v56 = vrot.slane %v5218_v23, 4  ;;  %v1491_v55 = vrot.slane %v5219_v15, 4  ;;  %v5222_v35 = vld [vmem:[#allocation45_spill] sm:$0xff] }
  0xf1   :  { %5211 = vst [vmem:[#allocation17_spill] sm:$0xff] %v4066_v38  ;;  %5212 = vst [vmem:[#allocation18_spill] sm:$0xff] %v4068_v6  ;;  %v1497_v4 = vrot.slane %v5220_v11, 4  ;;  %v1468_v36 = vmax.f32 %v5215_v58, %v1467_v5  ;;  %v1474_v7 = vmax.f32 %v5216_v9, %v1473_v25  ;;  %v1503_v53 = vrot.slane %v5221_v50, 4 }
  0xf2   :  { %5213 = vst [vmem:[#allocation19_spill] sm:$0xff] %v4070_v27  ;;  %5214 = vst [vmem:[#allocation22_spill] sm:$0xff] %v4072_v57  ;;  %v1509_v26 = vrot.slane %v5222_v35, 4  ;;  %v1480_v46 = vmax.f32 %v5217_v30, %v1479_v13  ;;  %v1486_v12 = vmax.f32 %v5218_v23, %v1485_v56  ;;  %v1492_v49 = vmax.f32 %v5219_v15, %v1491_v55 }
  0xf3   :  { %v1498_v48 = vmax.f32 %v5220_v11, %v1497_v4  ;;  %v1469_v18 = vrot.slane %v1468_v36, 2  ;;  %v1475_v59 = vrot.slane %v1474_v7, 2  ;;  %v1504_v57 = vmax.f32 %v5221_v50, %v1503_v53 }
  0xf4   :  { %v1510_v58 = vmax.f32 %v5222_v35, %v1509_v26  ;;  %v1481_v5 = vrot.slane %v1480_v46, 2  ;;  %v1487_v9 = vrot.slane %v1486_v12, 2  ;;  %v1493_v25 = vrot.slane %v1492_v49, 2 }
  0xf5   :  { %v1499_v27 = vrot.slane %v1498_v48, 2  ;;  %v1470_v6 = vmax.f32 %v1468_v36, %v1469_v18  ;;  %v1476_v38 = vmax.f32 %v1474_v7, %v1475_v59  ;;  %v1505_v51 = vrot.slane %v1504_v57, 2  ;;  %v5227_v59 = vld [vmem:[#allocation48_spill] sm:$0xff] }
  0xf6   :  { %v1511_v30 = vrot.slane %v1510_v58, 2  ;;  %v1482_v13 = vmax.f32 %v1480_v46, %v1481_v5  ;;  %v1488_v23 = vmax.f32 %v1486_v12, %v1487_v9  ;;  %v1494_v56 = vmax.f32 %v1492_v49, %v1493_v25  ;;  %v5225_v49 = vld [vmem:[#allocation46_spill] sm:$0xff]  ;;  %v5229_v9 = vld [vmem:[#allocation49_spill] sm:$0xff]  ;;  %v5242_v24 = vld [vmem:[#allocation12_spill] sm:$0xff] }
  0xf7   :  { %v1500_v15 = vmax.f32 %v1498_v48, %v1499_v27  ;;  %v1471_v55 = vrot.slane %v1470_v6, 1  ;;  %v1477_v11 = vrot.slane %v1476_v38, 1  ;;  %v1506_v4 = vmax.f32 %v1504_v57, %v1505_v51  ;;  %v5226_v48 = vld [vmem:[#allocation6_spill] sm:$0xff]  ;;  %v5243_v52 = vld [vmem:[#allocation13_spill] sm:$0xff] }
  0xf8   :  { %v1512_v31 = vmax.f32 %v1510_v58, %v1511_v30  ;;  %v1483_v10 = vrot.slane %v1482_v13, 1  ;;  %v1489_v50 = vrot.slane %v1488_v23, 1  ;;  %v1495_v53 = vrot.slane %v1494_v56, 1  ;;  %v5228_v58 = vld [vmem:[#allocation35_spill] sm:$0xff]  ;;  %v5245_v25 = vld [vmem:[#allocation17_spill] sm:$0xff]  ;;  %v5246_v5 = vld [vmem:[#allocation18_spill] sm:$0xff] }
  0xf9   :  { %v1501_v35 = vrot.slane %v1500_v15, 1  ;;  %v4090_v26 = vmax.f32 %v1470_v6, %v1471_v55  ;;  %v4092_v20 = vmax.f32 %v1476_v38, %v1477_v11  ;;  %v1507_v36 = vrot.slane %v1506_v4, 1  ;;  %v5230_v30 = vld [vmem:[#allocation7_spill] sm:$0xff]  ;;  %v5241_v6 = vld [vmem:[#allocation40_spill] sm:$0xff]  ;;  %v5248_v38 = vld [vmem:[#allocation22_spill] sm:$0xff] }
  0xfa   :  { %v1513_v7 = vrot.slane %v1512_v31, 1  ;;  %v4094_v18 = vmax.f32 %v1482_v13, %v1483_v10  ;;  %v4096_v46 = vmax.f32 %v1488_v23, %v1489_v50  ;;  %v4098_v12 = vmax.f32 %v1494_v56, %v1495_v53  ;;  %v5232_v56 = vld [vmem:[#allocation36_spill] sm:$0xff]  ;;  %v5235_v23 = vld [vmem:[#allocation53_spill] sm:$0xff]  ;;  %v5244_v13 = vld [vmem:[#allocation14_spill] sm:$0xff] }
  0xfb   :  { %5223 = vst [vmem:[#allocation41_spill] sm:$0xff] %v4092_v20  ;;  %v4100_v27 = vmax.f32 %v1500_v15, %v1501_v35  ;;  %v4102_v51 = vmax.f32 %v1506_v4, %v1507_v36  ;;  %v5233_v35 = vld [vmem:[#allocation52_spill] sm:$0xff]  ;;  %v5247_v10 = vld [vmem:[#allocation19_spill] sm:$0xff]  ;;  %v5249_v55 = vpack.c.bf16 %v5225_v49, %v5225_v49  ;;  %v5250_v4 = vpack.c.bf16 %v5226_v48, %v5226_v48 }
  0xfc   :  { %v4104_v57 = vmax.f32 %v1512_v31, %v1513_v7  ;;  %v5231_v31 = vld [vmem:[#allocation50_spill] sm:$0xff]  ;;  %v5234_v7 = vld [vmem:[#allocation8_spill] sm:$0xff]  ;;  %v5251_v50 = vpack.c.bf16 %v5227_v59, %v5227_v59  ;;  %v5252_v36 = vpack.c.bf16 %v5228_v58, %v5228_v58  ;;  %v5253_v49 = vpack.c.bf16 %v5229_v9, %v5229_v9 }
  0xfd   :  { %5224 = vst [vmem:[#allocation29_spill] sm:$0xff] %v4102_v51  ;;  %v4237_v20 = vunpack.c.l.b16 %v5249_v55  ;;  %v4242_v11 = vunpack.c.l.b16 %v5250_v4  ;;  %v5254_v48 = vpack.c.bf16 %v5230_v30, %v5230_v30  ;;  %v5255_v59 = vpack.c.bf16 %v5231_v31, %v5231_v31 }
  0xfe   :  { %v4247_v53 = vunpack.c.l.b16 %v5251_v50  ;;  %v4252_v51 = vunpack.c.l.b16 %v5252_v36  ;;  %v4257_v55 = vunpack.c.l.b16 %v5253_v49  ;;  %v5256_v58 = vpack.c.bf16 %v5232_v56, %v5232_v56 }
  0xff   :  { %v4262_v4 = vunpack.c.l.b16 %v5254_v48  ;;  %v4267_v50 = vunpack.c.l.b16 %v5255_v59  ;;  %v5258_v9 = vpack.c.bf16 %v3898_v41, %v3898_v41  ;;  %v5259_v30 = vpack.c.bf16 %v3900_v45, %v3900_v45 }
 0x100   :  { %v4272_v36 = vunpack.c.l.b16 %v5256_v58  ;;  %v5260_v31 = vpack.c.bf16 %v3902_v61, %v3902_v61  ;;  %v5261_v56 = vpack.c.bf16 %v3904_v28, %v3904_v28  ;;  %v5262_v41 = vpack.c.bf16 %v3906_v34, %v3906_v34 }
 0x101   :  { %v4277_v49 = vunpack.c.l.b16 %v5258_v9  ;;  %v4282_v48 = vunpack.c.l.b16 %v5259_v30  ;;  %v5263_v45 = vpack.c.bf16 %v5233_v35, %v5233_v35  ;;  %v5264_v61 = vpack.c.bf16 %v5234_v7, %v5234_v7 }
 0x102   :  { %5257 = vst [vmem:[#allocation30_spill] sm:$0xff] %v4272_v36  ;;  %v4287_v59 = vunpack.c.l.b16 %v5260_v31  ;;  %v4292_v58 = vunpack.c.l.b16 %v5261_v56  ;;  %v4297_v9 = vunpack.c.l.b16 %v5262_v41  ;;  %v5265_v28 = vpack.c.bf16 %v5235_v23, %v5235_v23 }
 0x103   :  { %v4302_v30 = vunpack.c.l.b16 %v5263_v45  ;;  %v4307_v31 = vunpack.c.l.b16 %v5264_v61  ;;  %v5266_v34 = vpack.c.bf16 %v3930_v40, %v3930_v40  ;;  %v5267_v15 = vpack.c.bf16 %v3932_v16, %v3932_v16 }
 0x104   :  { %v4312_v56 = vunpack.c.l.b16 %v5265_v28  ;;  %v5268_v45 = vpack.c.bf16 %v3934_v63, %v3934_v63  ;;  %v5269_v7 = vpack.c.bf16 %v3936_v21, %v3936_v21  ;;  %v5270_v23 = vpack.c.bf16 %v3938_v29, %v3938_v29 }
 0x105   :  { %v1787_v41 = vunpack.c.l.b16 %v5266_v34  ;;  %v1788_v35 = vunpack.c.l.b16 %v5267_v15  ;;  %v5271_v40 = vpack.c.bf16 %v3940_v19, %v3940_v19  ;;  %v5272_v63 = vpack.c.bf16 %v3942_v3, %v3942_v3 }
 0x106   :  { %v4323_v36 = vunpack.c.l.b16 %v5268_v45  ;;  %v4328_v61 = vunpack.c.l.b16 %v5269_v7  ;;  %v4333_v28 = vunpack.c.l.b16 %v5270_v23  ;;  %v5273_v21 = vpack.c.bf16 %v3944_v22, %v3944_v22 }
 0x107   :  { %v4338_v16 = vunpack.c.l.b16 %v5271_v40  ;;  %v4343_v15 = vunpack.c.l.b16 %v5272_v63  ;;  %v5274_v29 = vpack.c.bf16 %v3962_v39, %v3962_v39  ;;  %v5275_v7 = vpack.c.bf16 %v3964_v2, %v3964_v2 }
 0x108   :  { %v4348_v34 = vunpack.c.l.b16 %v5273_v21  ;;  %v5276_v23 = vpack.c.bf16 %v3966_v14, %v3966_v14  ;;  %v5277_v3 = vpack.c.bf16 %v3968_v62, %v3968_v62  ;;  %v5278_v22 = vpack.c.bf16 %v3970_v44, %v3970_v44 }
 0x109   :  { %v1795_v45 = vunpack.c.l.b16 %v5274_v29  ;;  %v1796_v19 = vunpack.c.l.b16 %v5275_v7  ;;  %v5279_v39 = vpack.c.bf16 %v3972_v17, %v3972_v17  ;;  %v5280_v2 = vpack.c.bf16 %v3974_v0, %v3974_v0 }
 0x10a   :  { %v1797_v40 = vunpack.c.l.b16 %v5276_v23  ;;  %v1798_v63 = vunpack.c.l.b16 %v5277_v3  ;;  %v1799_v21 = vunpack.c.l.b16 %v5278_v22  ;;  %v5281_v14 = vpack.c.bf16 %v3976_v60, %v3976_v60 }
 0x10b   :  { %v4368_v29 = vunpack.c.l.b16 %v5279_v39  ;;  %v4373_v7 = vunpack.c.l.b16 %v5280_v2  ;;  %v5282_v62 = vpack.c.bf16 %v3994_v47, %v3994_v47  ;;  %v5283_v17 = vpack.c.bf16 %v3996_v32, %v3996_v32 }
 0x10c   :  { %v4378_v23 = vunpack.c.l.b16 %v5281_v14  ;;  %v5284_v0 = vpack.c.bf16 %v3998_v1, %v3998_v1  ;;  %v5285_v60 = vpack.c.bf16 %v4000_v33, %v4000_v33  ;;  %v5287_v47 = vpack.c.bf16 %v4002_v54, %v4002_v54 }
 0x10d   :  { %v4383_v44 = vunpack.c.l.b16 %v5282_v62  ;;  %v4388_v3 = vunpack.c.l.b16 %v5283_v17  ;;  %v5289_v32 = vpack.c.bf16 %v4004_v8, %v4004_v8  ;;  %v5291_v1 = vpack.c.bf16 %v4006_v43, %v4006_v43  ;;  %v5300_v43 = vld [vmem:[#allocation9_spill] sm:$0xff] }
 0x10e   :  { %v4393_v22 = vunpack.c.l.b16 %v5284_v0  ;;  %v4398_v39 = vunpack.c.l.b16 %v5285_v60  ;;  %v4403_v2 = vunpack.c.l.b16 %v5287_v47  ;;  %v5293_v33 = vpack.c.bf16 %v4008_v42, %v4008_v42  ;;  %v5296_v60 = vld [vmem:[#allocation37_spill] sm:$0xff]  ;;  %v5302_v42 = vld [vmem:[#allocation38_spill] sm:$0xff] }
 0x10f   :  { %v4408_v14 = vunpack.c.l.b16 %v5289_v32  ;;  %v4413_v62 = vunpack.c.l.b16 %v5291_v1  ;;  %v5295_v54 = vpack.c.bf16 %v4026_v37, %v4026_v37  ;;  %v5297_v47 = vpack.c.bf16 %v5296_v60, %v5296_v60  ;;  %v5298_v32 = vld [vmem:[#allocation54_spill] sm:$0xff]  ;;  %v5308_v60 = vld [vmem:[#allocation39_spill] sm:$0xff] }
 0x110   :  { %5286 = vst [vmem:[#allocation43_spill] sm:$0xff] %v4398_v39  ;;  %5288 = vst [vmem:[#allocation2_spill] sm:$0xff] %v4403_v2  ;;  %v4418_v17 = vunpack.c.l.b16 %v5293_v33  ;;  %v5301_v1 = vpack.c.bf16 %v5300_v43, %v5300_v43  ;;  %v5303_v33 = vpack.c.bf16 %v5302_v42, %v5302_v42  ;;  %v5305_v37 = vld [vmem:[#allocation10_spill] sm:$0xff]  ;;  %v5313_v42 = vpack.c.bf16 %v5241_v6, %v5241_v6 }
 0x111   :  { %5290 = vst [vmem:[#allocation3_spill] sm:$0xff] %v4408_v14  ;;  %5292 = vst [vmem:[#allocation4_spill] sm:$0xff] %v4413_v62  ;;  %v1811_v0 = vunpack.c.l.b16 %v5295_v54  ;;  %v1812_v8 = vunpack.c.l.b16 %v5297_v47  ;;  %v5299_v14 = vpack.c.bf16 %v5298_v32, %v5298_v32  ;;  %v5306_v54 = vpack.c.bf16 %v5305_v37, %v5305_v37 }
 0x112   :  { %5294 = vst [vmem:[#allocation5_spill] sm:$0xff] %v4418_v17  ;;  %v4432_v62 = vunpack.c.l.b16 %v5301_v1  ;;  %v4437_v17 = vunpack.c.l.b16 %v5303_v33  ;;  %v5309_v47 = vpack.c.bf16 %v5308_v60, %v5308_v60  ;;  %v1819_v33 = vunpack.c.l.b16 %v5313_v42 }
 0x113   :  { %v1813_v2 = vunpack.c.l.b16 %v5299_v14  ;;  %v4442_v39 = vunpack.c.l.b16 %v5306_v54  ;;  %v5310_v14 = vld [vmem:[#allocation11_spill] sm:$0xff]  ;;  %v5315_v54 = vpack.c.bf16 %v5243_v52, %v5243_v52  ;;  %v5316_v60 = vpack.c.bf16 %v5244_v13, %v5244_v13 }
 0x114   :  { %5304 = vst [vmem:[#allocation44_spill] sm:$0xff] %v4437_v17  ;;  %v4447_v32 = vunpack.c.l.b16 %v5309_v47  ;;  %v5311_v43 = vpack.c.bf16 %v5310_v14, %v5310_v14  ;;  %v5314_v17 = vpack.c.bf16 %v5242_v24, %v5242_v24  ;;  %v5317_v14 = vpack.c.bf16 %v5245_v25, %v5245_v25 }
 0x115   :  { %5307 = vst [vmem:[#allocation47_spill] sm:$0xff] %v4442_v39  ;;  %v1821_v39 = vunpack.c.l.b16 %v5315_v54  ;;  %v1822_v47 = vunpack.c.l.b16 %v5316_v60  ;;  %v5318_v6 = vpack.c.bf16 %v5246_v5, %v5246_v5  ;;  %v5319_v24 = vpack.c.bf16 %v5247_v10, %v5247_v10  ;;  %v5323_v60 = vld [vmem:[#allocation41_spill] sm:$0xff] }
 0x116   :  { %v4452_v1 = vunpack.c.l.b16 %v5311_v43  ;;  %v1820_v37 = vunpack.c.l.b16 %v5314_v17  ;;  %v4469_v43 = vunpack.c.l.b16 %v5317_v14  ;;  %v5320_v52 = vpack.c.bf16 %v5248_v38, %v5248_v38 }
 0x117   :  { %v4474_v42 = vunpack.c.l.b16 %v5318_v6  ;;  %v4479_v17 = vunpack.c.l.b16 %v5319_v24  ;;  %v5322_v25 = vpack.c.bf16 %v4090_v26, %v4090_v26  ;;  %v5324_v14 = vpack.c.bf16 %v5323_v60, %v5323_v60 }
 0x118   :  { %5312 = vst [vmem:[#allocation51_spill] sm:$0xff] %v4452_v1  ;;  %v4484_v13 = vunpack.c.l.b16 %v5320_v52  ;;  %v5325_v6 = vpack.c.bf16 %v4094_v18, %v4094_v18  ;;  %v5326_v10 = vpack.c.bf16 %v4096_v46, %v4096_v46  ;;  %v5327_v38 = vpack.c.bf16 %v4098_v12, %v4098_v12 }
 0x119   :  { %v1827_v54 = vunpack.c.l.b16 %v5322_v25  ;;  %v1828_v5 = vunpack.c.l.b16 %v5324_v14  ;;  %v5328_v26 = vpack.c.bf16 %v4100_v27, %v4100_v27  ;;  %v5331_v18 = vpack.c.bf16 %v4104_v57, %v4104_v57 }
 0x11a   :  { %5321 = vst [vmem:[#allocation20_spill] sm:$0xff] %v4484_v13  ;;  %v1829_v1 = vunpack.c.l.b16 %v5325_v6  ;;  %v1830_v24 = vunpack.c.l.b16 %v5326_v10  ;;  %v1831_v52 = vunpack.c.l.b16 %v5327_v38  ;;  %v5329_v13 = vld [vmem:[#allocation29_spill] sm:$0xff]  ;;  %v1836_v46 = vsel %vm1835_vm4, %v4242_v11, %v4237_v20 }
 0x11b   :  { %v1832_v25 = vunpack.c.l.b16 %v5328_v26  ;;  %v5330_v60 = vpack.c.bf16 %v5329_v13, %v5329_v13  ;;  %v4512_v6 = vunpack.c.l.b16 %v5331_v18  ;;  %vm1839_vm0 = vcmask 1043459  }
 0x11c   :  { %vm1841_vm1 = vcmask 1044484   ;;  %vm1843_vm9 = vcmask 1045509   ;;  %v1838_v12 = vsel %vm1837_vm5, %v4247_v53, %v1836_v46  ;;  %vm1845_vm12 = vcmask 1046534   ;;  %v5338_v18 = vld [vmem:[#allocation47_spill] sm:$0xff]  ;;  %v5339_v46 = vld [vmem:[#allocation5_spill] sm:$0xff] }
 0x11d   :  { %v4507_v14 = vunpack.c.l.b16 %v5330_v60  ;;  %vm1847_vm3 = vcmask 1047559   ;;  %v1849_v27 = vsel %vm1835_vm4, %v4282_v48, %v4277_v49  ;;  %v1840_v57 = vsel %vm1839_vm0, %v4252_v51, %v1838_v12  ;;  %v5336_v60 = vld [vmem:[#allocation44_spill] sm:$0xff] }
 0x11e   :  { %v1850_v13 = vsel %vm1837_vm5, %v4287_v59, %v1849_v27  ;;  %v1856_v20 = vsel %vm1835_vm4, %v1788_v35, %v1787_v41  ;;  %v1863_v11 = vsel %vm1835_vm4, %v1796_v19, %v1795_v45  ;;  %v1842_v10 = vsel %vm1841_vm1, %v4257_v55, %v1840_v57 }
 0x11f   :  { %v1851_v53 = vsel %vm1839_vm0, %v4292_v58, %v1850_v13  ;;  %v1857_v38 = vsel %vm1837_vm5, %v4323_v36, %v1856_v20  ;;  %v1864_v49 = vsel %vm1837_vm5, %v1797_v40, %v1863_v11  ;;  %v1844_v51 = vsel %vm1843_vm9, %v4262_v4, %v1842_v10  ;;  %v5332_v4 = vld [vmem:[#allocation30_spill] sm:$0xff]  ;;  %v5340_v57 = vld [vmem:[#allocation51_spill] sm:$0xff] }
 0x120   :  { %v1852_v48 = vsel %vm1841_vm1, %v4297_v9, %v1851_v53  ;;  %v1858_v59 = vsel %vm1839_vm0, %v4328_v61, %v1857_v38  ;;  %v1865_v41 = vsel %vm1839_vm0, %v1798_v63, %v1864_v49  ;;  %v1846_v55 = vsel %vm1845_vm12, %v4267_v50, %v1844_v51 }
 0x121   :  { %v1853_v58 = vsel %vm1843_vm9, %v4302_v30, %v1852_v48  ;;  %v1859_v36 = vsel %vm1841_vm1, %v4333_v28, %v1858_v59  ;;  %v1866_v35 = vsel %vm1841_vm1, %v1799_v21, %v1865_v41  ;;  %v1848_v45 = vsel %vm1847_vm3, %v5332_v4, %v1846_v55  ;;  %v5333_v21 = vld [vmem:[#allocation43_spill] sm:$0xff]  ;;  %v5341_v11 = vld [vmem:[#allocation20_spill] sm:$0xff] }
 0x122   :  { %v1854_v9 = vsel %vm1845_vm12, %v4307_v31, %v1853_v58  ;;  %v1860_v61 = vsel %vm1843_vm9, %v4338_v16, %v1859_v36  ;;  %v1867_v50 = vsel %vm1843_vm9, %v4368_v29, %v1866_v35  ;;  %v1870_v40 = vsel %vm1835_vm4, %v4388_v3, %v4383_v44  ;;  %v5334_v3 = vld [vmem:[#allocation2_spill] sm:$0xff] }
 0x123   :  { %v1855_v30 = vsel %vm1847_vm3, %v4312_v56, %v1854_v9  ;;  %v1861_v28 = vsel %vm1845_vm12, %v4343_v15, %v1860_v61  ;;  %v1868_v19 = vsel %vm1845_vm12, %v4373_v7, %v1867_v50  ;;  %v1871_v63 = vsel %vm1837_vm5, %v4393_v22, %v1870_v40 }
 0x124   :  { %v1862_v31 = vsel %vm1847_vm3, %v4348_v34, %v1861_v28  ;;  %v1869_v16 = vsel %vm1847_vm3, %v4378_v23, %v1868_v19  ;;  %v1877_v56 = vsel %vm1835_vm4, %v1812_v8, %v1811_v0  ;;  %v1872_v15 = vsel %vm1839_vm0, %v5333_v21, %v1871_v63  ;;  %v5335_v0 = vld [vmem:[#allocation3_spill] sm:$0xff] }
 0x125   :  { %v1878_v29 = vsel %vm1837_vm5, %v1813_v2, %v1877_v56  ;;  %v1884_v7 = vsel %vm1835_vm4, %v1820_v37, %v1819_v33  ;;  %v1891_v44 = vsel %vm1835_vm4, %v1828_v5, %v1827_v54  ;;  %v1873_v34 = vsel %vm1841_vm1, %v5334_v3, %v1872_v15  ;;  %v5337_v54 = vld [vmem:[#allocation4_spill] sm:$0xff] }
 0x126   :  { %v1879_v23 = vsel %vm1839_vm0, %v4432_v62, %v1878_v29  ;;  %v1885_v26 = vsel %vm1837_vm5, %v1821_v39, %v1884_v7  ;;  %v1892_v22 = vsel %vm1837_vm5, %v1829_v1, %v1891_v44  ;;  %v1874_v8 = vsel %vm1843_vm9, %v5335_v0, %v1873_v34 }
 0x127   :  { %v1880_v2 = vsel %vm1841_vm1, %v5336_v60, %v1879_v23  ;;  %v1886_v33 = vsel %vm1839_vm0, %v1822_v47, %v1885_v26  ;;  %v1893_v37 = vsel %vm1839_vm0, %v1830_v24, %v1892_v22  ;;  %v1875_v5 = vsel %vm1845_vm12, %v5337_v54, %v1874_v8 }
 0x128   :  { %v1881_v62 = vsel %vm1843_vm9, %v5338_v18, %v1880_v2  ;;  %v1887_v39 = vsel %vm1841_vm1, %v4469_v43, %v1886_v33  ;;  %v1894_v1 = vsel %vm1841_vm1, %v1831_v52, %v1893_v37  ;;  %v1876_v12 = vsel %vm1847_vm3, %v5339_v46, %v1875_v5 }
 0x129   :  { %v1882_v27 = vsel %vm1845_vm12, %v4447_v32, %v1881_v62  ;;  %v1888_v47 = vsel %vm1843_vm9, %v4474_v42, %v1887_v39  ;;  %v1895_v24 = vsel %vm1843_vm9, %v1832_v25, %v1894_v1  ;;  %v1898_v52 = vpack.c.b16 %v1848_v45, %v1848_v45 }
 0x12a   :  { %v1883_v13 = vsel %vm1847_vm3, %v5340_v57, %v1882_v27  ;;  %v1889_v20 = vsel %vm1845_vm12, %v4479_v17, %v1888_v47  ;;  %v1896_v43 = vsel %vm1845_vm12, %v4507_v14, %v1895_v24  ;;  %v1899_v53 = vpack.c.b16 %v1855_v30, %v1855_v30 }
 0x12b   :  { %v1890_v10 = vsel %vm1847_vm3, %v5341_v11, %v1889_v20  ;;  %v1897_v32 = vsel %vm1847_vm3, %v4512_v6, %v1896_v43  ;;  %v1900_v42 = vpack.c.b16 %v1862_v31, %v1862_v31  ;;  %v1901_v38 = vpack.c.b16 %v1869_v16, %v1869_v16  ;;  %1914 = vst [vmem:[%s4640_s2] sm:$0xf] %v1898_v52 }
 0x12c   :  { %v1902_v25 = vpack.c.b16 %v1876_v12, %v1876_v12  ;;  %v1903_v49 = vpack.c.b16 %v1883_v13, %v1883_v13  ;;  %v1904_v51 = vpack.c.b16 %v1890_v10, %v1890_v10  ;;  %v1905_v17 = vpack.c.b16 %v1897_v32, %v1897_v32  ;;  %1915 = vst [vmem:[%s4640_s2 + $0x4] sm:$0xf] %v1899_v53 }
 0x12d   :  { %1916 = vst [vmem:[%s4640_s2 + $0x8] sm:$0xf] %v1900_v42  ;;  %1917 = vst [vmem:[%s4640_s2 + $0xc] sm:$0xf] %v1901_v38 }
 0x12e   :  { %1918 = vst [vmem:[%s4640_s2 + $0x10] sm:$0xf] %v1902_v25  ;;  %1919 = vst [vmem:[%s4640_s2 + $0x14] sm:$0xf] %v1903_v49 }
 0x12f   :  { %1920 = vst [vmem:[%s4640_s2 + $0x18] sm:$0xf] %v1904_v51  ;;  %1921 = vst [vmem:[%s4640_s2 + $0x1c] sm:$0xf] %v1905_v17 }

// kernel: dgcnn_with_color_forward.29
= control target key start
LH: loop header
LB: loop body
LE: loop exit
PB: predicated region body
PF: predicated region fallthrough
CT: control target
= control target key end

     0   :  { %s778_s1 = inlined_call_operand.vmem [shape: bf16[384,128], index: 1, kind: input, shape index: {}]   ;;  %s779_s0 = inlined_call_operand.vmem [shape: bf16[64,384], index: 0, kind: input, shape index: {}]   ;;  %s780_s2 = inlined_call_operand.vmem [shape: f32[1,128], index: 2, kind: input, shape index: {}]   ;;  %s781_s3 = inlined_call_operand.vmem [shape: f32[64,128], index: 3, kind: output, shape index: {}]  }
   0x1   :  { %v573_v0 = vld [vmem:[%s778_s1 + $0x40] sm:$0xff]   ;;  %v575_v2 = vld [vmem:[%s778_s1 + $0x48] sm:$0xff]   ;;  %v578_v5 = vld [vmem:[%s778_s1 + $0x50] sm:$0xff]  }
   0x2   :  { %v574_v1 = vld [vmem:[%s778_s1] sm:$0xff]   ;;  %497 = vmatprep.subr.bf16.mxu0 %v573_v0  ;;  %v577_v4 = vld [vmem:[%s778_s1 + $0x8] sm:$0xff]   ;;  %v580_v7 = vld [vmem:[%s778_s1 + $0x10] sm:$0xff]  }
   0x3   :  { %498 = vmatpush3.bf16.msra.mxu0 %v574_v1  ;;  %v576_v3 = vld [vmem:[%s778_s1 + $0x80] sm:$0xff]   ;;  %v579_v6 = vld [vmem:[%s778_s1 + $0x88] sm:$0xff]   ;;  %v581_v8 = vld [vmem:[%s778_s1 + $0x58] sm:$0xff]  }
   0x4   :  { %499 = vmatprep.subr.bf16.mxu0 %v575_v2  ;;  %549 = vmatprep.subr.bf16.mxu1 %v576_v3  ;;  %v582_v9 = vld [vmem:[%s778_s1 + $0x90] sm:$0xff]   ;;  %v583_v10 = vld [vmem:[%s778_s1 + $0x18] sm:$0xff]   ;;  %v584_v11 = vld [vmem:[%s778_s1 + $0x60] sm:$0xff]  }
   0x5   :  { %550 = vmatpush3.bf16.msra.mxu1 %v576_v3  ;;  %v585_v12 = vld [vmem:[%s778_s1 + $0x98] sm:$0xff]   ;;  %v586_v13 = vld [vmem:[%s778_s1 + $0x20] sm:$0xff]   ;;  %v587_v15 = vld [vmem:[%s778_s1 + $0x68] sm:$0xff]  }
   0x6   :  { %551 = vmatprep.subr.bf16.mxu1 %v579_v6  ;;  %v588_v14 = vld [vmem:[%s778_s1 + $0xa0] sm:$0xff]   ;;  %v589_v16 = vld [vmem:[%s778_s1 + $0x28] sm:$0xff]   ;;  %v590_v18 = vld [vmem:[%s778_s1 + $0x70] sm:$0xff]  }
   0x7   :  { %500 = vmatpush3.bf16.msra.mxu0 %v577_v4  ;;  %v591_v17 = vld [vmem:[%s778_s1 + $0xa8] sm:$0xff]   ;;  %v592_v19 = vld [vmem:[%s778_s1 + $0x30] sm:$0xff]   ;;  %v593_v20 = vld [vmem:[%s778_s1 + $0x78] sm:$0xff]  }
   0x8   :  { %501 = vmatprep.subr.bf16.mxu0 %v578_v5  ;;  %v594_v21 = vld [vmem:[%s778_s1 + $0xb0] sm:$0xff]   ;;  %v595_v23 = vld [vmem:[%s778_s1 + $0x38] sm:$0xff]   ;;  %v596_v26 = vld [vmem:[%s779_s0] ss:$12 sps:$4 sm:$0xff]  }
   0x9   :  { %552 = vmatpush3.bf16.msra.mxu1 %v579_v6  ;;  %v598_v22 = vld [vmem:[%s779_s0 + $0x4] ss:$12 sps:$4 sm:$0xff]   ;;  %v600_v24 = vld [vmem:[%s779_s0 + $0x8] ss:$12 sps:$4 sm:$0xff]   ;;  %v599_v25 = vld [vmem:[%s778_s1 + $0xb8] sm:$0xff]  }
   0xa   :  { %553 = vmatprep.subr.bf16.mxu1 %v582_v9  ;;  %326 = vmatprep.mubr.bf16.mxu0 %v598_v22  ;;  %v602_v27 = vld [vmem:[%s779_s0 + $0x1c] ss:$12 sps:$4 sm:$0xff]   ;;  %v601_v28 = vld [vmem:[%s779_s0 + $0x20] ss:$12 sps:$4 sm:$0xff]   ;;  %v608_v29 = vld [vmem:[%s779_s0 + $0x38] ss:$12 sps:$4 sm:$0xff]  }
   0xb   :  { %502 = vmatpush3.bf16.msra.mxu0 %v580_v7  ;;  %565 = vmatprep.mubr.bf16.mxu1 %v600_v24  ;;  %v604_v30 = vld [vmem:[%s779_s0 + $0x18] ss:$12 sps:$4 sm:$0xff]   ;;  %v605_v31 = vld [vmem:[%s779_s0 + $0x34] ss:$12 sps:$4 sm:$0xff]   ;;  %v609_v32 = vld [vmem:[%s779_s0 + $0x50] ss:$12 sps:$4 sm:$0xff]  }
   0xc   :  { %503 = vmatprep.subr.bf16.mxu0 %v581_v8  ;;  %v607_v33 = vld [vmem:[%s779_s0 + $0x30] ss:$12 sps:$4 sm:$0xff]   ;;  %v610_v34 = vld [vmem:[%s779_s0 + $0x4c] ss:$12 sps:$4 sm:$0xff]   ;;  %v612_v35 = vld [vmem:[%s779_s0 + $0x48] ss:$12 sps:$4 sm:$0xff]  }
   0xd   :  { %554 = vmatpush3.bf16.msra.mxu1 %v582_v9  ;;  %v744_v38 = vld [vmem:[%s780_s2] ss:$0 sm:$0xff] }
   0xe   :  { %555 = vmatprep.subr.bf16.mxu1 %v585_v12 }
   0xf   :  { %504 = vmatpush3.bf16.msra.mxu0 %v583_v10 }
  0x10   :  { %505 = vmatprep.subr.bf16.mxu0 %v584_v11 }
  0x11   :  { %556 = vmatpush3.bf16.msra.mxu1 %v585_v12 }
  0x12   :  { %557 = vmatprep.subr.bf16.mxu1 %v588_v14 }
  0x13   :  { %506 = vmatpush3.bf16.msra.mxu0 %v586_v13 }
  0x14   :  { %507 = vmatprep.subr.bf16.mxu0 %v587_v15 }
  0x15   :  { %558 = vmatpush3.bf16.msra.mxu1 %v588_v14 }
  0x16   :  { %559 = vmatprep.subr.bf16.mxu1 %v591_v17 }
  0x17   :  { %508 = vmatpush3.bf16.msra.mxu0 %v589_v16 }
  0x18   :  { %509 = vmatprep.subr.bf16.mxu0 %v590_v18 }
  0x19   :  { %560 = vmatpush3.bf16.msra.mxu1 %v591_v17 }
  0x1a   :  { %561 = vmatprep.subr.bf16.mxu1 %v594_v21 }
  0x1b   :  { %510 = vmatpush3.bf16.msra.mxu0 %v592_v19 }
  0x1c   :  { %511 = vmatprep.subr.bf16.mxu0 %v593_v20 }
  0x1d   :  { %562 = vmatpush3.bf16.msra.mxu1 %v594_v21 }
  0x1e   :  { %563 = vmatprep.subr.bf16.mxu1 %v599_v25 }
  0x1f   :  { %512 = vmatpush3.bf16.msra.mxu0 %v595_v23 }
  0x21   :  { %564 = vmatpush3.bf16.msra.mxu1 %v599_v25 }
  0x22   :  { %327 = vmatmul.mubr.bf16.vlgmr.msra.gmra.mrb[0].mxu0 %v596_v26 }
  0x23   :  { %334 = vmatprep.mubr.bf16.mxu0 %v602_v27 }
  0x24   :  { %566 = vmatmul.mubr.bf16.vlgmr.msra.gmra.mrb[0].mxu1 %v601_v28 }
  0x25   :  { %569 = vmatprep.mubr.bf16.mxu1 %v608_v29 }
  0x2a   :  { %335 = vmatmul.mubr.bf16.gmra.mrb[4].mxu0 %v604_v30 }
  0x2b   :  { %342 = vmatprep.mubr.bf16.mxu0 %v605_v31 }
  0x2c   :  { %570 = vmatmul.mubr.bf16.gmra.mrb[4].mxu1 %v609_v32 }
  0x32   :  { %343 = vmatmul.mubr.bf16.gmra.mrb[8].mxu0 %v607_v33 }
  0x33   :  { %350 = vmatprep.mubr.bf16.mxu0 %v610_v34 }
  0x3a   :  { %351 = vmatmul.mubr.bf16.gmra.mrb[12].mxu0 %v612_v35 }
  0xf5   :  { %v513_v36 = vpop.f32.mrb[0].mxu0 }
  0xf6   :  { %v514_v37 = vpop.f32.mrb[1].mxu0 }
  0xf7   :  { %v515_v39 = vadd.f32 %v514_v37, %v513_v36  ;;  %v516_v40 = vpop.f32.mrb[2].mxu0  ;;  %v567_v42 = vpop.f32.mrb[0].mxu1 }
  0xf8   :  { %v517_v41 = vpop.f32.mrb[3].mxu0  ;;  %v393_v45 = vpop.f32.mrb[1].mxu1 }
  0xf9   :  { %v518_v43 = vadd.f32 %v517_v41, %v516_v40  ;;  %v329_v44 = vadd.f32 %v515_v39, %v744_v38  ;;  %v568_v46 = vpop.f32.mrb[2].mxu1 }
  0xfa   :  { %v396_v49 = vpop.f32.mrb[3].mxu1 }
  0xfb   :  { %v394_v47 = vadd.f32 %v393_v45, %v329_v44  ;;  %v332_v48 = vadd.f32 %v518_v43, %v744_v38 }
  0xfd   :  { %vm424_vm0 = vcmp.gt.f32.partialorder %v394_v47, 0.0  ;;  %v432_v50 = vmul.f32 0.2, %v394_v47  ;;  %v397_v51 = vadd.f32 %v396_v49, %v332_v48  ;;  %v519_v52 = vpop.f32.mrb[4].mxu0 }
  0xfe   :  { %v520_v53 = vpop.f32.mrb[5].mxu0 }
  0xff   :  { %v440_v54 = vsel %vm424_vm0, %v394_v47, %v432_v50  ;;  %vm425_vm1 = vcmp.gt.f32.partialorder %v397_v51, 0.0  ;;  %v433_v55 = vmul.f32 0.2, %v397_v51  ;;  %v521_v56 = vadd.f32 %v520_v53, %v519_v52  ;;  %v522_v57 = vpop.f32.mrb[6].mxu0  ;;  %v571_v59 = vpop.f32.mrb[4].mxu1 }
 0x100   :  { %448 = vst [vmem:[%s781_s3] sm:$0xff] %v440_v54  ;;  %v523_v58 = vpop.f32.mrb[7].mxu0  ;;  %v409_v63 = vpop.f32.mrb[5].mxu1 }
 0x101   :  { %v441_v60 = vsel %vm425_vm1, %v397_v51, %v433_v55  ;;  %v337_v61 = vadd.f32 %v521_v56, %v744_v38  ;;  %v524_v62 = vadd.f32 %v523_v58, %v522_v57  ;;  %v572_v0 = vpop.f32.mrb[6].mxu1 }
 0x102   :  { %449 = vst [vmem:[%s781_s3 + $0x8] sm:$0xff] %v441_v60  ;;  %v412_v3 = vpop.f32.mrb[7].mxu1 }
 0x103   :  { %v402_v1 = vadd.f32 %v567_v42, %v337_v61  ;;  %v340_v2 = vadd.f32 %v524_v62, %v744_v38 }
 0x105   :  { %vm426_vm2 = vcmp.gt.f32.partialorder %v402_v1, 0.0  ;;  %v434_v4 = vmul.f32 0.2, %v402_v1  ;;  %v405_v5 = vadd.f32 %v568_v46, %v340_v2  ;;  %v525_v6 = vpop.f32.mrb[8].mxu0 }
 0x106   :  { %v526_v7 = vpop.f32.mrb[9].mxu0 }
 0x107   :  { %v442_v8 = vsel %vm426_vm2, %v402_v1, %v434_v4  ;;  %vm427_vm3 = vcmp.gt.f32.partialorder %v405_v5, 0.0  ;;  %v435_v9 = vmul.f32 0.2, %v405_v5  ;;  %v527_v10 = vadd.f32 %v526_v7, %v525_v6  ;;  %v528_v11 = vpop.f32.mrb[10].mxu0 }
 0x108   :  { %450 = vst [vmem:[%s781_s3 + $0x10] sm:$0xff] %v442_v8  ;;  %v529_v12 = vpop.f32.mrb[11].mxu0 }
 0x109   :  { %v443_v13 = vsel %vm427_vm3, %v405_v5, %v435_v9  ;;  %v530_v14 = vadd.f32 %v529_v12, %v528_v11  ;;  %v345_v15 = vadd.f32 %v527_v10, %v744_v38 }
 0x10a   :  { %451 = vst [vmem:[%s781_s3 + $0x18] sm:$0xff] %v443_v13 }
 0x10b   :  { %v410_v16 = vadd.f32 %v409_v63, %v345_v15  ;;  %v348_v17 = vadd.f32 %v530_v14, %v744_v38 }
 0x10d   :  { %vm428_vm4 = vcmp.gt.f32.partialorder %v410_v16, 0.0  ;;  %v436_v18 = vmul.f32 0.2, %v410_v16  ;;  %v413_v19 = vadd.f32 %v412_v3, %v348_v17  ;;  %v531_v20 = vpop.f32.mrb[12].mxu0 }
 0x10e   :  { %v532_v21 = vpop.f32.mrb[13].mxu0 }
 0x10f   :  { %v444_v22 = vsel %vm428_vm4, %v410_v16, %v436_v18  ;;  %vm429_vm5 = vcmp.gt.f32.partialorder %v413_v19, 0.0  ;;  %v437_v23 = vmul.f32 0.2, %v413_v19  ;;  %v533_v24 = vadd.f32 %v532_v21, %v531_v20  ;;  %v534_v25 = vpop.f32.mrb[14].mxu0 }
 0x110   :  { %452 = vst [vmem:[%s781_s3 + $0x20] sm:$0xff] %v444_v22  ;;  %v535_v26 = vpop.f32.mrb[15].mxu0 }
 0x111   :  { %v445_v27 = vsel %vm429_vm5, %v413_v19, %v437_v23  ;;  %v353_v28 = vadd.f32 %v533_v24, %v744_v38  ;;  %v536_v29 = vadd.f32 %v535_v26, %v534_v25 }
 0x112   :  { %453 = vst [vmem:[%s781_s3 + $0x28] sm:$0xff] %v445_v27 }
 0x113   :  { %v418_v30 = vadd.f32 %v571_v59, %v353_v28  ;;  %v356_v31 = vadd.f32 %v536_v29, %v744_v38 }
 0x115   :  { %vm430_vm6 = vcmp.gt.f32.partialorder %v418_v30, 0.0  ;;  %v438_v32 = vmul.f32 0.2, %v418_v30  ;;  %v421_v33 = vadd.f32 %v572_v0, %v356_v31 }
 0x117   :  { %v446_v34 = vsel %vm430_vm6, %v418_v30, %v438_v32  ;;  %vm431_vm7 = vcmp.gt.f32.partialorder %v421_v33, 0.0  ;;  %v439_v35 = vmul.f32 0.2, %v421_v33 }
 0x118   :  { %454 = vst [vmem:[%s781_s3 + $0x30] sm:$0xff] %v446_v34 }
 0x119   :  { %v447_v36 = vsel %vm431_vm7, %v421_v33, %v439_v35 }
 0x11a   :  { %455 = vst [vmem:[%s781_s3 + $0x38] sm:$0xff] %v447_v36 }

// kernel: dgcnn_with_color_forward.30
= control target key start
LH: loop header
LB: loop body
LE: loop exit
PB: predicated region body
PF: predicated region fallthrough
CT: control target
= control target key end

     0   :  { %s2404_s1 = inlined_call_operand.vmem [shape: bf16[512,512], index: 1, kind: input, shape index: {}]   ;;  %s2405_s0 = inlined_call_operand.vmem [shape: bf16[64,512], index: 0, kind: input, shape index: {}]   ;;  %s2406_s2 = inlined_call_operand.vmem [shape: f32[1,512], index: 2, kind: input, shape index: {}]   ;;  %s2407_s3 = inlined_call_operand.vmem [shape: bf16[64,512], index: 3, kind: output, shape index: {}]  }
   0x1   :  { %v1644_v0 = vld [vmem:[%s2404_s1 + $0x4] ss:$16 sps:$4 sm:$0xff]   ;;  %v1646_v1 = vld [vmem:[%s2404_s1 + $0xc] ss:$16 sps:$4 sm:$0xff]   ;;  %v1648_v2 = vld [vmem:[%s2404_s1] ss:$16 sps:$4 sm:$0xff]  }
   0x2   :  { %900 = vmatprep.subr.bf16.mxu0 %v1644_v0  ;;  %v1649_v3 = vld [vmem:[%s2404_s1 + $0x8] ss:$16 sps:$4 sm:$0xff]   ;;  %1046 = vmatprep.subr.bf16.mxu1 %v1646_v1  ;;  %v1650_v4 = vld [vmem:[%s2404_s1 + $0x24] ss:$16 sps:$4 sm:$0xff]   ;;  %v1652_v5 = vld [vmem:[%s2404_s1 + $0x2c] ss:$16 sps:$4 sm:$0xff]  }
   0x3   :  { %901 = vmatpush1.bf16.msra.mxu0 %v1648_v2  ;;  %1047 = vmatpush1.bf16.msra.mxu1 %v1649_v3  ;;  %v1654_v6 = vld [vmem:[%s2404_s1 + $0x20] ss:$16 sps:$4 sm:$0xff]   ;;  %v1655_v7 = vld [vmem:[%s2404_s1 + $0x28] ss:$16 sps:$4 sm:$0xff]   ;;  %v1656_v8 = vld [vmem:[%s2404_s1 + $0x44] ss:$16 sps:$4 sm:$0xff]  }
   0x4   :  { %902 = vmatprep.subr.bf16.mxu0 %v1650_v4  ;;  %1048 = vmatprep.subr.bf16.mxu1 %v1652_v5  ;;  %v1658_v9 = vld [vmem:[%s2404_s1 + $0x4c] ss:$16 sps:$4 sm:$0xff]   ;;  %v1660_v10 = vld [vmem:[%s2404_s1 + $0x40] ss:$16 sps:$4 sm:$0xff]   ;;  %v1661_v11 = vld [vmem:[%s2404_s1 + $0x48] ss:$16 sps:$4 sm:$0xff]  }
   0x5   :  { %v1662_v12 = vld [vmem:[%s2404_s1 + $0x64] ss:$16 sps:$4 sm:$0xff]   ;;  %v1664_v13 = vld [vmem:[%s2404_s1 + $0x6c] ss:$16 sps:$4 sm:$0xff]   ;;  %v1666_v14 = vld [vmem:[%s2404_s1 + $0x60] ss:$16 sps:$4 sm:$0xff]  }
   0x6   :  { %v1667_v15 = vld [vmem:[%s2404_s1 + $0x68] ss:$16 sps:$4 sm:$0xff]   ;;  %v1668_v16 = vld [vmem:[%s2404_s1 + $0x84] ss:$16 sps:$4 sm:$0xff]   ;;  %v1670_v17 = vld [vmem:[%s2404_s1 + $0x8c] ss:$16 sps:$4 sm:$0xff]  }
   0x7   :  { %903 = vmatpush1.bf16.msra.mxu0 %v1654_v6  ;;  %1049 = vmatpush1.bf16.msra.mxu1 %v1655_v7  ;;  %v1672_v18 = vld [vmem:[%s2404_s1 + $0x80] ss:$16 sps:$4 sm:$0xff]   ;;  %v1673_v19 = vld [vmem:[%s2404_s1 + $0x88] ss:$16 sps:$4 sm:$0xff]   ;;  %v1674_v20 = vld [vmem:[%s2404_s1 + $0xa4] ss:$16 sps:$4 sm:$0xff]  }
   0x8   :  { %904 = vmatprep.subr.bf16.mxu0 %v1656_v8  ;;  %1050 = vmatprep.subr.bf16.mxu1 %v1658_v9  ;;  %v1676_v21 = vld [vmem:[%s2404_s1 + $0xac] ss:$16 sps:$4 sm:$0xff]   ;;  %v1678_v22 = vld [vmem:[%s2404_s1 + $0xa0] ss:$16 sps:$4 sm:$0xff]   ;;  %v1679_v23 = vld [vmem:[%s2404_s1 + $0xa8] ss:$16 sps:$4 sm:$0xff]  }
   0x9   :  { %v1680_v24 = vld [vmem:[%s2404_s1 + $0xc4] ss:$16 sps:$4 sm:$0xff]   ;;  %v1682_v25 = vld [vmem:[%s2404_s1 + $0xcc] ss:$16 sps:$4 sm:$0xff]   ;;  %v1684_v26 = vld [vmem:[%s2404_s1 + $0xc0] ss:$16 sps:$4 sm:$0xff]  }
   0xa   :  { %v1685_v27 = vld [vmem:[%s2404_s1 + $0xc8] ss:$16 sps:$4 sm:$0xff]   ;;  %v1686_v28 = vld [vmem:[%s2404_s1 + $0xe4] ss:$16 sps:$4 sm:$0xff]   ;;  %v1688_v29 = vld [vmem:[%s2404_s1 + $0xec] ss:$16 sps:$4 sm:$0xff]  }
   0xb   :  { %905 = vmatpush1.bf16.msra.mxu0 %v1660_v10  ;;  %1051 = vmatpush1.bf16.msra.mxu1 %v1661_v11  ;;  %v1690_v30 = vld [vmem:[%s2404_s1 + $0xe0] ss:$16 sps:$4 sm:$0xff]   ;;  %v1691_v31 = vld [vmem:[%s2404_s1 + $0xe8] ss:$16 sps:$4 sm:$0xff]   ;;  %v1692_v32 = vld [vmem:[%s2404_s1 + $0x104] ss:$16 sps:$4 sm:$0xff]  }
   0xc   :  { %906 = vmatprep.subr.bf16.mxu0 %v1662_v12  ;;  %1052 = vmatprep.subr.bf16.mxu1 %v1664_v13  ;;  %v1694_v33 = vld [vmem:[%s2404_s1 + $0x10c] ss:$16 sps:$4 sm:$0xff]   ;;  %v1696_v34 = vld [vmem:[%s2404_s1 + $0x100] ss:$16 sps:$4 sm:$0xff]   ;;  %v1697_v35 = vld [vmem:[%s2404_s1 + $0x108] ss:$16 sps:$4 sm:$0xff]  }
   0xd   :  { %v1698_v36 = vld [vmem:[%s2404_s1 + $0x124] ss:$16 sps:$4 sm:$0xff]   ;;  %v1700_v37 = vld [vmem:[%s2404_s1 + $0x12c] ss:$16 sps:$4 sm:$0xff]   ;;  %v1702_v38 = vld [vmem:[%s2404_s1 + $0x120] ss:$16 sps:$4 sm:$0xff]  }
   0xe   :  { %v1703_v39 = vld [vmem:[%s2404_s1 + $0x128] ss:$16 sps:$4 sm:$0xff]   ;;  %v1704_v40 = vld [vmem:[%s2404_s1 + $0x144] ss:$16 sps:$4 sm:$0xff]   ;;  %v1706_v41 = vld [vmem:[%s2404_s1 + $0x14c] ss:$16 sps:$4 sm:$0xff]  }
   0xf   :  { %907 = vmatpush1.bf16.msra.mxu0 %v1666_v14  ;;  %1053 = vmatpush1.bf16.msra.mxu1 %v1667_v15  ;;  %v1708_v42 = vld [vmem:[%s2404_s1 + $0x140] ss:$16 sps:$4 sm:$0xff]   ;;  %v1709_v43 = vld [vmem:[%s2404_s1 + $0x148] ss:$16 sps:$4 sm:$0xff]   ;;  %v1710_v44 = vld [vmem:[%s2404_s1 + $0x164] ss:$16 sps:$4 sm:$0xff]  }
  0x10   :  { %908 = vmatprep.subr.bf16.mxu0 %v1668_v16  ;;  %1054 = vmatprep.subr.bf16.mxu1 %v1670_v17  ;;  %v1712_v45 = vld [vmem:[%s2404_s1 + $0x16c] ss:$16 sps:$4 sm:$0xff]   ;;  %v1714_v46 = vld [vmem:[%s2404_s1 + $0x160] ss:$16 sps:$4 sm:$0xff]   ;;  %v1715_v47 = vld [vmem:[%s2404_s1 + $0x168] ss:$16 sps:$4 sm:$0xff]  }
  0x11   :  { %v1742_v48 = vld [vmem:[%s2405_s0 + $0x4] ss:$16 sps:$4 sm:$0xff]   ;;  %v1718_v50 = vld [vmem:[%s2404_s1 + $0x18c] ss:$16 sps:$4 sm:$0xff]   ;;  %v1720_v51 = vld [vmem:[%s2404_s1 + $0x180] ss:$16 sps:$4 sm:$0xff]  }
  0x12   :  { %v1716_v49 = vld [vmem:[%s2404_s1 + $0x184] ss:$16 sps:$4 sm:$0xff]   ;;  %932 = vmatprep.mubr.bf16.mxu0 %v1742_v48  ;;  %1078 = vmatprep.mubr.bf16.mxu1 %v1742_v48  ;;  %v1721_v52 = vld [vmem:[%s2404_s1 + $0x188] ss:$16 sps:$4 sm:$0xff]   ;;  %v1724_v54 = vld [vmem:[%s2404_s1 + $0x1ac] ss:$16 sps:$4 sm:$0xff]  }
  0x13   :  { %909 = vmatpush1.bf16.msra.mxu0 %v1672_v18  ;;  %1055 = vmatpush1.bf16.msra.mxu1 %v1673_v19  ;;  %v1722_v53 = vld [vmem:[%s2404_s1 + $0x1a4] ss:$16 sps:$4 sm:$0xff]   ;;  %v1726_v55 = vld [vmem:[%s2404_s1 + $0x1a0] ss:$16 sps:$4 sm:$0xff]   ;;  %v1727_v56 = vld [vmem:[%s2404_s1 + $0x1a8] ss:$16 sps:$4 sm:$0xff]  }
  0x14   :  { %910 = vmatprep.subr.bf16.mxu0 %v1674_v20  ;;  %1056 = vmatprep.subr.bf16.mxu1 %v1676_v21  ;;  %v1728_v57 = vld [vmem:[%s2404_s1 + $0x1c4] ss:$16 sps:$4 sm:$0xff]   ;;  %v1730_v58 = vld [vmem:[%s2404_s1 + $0x1cc] ss:$16 sps:$4 sm:$0xff]   ;;  %v1732_v59 = vld [vmem:[%s2404_s1 + $0x1c0] ss:$16 sps:$4 sm:$0xff]  }
  0x15   :  { %v1733_v60 = vld [vmem:[%s2404_s1 + $0x1c8] ss:$16 sps:$4 sm:$0xff]   ;;  %v1734_v61 = vld [vmem:[%s2404_s1 + $0x1e4] ss:$16 sps:$4 sm:$0xff]   ;;  %v1736_v62 = vld [vmem:[%s2404_s1 + $0x1ec] ss:$16 sps:$4 sm:$0xff]  }
  0x16   :  { %v1738_v63 = vld [vmem:[%s2404_s1 + $0x1e0] ss:$16 sps:$4 sm:$0xff]   ;;  %v1739_v0 = vld [vmem:[%s2404_s1 + $0x1e8] ss:$16 sps:$4 sm:$0xff]   ;;  %v1745_v1 = vld [vmem:[%s2404_s1 + $0x204] ss:$16 sps:$4 sm:$0xff]  }
  0x17   :  { %911 = vmatpush1.bf16.msra.mxu0 %v1678_v22  ;;  %1057 = vmatpush1.bf16.msra.mxu1 %v1679_v23  ;;  %v1748_v2 = vld [vmem:[%s2404_s1 + $0x20c] ss:$16 sps:$4 sm:$0xff]   ;;  %v1740_v3 = vld [vmem:[%s2405_s0] ss:$16 sps:$4 sm:$0xff]   ;;  %v1746_v5 = vld [vmem:[%s2404_s1 + $0x208] ss:$16 sps:$4 sm:$0xff]  }
  0x18   :  { %912 = vmatprep.subr.bf16.mxu0 %v1680_v24  ;;  %1058 = vmatprep.subr.bf16.mxu1 %v1682_v25  ;;  %v1743_v4 = vld [vmem:[%s2404_s1 + $0x200] ss:$16 sps:$4 sm:$0xff]   ;;  %v1751_v6 = vld [vmem:[%s2404_s1 + $0x224] ss:$16 sps:$4 sm:$0xff]   ;;  %v1754_v7 = vld [vmem:[%s2404_s1 + $0x22c] ss:$16 sps:$4 sm:$0xff]  }
  0x19   :  { %v1749_v8 = vld [vmem:[%s2404_s1 + $0x220] ss:$16 sps:$4 sm:$0xff]   ;;  %v1752_v9 = vld [vmem:[%s2404_s1 + $0x228] ss:$16 sps:$4 sm:$0xff]   ;;  %v1757_v10 = vld [vmem:[%s2404_s1 + $0x244] ss:$16 sps:$4 sm:$0xff]  }
  0x1a   :  { %v1760_v11 = vld [vmem:[%s2404_s1 + $0x24c] ss:$16 sps:$4 sm:$0xff]   ;;  %v1755_v12 = vld [vmem:[%s2404_s1 + $0x240] ss:$16 sps:$4 sm:$0xff]   ;;  %v1758_v13 = vld [vmem:[%s2404_s1 + $0x248] ss:$16 sps:$4 sm:$0xff]  }
  0x1b   :  { %913 = vmatpush1.bf16.msra.mxu0 %v1684_v26  ;;  %1059 = vmatpush1.bf16.msra.mxu1 %v1685_v27  ;;  %v1803_v14 = vld [vmem:[%s2405_s0 + $0x24] ss:$16 sps:$4 sm:$0xff]   ;;  %v1805_v15 = vld [vmem:[%s2405_s0 + $0x20] ss:$16 sps:$4 sm:$0xff]   ;;  %v1766_v17 = vld [vmem:[%s2404_s1 + $0x26c] ss:$16 sps:$4 sm:$0xff]  }
  0x1c   :  { %914 = vmatprep.subr.bf16.mxu0 %v1686_v28  ;;  %1060 = vmatprep.subr.bf16.mxu1 %v1688_v29  ;;  %v1763_v16 = vld [vmem:[%s2404_s1 + $0x264] ss:$16 sps:$4 sm:$0xff]   ;;  %v1761_v18 = vld [vmem:[%s2404_s1 + $0x260] ss:$16 sps:$4 sm:$0xff]   ;;  %v1764_v19 = vld [vmem:[%s2404_s1 + $0x268] ss:$16 sps:$4 sm:$0xff]  }
  0x1d   :  { %v1769_v20 = vld [vmem:[%s2404_s1 + $0x284] ss:$16 sps:$4 sm:$0xff]   ;;  %v1772_v21 = vld [vmem:[%s2404_s1 + $0x28c] ss:$16 sps:$4 sm:$0xff]   ;;  %v1767_v22 = vld [vmem:[%s2404_s1 + $0x280] ss:$16 sps:$4 sm:$0xff]  }
  0x1e   :  { %v1818_v23 = vld [vmem:[%s2405_s0 + $0x44] ss:$16 sps:$4 sm:$0xff]   ;;  %v1770_v24 = vld [vmem:[%s2404_s1 + $0x288] ss:$16 sps:$4 sm:$0xff]   ;;  %v1820_v25 = vld [vmem:[%s2405_s0 + $0x40] ss:$16 sps:$4 sm:$0xff]  }
  0x1f   :  { %915 = vmatpush1.bf16.msra.mxu0 %v1690_v30  ;;  %1061 = vmatpush1.bf16.msra.mxu1 %v1691_v31  ;;  %v1775_v26 = vld [vmem:[%s2404_s1 + $0x2a4] ss:$16 sps:$4 sm:$0xff]   ;;  %v1778_v27 = vld [vmem:[%s2404_s1 + $0x2ac] ss:$16 sps:$4 sm:$0xff]   ;;  %v1773_v28 = vld [vmem:[%s2404_s1 + $0x2a0] ss:$16 sps:$4 sm:$0xff]  }
  0x20   :  { %916 = vmatprep.subr.bf16.mxu0 %v1692_v32  ;;  %1062 = vmatprep.subr.bf16.mxu1 %v1694_v33  ;;  %v1776_v29 = vld [vmem:[%s2404_s1 + $0x2a8] ss:$16 sps:$4 sm:$0xff]   ;;  %v1781_v30 = vld [vmem:[%s2404_s1 + $0x2c4] ss:$16 sps:$4 sm:$0xff]   ;;  %v1784_v32 = vld [vmem:[%s2404_s1 + $0x2cc] ss:$16 sps:$4 sm:$0xff]  }
  0x21   :  { %v1833_v31 = vld [vmem:[%s2405_s0 + $0x64] ss:$16 sps:$4 sm:$0xff]   ;;  %v1779_v33 = vld [vmem:[%s2404_s1 + $0x2c0] ss:$16 sps:$4 sm:$0xff]   ;;  %v1800_v48 = vld [vmem:[%s2404_s1 + $0x328] ss:$16 sps:$4 sm:$0xff]  }
  0x23   :  { %917 = vmatpush1.bf16.msra.mxu0 %v1696_v34  ;;  %1063 = vmatpush1.bf16.msra.mxu1 %v1697_v35  ;;  %v1782_v34 = vld [vmem:[%s2404_s1 + $0x2c8] ss:$16 sps:$4 sm:$0xff]   ;;  %v1835_v35 = vld [vmem:[%s2405_s0 + $0x60] ss:$16 sps:$4 sm:$0xff]  }
  0x24   :  { %918 = vmatprep.subr.bf16.mxu0 %v1698_v36  ;;  %1064 = vmatprep.subr.bf16.mxu1 %v1700_v37  ;;  %v1787_v36 = vld [vmem:[%s2404_s1 + $0x2e4] ss:$16 sps:$4 sm:$0xff]   ;;  %v1790_v37 = vld [vmem:[%s2404_s1 + $0x2ec] ss:$16 sps:$4 sm:$0xff]  }
  0x27   :  { %919 = vmatpush1.bf16.msra.mxu0 %v1702_v38  ;;  %1065 = vmatpush1.bf16.msra.mxu1 %v1703_v39  ;;  %v1785_v38 = vld [vmem:[%s2404_s1 + $0x2e0] ss:$16 sps:$4 sm:$0xff]   ;;  %v1788_v39 = vld [vmem:[%s2404_s1 + $0x2e8] ss:$16 sps:$4 sm:$0xff]  }
  0x28   :  { %920 = vmatprep.subr.bf16.mxu0 %v1704_v40  ;;  %1066 = vmatprep.subr.bf16.mxu1 %v1706_v41  ;;  %v1850_v40 = vld [vmem:[%s2405_s0 + $0xc] ss:$16 sps:$4 sm:$0xff]   ;;  %v1793_v41 = vld [vmem:[%s2404_s1 + $0x304] ss:$16 sps:$4 sm:$0xff]  }
  0x2b   :  { %921 = vmatpush1.bf16.msra.mxu0 %v1708_v42  ;;  %1067 = vmatpush1.bf16.msra.mxu1 %v1709_v43  ;;  %v1796_v42 = vld [vmem:[%s2404_s1 + $0x30c] ss:$16 sps:$4 sm:$0xff]   ;;  %v1791_v43 = vld [vmem:[%s2404_s1 + $0x300] ss:$16 sps:$4 sm:$0xff]  }
  0x2c   :  { %922 = vmatprep.subr.bf16.mxu0 %v1710_v44  ;;  %1068 = vmatprep.subr.bf16.mxu1 %v1712_v45  ;;  %v1794_v44 = vld [vmem:[%s2404_s1 + $0x308] ss:$16 sps:$4 sm:$0xff]   ;;  %v1799_v45 = vld [vmem:[%s2404_s1 + $0x324] ss:$16 sps:$4 sm:$0xff]  }
  0x2f   :  { %923 = vmatpush1.bf16.msra.mxu0 %v1714_v46  ;;  %1069 = vmatpush1.bf16.msra.mxu1 %v1715_v47  ;;  %v1802_v46 = vld [vmem:[%s2404_s1 + $0x32c] ss:$16 sps:$4 sm:$0xff]   ;;  %v1797_v47 = vld [vmem:[%s2404_s1 + $0x320] ss:$16 sps:$4 sm:$0xff]  }
  0x30   :  { %924 = vmatprep.subr.bf16.mxu0 %v1716_v49  ;;  %1070 = vmatprep.subr.bf16.mxu1 %v1718_v50  ;;  %v1808_v49 = vld [vmem:[%s2404_s1 + $0x344] ss:$16 sps:$4 sm:$0xff]   ;;  %v1811_v50 = vld [vmem:[%s2404_s1 + $0x34c] ss:$16 sps:$4 sm:$0xff]  }
  0x33   :  { %925 = vmatpush1.bf16.msra.mxu0 %v1720_v51  ;;  %1071 = vmatpush1.bf16.msra.mxu1 %v1721_v52  ;;  %v1806_v51 = vld [vmem:[%s2404_s1 + $0x340] ss:$16 sps:$4 sm:$0xff]   ;;  %v1809_v52 = vld [vmem:[%s2404_s1 + $0x348] ss:$16 sps:$4 sm:$0xff]  }
  0x34   :  { %926 = vmatprep.subr.bf16.mxu0 %v1722_v53  ;;  %1072 = vmatprep.subr.bf16.mxu1 %v1724_v54  ;;  %v1814_v53 = vld [vmem:[%s2404_s1 + $0x364] ss:$16 sps:$4 sm:$0xff]   ;;  %v1817_v54 = vld [vmem:[%s2404_s1 + $0x36c] ss:$16 sps:$4 sm:$0xff]  }
  0x37   :  { %927 = vmatpush1.bf16.msra.mxu0 %v1726_v55  ;;  %1073 = vmatpush1.bf16.msra.mxu1 %v1727_v56  ;;  %v1812_v55 = vld [vmem:[%s2404_s1 + $0x360] ss:$16 sps:$4 sm:$0xff]   ;;  %v1815_v56 = vld [vmem:[%s2404_s1 + $0x368] ss:$16 sps:$4 sm:$0xff]  }
  0x38   :  { %928 = vmatprep.subr.bf16.mxu0 %v1728_v57  ;;  %1074 = vmatprep.subr.bf16.mxu1 %v1730_v58  ;;  %v1823_v57 = vld [vmem:[%s2404_s1 + $0x384] ss:$16 sps:$4 sm:$0xff]   ;;  %v1826_v58 = vld [vmem:[%s2404_s1 + $0x38c] ss:$16 sps:$4 sm:$0xff]  }
  0x3b   :  { %929 = vmatpush1.bf16.msra.mxu0 %v1732_v59  ;;  %1075 = vmatpush1.bf16.msra.mxu1 %v1733_v60  ;;  %v1821_v59 = vld [vmem:[%s2404_s1 + $0x380] ss:$16 sps:$4 sm:$0xff]   ;;  %v1824_v60 = vld [vmem:[%s2404_s1 + $0x388] ss:$16 sps:$4 sm:$0xff]  }
  0x3c   :  { %930 = vmatprep.subr.bf16.mxu0 %v1734_v61  ;;  %1076 = vmatprep.subr.bf16.mxu1 %v1736_v62  ;;  %v1829_v61 = vld [vmem:[%s2404_s1 + $0x3a4] ss:$16 sps:$4 sm:$0xff]   ;;  %v1832_v62 = vld [vmem:[%s2404_s1 + $0x3ac] ss:$16 sps:$4 sm:$0xff]  }
  0x3f   :  { %931 = vmatpush1.bf16.msra.mxu0 %v1738_v63  ;;  %1077 = vmatpush1.bf16.msra.mxu1 %v1739_v0  ;;  %v1827_v63 = vld [vmem:[%s2404_s1 + $0x3a0] ss:$16 sps:$4 sm:$0xff]   ;;  %v1830_v0 = vld [vmem:[%s2404_s1 + $0x3a8] ss:$16 sps:$4 sm:$0xff]  }
  0x40   :  { %973 = vmatprep.subr.bf16.mxu0 %v1745_v1  ;;  %1119 = vmatprep.subr.bf16.mxu1 %v1748_v2  ;;  %v1838_v1 = vld [vmem:[%s2404_s1 + $0x3c4] ss:$16 sps:$4 sm:$0xff]   ;;  %v1841_v2 = vld [vmem:[%s2404_s1 + $0x3cc] ss:$16 sps:$4 sm:$0xff]  }
  0x42   :  { %933 = vmatmul.mubr.bf16.vlgmr.msra.gmra.mrb[0].mxu0 %v1740_v3  ;;  %1079 = vmatmul.mubr.bf16.vlgmr.msra.gmra.mrb[0].mxu1 %v1740_v3  ;;  %v1836_v3 = vld [vmem:[%s2404_s1 + $0x3c0] ss:$16 sps:$4 sm:$0xff]  }
  0x43   :  { %974 = vmatpush1.bf16.msra.mxu0 %v1743_v4  ;;  %1120 = vmatpush1.bf16.msra.mxu1 %v1746_v5  ;;  %v1839_v4 = vld [vmem:[%s2404_s1 + $0x3c8] ss:$16 sps:$4 sm:$0xff]   ;;  %v1844_v5 = vld [vmem:[%s2404_s1 + $0x3e4] ss:$16 sps:$4 sm:$0xff]  }
  0x44   :  { %975 = vmatprep.subr.bf16.mxu0 %v1751_v6  ;;  %1121 = vmatprep.subr.bf16.mxu1 %v1754_v7  ;;  %v1847_v6 = vld [vmem:[%s2404_s1 + $0x3ec] ss:$16 sps:$4 sm:$0xff]   ;;  %v1842_v7 = vld [vmem:[%s2404_s1 + $0x3e0] ss:$16 sps:$4 sm:$0xff]  }
  0x45   :  { %942 = vmatprep.mubr.bf16.mxu0 %v1803_v14  ;;  %1088 = vmatprep.mubr.bf16.mxu1 %v1803_v14  ;;  %v1857_v14 = vld [vmem:[%s2405_s0 + $0x6c] ss:$16 sps:$4 sm:$0xff]  }
  0x47   :  { %976 = vmatpush1.bf16.msra.mxu0 %v1749_v8  ;;  %1122 = vmatpush1.bf16.msra.mxu1 %v1752_v9  ;;  %v1845_v8 = vld [vmem:[%s2404_s1 + $0x3e8] ss:$16 sps:$4 sm:$0xff]  }
  0x48   :  { %977 = vmatprep.subr.bf16.mxu0 %v1757_v10  ;;  %1123 = vmatprep.subr.bf16.mxu1 %v1760_v11  ;;  %v1848_v9 = vld [vmem:[%s2405_s0 + $0x8] ss:$16 sps:$4 sm:$0xff]   ;;  %v1851_v10 = vld [vmem:[%s2405_s0 + $0x2c] ss:$16 sps:$4 sm:$0xff]  }
  0x49   :  { %v1853_v11 = vld [vmem:[%s2405_s0 + $0x28] ss:$16 sps:$4 sm:$0xff]  }
  0x4a   :  { %943 = vmatmul.mubr.bf16.gmra.mrb[4].mxu0 %v1805_v15  ;;  %1089 = vmatmul.mubr.bf16.gmra.mrb[4].mxu1 %v1805_v15  ;;  %v1859_v15 = vld [vmem:[%s2405_s0 + $0x68] ss:$16 sps:$4 sm:$0xff]  }
  0x4b   :  { %978 = vmatpush1.bf16.msra.mxu0 %v1755_v12  ;;  %1124 = vmatpush1.bf16.msra.mxu1 %v1758_v13  ;;  %v1854_v12 = vld [vmem:[%s2405_s0 + $0x4c] ss:$16 sps:$4 sm:$0xff]   ;;  %v1856_v13 = vld [vmem:[%s2405_s0 + $0x48] ss:$16 sps:$4 sm:$0xff]  }
  0x4c   :  { %979 = vmatprep.subr.bf16.mxu0 %v1763_v16  ;;  %1125 = vmatprep.subr.bf16.mxu1 %v1766_v17  ;;  %v160_v16 = vlaneseq }
  0x4d   :  { %952 = vmatprep.mubr.bf16.mxu0 %v1818_v23  ;;  %1098 = vmatprep.mubr.bf16.mxu1 %v1818_v23 }
  0x4e   :  { %v161_v17 = vshrl.u32 %v160_v16, 7 }
  0x4f   :  { %980 = vmatpush1.bf16.msra.mxu0 %v1761_v18  ;;  %1126 = vmatpush1.bf16.msra.mxu1 %v1764_v19 }
  0x50   :  { %981 = vmatprep.subr.bf16.mxu0 %v1769_v20  ;;  %1127 = vmatprep.subr.bf16.mxu1 %v1772_v21  ;;  %v162_v18 = vsub.s32 0, %v161_v17  ;;  %v170_v19 = vsub.s32 2, %v161_v17  ;;  %v158_v20 = vld [vmem:[%s2406_s2] sm:$0xf]  ;;  %v166_v21 = vsub.s32 1, %v161_v17 }
  0x52   :  { %953 = vmatmul.mubr.bf16.gmra.mrb[8].mxu0 %v1820_v25  ;;  %1099 = vmatmul.mubr.bf16.gmra.mrb[8].mxu1 %v1820_v25  ;;  %v2315_v23 = vrot.slane %v158_v20, %v162_v18  ;;  %v2319_v25 = vrot.slane %v158_v20, %v166_v21 }
  0x53   :  { %982 = vmatpush1.bf16.msra.mxu0 %v1767_v22  ;;  %1128 = vmatpush1.bf16.msra.mxu1 %v1770_v24  ;;  %v174_v22 = vsub.s32 3, %v161_v17  ;;  %v2317_v24 = vrot.slane %v158_v20, %v170_v19 }
  0x54   :  { %983 = vmatprep.subr.bf16.mxu0 %v1775_v26  ;;  %1129 = vmatprep.subr.bf16.mxu1 %v1778_v27 }
  0x55   :  { %962 = vmatprep.mubr.bf16.mxu0 %v1833_v31  ;;  %1108 = vmatprep.mubr.bf16.mxu1 %v1833_v31  ;;  %v2321_v26 = vrot.slane %v158_v20, %v174_v22 }
  0x57   :  { %984 = vmatpush1.bf16.msra.mxu0 %v1773_v28  ;;  %1130 = vmatpush1.bf16.msra.mxu1 %v1776_v29 }
  0x58   :  { %985 = vmatprep.subr.bf16.mxu0 %v1781_v30  ;;  %1131 = vmatprep.subr.bf16.mxu1 %v1784_v32 }
  0x5a   :  { %963 = vmatmul.mubr.bf16.gmra.mrb[12].mxu0 %v1835_v35  ;;  %1109 = vmatmul.mubr.bf16.gmra.mrb[12].mxu1 %v1835_v35 }
  0x5b   :  { %986 = vmatpush1.bf16.msra.mxu0 %v1779_v33  ;;  %1132 = vmatpush1.bf16.msra.mxu1 %v1782_v34 }
  0x5c   :  { %987 = vmatprep.subr.bf16.mxu0 %v1787_v36  ;;  %1133 = vmatprep.subr.bf16.mxu1 %v1790_v37 }
  0x5d   :  { %1005 = vmatprep.mubr.bf16.mxu0 %v1850_v40  ;;  %1151 = vmatprep.mubr.bf16.mxu1 %v1850_v40 }
  0x5f   :  { %988 = vmatpush1.bf16.msra.mxu0 %v1785_v38  ;;  %1134 = vmatpush1.bf16.msra.mxu1 %v1788_v39 }
  0x60   :  { %989 = vmatprep.subr.bf16.mxu0 %v1793_v41  ;;  %1135 = vmatprep.subr.bf16.mxu1 %v1796_v42 }
  0x63   :  { %990 = vmatpush1.bf16.msra.mxu0 %v1791_v43  ;;  %1136 = vmatpush1.bf16.msra.mxu1 %v1794_v44 }
  0x64   :  { %991 = vmatprep.subr.bf16.mxu0 %v1799_v45  ;;  %1137 = vmatprep.subr.bf16.mxu1 %v1802_v46 }
  0x67   :  { %992 = vmatpush1.bf16.msra.mxu0 %v1797_v47  ;;  %1138 = vmatpush1.bf16.msra.mxu1 %v1800_v48 }
  0x68   :  { %993 = vmatprep.subr.bf16.mxu0 %v1808_v49  ;;  %1139 = vmatprep.subr.bf16.mxu1 %v1811_v50 }
  0x6b   :  { %994 = vmatpush1.bf16.msra.mxu0 %v1806_v51  ;;  %1140 = vmatpush1.bf16.msra.mxu1 %v1809_v52 }
  0x6c   :  { %995 = vmatprep.subr.bf16.mxu0 %v1814_v53  ;;  %1141 = vmatprep.subr.bf16.mxu1 %v1817_v54 }
  0x6f   :  { %996 = vmatpush1.bf16.msra.mxu0 %v1812_v55  ;;  %1142 = vmatpush1.bf16.msra.mxu1 %v1815_v56 }
  0x70   :  { %997 = vmatprep.subr.bf16.mxu0 %v1823_v57  ;;  %1143 = vmatprep.subr.bf16.mxu1 %v1826_v58 }
  0x73   :  { %998 = vmatpush1.bf16.msra.mxu0 %v1821_v59  ;;  %1144 = vmatpush1.bf16.msra.mxu1 %v1824_v60 }
  0x74   :  { %999 = vmatprep.subr.bf16.mxu0 %v1829_v61  ;;  %1145 = vmatprep.subr.bf16.mxu1 %v1832_v62 }
  0x77   :  { %1000 = vmatpush1.bf16.msra.mxu0 %v1827_v63  ;;  %1146 = vmatpush1.bf16.msra.mxu1 %v1830_v0 }
  0x78   :  { %1001 = vmatprep.subr.bf16.mxu0 %v1838_v1  ;;  %1147 = vmatprep.subr.bf16.mxu1 %v1841_v2 }
  0x7b   :  { %1002 = vmatpush1.bf16.msra.mxu0 %v1836_v3  ;;  %1148 = vmatpush1.bf16.msra.mxu1 %v1839_v4 }
  0x7c   :  { %1003 = vmatprep.subr.bf16.mxu0 %v1844_v5  ;;  %1149 = vmatprep.subr.bf16.mxu1 %v1847_v6 }
  0x7f   :  { %1004 = vmatpush1.bf16.msra.mxu0 %v1842_v7  ;;  %1150 = vmatpush1.bf16.msra.mxu1 %v1845_v8 }
  0x82   :  { %1006 = vmatmul.mubr.bf16.vlgmr.msra.gmra.mrb[0].mxu0 %v1848_v9  ;;  %1152 = vmatmul.mubr.bf16.vlgmr.msra.gmra.mrb[0].mxu1 %v1848_v9 }
  0x83   :  { %1015 = vmatprep.mubr.bf16.mxu0 %v1851_v10  ;;  %1161 = vmatprep.mubr.bf16.mxu1 %v1851_v10 }
  0x8a   :  { %1016 = vmatmul.mubr.bf16.gmra.mrb[4].mxu0 %v1853_v11  ;;  %1162 = vmatmul.mubr.bf16.gmra.mrb[4].mxu1 %v1853_v11 }
  0x8b   :  { %1025 = vmatprep.mubr.bf16.mxu0 %v1854_v12  ;;  %1171 = vmatprep.mubr.bf16.mxu1 %v1854_v12 }
  0x92   :  { %1026 = vmatmul.mubr.bf16.gmra.mrb[8].mxu0 %v1856_v13  ;;  %1172 = vmatmul.mubr.bf16.gmra.mrb[8].mxu1 %v1856_v13 }
  0x93   :  { %1035 = vmatprep.mubr.bf16.mxu0 %v1857_v14  ;;  %1181 = vmatprep.mubr.bf16.mxu1 %v1857_v14 }
  0x9a   :  { %1036 = vmatmul.mubr.bf16.gmra.mrb[12].mxu0 %v1859_v15  ;;  %1182 = vmatmul.mubr.bf16.gmra.mrb[12].mxu1 %v1859_v15 }
 0x155   :  { %v1007_v27 = vpop.f32.mrb[0].mxu0  ;;  %v1153_v28 = vpop.f32.mrb[0].mxu1 }
 0x156   :  { %v1580_v29 = vadd.f32 %v1007_v27, %v2315_v23  ;;  %v1596_v30 = vadd.f32 %v1153_v28, %v2317_v24  ;;  %v1009_v31 = vpop.f32.mrb[1].mxu0  ;;  %v1155_v32 = vpop.f32.mrb[1].mxu1 }
 0x157   :  { %v1581_v33 = vadd.f32 %v1009_v31, %v2319_v25  ;;  %v1597_v34 = vadd.f32 %v1155_v32, %v2321_v26  ;;  %v1011_v35 = vpop.f32.mrb[2].mxu0  ;;  %v1157_v36 = vpop.f32.mrb[2].mxu1 }
 0x158   :  { %vm1192_vm0 = vcmp.gt.f32.partialorder %v1580_v29, 0.0  ;;  %v1224_v37 = vmul.f32 0.2, %v1580_v29  ;;  %vm1194_vm1 = vcmp.gt.f32.partialorder %v1596_v30, 0.0  ;;  %v1226_v38 = vmul.f32 0.2, %v1596_v30 }
 0x159   :  { %vm1193_vm2 = vcmp.gt.f32.partialorder %v1581_v33, 0.0  ;;  %v1225_v39 = vmul.f32 0.2, %v1581_v33  ;;  %vm1195_vm3 = vcmp.gt.f32.partialorder %v1597_v34, 0.0  ;;  %v1227_v40 = vmul.f32 0.2, %v1597_v34 }
 0x15a   :  { %v1256_v41 = vsel %vm1192_vm0, %v1580_v29, %v1224_v37  ;;  %v1258_v42 = vsel %vm1194_vm1, %v1596_v30, %v1226_v38  ;;  %v1582_v43 = vadd.f32 %v1011_v35, %v2315_v23  ;;  %v1598_v44 = vadd.f32 %v1157_v36, %v2317_v24  ;;  %v1013_v45 = vpop.f32.mrb[3].mxu0  ;;  %v1159_v46 = vpop.f32.mrb[3].mxu1 }
 0x15b   :  { %v1257_v47 = vsel %vm1193_vm2, %v1581_v33, %v1225_v39  ;;  %v1259_v48 = vsel %vm1195_vm3, %v1597_v34, %v1227_v40  ;;  %v1583_v49 = vadd.f32 %v1013_v45, %v2319_v25  ;;  %v1599_v50 = vadd.f32 %v1159_v46, %v2321_v26 }
 0x15c   :  { %v1564_v51 = vpack.c.bf16 %v1257_v47, %v1256_v41  ;;  %v1565_v52 = vpack.c.bf16 %v1259_v48, %v1258_v42  ;;  %vm1196_vm4 = vcmp.gt.f32.partialorder %v1582_v43, 0.0  ;;  %v1228_v53 = vmul.f32 0.2, %v1582_v43 }
 0x15d   :  { %vm1198_vm5 = vcmp.gt.f32.partialorder %v1598_v44, 0.0  ;;  %v1230_v54 = vmul.f32 0.2, %v1598_v44  ;;  %vm1197_vm6 = vcmp.gt.f32.partialorder %v1583_v49, 0.0  ;;  %v1229_v55 = vmul.f32 0.2, %v1583_v49 }
 0x15e   :  { %1384 = vst [vmem:[%s2407_s3] sm:$0xff] %v1564_v51  ;;  %1385 = vst [vmem:[%s2407_s3 + $0x8] sm:$0xff] %v1565_v52  ;;  %v1260_v56 = vsel %vm1196_vm4, %v1582_v43, %v1228_v53  ;;  %vm1199_vm7 = vcmp.gt.f32.partialorder %v1599_v50, 0.0  ;;  %v1231_v57 = vmul.f32 0.2, %v1599_v50  ;;  %v1017_v58 = vpop.f32.mrb[4].mxu0  ;;  %v1163_v59 = vpop.f32.mrb[4].mxu1 }
 0x15f   :  { %v1262_v60 = vsel %vm1198_vm5, %v1598_v44, %v1230_v54  ;;  %v1261_v61 = vsel %vm1197_vm6, %v1583_v49, %v1229_v55  ;;  %v1584_v62 = vadd.f32 %v1017_v58, %v2315_v23  ;;  %v1600_v63 = vadd.f32 %v1163_v59, %v2317_v24  ;;  %v1019_v0 = vpop.f32.mrb[5].mxu0  ;;  %v1165_v1 = vpop.f32.mrb[5].mxu1 }
 0x160   :  { %v1566_v2 = vpack.c.bf16 %v1261_v61, %v1260_v56  ;;  %v1263_v3 = vsel %vm1199_vm7, %v1599_v50, %v1231_v57  ;;  %v1585_v4 = vadd.f32 %v1019_v0, %v2319_v25  ;;  %v1601_v5 = vadd.f32 %v1165_v1, %v2321_v26  ;;  %v1021_v6 = vpop.f32.mrb[6].mxu0  ;;  %v1167_v7 = vpop.f32.mrb[6].mxu1 }
 0x161   :  { %v1567_v8 = vpack.c.bf16 %v1263_v3, %v1262_v60  ;;  %vm1200_vm8 = vcmp.gt.f32.partialorder %v1584_v62, 0.0  ;;  %v1232_v9 = vmul.f32 0.2, %v1584_v62  ;;  %vm1202_vm9 = vcmp.gt.f32.partialorder %v1600_v63, 0.0  ;;  %v1023_v10 = vpop.f32.mrb[7].mxu0  ;;  %v1169_v11 = vpop.f32.mrb[7].mxu1 }
 0x162   :  { %1386 = vst [vmem:[%s2407_s3 + $0x10] sm:$0xff] %v1566_v2  ;;  %v1234_v12 = vmul.f32 0.2, %v1600_v63  ;;  %vm1201_vm10 = vcmp.gt.f32.partialorder %v1585_v4, 0.0  ;;  %v1233_v13 = vmul.f32 0.2, %v1585_v4  ;;  %v1586_v16 = vadd.f32 %v1021_v6, %v2315_v23 }
 0x163   :  { %vm1203_vm11 = vcmp.gt.f32.partialorder %v1601_v5, 0.0  ;;  %1387 = vst [vmem:[%s2407_s3 + $0x18] sm:$0xff] %v1567_v8  ;;  %v1264_v14 = vsel %vm1200_vm8, %v1584_v62, %v1232_v9  ;;  %v1235_v15 = vmul.f32 0.2, %v1601_v5  ;;  %v1602_v17 = vadd.f32 %v1167_v7, %v2317_v24 }
 0x164   :  { %v1266_v18 = vsel %vm1202_vm9, %v1600_v63, %v1234_v12  ;;  %v1265_v19 = vsel %vm1201_vm10, %v1585_v4, %v1233_v13  ;;  %v1587_v20 = vadd.f32 %v1023_v10, %v2319_v25  ;;  %v1603_v21 = vadd.f32 %v1169_v11, %v2321_v26 }
 0x165   :  { %v1568_v22 = vpack.c.bf16 %v1265_v19, %v1264_v14  ;;  %v1267_v27 = vsel %vm1203_vm11, %v1601_v5, %v1235_v15  ;;  %vm1204_vm12 = vcmp.gt.f32.partialorder %v1586_v16, 0.0  ;;  %v1236_v28 = vmul.f32 0.2, %v1586_v16  ;;  %v1027_v29 = vpop.f32.mrb[8].mxu0  ;;  %v1173_v30 = vpop.f32.mrb[8].mxu1 }
 0x166   :  { %v1569_v31 = vpack.c.bf16 %v1267_v27, %v1266_v18  ;;  %vm1206_vm13 = vcmp.gt.f32.partialorder %v1602_v17, 0.0  ;;  %v1238_v32 = vmul.f32 0.2, %v1602_v17  ;;  %vm1205_vm14 = vcmp.gt.f32.partialorder %v1587_v20, 0.0  ;;  %v1029_v33 = vpop.f32.mrb[9].mxu0  ;;  %v1175_v34 = vpop.f32.mrb[9].mxu1 }
 0x167   :  { %1388 = vst [vmem:[%s2407_s3 + $0x20] sm:$0xff] %v1568_v22  ;;  %v1268_v35 = vsel %vm1204_vm12, %v1586_v16, %v1236_v28  ;;  %v1237_v36 = vmul.f32 0.2, %v1587_v20  ;;  %vm1207_vm15 = vcmp.gt.f32.partialorder %v1603_v21, 0.0  ;;  %v1239_v37 = vmul.f32 0.2, %v1603_v21 }
 0x168   :  { %v1031_v38 = vpop.f32.mrb[10].mxu0  ;;  %1389 = vst [vmem:[%s2407_s3 + $0x28] sm:$0xff] %v1569_v31  ;;  %v1270_v39 = vsel %vm1206_vm13, %v1602_v17, %v1238_v32  ;;  %v1588_v40 = vadd.f32 %v1027_v29, %v2315_v23  ;;  %v1604_v41 = vadd.f32 %v1173_v30, %v2317_v24  ;;  %v1589_v42 = vadd.f32 %v1029_v33, %v2319_v25  ;;  %v1177_v43 = vpop.f32.mrb[10].mxu1 }
 0x169   :  { %v1033_v44 = vpop.f32.mrb[11].mxu0  ;;  %v1269_v45 = vsel %vm1205_vm14, %v1587_v20, %v1237_v36  ;;  %v1271_v46 = vsel %vm1207_vm15, %v1603_v21, %v1239_v37  ;;  %v1605_v47 = vadd.f32 %v1175_v34, %v2321_v26  ;;  %v1590_v48 = vadd.f32 %v1031_v38, %v2315_v23  ;;  %v1179_v49 = vpop.f32.mrb[11].mxu1 }
 0x16a   :  { %v1570_v50 = vpack.c.bf16 %v1269_v45, %v1268_v35  ;;  %v1571_v51 = vpack.c.bf16 %v1271_v46, %v1270_v39  ;;  %vm1208_vm0 = vcmp.gt.f32.partialorder %v1588_v40, 0.0  ;;  %v1240_v52 = vmul.f32 0.2, %v1588_v40 }
 0x16b   :  { %vm1210_vm1 = vcmp.gt.f32.partialorder %v1604_v41, 0.0  ;;  %v1242_v53 = vmul.f32 0.2, %v1604_v41  ;;  %vm1209_vm2 = vcmp.gt.f32.partialorder %v1589_v42, 0.0  ;;  %v1241_v54 = vmul.f32 0.2, %v1589_v42 }
 0x16c   :  { %1390 = vst [vmem:[%s2407_s3 + $0x30] sm:$0xff] %v1570_v50  ;;  %1391 = vst [vmem:[%s2407_s3 + $0x38] sm:$0xff] %v1571_v51  ;;  %v1272_v55 = vsel %vm1208_vm0, %v1588_v40, %v1240_v52  ;;  %vm1211_vm3 = vcmp.gt.f32.partialorder %v1605_v47, 0.0  ;;  %v1243_v56 = vmul.f32 0.2, %v1605_v47  ;;  %vm1212_vm4 = vcmp.gt.f32.partialorder %v1590_v48, 0.0 }
 0x16d   :  { %v1274_v57 = vsel %vm1210_vm1, %v1604_v41, %v1242_v53  ;;  %v1273_v58 = vsel %vm1209_vm2, %v1589_v42, %v1241_v54  ;;  %v1244_v59 = vmul.f32 0.2, %v1590_v48  ;;  %v1606_v60 = vadd.f32 %v1177_v43, %v2317_v24  ;;  %v1037_v61 = vpop.f32.mrb[12].mxu0  ;;  %v1183_v62 = vpop.f32.mrb[12].mxu1 }
 0x16e   :  { %v1572_v63 = vpack.c.bf16 %v1273_v58, %v1272_v55  ;;  %v1275_v0 = vsel %vm1211_vm3, %v1605_v47, %v1243_v56  ;;  %v1591_v1 = vadd.f32 %v1033_v44, %v2319_v25  ;;  %v1607_v2 = vadd.f32 %v1179_v49, %v2321_v26  ;;  %v1039_v3 = vpop.f32.mrb[13].mxu0  ;;  %v1185_v4 = vpop.f32.mrb[13].mxu1 }
 0x16f   :  { %v1573_v5 = vpack.c.bf16 %v1275_v0, %v1274_v57  ;;  %v1276_v6 = vsel %vm1212_vm4, %v1590_v48, %v1244_v59  ;;  %vm1214_vm5 = vcmp.gt.f32.partialorder %v1606_v60, 0.0  ;;  %v1246_v7 = vmul.f32 0.2, %v1606_v60  ;;  %v1041_v8 = vpop.f32.mrb[14].mxu0  ;;  %v1187_v9 = vpop.f32.mrb[14].mxu1 }
 0x170   :  { %1392 = vst [vmem:[%s2407_s3 + $0x40] sm:$0xff] %v1572_v63  ;;  %vm1213_vm6 = vcmp.gt.f32.partialorder %v1591_v1, 0.0  ;;  %v1245_v10 = vmul.f32 0.2, %v1591_v1  ;;  %vm1215_vm7 = vcmp.gt.f32.partialorder %v1607_v2, 0.0  ;;  %v1592_v13 = vadd.f32 %v1037_v61, %v2315_v23  ;;  %v1043_v16 = vpop.f32.mrb[15].mxu0 }
 0x171   :  { %v1247_v11 = vmul.f32 0.2, %v1607_v2  ;;  %1393 = vst [vmem:[%s2407_s3 + $0x48] sm:$0xff] %v1573_v5  ;;  %v1278_v12 = vsel %vm1214_vm5, %v1606_v60, %v1246_v7  ;;  %v1608_v14 = vadd.f32 %v1183_v62, %v2317_v24  ;;  %v1593_v15 = vadd.f32 %v1039_v3, %v2319_v25  ;;  %v1189_v17 = vpop.f32.mrb[15].mxu1 }
 0x172   :  { %v1277_v18 = vsel %vm1213_vm6, %v1591_v1, %v1245_v10  ;;  %v1609_v20 = vadd.f32 %v1185_v4, %v2321_v26  ;;  %v1594_v21 = vadd.f32 %v1041_v8, %v2315_v23  ;;  %vm1216_vm8 = vcmp.gt.f32.partialorder %v1592_v13, 0.0 }
 0x173   :  { %v1279_v19 = vsel %vm1215_vm7, %v1607_v2, %v1247_v11  ;;  %v1574_v22 = vpack.c.bf16 %v1277_v18, %v1276_v6  ;;  %v1248_v28 = vmul.f32 0.2, %v1592_v13  ;;  %vm1218_vm9 = vcmp.gt.f32.partialorder %v1608_v14, 0.0 }
 0x174   :  { %v1575_v27 = vpack.c.bf16 %v1279_v19, %v1278_v12  ;;  %v1250_v29 = vmul.f32 0.2, %v1608_v14  ;;  %vm1217_vm10 = vcmp.gt.f32.partialorder %v1593_v15, 0.0  ;;  %v1249_v30 = vmul.f32 0.2, %v1593_v15 }
 0x175   :  { %1394 = vst [vmem:[%s2407_s3 + $0x50] sm:$0xff] %v1574_v22  ;;  %v1280_v31 = vsel %vm1216_vm8, %v1592_v13, %v1248_v28  ;;  %vm1219_vm11 = vcmp.gt.f32.partialorder %v1609_v20, 0.0  ;;  %v1251_v32 = vmul.f32 0.2, %v1609_v20  ;;  %vm1220_vm12 = vcmp.gt.f32.partialorder %v1594_v21, 0.0 }
 0x176   :  { %1395 = vst [vmem:[%s2407_s3 + $0x58] sm:$0xff] %v1575_v27  ;;  %v1282_v23 = vsel %vm1218_vm9, %v1608_v14, %v1250_v29  ;;  %v1281_v33 = vsel %vm1217_vm10, %v1593_v15, %v1249_v30  ;;  %v1252_v34 = vmul.f32 0.2, %v1594_v21  ;;  %v1610_v35 = vadd.f32 %v1187_v9, %v2317_v24 }
 0x177   :  { %v1576_v36 = vpack.c.bf16 %v1281_v33, %v1280_v31  ;;  %v1283_v37 = vsel %vm1219_vm11, %v1609_v20, %v1251_v32  ;;  %v1595_v38 = vadd.f32 %v1043_v16, %v2319_v25  ;;  %v1611_v39 = vadd.f32 %v1189_v17, %v2321_v26 }
 0x178   :  { %v1577_v40 = vpack.c.bf16 %v1283_v37, %v1282_v23  ;;  %v1284_v41 = vsel %vm1220_vm12, %v1594_v21, %v1252_v34  ;;  %vm1222_vm13 = vcmp.gt.f32.partialorder %v1610_v35, 0.0  ;;  %v1254_v42 = vmul.f32 0.2, %v1610_v35 }
 0x179   :  { %1396 = vst [vmem:[%s2407_s3 + $0x60] sm:$0xff] %v1576_v36  ;;  %vm1221_vm14 = vcmp.gt.f32.partialorder %v1595_v38, 0.0  ;;  %v1253_v43 = vmul.f32 0.2, %v1595_v38  ;;  %vm1223_vm15 = vcmp.gt.f32.partialorder %v1611_v39, 0.0 }
 0x17a   :  { %v1255_v44 = vmul.f32 0.2, %v1611_v39  ;;  %1397 = vst [vmem:[%s2407_s3 + $0x68] sm:$0xff] %v1577_v40  ;;  %v1286_v24 = vsel %vm1222_vm13, %v1610_v35, %v1254_v42 }
 0x17b   :  { %v1285_v25 = vsel %vm1221_vm14, %v1595_v38, %v1253_v43 }
 0x17c   :  { %v1287_v45 = vsel %vm1223_vm15, %v1611_v39, %v1255_v44  ;;  %v1578_v26 = vpack.c.bf16 %v1285_v25, %v1284_v41 }
 0x17d   :  { %v1579_v46 = vpack.c.bf16 %v1287_v45, %v1286_v24 }
 0x17e   :  { %1398 = vst [vmem:[%s2407_s3 + $0x70] sm:$0xff] %v1578_v26 }
 0x17f   :  { %1399 = vst [vmem:[%s2407_s3 + $0x78] sm:$0xff] %v1579_v46 }

// kernel: dgcnn_with_color_forward.31
= control target key start
LH: loop header
LB: loop body
LE: loop exit
PB: predicated region body
PF: predicated region fallthrough
CT: control target
= control target key end

     0   :  { %s1618_s1 = inlined_call_operand.vmem [shape: bf16[512,256], index: 1, kind: input, shape index: {}]   ;;  %s1619_s0 = inlined_call_operand.vmem [shape: bf16[64,512], index: 0, kind: input, shape index: {}]   ;;  %s1620_s3 = inlined_call_operand.vmem [shape: bf16[256,128], index: 3, kind: input, shape index: {}]   ;;  %s1621_s2 = inlined_call_operand.vmem [shape: f32[1,256], index: 2, kind: input, shape index: {}]   ;;  %s1622_s4 = inlined_call_operand.vmem [shape: f32[1,128], index: 4, kind: input, shape index: {}]   ;;  %s1623_s5 = inlined_call_operand.vmem [shape: f32[64,128], index: 5, kind: output, shape index: {}]  }
   0x1   :  { %v1112_v0 = vld [vmem:[%s1618_s1 + $0x4] ss:$8 sps:$4 sm:$0xff]   ;;  %v1116_v2 = vld [vmem:[%s1618_s1] ss:$8 sps:$4 sm:$0xff]   ;;  %v1118_v4 = vld [vmem:[%s1618_s1 + $0x14] ss:$8 sps:$4 sm:$0xff]  }
   0x2   :  { %v1114_v1 = vld [vmem:[%s1618_s1 + $0x104] ss:$8 sps:$4 sm:$0xff]   ;;  %513 = vmatprep.subr.bf16.mxu1 %v1112_v0  ;;  %v1117_v3 = vld [vmem:[%s1618_s1 + $0x100] ss:$8 sps:$4 sm:$0xff]   ;;  %v1120_v5 = vld [vmem:[%s1618_s1 + $0x114] ss:$8 sps:$4 sm:$0xff]  }
   0x3   :  { %586 = vmatprep.subr.bf16.mxu0 %v1114_v1  ;;  %514 = vmatpush1.bf16.msra.mxu1 %v1116_v2  ;;  %v1122_v6 = vld [vmem:[%s1618_s1 + $0x10] ss:$8 sps:$4 sm:$0xff]   ;;  %v1124_v8 = vld [vmem:[%s1618_s1 + $0x24] ss:$8 sps:$4 sm:$0xff]   ;;  %v1128_v10 = vld [vmem:[%s1618_s1 + $0x20] ss:$8 sps:$4 sm:$0xff]  }
   0x4   :  { %587 = vmatpush1.bf16.msra.mxu0 %v1117_v3  ;;  %515 = vmatprep.subr.bf16.mxu1 %v1118_v4  ;;  %v1123_v7 = vld [vmem:[%s1618_s1 + $0x110] ss:$8 sps:$4 sm:$0xff]   ;;  %v1126_v9 = vld [vmem:[%s1618_s1 + $0x124] ss:$8 sps:$4 sm:$0xff]   ;;  %v1129_v11 = vld [vmem:[%s1618_s1 + $0x120] ss:$8 sps:$4 sm:$0xff]  }
   0x5   :  { %588 = vmatprep.subr.bf16.mxu0 %v1120_v5  ;;  %v1130_v12 = vld [vmem:[%s1618_s1 + $0x34] ss:$8 sps:$4 sm:$0xff]   ;;  %v1134_v14 = vld [vmem:[%s1618_s1 + $0x30] ss:$8 sps:$4 sm:$0xff]   ;;  %v1136_v16 = vld [vmem:[%s1618_s1 + $0x44] ss:$8 sps:$4 sm:$0xff]  }
   0x6   :  { %v1132_v13 = vld [vmem:[%s1618_s1 + $0x134] ss:$8 sps:$4 sm:$0xff]   ;;  %v1135_v15 = vld [vmem:[%s1618_s1 + $0x130] ss:$8 sps:$4 sm:$0xff]   ;;  %v1138_v17 = vld [vmem:[%s1618_s1 + $0x144] ss:$8 sps:$4 sm:$0xff]  }
   0x7   :  { %516 = vmatpush1.bf16.msra.mxu1 %v1122_v6  ;;  %v1140_v18 = vld [vmem:[%s1618_s1 + $0x40] ss:$8 sps:$4 sm:$0xff]   ;;  %v1142_v20 = vld [vmem:[%s1618_s1 + $0x54] ss:$8 sps:$4 sm:$0xff]   ;;  %v1146_v22 = vld [vmem:[%s1618_s1 + $0x50] ss:$8 sps:$4 sm:$0xff]  }
   0x8   :  { %589 = vmatpush1.bf16.msra.mxu0 %v1123_v7  ;;  %517 = vmatprep.subr.bf16.mxu1 %v1124_v8  ;;  %v1141_v19 = vld [vmem:[%s1618_s1 + $0x140] ss:$8 sps:$4 sm:$0xff]   ;;  %v1144_v21 = vld [vmem:[%s1618_s1 + $0x154] ss:$8 sps:$4 sm:$0xff]   ;;  %v1147_v23 = vld [vmem:[%s1618_s1 + $0x150] ss:$8 sps:$4 sm:$0xff]  }
   0x9   :  { %590 = vmatprep.subr.bf16.mxu0 %v1126_v9  ;;  %v1148_v24 = vld [vmem:[%s1618_s1 + $0x64] ss:$8 sps:$4 sm:$0xff]   ;;  %v1152_v26 = vld [vmem:[%s1618_s1 + $0x60] ss:$8 sps:$4 sm:$0xff]   ;;  %v1154_v28 = vld [vmem:[%s1618_s1 + $0x74] ss:$8 sps:$4 sm:$0xff]  }
   0xa   :  { %v1150_v25 = vld [vmem:[%s1618_s1 + $0x164] ss:$8 sps:$4 sm:$0xff]   ;;  %v1153_v27 = vld [vmem:[%s1618_s1 + $0x160] ss:$8 sps:$4 sm:$0xff]   ;;  %v1156_v29 = vld [vmem:[%s1618_s1 + $0x174] ss:$8 sps:$4 sm:$0xff]  }
   0xb   :  { %518 = vmatpush1.bf16.msra.mxu1 %v1128_v10  ;;  %v1158_v30 = vld [vmem:[%s1618_s1 + $0x70] ss:$8 sps:$4 sm:$0xff]   ;;  %v1160_v32 = vld [vmem:[%s1618_s1 + $0x84] ss:$8 sps:$4 sm:$0xff]   ;;  %v1164_v34 = vld [vmem:[%s1618_s1 + $0x80] ss:$8 sps:$4 sm:$0xff]  }
   0xc   :  { %591 = vmatpush1.bf16.msra.mxu0 %v1129_v11  ;;  %519 = vmatprep.subr.bf16.mxu1 %v1130_v12  ;;  %v1159_v31 = vld [vmem:[%s1618_s1 + $0x170] ss:$8 sps:$4 sm:$0xff]   ;;  %v1162_v33 = vld [vmem:[%s1618_s1 + $0x184] ss:$8 sps:$4 sm:$0xff]   ;;  %v1165_v35 = vld [vmem:[%s1618_s1 + $0x180] ss:$8 sps:$4 sm:$0xff]  }
   0xd   :  { %592 = vmatprep.subr.bf16.mxu0 %v1132_v13  ;;  %v1166_v36 = vld [vmem:[%s1618_s1 + $0x94] ss:$8 sps:$4 sm:$0xff]   ;;  %v1170_v38 = vld [vmem:[%s1618_s1 + $0x90] ss:$8 sps:$4 sm:$0xff]   ;;  %v1172_v40 = vld [vmem:[%s1618_s1 + $0xa4] ss:$8 sps:$4 sm:$0xff]  }
   0xe   :  { %v1168_v37 = vld [vmem:[%s1618_s1 + $0x194] ss:$8 sps:$4 sm:$0xff]   ;;  %v1171_v39 = vld [vmem:[%s1618_s1 + $0x190] ss:$8 sps:$4 sm:$0xff]   ;;  %v1174_v41 = vld [vmem:[%s1618_s1 + $0x1a4] ss:$8 sps:$4 sm:$0xff]  }
   0xf   :  { %520 = vmatpush1.bf16.msra.mxu1 %v1134_v14  ;;  %v1176_v42 = vld [vmem:[%s1618_s1 + $0xa0] ss:$8 sps:$4 sm:$0xff]   ;;  %v1178_v44 = vld [vmem:[%s1618_s1 + $0xb4] ss:$8 sps:$4 sm:$0xff]   ;;  %v1182_v46 = vld [vmem:[%s1618_s1 + $0xb0] ss:$8 sps:$4 sm:$0xff]  }
  0x10   :  { %593 = vmatpush1.bf16.msra.mxu0 %v1135_v15  ;;  %521 = vmatprep.subr.bf16.mxu1 %v1136_v16  ;;  %v1177_v43 = vld [vmem:[%s1618_s1 + $0x1a0] ss:$8 sps:$4 sm:$0xff]   ;;  %v1180_v45 = vld [vmem:[%s1618_s1 + $0x1b4] ss:$8 sps:$4 sm:$0xff]   ;;  %v1183_v47 = vld [vmem:[%s1618_s1 + $0x1b0] ss:$8 sps:$4 sm:$0xff]  }
  0x11   :  { %594 = vmatprep.subr.bf16.mxu0 %v1138_v17  ;;  %v1184_v48 = vld [vmem:[%s1618_s1 + $0xc4] ss:$8 sps:$4 sm:$0xff]   ;;  %v1188_v52 = vld [vmem:[%s1618_s1 + $0xc0] ss:$8 sps:$4 sm:$0xff]   ;;  %v1190_v54 = vld [vmem:[%s1618_s1 + $0xd4] ss:$8 sps:$4 sm:$0xff]  }
  0x12   :  { %v1210_v49 = vld [vmem:[%s1619_s0 + $0x4] ss:$16 sps:$4 sm:$0xff]   ;;  %v1213_v51 = vld [vmem:[%s1619_s0 + $0xc] ss:$16 sps:$4 sm:$0xff]   ;;  %v1189_v53 = vld [vmem:[%s1618_s1 + $0x1c0] ss:$8 sps:$4 sm:$0xff]  }
  0x13   :  { %522 = vmatpush1.bf16.msra.mxu1 %v1140_v18  ;;  %v1186_v50 = vld [vmem:[%s1618_s1 + $0x1c4] ss:$8 sps:$4 sm:$0xff]   ;;  %545 = vmatprep.mubr.bf16.mxu1 %v1210_v49  ;;  %v1192_v55 = vld [vmem:[%s1618_s1 + $0x1d4] ss:$8 sps:$4 sm:$0xff]   ;;  %v1194_v56 = vld [vmem:[%s1618_s1 + $0xd0] ss:$8 sps:$4 sm:$0xff]  }
  0x14   :  { %595 = vmatpush1.bf16.msra.mxu0 %v1141_v19  ;;  %523 = vmatprep.subr.bf16.mxu1 %v1142_v20  ;;  %v1195_v57 = vld [vmem:[%s1618_s1 + $0x1d0] ss:$8 sps:$4 sm:$0xff]   ;;  %v1196_v58 = vld [vmem:[%s1618_s1 + $0xe4] ss:$8 sps:$4 sm:$0xff]   ;;  %v1200_v60 = vld [vmem:[%s1618_s1 + $0xe0] ss:$8 sps:$4 sm:$0xff]  }
  0x15   :  { %596 = vmatprep.subr.bf16.mxu0 %v1144_v21  ;;  %618 = vmatprep.mubr.bf16.mxu0 %v1213_v51  ;;  %v1198_v59 = vld [vmem:[%s1618_s1 + $0x1e4] ss:$8 sps:$4 sm:$0xff]   ;;  %v1201_v61 = vld [vmem:[%s1618_s1 + $0x1e0] ss:$8 sps:$4 sm:$0xff]   ;;  %v1202_v62 = vld [vmem:[%s1618_s1 + $0xf4] ss:$8 sps:$4 sm:$0xff]  }
  0x16   :  { %v1204_v63 = vld [vmem:[%s1618_s1 + $0x1f4] ss:$8 sps:$4 sm:$0xff]   ;;  %v1206_v0 = vld [vmem:[%s1618_s1 + $0xf0] ss:$8 sps:$4 sm:$0xff]   ;;  %v1232_v4 = vld [vmem:[%s1620_s3 + $0x40] sm:$0xff]  }
  0x17   :  { %524 = vmatpush1.bf16.msra.mxu1 %v1146_v22  ;;  %v1207_v1 = vld [vmem:[%s1618_s1 + $0x1f0] ss:$8 sps:$4 sm:$0xff]   ;;  %v1214_v5 = vld [vmem:[%s1619_s0 + $0x24] ss:$16 sps:$4 sm:$0xff]   ;;  %v1216_v6 = vld [vmem:[%s1619_s0 + $0x2c] ss:$16 sps:$4 sm:$0xff]  }
  0x18   :  { %597 = vmatpush1.bf16.msra.mxu0 %v1147_v23  ;;  %525 = vmatprep.subr.bf16.mxu1 %v1148_v24  ;;  %v1208_v2 = vld [vmem:[%s1619_s0] ss:$16 sps:$4 sm:$0xff]   ;;  %v1211_v3 = vld [vmem:[%s1619_s0 + $0x8] ss:$16 sps:$4 sm:$0xff]   ;;  %v1220_v13 = vld [vmem:[%s1619_s0 + $0x44] ss:$16 sps:$4 sm:$0xff]  }
  0x19   :  { %598 = vmatprep.subr.bf16.mxu0 %v1150_v25  ;;  %v1233_v7 = vld [vmem:[%s1620_s3] sm:$0xff]   ;;  %v1234_v8 = vld [vmem:[%s1620_s3 + $0x48] sm:$0xff]   ;;  %v1236_v10 = vld [vmem:[%s1620_s3 + $0x50] sm:$0xff]  }
  0x1a   :  { %v1235_v9 = vld [vmem:[%s1620_s3 + $0x8] sm:$0xff]   ;;  %v1218_v11 = vld [vmem:[%s1619_s0 + $0x20] ss:$16 sps:$4 sm:$0xff]   ;;  %v1238_v16 = vld [vmem:[%s1620_s3 + $0x58] sm:$0xff]  }
  0x1b   :  { %526 = vmatpush1.bf16.msra.mxu1 %v1152_v26  ;;  %v1219_v12 = vld [vmem:[%s1619_s0 + $0x28] ss:$16 sps:$4 sm:$0xff]   ;;  %v1222_v14 = vld [vmem:[%s1619_s0 + $0x4c] ss:$16 sps:$4 sm:$0xff]   ;;  %v1237_v15 = vld [vmem:[%s1620_s3 + $0x10] sm:$0xff]  }
  0x1c   :  { %599 = vmatpush1.bf16.msra.mxu0 %v1153_v27  ;;  %527 = vmatprep.subr.bf16.mxu1 %v1154_v28  ;;  %v1239_v17 = vld [vmem:[%s1620_s3 + $0x18] sm:$0xff]   ;;  %v1240_v18 = vld [vmem:[%s1620_s3 + $0x60] sm:$0xff]   ;;  %v1242_v26 = vld [vmem:[%s1620_s3 + $0x68] sm:$0xff]  }
  0x1d   :  { %600 = vmatprep.subr.bf16.mxu0 %v1156_v29  ;;  %v1224_v19 = vld [vmem:[%s1619_s0 + $0x40] ss:$16 sps:$4 sm:$0xff]   ;;  %v1225_v20 = vld [vmem:[%s1619_s0 + $0x48] ss:$16 sps:$4 sm:$0xff]   ;;  %v1226_v21 = vld [vmem:[%s1619_s0 + $0x64] ss:$16 sps:$4 sm:$0xff]  }
  0x1e   :  { %v1228_v22 = vld [vmem:[%s1619_s0 + $0x6c] ss:$16 sps:$4 sm:$0xff]   ;;  %v1241_v23 = vld [vmem:[%s1620_s3 + $0x20] sm:$0xff]   ;;  %v1231_v25 = vld [vmem:[%s1619_s0 + $0x68] ss:$16 sps:$4 sm:$0xff]  }
  0x1f   :  { %528 = vmatpush1.bf16.msra.mxu1 %v1158_v30  ;;  %v1230_v24 = vld [vmem:[%s1619_s0 + $0x60] ss:$16 sps:$4 sm:$0xff]   ;;  %v1243_v27 = vld [vmem:[%s1620_s3 + $0x28] sm:$0xff]   ;;  %v1246_v30 = vld [vmem:[%s1620_s3 + $0x78] sm:$0xff]  }
  0x20   :  { %601 = vmatpush1.bf16.msra.mxu0 %v1159_v31  ;;  %529 = vmatprep.subr.bf16.mxu1 %v1160_v32  ;;  %v1244_v28 = vld [vmem:[%s1620_s3 + $0x70] sm:$0xff]   ;;  %v1247_v31 = vld [vmem:[%s1620_s3 + $0x38] sm:$0xff]   ;;  %v103_v32 = vlaneseq }
  0x21   :  { %602 = vmatprep.subr.bf16.mxu0 %v1162_v33  ;;  %v1245_v29 = vld [vmem:[%s1620_s3 + $0x30] sm:$0xff]  }
  0x22   :  { %v104_v33 = vshrl.u32 %v103_v32, 7 }
  0x23   :  { %530 = vmatpush1.bf16.msra.mxu1 %v1164_v34 }
  0x24   :  { %603 = vmatpush1.bf16.msra.mxu0 %v1165_v35  ;;  %531 = vmatprep.subr.bf16.mxu1 %v1166_v36  ;;  %v105_v34 = vsub.s32 0, %v104_v33  ;;  %v101_v35 = vld [vmem:[%s1621_s2] sm:$0x3]  ;;  %v109_v36 = vsub.s32 1, %v104_v33 }
  0x25   :  { %604 = vmatprep.subr.bf16.mxu0 %v1168_v37 }
  0x26   :  { %v1569_v37 = vrot.slane %v101_v35, %v105_v34 }
  0x27   :  { %532 = vmatpush1.bf16.msra.mxu1 %v1170_v38  ;;  %v1571_v38 = vrot.slane %v101_v35, %v109_v36 }
  0x28   :  { %605 = vmatpush1.bf16.msra.mxu0 %v1171_v39  ;;  %533 = vmatprep.subr.bf16.mxu1 %v1172_v40 }
  0x29   :  { %606 = vmatprep.subr.bf16.mxu0 %v1174_v41 }
  0x2b   :  { %534 = vmatpush1.bf16.msra.mxu1 %v1176_v42 }
  0x2c   :  { %607 = vmatpush1.bf16.msra.mxu0 %v1177_v43  ;;  %535 = vmatprep.subr.bf16.mxu1 %v1178_v44 }
  0x2d   :  { %608 = vmatprep.subr.bf16.mxu0 %v1180_v45 }
  0x2f   :  { %536 = vmatpush1.bf16.msra.mxu1 %v1182_v46 }
  0x30   :  { %609 = vmatpush1.bf16.msra.mxu0 %v1183_v47  ;;  %537 = vmatprep.subr.bf16.mxu1 %v1184_v48 }
  0x31   :  { %610 = vmatprep.subr.bf16.mxu0 %v1186_v50 }
  0x33   :  { %538 = vmatpush1.bf16.msra.mxu1 %v1188_v52 }
  0x34   :  { %611 = vmatpush1.bf16.msra.mxu0 %v1189_v53  ;;  %539 = vmatprep.subr.bf16.mxu1 %v1190_v54 }
  0x35   :  { %612 = vmatprep.subr.bf16.mxu0 %v1192_v55 }
  0x37   :  { %540 = vmatpush1.bf16.msra.mxu1 %v1194_v56 }
  0x38   :  { %613 = vmatpush1.bf16.msra.mxu0 %v1195_v57  ;;  %541 = vmatprep.subr.bf16.mxu1 %v1196_v58 }
  0x39   :  { %614 = vmatprep.subr.bf16.mxu0 %v1198_v59 }
  0x3b   :  { %542 = vmatpush1.bf16.msra.mxu1 %v1200_v60 }
  0x3c   :  { %615 = vmatpush1.bf16.msra.mxu0 %v1201_v61  ;;  %543 = vmatprep.subr.bf16.mxu1 %v1202_v62 }
  0x3d   :  { %616 = vmatprep.subr.bf16.mxu0 %v1204_v63 }
  0x3f   :  { %544 = vmatpush1.bf16.msra.mxu1 %v1206_v0 }
  0x40   :  { %617 = vmatpush1.bf16.msra.mxu0 %v1207_v1  ;;  %1064 = vmatprep.subr.bf16.mxu1 %v1232_v4 }
  0x41   :  { %1024 = vmatprep.subr.bf16.mxu0 %v1232_v4 }
  0x42   :  { %546 = vmatmul.mubr.bf16.vlgmr.msra.gmra.mrb[0].mxu1 %v1208_v2 }
  0x43   :  { %619 = vmatmul.mubr.bf16.vlgmr.msra.gmra.mrb[0].mxu0 %v1211_v3  ;;  %555 = vmatprep.mubr.bf16.mxu1 %v1214_v5 }
  0x44   :  { %628 = vmatprep.mubr.bf16.mxu0 %v1216_v6  ;;  %1025 = vmatpush3.bf16.msra.mxu0 %v1233_v7 }
  0x45   :  { %1072 = vmatpush3.bf16.msra.mxu1 %v1233_v7  ;;  %1026 = vmatprep.subr.bf16.mxu0 %v1234_v8 }
  0x46   :  { %1065 = vmatprep.subr.bf16.mxu1 %v1234_v8 }
  0x48   :  { %1027 = vmatpush3.bf16.msra.mxu0 %v1235_v9 }
  0x49   :  { %1073 = vmatpush3.bf16.msra.mxu1 %v1235_v9  ;;  %1028 = vmatprep.subr.bf16.mxu0 %v1236_v10 }
  0x4a   :  { %1066 = vmatprep.subr.bf16.mxu1 %v1236_v10  ;;  %556 = vmatmul.mubr.bf16.gmra.mrb[4].mxu1 %v1218_v11 }
  0x4b   :  { %629 = vmatmul.mubr.bf16.gmra.mrb[4].mxu0 %v1219_v12  ;;  %565 = vmatprep.mubr.bf16.mxu1 %v1220_v13 }
  0x4c   :  { %638 = vmatprep.mubr.bf16.mxu0 %v1222_v14  ;;  %1029 = vmatpush3.bf16.msra.mxu0 %v1237_v15 }
  0x4d   :  { %1074 = vmatpush3.bf16.msra.mxu1 %v1237_v15  ;;  %1030 = vmatprep.subr.bf16.mxu0 %v1238_v16 }
  0x4e   :  { %1067 = vmatprep.subr.bf16.mxu1 %v1238_v16 }
  0x50   :  { %1031 = vmatpush3.bf16.msra.mxu0 %v1239_v17 }
  0x51   :  { %1075 = vmatpush3.bf16.msra.mxu1 %v1239_v17  ;;  %1032 = vmatprep.subr.bf16.mxu0 %v1240_v18 }
  0x52   :  { %1068 = vmatprep.subr.bf16.mxu1 %v1240_v18  ;;  %566 = vmatmul.mubr.bf16.gmra.mrb[8].mxu1 %v1224_v19 }
  0x53   :  { %639 = vmatmul.mubr.bf16.gmra.mrb[8].mxu0 %v1225_v20  ;;  %575 = vmatprep.mubr.bf16.mxu1 %v1226_v21 }
  0x54   :  { %648 = vmatprep.mubr.bf16.mxu0 %v1228_v22  ;;  %1033 = vmatpush3.bf16.msra.mxu0 %v1241_v23 }
  0x55   :  { %1076 = vmatpush3.bf16.msra.mxu1 %v1241_v23  ;;  %1034 = vmatprep.subr.bf16.mxu0 %v1242_v26 }
  0x56   :  { %1069 = vmatprep.subr.bf16.mxu1 %v1242_v26 }
  0x58   :  { %1035 = vmatpush3.bf16.msra.mxu0 %v1243_v27 }
  0x59   :  { %1077 = vmatpush3.bf16.msra.mxu1 %v1243_v27  ;;  %1036 = vmatprep.subr.bf16.mxu0 %v1244_v28 }
  0x5a   :  { %576 = vmatmul.mubr.bf16.gmra.mrb[12].mxu1 %v1230_v24  ;;  %1070 = vmatprep.subr.bf16.mxu1 %v1244_v28 }
  0x5b   :  { %649 = vmatmul.mubr.bf16.gmra.mrb[12].mxu0 %v1231_v25 }
  0x5c   :  { %1037 = vmatpush3.bf16.msra.mxu0 %v1245_v29 }
  0x5d   :  { %1078 = vmatpush3.bf16.msra.mxu1 %v1245_v29  ;;  %1038 = vmatprep.subr.bf16.mxu0 %v1246_v30 }
  0x5e   :  { %1071 = vmatprep.subr.bf16.mxu1 %v1246_v30 }
  0x60   :  { %1039 = vmatpush3.bf16.msra.mxu0 %v1247_v31 }
  0x61   :  { %1079 = vmatpush3.bf16.msra.mxu1 %v1247_v31 }
 0x115   :  { %v547_v39 = vpop.f32.mrb[0].mxu1 }
 0x116   :  { %v620_v40 = vpop.f32.mrb[0].mxu0  ;;  %v548_v41 = vadd.f32 %v547_v39, %v1569_v37  ;;  %v549_v42 = vpop.f32.mrb[1].mxu1 }
 0x117   :  { %v622_v43 = vpop.f32.mrb[1].mxu0  ;;  %v550_v44 = vadd.f32 %v549_v42, %v1571_v38  ;;  %v551_v45 = vpop.f32.mrb[2].mxu1 }
 0x118   :  { %v624_v46 = vpop.f32.mrb[2].mxu0  ;;  %v621_v47 = vadd.f32 %v620_v40, %v548_v41  ;;  %v552_v48 = vadd.f32 %v551_v45, %v1569_v37  ;;  %v553_v49 = vpop.f32.mrb[3].mxu1 }
 0x119   :  { %v626_v50 = vpop.f32.mrb[3].mxu0  ;;  %v623_v51 = vadd.f32 %v622_v43, %v550_v44  ;;  %v554_v52 = vadd.f32 %v553_v49, %v1571_v38 }
 0x11a   :  { %v675_v53 = vmul.f32 0.2, %v621_v47  ;;  %v625_v54 = vadd.f32 %v624_v46, %v552_v48  ;;  %vm659_vm0 = vcmp.gt.f32.partialorder %v621_v47, 0.0 }
 0x11b   :  { %v676_v55 = vmul.f32 0.2, %v623_v51  ;;  %v627_v56 = vadd.f32 %v626_v50, %v554_v52  ;;  %vm660_vm1 = vcmp.gt.f32.partialorder %v623_v51, 0.0 }
 0x11c   :  { %vm661_vm2 = vcmp.gt.f32.partialorder %v625_v54, 0.0  ;;  %v677_v57 = vmul.f32 0.2, %v625_v54  ;;  %v691_v61 = vsel %vm659_vm0, %v621_v47, %v675_v53 }
 0x11d   :  { %vm662_vm3 = vcmp.gt.f32.partialorder %v627_v56, 0.0  ;;  %v678_v58 = vmul.f32 0.2, %v627_v56  ;;  %v557_v59 = vpop.f32.mrb[4].mxu1  ;;  %v692_v6 = vsel %vm660_vm1, %v623_v51, %v676_v55 }
 0x11e   :  { %v630_v60 = vpop.f32.mrb[4].mxu0  ;;  %v693_v62 = vsel %vm661_vm2, %v625_v54, %v677_v57  ;;  %v558_v63 = vadd.f32 %v557_v59, %v1569_v37  ;;  %v559_v0 = vpop.f32.mrb[5].mxu1 }
 0x11f   :  { %v632_v1 = vpop.f32.mrb[5].mxu0  ;;  %v707_v2 = vpack.c.bf16 %v693_v62, %v691_v61  ;;  %v560_v3 = vadd.f32 %v559_v0, %v1571_v38  ;;  %v561_v4 = vpop.f32.mrb[6].mxu1  ;;  %v694_v7 = vsel %vm662_vm3, %v627_v56, %v678_v58 }
 0x120   :  { %v634_v5 = vpop.f32.mrb[6].mxu0  ;;  %v631_v8 = vadd.f32 %v630_v60, %v558_v63  ;;  %v562_v9 = vadd.f32 %v561_v4, %v1569_v37  ;;  %v563_v10 = vpop.f32.mrb[7].mxu1  ;;  %v708_v12 = vpack.c.bf16 %v694_v7, %v692_v6 }
 0x121   :  { %v636_v11 = vpop.f32.mrb[7].mxu0  ;;  %v633_v13 = vadd.f32 %v632_v1, %v560_v3  ;;  %v564_v14 = vadd.f32 %v563_v10, %v1571_v38 }
 0x122   :  { %v679_v15 = vmul.f32 0.2, %v631_v8  ;;  %v635_v16 = vadd.f32 %v634_v5, %v562_v9  ;;  %882 = vmatprep.mubr.bf16.mxu0 %v708_v12  ;;  %vm663_vm4 = vcmp.gt.f32.partialorder %v631_v8, 0.0 }
 0x123   :  { %v680_v17 = vmul.f32 0.2, %v633_v13  ;;  %v637_v18 = vadd.f32 %v636_v11, %v564_v14  ;;  %883 = vmatmul.mubr.bf16.vlgmr.msra.gmra.mrb[16].mxu0 %v707_v2  ;;  %vm664_vm5 = vcmp.gt.f32.partialorder %v633_v13, 0.0 }
 0x124   :  { %vm665_vm6 = vcmp.gt.f32.partialorder %v635_v16, 0.0  ;;  %v681_v19 = vmul.f32 0.2, %v635_v16  ;;  %v695_v26 = vsel %vm663_vm4, %v631_v8, %v679_v15 }
 0x125   :  { %vm666_vm7 = vcmp.gt.f32.partialorder %v637_v18, 0.0  ;;  %v682_v20 = vmul.f32 0.2, %v637_v18  ;;  %v567_v21 = vpop.f32.mrb[8].mxu1  ;;  %v696_v31 = vsel %vm664_vm5, %v633_v13, %v680_v17 }
 0x126   :  { %v640_v22 = vpop.f32.mrb[8].mxu0  ;;  %v568_v23 = vadd.f32 %v567_v21, %v1569_v37  ;;  %v569_v24 = vpop.f32.mrb[9].mxu1  ;;  %v697_v27 = vsel %vm665_vm6, %v635_v16, %v681_v19  ;;  %v1007_v16 = vld [vmem:[%s1622_s4] ss:$0 sm:$0xff] }
 0x127   :  { %v642_v25 = vpop.f32.mrb[9].mxu0  ;;  %v570_v28 = vadd.f32 %v569_v24, %v1571_v38  ;;  %v571_v29 = vpop.f32.mrb[10].mxu1  ;;  %v698_v32 = vsel %vm666_vm7, %v637_v18, %v682_v20  ;;  %v709_v33 = vpack.c.bf16 %v697_v27, %v695_v26 }
 0x128   :  { %v644_v30 = vpop.f32.mrb[10].mxu0  ;;  %v641_v34 = vadd.f32 %v640_v22, %v568_v23  ;;  %v572_v35 = vadd.f32 %v571_v29, %v1569_v37  ;;  %v573_v36 = vpop.f32.mrb[11].mxu1  ;;  %v710_v40 = vpack.c.bf16 %v698_v32, %v696_v31 }
 0x129   :  { %v646_v39 = vpop.f32.mrb[11].mxu0  ;;  %v643_v41 = vadd.f32 %v642_v25, %v570_v28  ;;  %v574_v42 = vadd.f32 %v573_v36, %v1571_v38 }
 0x12a   :  { %v683_v43 = vmul.f32 0.2, %v641_v34  ;;  %v645_v44 = vadd.f32 %v644_v30, %v572_v35  ;;  %890 = vmatprep.mubr.bf16.mxu0 %v710_v40  ;;  %vm667_vm8 = vcmp.gt.f32.partialorder %v641_v34, 0.0 }
 0x12b   :  { %v684_v45 = vmul.f32 0.2, %v643_v41  ;;  %v647_v46 = vadd.f32 %v646_v39, %v574_v42  ;;  %891 = vmatmul.mubr.bf16.gmra.mrb[20].mxu0 %v709_v33  ;;  %vm668_vm9 = vcmp.gt.f32.partialorder %v643_v41, 0.0 }
 0x12c   :  { %vm669_vm10 = vcmp.gt.f32.partialorder %v645_v44, 0.0  ;;  %v685_v47 = vmul.f32 0.2, %v645_v44  ;;  %v699_v51 = vsel %vm667_vm8, %v641_v34, %v683_v43 }
 0x12d   :  { %vm670_vm11 = vcmp.gt.f32.partialorder %v647_v46, 0.0  ;;  %v686_v48 = vmul.f32 0.2, %v647_v46  ;;  %v577_v49 = vpop.f32.mrb[12].mxu1  ;;  %v700_v60 = vsel %vm668_vm9, %v643_v41, %v684_v45 }
 0x12e   :  { %v650_v50 = vpop.f32.mrb[12].mxu0  ;;  %v701_v52 = vsel %vm669_vm10, %v645_v44, %v685_v47  ;;  %v578_v53 = vadd.f32 %v577_v49, %v1569_v37  ;;  %v579_v54 = vpop.f32.mrb[13].mxu1 }
 0x12f   :  { %v652_v55 = vpop.f32.mrb[13].mxu0  ;;  %v711_v56 = vpack.c.bf16 %v701_v52, %v699_v51  ;;  %v580_v57 = vadd.f32 %v579_v54, %v1571_v38  ;;  %v581_v58 = vpop.f32.mrb[14].mxu1  ;;  %v702_v61 = vsel %vm670_vm11, %v647_v46, %v686_v48 }
 0x130   :  { %v654_v59 = vpop.f32.mrb[14].mxu0  ;;  %v651_v62 = vadd.f32 %v650_v50, %v578_v53  ;;  %v582_v63 = vadd.f32 %v581_v58, %v1569_v37  ;;  %v583_v0 = vpop.f32.mrb[15].mxu1  ;;  %v712_v2 = vpack.c.bf16 %v702_v61, %v700_v60 }
 0x131   :  { %v656_v1 = vpop.f32.mrb[15].mxu0  ;;  %v653_v3 = vadd.f32 %v652_v55, %v580_v57  ;;  %v584_v4 = vadd.f32 %v583_v0, %v1571_v38 }
 0x132   :  { %v687_v5 = vmul.f32 0.2, %v651_v62  ;;  %v655_v6 = vadd.f32 %v654_v59, %v582_v63  ;;  %898 = vmatprep.mubr.bf16.mxu1 %v712_v2  ;;  %vm671_vm12 = vcmp.gt.f32.partialorder %v651_v62, 0.0 }
 0x133   :  { %v688_v7 = vmul.f32 0.2, %v653_v3  ;;  %v657_v8 = vadd.f32 %v656_v1, %v584_v4  ;;  %899 = vmatmul.mubr.bf16.vlgmr.msra.gmra.mrb[16].mxu1 %v711_v56  ;;  %vm672_vm13 = vcmp.gt.f32.partialorder %v653_v3, 0.0 }
 0x134   :  { %vm673_vm14 = vcmp.gt.f32.partialorder %v655_v6, 0.0  ;;  %v689_v9 = vmul.f32 0.2, %v655_v6  ;;  %v703_v11 = vsel %vm671_vm12, %v651_v62, %v687_v5 }
 0x135   :  { %vm674_vm15 = vcmp.gt.f32.partialorder %v657_v8, 0.0  ;;  %v690_v10 = vmul.f32 0.2, %v657_v8  ;;  %v704_v12 = vsel %vm672_vm13, %v653_v3, %v688_v7 }
 0x136   :  { %v705_v37 = vsel %vm673_vm14, %v655_v6, %v689_v9 }
 0x137   :  { %v706_v13 = vsel %vm674_vm15, %v657_v8, %v690_v10  ;;  %v713_v14 = vpack.c.bf16 %v705_v37, %v703_v11 }
 0x138   :  { %v714_v15 = vpack.c.bf16 %v706_v13, %v704_v12 }
 0x13a   :  { %906 = vmatprep.mubr.bf16.mxu1 %v714_v15 }
 0x13b   :  { %907 = vmatmul.mubr.bf16.gmra.mrb[20].mxu1 %v713_v14 }
 0x1f6   :  { %v1040_v38 = vpop.f32.mrb[16].mxu0 }
 0x1f7   :  { %v1041_v17 = vpop.f32.mrb[17].mxu0 }
 0x1f8   :  { %v1042_v18 = vadd.f32 %v1041_v17, %v1040_v38  ;;  %v1043_v19 = vpop.f32.mrb[18].mxu0 }
 0x1f9   :  { %v1044_v20 = vpop.f32.mrb[19].mxu0 }
 0x1fa   :  { %v885_v21 = vadd.f32 %v1042_v18, %v1007_v16  ;;  %v1045_v22 = vadd.f32 %v1044_v20, %v1043_v19 }
 0x1fc   :  { %915 = vst [vmem:[%s1623_s5] sm:$0xff] %v885_v21  ;;  %v888_v23 = vadd.f32 %v1045_v22, %v1007_v16 }
 0x1fe   :  { %916 = vst [vmem:[%s1623_s5 + $0x8] sm:$0xff] %v888_v23  ;;  %v1046_v24 = vpop.f32.mrb[20].mxu0 }
 0x1ff   :  { %v1047_v25 = vpop.f32.mrb[21].mxu0 }
 0x200   :  { %v1048_v26 = vadd.f32 %v1047_v25, %v1046_v24  ;;  %v1049_v27 = vpop.f32.mrb[22].mxu0 }
 0x201   :  { %v1050_v28 = vpop.f32.mrb[23].mxu0 }
 0x202   :  { %v893_v29 = vadd.f32 %v1048_v26, %v1007_v16  ;;  %v1051_v30 = vadd.f32 %v1050_v28, %v1049_v27 }
 0x204   :  { %917 = vst [vmem:[%s1623_s5 + $0x10] sm:$0xff] %v893_v29  ;;  %v896_v31 = vadd.f32 %v1051_v30, %v1007_v16 }
 0x206   :  { %918 = vst [vmem:[%s1623_s5 + $0x18] sm:$0xff] %v896_v31  ;;  %v1052_v32 = vpop.f32.mrb[16].mxu1 }
 0x207   :  { %v1053_v33 = vpop.f32.mrb[17].mxu1 }
 0x208   :  { %v1054_v34 = vadd.f32 %v1053_v33, %v1052_v32  ;;  %v1055_v35 = vpop.f32.mrb[18].mxu1 }
 0x209   :  { %v1056_v36 = vpop.f32.mrb[19].mxu1 }
 0x20a   :  { %v901_v39 = vadd.f32 %v1054_v34, %v1007_v16  ;;  %v1057_v40 = vadd.f32 %v1056_v36, %v1055_v35 }
 0x20c   :  { %919 = vst [vmem:[%s1623_s5 + $0x20] sm:$0xff] %v901_v39  ;;  %v904_v41 = vadd.f32 %v1057_v40, %v1007_v16 }
 0x20e   :  { %920 = vst [vmem:[%s1623_s5 + $0x28] sm:$0xff] %v904_v41  ;;  %v1058_v42 = vpop.f32.mrb[20].mxu1 }
 0x20f   :  { %v1059_v43 = vpop.f32.mrb[21].mxu1 }
 0x210   :  { %v1060_v44 = vadd.f32 %v1059_v43, %v1058_v42  ;;  %v1061_v45 = vpop.f32.mrb[22].mxu1 }
 0x211   :  { %v1062_v46 = vpop.f32.mrb[23].mxu1 }
 0x212   :  { %v909_v47 = vadd.f32 %v1060_v44, %v1007_v16  ;;  %v1063_v48 = vadd.f32 %v1062_v46, %v1061_v45 }
 0x214   :  { %921 = vst [vmem:[%s1623_s5 + $0x30] sm:$0xff] %v909_v47  ;;  %v912_v49 = vadd.f32 %v1063_v48, %v1007_v16 }
 0x216   :  { %922 = vst [vmem:[%s1623_s5 + $0x38] sm:$0xff] %v912_v49 }

</bundles_post_ra>
